<compile_context>
chip_gen: v5e
topology: v5e:2x2
jax: 0.10.0
libtpu: 0.0.40
codegen_flags: <defaults>
</compile_context>

<pallas_src>
import numpy as np
import jax
import jax.numpy as jnp
from jax.experimental import pallas as pl
from jax.experimental.pallas import tpu as pltpu

BT = 4        # images per grid step (2 steps at batch 8 -> both v7x TCs get work)
LANES = 128   # lane-group width (one group per 2x2 pool position)


# ------------------------------ Pallas kernel --------------------------------

def _lenet_kernel(x_ref, w1_ref, b1_ref, w2_ref, b2_ref,
                  wf1_ref, bf1_ref, wf2_ref, bf2_ref, o_ref, a1_ref):
    """Full forward for BT images; every intermediate stays in VMEM.

    x_ref  : (BT, 28, 28) f32     input images
    w1_ref : (6, 28, 512) bf16    conv1 Toeplitz weight; 4 pool-position lane groups
    b1_ref : (1, 128)     f32     conv1 bias tiled at stride 10  (lane = wp*10 + c)
    w2_ref : (6, 128, 512) bf16   conv2 Toeplitz weight; 4 pool-position lane groups
    b2_ref : (1, 128)     f32     conv2 bias tiled at stride 20  (lane = wp*20 + co)
    wf1_ref: (4, 128, 128) bf16   fc1 weight split per pooled row hp2
    bf1_ref: (1, 128)     f32
    wf2_ref: (128, 128)   bf16
    bf2_ref: (1, 128)     f32     fc2 bias; padded logit lanes hold -1e30 sentinel
    o_ref  : (1, BT, 128) f32     log-probabilities (lanes 0..9 are the real classes)
    a1_ref : VMEM scratch (12, 128) f32   conv1 activation  [i1, j1*10 + ci]
    """
    rows = []
    for b in range(BT):
        xb = x_ref.at[b]                                         # (28, 28) ref view

        # ---- conv1 (1->10, k=5) + MaxPool2d(2) + ReLU ------------------------
        # Slab m holds input rows {2*hp + m}; one matmul per m emits all four
        # pool positions at once (lane groups of 128).
        z1 = jnp.zeros((12, 4 * LANES), jnp.float32)
        for m in range(6):
            s = xb[pl.ds(m, 12, stride=2), :].astype(jnp.bfloat16)      # (12, 28)
            z1 = z1 + jnp.dot(s, w1_ref[m], preferred_element_type=jnp.float32)
        zp = jnp.maximum(jnp.maximum(z1[:, 0:128], z1[:, 128:256]),
                         jnp.maximum(z1[:, 256:384], z1[:, 384:512]))
        a1_ref[...] = jnp.maximum(zp + b1_ref[...], 0.0)         # (12, 128)

        # ---- conv2 (10->20, k=5) + Dropout2d(eval: id) + MaxPool2d(2) + ReLU -
        z2 = jnp.zeros((4, 4 * LANES), jnp.float32)
        for m in range(6):
            s2 = a1_ref[pl.ds(m, 4, stride=2), :].astype(jnp.bfloat16)  # (4, 128)
            z2 = z2 + jnp.dot(s2, w2_ref[m], preferred_element_type=jnp.float32)
        zp2 = jnp.maximum(jnp.maximum(z2[:, 0:128], z2[:, 128:256]),
                          jnp.maximum(z2[:, 256:384], z2[:, 384:512]))
        a2 = jnp.maximum(zp2 + b2_ref[...], 0.0).astype(jnp.bfloat16)   # (4, 128)

        # ---- fc1 (320->50) + ReLU + Dropout(eval: id) -------------------------
        h = jnp.zeros((1, LANES), jnp.float32)
        for r in range(4):
            h = h + jnp.dot(a2[r:r + 1, :], wf1_ref[r],
                            preferred_element_type=jnp.float32)
        h = jnp.maximum(h + bf1_ref[...], 0.0).astype(jnp.bfloat16)     # (1, 128)

        # ---- fc2 (50->10) + LogSoftmax ----------------------------------------
        y = jnp.dot(h, wf2_ref[...], preferred_element_type=jnp.float32) + bf2_ref[...]
        mx = jnp.max(y, axis=-1, keepdims=True)
        lse = jnp.log(jnp.sum(jnp.exp(y - mx), axis=-1, keepdims=True))
        rows.append(y - mx - lse)                                       # (1, 128)

    o_ref[0] = jnp.concatenate(rows, axis=0)


# ------------------------------ forward wrapper -------------------------------

@jax.jit
def forward(packed, x):
    """x: (N, 1, 28, 28) float32 NCHW -> (N, 10) log-probabilities."""
    n = x.shape[0]
    n_pad = -(-n // BT) * BT
    xb = x.reshape(n, 28, 28)
    if n_pad != n:
        xb = jnp.pad(xb, ((0, n_pad - n), (0, 0), (0, 0)))
    steps = n_pad // BT

    # Real (unpadded) work estimate (advisory only).
    flops = n_pad * (2 * 24 * 24 * 25 * 10 + 2 * 8 * 8 * 250 * 20
                     + 2 * 320 * 50 + 2 * 50 * 10)
    w_bytes = 2 * (6 * 28 * 512 + 6 * 128 * 512 + 4 * 128 * 128 + 128 * 128) + 4 * 4 * 128
    cost = pl.CostEstimate(flops=flops, transcendentals=n_pad * 11,
                           bytes_accessed=n_pad * 28 * 28 * 4 + w_bytes + n_pad * 128 * 4)

    out = pl.pallas_call(
        _lenet_kernel,
        out_shape=jax.ShapeDtypeStruct((steps, BT, 128), jnp.float32),
        grid=(steps,),
        in_specs=[
            pl.BlockSpec((BT, 28, 28), lambda i: (i, 0, 0)),   # only per-step DMA
            pl.BlockSpec((6, 28, 512), lambda i: (0, 0, 0)),   # constant index_maps:
            pl.BlockSpec((1, 128), lambda i: (0, 0)),          # weights fetched once,
            pl.BlockSpec((6, 128, 512), lambda i: (0, 0, 0)),  # reused across steps
            pl.BlockSpec((1, 128), lambda i: (0, 0)),
            pl.BlockSpec((4, 128, 128), lambda i: (0, 0, 0)),
            pl.BlockSpec((1, 128), lambda i: (0, 0)),
            pl.BlockSpec((128, 128), lambda i: (0, 0)),
            pl.BlockSpec((1, 128), lambda i: (0, 0)),
        ],
        out_specs=pl.BlockSpec((1, BT, 128), lambda i: (i, 0, 0)),
        scratch_shapes=[pltpu.VMEM((12, 128), jnp.float32)],
        compiler_params=pltpu.CompilerParams(dimension_semantics=("parallel",)),
        cost_estimate=cost,
    )(xb, packed["w1"], packed["b1"], packed["w2"], packed["b2"],
      packed["wf1"], packed["bf1"], packed["wf2"], packed["bf2"])
    return out.reshape(n_pad, 128)[:n, :10]


# ------------------------------- parameters -----------------------------------

def init_params(key):
    def uniform(k, shape, fan_in):
        bound = 1.0 / (fan_in ** 0.5)
        return jax.random.uniform(k, shape, jnp.float32, -bound, bound)

    ks = jax.random.split(key, 8)
    return {
        "w_conv1": uniform(ks[0], (10, 1, 5, 5), 1 * 25),
        "b_conv1": uniform(ks[1], (10,), 1 * 25),
        "w_conv2": uniform(ks[2], (20, 10, 5, 5), 10 * 25),
        "b_conv2": uniform(ks[3], (20,), 10 * 25),
        "w_fc1": uniform(ks[4], (50, 320), 320),
        "b_fc1": uniform(ks[5], (50,), 320),
        "w_fc2": uniform(ks[6], (10, 50), 50),
        "b_fc2": uniform(ks[7], (10,), 50),
    }


def pack_params(p):
    """One-time host-side repack into Toeplitz / lane-grouped form (bf16 weights).

    Conv Toeplitz weights fold the kernel-width taps, the output channels and the
    horizontal pool offset into the matmul output lanes, and the kernel-height taps
    plus the vertical pool offset into the 6 row-slab matmuls accumulated in-kernel.
    Lane group g = dh*2 + dw (2x2 pool position), 128 lanes each.
    """
    w1 = np.asarray(p["w_conv1"], np.float32)
    b1 = np.asarray(p["b_conv1"], np.float32)
    w2 = np.asarray(p["w_conv2"], np.float32)
    b2 = np.asarray(p["b_conv2"], np.float32)
    wf1 = np.asarray(p["w_fc1"], np.float32)
    bf1 = np.asarray(p["b_fc1"], np.float32)
    wf2 = np.asarray(p["w_fc2"], np.float32)
    bf2 = np.asarray(p["b_fc2"], np.float32)

    # conv1: W1[m][p, g*128 + wp*10 + c] = w1[c,0,m-dh, p-2wp-dw]
    W1 = np.zeros((6, 28, 4 * LANES), np.float32)
    for g in range(4):
        dh, dw = g // 2, g % 2
        for m in range(6):
            kh = m - dh
            if not 0 <= kh <= 4:
                continue
            for wp in range(12):
                for kw in range(5):
                    pcol = 2 * wp + dw + kw
                    W1[m, pcol, g * 128 + wp * 10: g * 128 + wp * 10 + 10] = w1[:, 0, kh, kw]
    B1 = np.zeros((1, 128), np.float32)
    for wp in range(12):
        B1[0, wp * 10: wp * 10 + 10] = b1

    # conv2: W2[m][j1*10 + ci, g*128 + wp*20 + co] = w2[co,ci,m-dh, j1-2wp-dw]
    W2 = np.zeros((6, 128, 4 * LANES), np.float32)
    for g in range(4):
        dh, dw = g // 2, g % 2
        for m in range(6):
            kh = m - dh
            if not 0 <= kh <= 4:
                continue
            for wp in range(4):
                for kw in range(5):
                    j1 = 2 * wp + dw + kw
                    for ci in range(10):
                        W2[m, j1 * 10 + ci, g * 128 + wp * 20: g * 128 + wp * 20 + 20] = \
                            w2[:, ci, kh, kw]
    B2 = np.zeros((1, 128), np.float32)
    for wp in range(4):
        B2[0, wp * 20: wp * 20 + 20] = b2

    # fc1: absorbs torch's NCHW view(-1, 320) order (idx = co*16 + hp*4 + wp).
    WF1 = np.zeros((4, 128, 128), np.float32)
    for hp in range(4):
        for wp in range(4):
            for co in range(20):
                WF1[hp, wp * 20 + co, :50] = wf1[:, co * 16 + hp * 4 + wp]
    BF1 = np.zeros((1, 128), np.float32)
    BF1[0, :50] = bf1

    WF2 = np.zeros((128, 128), np.float32)
    WF2[:50, :10] = wf2.T
    # padded logit lanes get a huge negative bias so they are inert in the log-softmax
    # (kept in f32; would overflow if this row were ever cast to fp16/fp8).
    BF2 = np.full((1, 128), -1e30, np.float32)
    BF2[0, :10] = bf2

    return {"w1": jnp.asarray(W1, jnp.bfloat16), "b1": jnp.asarray(B1),
            "w2": jnp.asarray(W2, jnp.bfloat16), "b2": jnp.asarray(B2),
            "wf1": jnp.asarray(WF1, jnp.bfloat16), "bf1": jnp.asarray(BF1),
            "wf2": jnp.asarray(WF2, jnp.bfloat16), "bf2": jnp.asarray(BF2)}


# --------------------------- pure-JAX reference -------------------------------

def reference_forward(params, x):
    n = x.shape[0]

    def conv(inp, w, b):
        y = jax.lax.conv_general_dilated(
            inp, w, window_strides=(1, 1), padding="VALID",
            dimension_numbers=("NCHW", "OIHW", "NCHW"))
        return y + b[None, :, None, None]

    def maxpool2(y):
        return jax.lax.reduce_window(y, -jnp.inf, jax.lax.max,
                                     (1, 1, 2, 2), (1, 1, 2, 2), "VALID")

    y = jnp.maximum(maxpool2(conv(x, params["w_conv1"], params["b_conv1"])), 0.0)
    y = jnp.maximum(maxpool2(conv(y, params["w_conv2"], params["b_conv2"])), 0.0)
    flat = y.reshape(n, 320)
    h = jnp.maximum(flat @ params["w_fc1"].T + params["b_fc1"], 0.0)
    logits = h @ params["w_fc2"].T + params["b_fc2"]
    return jax.nn.log_softmax(logits, axis=1)


# ----------------------------------- main --------------------------------------

if __name__ == "__main__":
    key = jax.random.PRNGKey(0)
    k_params, k_x = jax.random.split(key)

    params = init_params(k_params)
    packed = pack_params(params)

    # MNIST-style input: batch=8, 1 channel, 28x28 (28x28 required by the 320-wide flatten).
    x = jax.random.normal(k_x, (8, 1, 28, 28), jnp.float32)

    out = jax.block_until_ready(forward(packed, x))
    assert out.shape == (8, 10) and out.dtype == jnp.float32

    ref = jax.block_until_ready(reference_forward(params, x))
    # bf16 matmul operands with f32 accumulation -> relaxed tolerance vs f32 reference.
    assert jnp.allclose(out, ref, atol=2e-2, rtol=2e-2), "Pallas output mismatch vs reference"

    print("KERNEL_OK")
</pallas_src>

<mosaic_0001>
module attributes {stable_mosaic.version = 11 : i64} {
  func.func @_lenet_kernel(%arg0: i32, %arg1: memref<4x28x28xf32, #tpu.memory_space<vmem>>, %arg2: memref<6x28x512xbf16, #tpu.memory_space<vmem>>, %arg3: memref<1x128xf32, #tpu.memory_space<vmem>>, %arg4: memref<6x128x512xbf16, #tpu.memory_space<vmem>>, %arg5: memref<1x128xf32, #tpu.memory_space<vmem>>, %arg6: memref<4x128x128xbf16, #tpu.memory_space<vmem>>, %arg7: memref<1x128xf32, #tpu.memory_space<vmem>>, %arg8: memref<128x128xbf16, #tpu.memory_space<vmem>>, %arg9: memref<1x128xf32, #tpu.memory_space<vmem>>, %arg10: memref<1x4x128xf32, #tpu.memory_space<vmem>>, %arg11: memref<12x128xf32, #tpu.memory_space<vmem>>) attributes {dimension_semantics = [#tpu.dimension_semantics<parallel>], iteration_bounds = array<i64: 2>, scalar_prefetch = 0 : i64, scratch_operands = 1 : i64, tpu.core_type = #tpu.core_type<tc>, window_params = [{transform_indices = @transform_0, window_bounds = array<i64: 4, 28, 28>}, {pipeline_mode = #tpu.pipeline_mode<synchronous>, transform_indices = @transform_1, window_bounds = array<i64: 6, 28, 512>}, {pipeline_mode = #tpu.pipeline_mode<synchronous>, transform_indices = @transform_2, window_bounds = array<i64: 1, 128>}, {pipeline_mode = #tpu.pipeline_mode<synchronous>, transform_indices = @transform_3, window_bounds = array<i64: 6, 128, 512>}, {pipeline_mode = #tpu.pipeline_mode<synchronous>, transform_indices = @transform_4, window_bounds = array<i64: 1, 128>}, {pipeline_mode = #tpu.pipeline_mode<synchronous>, transform_indices = @transform_5, window_bounds = array<i64: 4, 128, 128>}, {pipeline_mode = #tpu.pipeline_mode<synchronous>, transform_indices = @transform_6, window_bounds = array<i64: 1, 128>}, {pipeline_mode = #tpu.pipeline_mode<synchronous>, transform_indices = @transform_7, window_bounds = array<i64: 128, 128>}, {pipeline_mode = #tpu.pipeline_mode<synchronous>, transform_indices = @transform_8, window_bounds = array<i64: 1, 128>}, {transform_indices = @transform_9, window_bounds = array<i64: 1, 4, 128>}]} {
    %cst = arith.constant 0.000000e+00 : f32
    %0 = vector.broadcast %cst : f32 to vector<12x512xf32>
    %c0_i32 = arith.constant 0 : i32
    %c0_i32_0 = arith.constant 0 : i32
    %c0_i32_1 = arith.constant 0 : i32
    %1 = tpu.memref_slice %arg1[%c0_i32, %c0_i32_0, %c0_i32_1] : memref<4x28x28xf32, #tpu.memory_space<vmem>> -> memref<1x28x28xf32, #tpu.memory_space<vmem>>
    %2 = tpu.memref_squeeze %1 : memref<1x28x28xf32, #tpu.memory_space<vmem>> -> memref<28x28xf32, #tpu.memory_space<vmem>>
    %c0 = arith.constant 0 : index
    %c0_2 = arith.constant 0 : index
    %3 = tpu.strided_load %2[%c0, %c0_2] {strides = array<i32: 2, 1>} : memref<28x28xf32, #tpu.memory_space<vmem>>, vector<12x28xf32>
    %4 = arith.truncf %3 : vector<12x28xf32> to vector<12x28xbf16>
    %c0_3 = arith.constant 0 : index
    %c0_4 = arith.constant 0 : index
    %c0_5 = arith.constant 0 : index
    %5 = vector.load %arg2[%c0_3, %c0_4, %c0_5] : memref<6x28x512xbf16, #tpu.memory_space<vmem>>, vector<1x28x512xbf16>
    %6 = vector.shape_cast %5 : vector<1x28x512xbf16> to vector<28x512xbf16>
    %cst_6 = arith.constant dense<0.000000e+00> : vector<12x512xf32>
    %7 = tpu.matmul %4, %6, %cst_6 {dimension_numbers = #tpu.dot_dimension_numbers<[1], [0], [0], [1], [0, 0, 1, 1], [], []>} : vector<12x28xbf16>, vector<28x512xbf16>, vector<12x512xf32> -> vector<12x512xf32>
    %8 = arith.addf %0, %7 : vector<12x512xf32>
    %c0_i32_7 = arith.constant 0 : i32
    %c0_i32_8 = arith.constant 0 : i32
    %c0_i32_9 = arith.constant 0 : i32
    %9 = tpu.memref_slice %arg1[%c0_i32_7, %c0_i32_8, %c0_i32_9] : memref<4x28x28xf32, #tpu.memory_space<vmem>> -> memref<1x28x28xf32, #tpu.memory_space<vmem>>
    %10 = tpu.memref_squeeze %9 : memref<1x28x28xf32, #tpu.memory_space<vmem>> -> memref<28x28xf32, #tpu.memory_space<vmem>>
    %c1 = arith.constant 1 : index
    %c0_10 = arith.constant 0 : index
    %11 = tpu.strided_load %10[%c1, %c0_10] {strides = array<i32: 2, 1>} : memref<28x28xf32, #tpu.memory_space<vmem>>, vector<12x28xf32>
    %12 = arith.truncf %11 : vector<12x28xf32> to vector<12x28xbf16>
    %c1_11 = arith.constant 1 : index
    %c0_12 = arith.constant 0 : index
    %c0_13 = arith.constant 0 : index
    %13 = vector.load %arg2[%c1_11, %c0_12, %c0_13] : memref<6x28x512xbf16, #tpu.memory_space<vmem>>, vector<1x28x512xbf16>
    %14 = vector.shape_cast %13 : vector<1x28x512xbf16> to vector<28x512xbf16>
    %cst_14 = arith.constant dense<0.000000e+00> : vector<12x512xf32>
    %15 = tpu.matmul %12, %14, %cst_14 {dimension_numbers = #tpu.dot_dimension_numbers<[1], [0], [0], [1], [0, 0, 1, 1], [], []>} : vector<12x28xbf16>, vector<28x512xbf16>, vector<12x512xf32> -> vector<12x512xf32>
    %16 = arith.addf %8, %15 : vector<12x512xf32>
    %c0_i32_15 = arith.constant 0 : i32
    %c0_i32_16 = arith.constant 0 : i32
    %c0_i32_17 = arith.constant 0 : i32
    %17 = tpu.memref_slice %arg1[%c0_i32_15, %c0_i32_16, %c0_i32_17] : memref<4x28x28xf32, #tpu.memory_space<vmem>> -> memref<1x28x28xf32, #tpu.memory_space<vmem>>
    %18 = tpu.memref_squeeze %17 : memref<1x28x28xf32, #tpu.memory_space<vmem>> -> memref<28x28xf32, #tpu.memory_space<vmem>>
    %c2 = arith.constant 2 : index
    %c0_18 = arith.constant 0 : index
    %19 = tpu.strided_load %18[%c2, %c0_18] {strides = array<i32: 2, 1>} : memref<28x28xf32, #tpu.memory_space<vmem>>, vector<12x28xf32>
    %20 = arith.truncf %19 : vector<12x28xf32> to vector<12x28xbf16>
    %c2_19 = arith.constant 2 : index
    %c0_20 = arith.constant 0 : index
    %c0_21 = arith.constant 0 : index
    %21 = vector.load %arg2[%c2_19, %c0_20, %c0_21] : memref<6x28x512xbf16, #tpu.memory_space<vmem>>, vector<1x28x512xbf16>
    %22 = vector.shape_cast %21 : vector<1x28x512xbf16> to vector<28x512xbf16>
    %cst_22 = arith.constant dense<0.000000e+00> : vector<12x512xf32>
    %23 = tpu.matmul %20, %22, %cst_22 {dimension_numbers = #tpu.dot_dimension_numbers<[1], [0], [0], [1], [0, 0, 1, 1], [], []>} : vector<12x28xbf16>, vector<28x512xbf16>, vector<12x512xf32> -> vector<12x512xf32>
    %24 = arith.addf %16, %23 : vector<12x512xf32>
    %c0_i32_23 = arith.constant 0 : i32
    %c0_i32_24 = arith.constant 0 : i32
    %c0_i32_25 = arith.constant 0 : i32
    %25 = tpu.memref_slice %arg1[%c0_i32_23, %c0_i32_24, %c0_i32_25] : memref<4x28x28xf32, #tpu.memory_space<vmem>> -> memref<1x28x28xf32, #tpu.memory_space<vmem>>
    %26 = tpu.memref_squeeze %25 : memref<1x28x28xf32, #tpu.memory_space<vmem>> -> memref<28x28xf32, #tpu.memory_space<vmem>>
    %c3 = arith.constant 3 : index
    %c0_26 = arith.constant 0 : index
    %27 = tpu.strided_load %26[%c3, %c0_26] {strides = array<i32: 2, 1>} : memref<28x28xf32, #tpu.memory_space<vmem>>, vector<12x28xf32>
    %28 = arith.truncf %27 : vector<12x28xf32> to vector<12x28xbf16>
    %c3_27 = arith.constant 3 : index
    %c0_28 = arith.constant 0 : index
    %c0_29 = arith.constant 0 : index
    %29 = vector.load %arg2[%c3_27, %c0_28, %c0_29] : memref<6x28x512xbf16, #tpu.memory_space<vmem>>, vector<1x28x512xbf16>
    %30 = vector.shape_cast %29 : vector<1x28x512xbf16> to vector<28x512xbf16>
    %cst_30 = arith.constant dense<0.000000e+00> : vector<12x512xf32>
    %31 = tpu.matmul %28, %30, %cst_30 {dimension_numbers = #tpu.dot_dimension_numbers<[1], [0], [0], [1], [0, 0, 1, 1], [], []>} : vector<12x28xbf16>, vector<28x512xbf16>, vector<12x512xf32> -> vector<12x512xf32>
    %32 = arith.addf %24, %31 : vector<12x512xf32>
    %c0_i32_31 = arith.constant 0 : i32
    %c0_i32_32 = arith.constant 0 : i32
    %c0_i32_33 = arith.constant 0 : i32
    %33 = tpu.memref_slice %arg1[%c0_i32_31, %c0_i32_32, %c0_i32_33] : memref<4x28x28xf32, #tpu.memory_space<vmem>> -> memref<1x28x28xf32, #tpu.memory_space<vmem>>
    %34 = tpu.memref_squeeze %33 : memref<1x28x28xf32, #tpu.memory_space<vmem>> -> memref<28x28xf32, #tpu.memory_space<vmem>>
    %c4 = arith.constant 4 : index
    %c0_34 = arith.constant 0 : index
    %35 = tpu.strided_load %34[%c4, %c0_34] {strides = array<i32: 2, 1>} : memref<28x28xf32, #tpu.memory_space<vmem>>, vector<12x28xf32>
    %36 = arith.truncf %35 : vector<12x28xf32> to vector<12x28xbf16>
    %c4_35 = arith.constant 4 : index
    %c0_36 = arith.constant 0 : index
    %c0_37 = arith.constant 0 : index
    %37 = vector.load %arg2[%c4_35, %c0_36, %c0_37] : memref<6x28x512xbf16, #tpu.memory_space<vmem>>, vector<1x28x512xbf16>
    %38 = vector.shape_cast %37 : vector<1x28x512xbf16> to vector<28x512xbf16>
    %cst_38 = arith.constant dense<0.000000e+00> : vector<12x512xf32>
    %39 = tpu.matmul %36, %38, %cst_38 {dimension_numbers = #tpu.dot_dimension_numbers<[1], [0], [0], [1], [0, 0, 1, 1], [], []>} : vector<12x28xbf16>, vector<28x512xbf16>, vector<12x512xf32> -> vector<12x512xf32>
    %40 = arith.addf %32, %39 : vector<12x512xf32>
    %c0_i32_39 = arith.constant 0 : i32
    %c0_i32_40 = arith.constant 0 : i32
    %c0_i32_41 = arith.constant 0 : i32
    %41 = tpu.memref_slice %arg1[%c0_i32_39, %c0_i32_40, %c0_i32_41] : memref<4x28x28xf32, #tpu.memory_space<vmem>> -> memref<1x28x28xf32, #tpu.memory_space<vmem>>
    %42 = tpu.memref_squeeze %41 : memref<1x28x28xf32, #tpu.memory_space<vmem>> -> memref<28x28xf32, #tpu.memory_space<vmem>>
    %c5 = arith.constant 5 : index
    %c0_42 = arith.constant 0 : index
    %43 = tpu.strided_load %42[%c5, %c0_42] {strides = array<i32: 2, 1>} : memref<28x28xf32, #tpu.memory_space<vmem>>, vector<12x28xf32>
    %44 = arith.truncf %43 : vector<12x28xf32> to vector<12x28xbf16>
    %c5_43 = arith.constant 5 : index
    %c0_44 = arith.constant 0 : index
    %c0_45 = arith.constant 0 : index
    %45 = vector.load %arg2[%c5_43, %c0_44, %c0_45] : memref<6x28x512xbf16, #tpu.memory_space<vmem>>, vector<1x28x512xbf16>
    %46 = vector.shape_cast %45 : vector<1x28x512xbf16> to vector<28x512xbf16>
    %cst_46 = arith.constant dense<0.000000e+00> : vector<12x512xf32>
    %47 = tpu.matmul %44, %46, %cst_46 {dimension_numbers = #tpu.dot_dimension_numbers<[1], [0], [0], [1], [0, 0, 1, 1], [], []>} : vector<12x28xbf16>, vector<28x512xbf16>, vector<12x512xf32> -> vector<12x512xf32>
    %48 = arith.addf %40, %47 : vector<12x512xf32>
    %49 = vector.extract_strided_slice %48 {offsets = [0, 0], sizes = [12, 128], strides = [1, 1]} : vector<12x512xf32> to vector<12x128xf32>
    %50 = vector.extract_strided_slice %48 {offsets = [0, 128], sizes = [12, 128], strides = [1, 1]} : vector<12x512xf32> to vector<12x128xf32>
    %51 = arith.maximumf %49, %50 : vector<12x128xf32>
    %52 = vector.extract_strided_slice %48 {offsets = [0, 256], sizes = [12, 128], strides = [1, 1]} : vector<12x512xf32> to vector<12x128xf32>
    %53 = vector.extract_strided_slice %48 {offsets = [0, 384], sizes = [12, 128], strides = [1, 1]} : vector<12x512xf32> to vector<12x128xf32>
    %54 = arith.maximumf %52, %53 : vector<12x128xf32>
    %55 = arith.maximumf %51, %54 : vector<12x128xf32>
    %c0_47 = arith.constant 0 : index
    %c0_48 = arith.constant 0 : index
    %56 = vector.load %arg3[%c0_47, %c0_48] : memref<1x128xf32, #tpu.memory_space<vmem>>, vector<1x128xf32>
    %57 = vector.broadcast %56 : vector<1x128xf32> to vector<12x128xf32>
    %58 = arith.addf %55, %57 : vector<12x128xf32>
    %cst_49 = arith.constant 0.000000e+00 : f32
    %59 = vector.broadcast %cst_49 : f32 to vector<12x128xf32>
    %60 = arith.maximumf %58, %59 : vector<12x128xf32>
    %c0_50 = arith.constant 0 : index
    %c0_51 = arith.constant 0 : index
    %61 = vector.load %arg11[%c0_50, %c0_51] : memref<12x128xf32, #tpu.memory_space<vmem>>, vector<12x128xf32>
    tpu.vector_store %arg11[%c0_50, %c0_51], %60 {strides = array<i32>} : memref<12x128xf32, #tpu.memory_space<vmem>>, vector<12x128xf32>,
    %cst_52 = arith.constant 0.000000e+00 : f32
    %62 = vector.broadcast %cst_52 : f32 to vector<4x512xf32>
    %c0_53 = arith.constant 0 : index
    %c0_54 = arith.constant 0 : index
    %63 = tpu.strided_load %arg11[%c0_53, %c0_54] {strides = array<i32: 2, 1>} : memref<12x128xf32, #tpu.memory_space<vmem>>, vector<4x128xf32>
    %64 = arith.truncf %63 : vector<4x128xf32> to vector<4x128xbf16>
    %c0_55 = arith.constant 0 : index
    %c0_56 = arith.constant 0 : index
    %c0_57 = arith.constant 0 : index
    %65 = vector.load %arg4[%c0_55, %c0_56, %c0_57] : memref<6x128x512xbf16, #tpu.memory_space<vmem>>, vector<1x128x512xbf16>
    %66 = vector.shape_cast %65 : vector<1x128x512xbf16> to vector<128x512xbf16>
    %cst_58 = arith.constant dense<0.000000e+00> : vector<4x512xf32>
    %67 = tpu.matmul %64, %66, %cst_58 {dimension_numbers = #tpu.dot_dimension_numbers<[1], [0], [0], [1], [0, 0, 1, 1], [], []>} : vector<4x128xbf16>, vector<128x512xbf16>, vector<4x512xf32> -> vector<4x512xf32>
    %68 = arith.addf %62, %67 : vector<4x512xf32>
    %c1_59 = arith.constant 1 : index
    %c0_60 = arith.constant 0 : index
    %69 = tpu.strided_load %arg11[%c1_59, %c0_60] {strides = array<i32: 2, 1>} : memref<12x128xf32, #tpu.memory_space<vmem>>, vector<4x128xf32>
    %70 = arith.truncf %69 : vector<4x128xf32> to vector<4x128xbf16>
    %c1_61 = arith.constant 1 : index
    %c0_62 = arith.constant 0 : index
    %c0_63 = arith.constant 0 : index
    %71 = vector.load %arg4[%c1_61, %c0_62, %c0_63] : memref<6x128x512xbf16, #tpu.memory_space<vmem>>, vector<1x128x512xbf16>
    %72 = vector.shape_cast %71 : vector<1x128x512xbf16> to vector<128x512xbf16>
    %cst_64 = arith.constant dense<0.000000e+00> : vector<4x512xf32>
    %73 = tpu.matmul %70, %72, %cst_64 {dimension_numbers = #tpu.dot_dimension_numbers<[1], [0], [0], [1], [0, 0, 1, 1], [], []>} : vector<4x128xbf16>, vector<128x512xbf16>, vector<4x512xf32> -> vector<4x512xf32>
    %74 = arith.addf %68, %73 : vector<4x512xf32>
    %c2_65 = arith.constant 2 : index
    %c0_66 = arith.constant 0 : index
    %75 = tpu.strided_load %arg11[%c2_65, %c0_66] {strides = array<i32: 2, 1>} : memref<12x128xf32, #tpu.memory_space<vmem>>, vector<4x128xf32>
    %76 = arith.truncf %75 : vector<4x128xf32> to vector<4x128xbf16>
    %c2_67 = arith.constant 2 : index
    %c0_68 = arith.constant 0 : index
    %c0_69 = arith.constant 0 : index
    %77 = vector.load %arg4[%c2_67, %c0_68, %c0_69] : memref<6x128x512xbf16, #tpu.memory_space<vmem>>, vector<1x128x512xbf16>
    %78 = vector.shape_cast %77 : vector<1x128x512xbf16> to vector<128x512xbf16>
    %cst_70 = arith.constant dense<0.000000e+00> : vector<4x512xf32>
    %79 = tpu.matmul %76, %78, %cst_70 {dimension_numbers = #tpu.dot_dimension_numbers<[1], [0], [0], [1], [0, 0, 1, 1], [], []>} : vector<4x128xbf16>, vector<128x512xbf16>, vector<4x512xf32> -> vector<4x512xf32>
    %80 = arith.addf %74, %79 : vector<4x512xf32>
    %c3_71 = arith.constant 3 : index
    %c0_72 = arith.constant 0 : index
    %81 = tpu.strided_load %arg11[%c3_71, %c0_72] {strides = array<i32: 2, 1>} : memref<12x128xf32, #tpu.memory_space<vmem>>, vector<4x128xf32>
    %82 = arith.truncf %81 : vector<4x128xf32> to vector<4x128xbf16>
    %c3_73 = arith.constant 3 : index
    %c0_74 = arith.constant 0 : index
    %c0_75 = arith.constant 0 : index
    %83 = vector.load %arg4[%c3_73, %c0_74, %c0_75] : memref<6x128x512xbf16, #tpu.memory_space<vmem>>, vector<1x128x512xbf16>
    %84 = vector.shape_cast %83 : vector<1x128x512xbf16> to vector<128x512xbf16>
    %cst_76 = arith.constant dense<0.000000e+00> : vector<4x512xf32>
    %85 = tpu.matmul %82, %84, %cst_76 {dimension_numbers = #tpu.dot_dimension_numbers<[1], [0], [0], [1], [0, 0, 1, 1], [], []>} : vector<4x128xbf16>, vector<128x512xbf16>, vector<4x512xf32> -> vector<4x512xf32>
    %86 = arith.addf %80, %85 : vector<4x512xf32>
    %c4_77 = arith.constant 4 : index
    %c0_78 = arith.constant 0 : index
    %87 = tpu.strided_load %arg11[%c4_77, %c0_78] {strides = array<i32: 2, 1>} : memref<12x128xf32, #tpu.memory_space<vmem>>, vector<4x128xf32>
    %88 = arith.truncf %87 : vector<4x128xf32> to vector<4x128xbf16>
    %c4_79 = arith.constant 4 : index
    %c0_80 = arith.constant 0 : index
    %c0_81 = arith.constant 0 : index
    %89 = vector.load %arg4[%c4_79, %c0_80, %c0_81] : memref<6x128x512xbf16, #tpu.memory_space<vmem>>, vector<1x128x512xbf16>
    %90 = vector.shape_cast %89 : vector<1x128x512xbf16> to vector<128x512xbf16>
    %cst_82 = arith.constant dense<0.000000e+00> : vector<4x512xf32>
    %91 = tpu.matmul %88, %90, %cst_82 {dimension_numbers = #tpu.dot_dimension_numbers<[1], [0], [0], [1], [0, 0, 1, 1], [], []>} : vector<4x128xbf16>, vector<128x512xbf16>, vector<4x512xf32> -> vector<4x512xf32>
    %92 = arith.addf %86, %91 : vector<4x512xf32>
    %c5_83 = arith.constant 5 : index
    %c0_84 = arith.constant 0 : index
    %93 = tpu.strided_load %arg11[%c5_83, %c0_84] {strides = array<i32: 2, 1>} : memref<12x128xf32, #tpu.memory_space<vmem>>, vector<4x128xf32>
    %94 = arith.truncf %93 : vector<4x128xf32> to vector<4x128xbf16>
    %c5_85 = arith.constant 5 : index
    %c0_86 = arith.constant 0 : index
    %c0_87 = arith.constant 0 : index
    %95 = vector.load %arg4[%c5_85, %c0_86, %c0_87] : memref<6x128x512xbf16, #tpu.memory_space<vmem>>, vector<1x128x512xbf16>
    %96 = vector.shape_cast %95 : vector<1x128x512xbf16> to vector<128x512xbf16>
    %cst_88 = arith.constant dense<0.000000e+00> : vector<4x512xf32>
    %97 = tpu.matmul %94, %96, %cst_88 {dimension_numbers = #tpu.dot_dimension_numbers<[1], [0], [0], [1], [0, 0, 1, 1], [], []>} : vector<4x128xbf16>, vector<128x512xbf16>, vector<4x512xf32> -> vector<4x512xf32>
    %98 = arith.addf %92, %97 : vector<4x512xf32>
    %99 = vector.extract_strided_slice %98 {offsets = [0, 0], sizes = [4, 128], strides = [1, 1]} : vector<4x512xf32> to vector<4x128xf32>
    %100 = vector.extract_strided_slice %98 {offsets = [0, 128], sizes = [4, 128], strides = [1, 1]} : vector<4x512xf32> to vector<4x128xf32>
    %101 = arith.maximumf %99, %100 : vector<4x128xf32>
    %102 = vector.extract_strided_slice %98 {offsets = [0, 256], sizes = [4, 128], strides = [1, 1]} : vector<4x512xf32> to vector<4x128xf32>
    %103 = vector.extract_strided_slice %98 {offsets = [0, 384], sizes = [4, 128], strides = [1, 1]} : vector<4x512xf32> to vector<4x128xf32>
    %104 = arith.maximumf %102, %103 : vector<4x128xf32>
    %105 = arith.maximumf %101, %104 : vector<4x128xf32>
    %c0_89 = arith.constant 0 : index
    %c0_90 = arith.constant 0 : index
    %106 = vector.load %arg5[%c0_89, %c0_90] : memref<1x128xf32, #tpu.memory_space<vmem>>, vector<1x128xf32>
    %107 = vector.broadcast %106 : vector<1x128xf32> to vector<4x128xf32>
    %108 = arith.addf %105, %107 : vector<4x128xf32>
    %cst_91 = arith.constant 0.000000e+00 : f32
    %109 = vector.broadcast %cst_91 : f32 to vector<4x128xf32>
    %110 = arith.maximumf %108, %109 : vector<4x128xf32>
    %111 = arith.truncf %110 : vector<4x128xf32> to vector<4x128xbf16>
    %cst_92 = arith.constant 0.000000e+00 : f32
    %112 = vector.broadcast %cst_92 : f32 to vector<1x128xf32>
    %113 = vector.extract_strided_slice %111 {offsets = [0, 0], sizes = [1, 128], strides = [1, 1]} : vector<4x128xbf16> to vector<1x128xbf16>
    %c0_93 = arith.constant 0 : index
    %c0_94 = arith.constant 0 : index
    %c0_95 = arith.constant 0 : index
    %114 = vector.load %arg6[%c0_93, %c0_94, %c0_95] : memref<4x128x128xbf16, #tpu.memory_space<vmem>>, vector<1x128x128xbf16>
    %115 = vector.shape_cast %114 : vector<1x128x128xbf16> to vector<128x128xbf16>
    %cst_96 = arith.constant dense<0.000000e+00> : vector<1x128xf32>
    %116 = tpu.matmul %113, %115, %cst_96 {dimension_numbers = #tpu.dot_dimension_numbers<[1], [0], [0], [1], [0, 0, 1, 1], [], []>} : vector<1x128xbf16>, vector<128x128xbf16>, vector<1x128xf32> -> vector<1x128xf32>
    %117 = arith.addf %112, %116 : vector<1x128xf32>
    %118 = vector.extract_strided_slice %111 {offsets = [1, 0], sizes = [1, 128], strides = [1, 1]} : vector<4x128xbf16> to vector<1x128xbf16>
    %c1_97 = arith.constant 1 : index
    %c0_98 = arith.constant 0 : index
    %c0_99 = arith.constant 0 : index
    %119 = vector.load %arg6[%c1_97, %c0_98, %c0_99] : memref<4x128x128xbf16, #tpu.memory_space<vmem>>, vector<1x128x128xbf16>
    %120 = vector.shape_cast %119 : vector<1x128x128xbf16> to vector<128x128xbf16>
    %cst_100 = arith.constant dense<0.000000e+00> : vector<1x128xf32>
    %121 = tpu.matmul %118, %120, %cst_100 {dimension_numbers = #tpu.dot_dimension_numbers<[1], [0], [0], [1], [0, 0, 1, 1], [], []>} : vector<1x128xbf16>, vector<128x128xbf16>, vector<1x128xf32> -> vector<1x128xf32>
    %122 = arith.addf %117, %121 : vector<1x128xf32>
    %123 = vector.extract_strided_slice %111 {offsets = [2, 0], sizes = [1, 128], strides = [1, 1]} : vector<4x128xbf16> to vector<1x128xbf16>
    %c2_101 = arith.constant 2 : index
    %c0_102 = arith.constant 0 : index
    %c0_103 = arith.constant 0 : index
    %124 = vector.load %arg6[%c2_101, %c0_102, %c0_103] : memref<4x128x128xbf16, #tpu.memory_space<vmem>>, vector<1x128x128xbf16>
    %125 = vector.shape_cast %124 : vector<1x128x128xbf16> to vector<128x128xbf16>
    %cst_104 = arith.constant dense<0.000000e+00> : vector<1x128xf32>
    %126 = tpu.matmul %123, %125, %cst_104 {dimension_numbers = #tpu.dot_dimension_numbers<[1], [0], [0], [1], [0, 0, 1, 1], [], []>} : vector<1x128xbf16>, vector<128x128xbf16>, vector<1x128xf32> -> vector<1x128xf32>
    %127 = arith.addf %122, %126 : vector<1x128xf32>
    %128 = vector.extract_strided_slice %111 {offsets = [3, 0], sizes = [1, 128], strides = [1, 1]} : vector<4x128xbf16> to vector<1x128xbf16>
    %c3_105 = arith.constant 3 : index
    %c0_106 = arith.constant 0 : index
    %c0_107 = arith.constant 0 : index
    %129 = vector.load %arg6[%c3_105, %c0_106, %c0_107] : memref<4x128x128xbf16, #tpu.memory_space<vmem>>, vector<1x128x128xbf16>
    %130 = vector.shape_cast %129 : vector<1x128x128xbf16> to vector<128x128xbf16>
    %cst_108 = arith.constant dense<0.000000e+00> : vector<1x128xf32>
    %131 = tpu.matmul %128, %130, %cst_108 {dimension_numbers = #tpu.dot_dimension_numbers<[1], [0], [0], [1], [0, 0, 1, 1], [], []>} : vector<1x128xbf16>, vector<128x128xbf16>, vector<1x128xf32> -> vector<1x128xf32>
    %132 = arith.addf %127, %131 : vector<1x128xf32>
    %c0_109 = arith.constant 0 : index
    %c0_110 = arith.constant 0 : index
    %133 = vector.load %arg7[%c0_109, %c0_110] : memref<1x128xf32, #tpu.memory_space<vmem>>, vector<1x128xf32>
    %134 = arith.addf %132, %133 : vector<1x128xf32>
    %cst_111 = arith.constant 0.000000e+00 : f32
    %135 = vector.broadcast %cst_111 : f32 to vector<1x128xf32>
    %136 = arith.maximumf %134, %135 : vector<1x128xf32>
    %137 = arith.truncf %136 : vector<1x128xf32> to vector<1x128xbf16>
    %c0_112 = arith.constant 0 : index
    %c0_113 = arith.constant 0 : index
    %138 = vector.load %arg8[%c0_112, %c0_113] : memref<128x128xbf16, #tpu.memory_space<vmem>>, vector<128x128xbf16>
    %cst_114 = arith.constant dense<0.000000e+00> : vector<1x128xf32>
    %139 = tpu.matmul %137, %138, %cst_114 {dimension_numbers = #tpu.dot_dimension_numbers<[1], [0], [0], [1], [0, 0, 1, 1], [], []>} : vector<1x128xbf16>, vector<128x128xbf16>, vector<1x128xf32> -> vector<1x128xf32>
    %c0_115 = arith.constant 0 : index
    %c0_116 = arith.constant 0 : index
    %140 = vector.load %arg9[%c0_115, %c0_116] : memref<1x128xf32, #tpu.memory_space<vmem>>, vector<1x128xf32>
    %141 = arith.addf %139, %140 : vector<1x128xf32>
    %cst_117 = arith.constant dense<0xFF800000> : vector<1xf32>
    %142 = vector.multi_reduction <maximumf>, %141, %cst_117 [1] : vector<1x128xf32> to vector<1xf32>
    %143 = vector.shape_cast %142 : vector<1xf32> to vector<1x1xf32>
    %144 = vector.broadcast %143 : vector<1x1xf32> to vector<1x128xf32>
    %145 = arith.subf %141, %144 : vector<1x128xf32>
    %146 = math.exp %145 : vector<1x128xf32>
    %cst_118 = arith.constant dense<0.000000e+00> : vector<1xf32>
    %147 = vector.multi_reduction <add>, %146, %cst_118 [1] : vector<1x128xf32> to vector<1xf32>
    %148 = vector.shape_cast %147 : vector<1xf32> to vector<1x1xf32>
    %149 = math.log %148 : vector<1x1xf32>
    %150 = vector.broadcast %143 : vector<1x1xf32> to vector<1x128xf32>
    %151 = arith.subf %141, %150 : vector<1x128xf32>
    %152 = vector.broadcast %149 : vector<1x1xf32> to vector<1x128xf32>
    %153 = arith.subf %151, %152 : vector<1x128xf32>
    %cst_119 = arith.constant 0.000000e+00 : f32
    %154 = vector.broadcast %cst_119 : f32 to vector<12x512xf32>
    %c1_i32 = arith.constant 1 : i32
    %c0_i32_120 = arith.constant 0 : i32
    %c0_i32_121 = arith.constant 0 : i32
    %155 = tpu.memref_slice %arg1[%c1_i32, %c0_i32_120, %c0_i32_121] : memref<4x28x28xf32, #tpu.memory_space<vmem>> -> memref<1x28x28xf32, #tpu.memory_space<vmem>>
    %156 = tpu.memref_squeeze %155 : memref<1x28x28xf32, #tpu.memory_space<vmem>> -> memref<28x28xf32, #tpu.memory_space<vmem>>
    %c0_122 = arith.constant 0 : index
    %c0_123 = arith.constant 0 : index
    %157 = tpu.strided_load %156[%c0_122, %c0_123] {strides = array<i32: 2, 1>} : memref<28x28xf32, #tpu.memory_space<vmem>>, vector<12x28xf32>
    %158 = arith.truncf %157 : vector<12x28xf32> to vector<12x28xbf16>
    %c0_124 = arith.constant 0 : index
    %c0_125 = arith.constant 0 : index
    %c0_126 = arith.constant 0 : index
    %159 = vector.load %arg2[%c0_124, %c0_125, %c0_126] : memref<6x28x512xbf16, #tpu.memory_space<vmem>>, vector<1x28x512xbf16>
    %160 = vector.shape_cast %159 : vector<1x28x512xbf16> to vector<28x512xbf16>
    %cst_127 = arith.constant dense<0.000000e+00> : vector<12x512xf32>
    %161 = tpu.matmul %158, %160, %cst_127 {dimension_numbers = #tpu.dot_dimension_numbers<[1], [0], [0], [1], [0, 0, 1, 1], [], []>} : vector<12x28xbf16>, vector<28x512xbf16>, vector<12x512xf32> -> vector<12x512xf32>
    %162 = arith.addf %154, %161 : vector<12x512xf32>
    %c1_i32_128 = arith.constant 1 : i32
    %c0_i32_129 = arith.constant 0 : i32
    %c0_i32_130 = arith.constant 0 : i32
    %163 = tpu.memref_slice %arg1[%c1_i32_128, %c0_i32_129, %c0_i32_130] : memref<4x28x28xf32, #tpu.memory_space<vmem>> -> memref<1x28x28xf32, #tpu.memory_space<vmem>>
    %164 = tpu.memref_squeeze %163 : memref<1x28x28xf32, #tpu.memory_space<vmem>> -> memref<28x28xf32, #tpu.memory_space<vmem>>
    %c1_131 = arith.constant 1 : index
    %c0_132 = arith.constant 0 : index
    %165 = tpu.strided_load %164[%c1_131, %c0_132] {strides = array<i32: 2, 1>} : memref<28x28xf32, #tpu.memory_space<vmem>>, vector<12x28xf32>
    %166 = arith.truncf %165 : vector<12x28xf32> to vector<12x28xbf16>
    %c1_133 = arith.constant 1 : index
    %c0_134 = arith.constant 0 : index
    %c0_135 = arith.constant 0 : index
    %167 = vector.load %arg2[%c1_133, %c0_134, %c0_135] : memref<6x28x512xbf16, #tpu.memory_space<vmem>>, vector<1x28x512xbf16>
    %168 = vector.shape_cast %167 : vector<1x28x512xbf16> to vector<28x512xbf16>
    %cst_136 = arith.constant dense<0.000000e+00> : vector<12x512xf32>
    %169 = tpu.matmul %166, %168, %cst_136 {dimension_numbers = #tpu.dot_dimension_numbers<[1], [0], [0], [1], [0, 0, 1, 1], [], []>} : vector<12x28xbf16>, vector<28x512xbf16>, vector<12x512xf32> -> vector<12x512xf32>
    %170 = arith.addf %162, %169 : vector<12x512xf32>
    %c1_i32_137 = arith.constant 1 : i32
    %c0_i32_138 = arith.constant 0 : i32
    %c0_i32_139 = arith.constant 0 : i32
    %171 = tpu.memref_slice %arg1[%c1_i32_137, %c0_i32_138, %c0_i32_139] : memref<4x28x28xf32, #tpu.memory_space<vmem>> -> memref<1x28x28xf32, #tpu.memory_space<vmem>>
    %172 = tpu.memref_squeeze %171 : memref<1x28x28xf32, #tpu.memory_space<vmem>> -> memref<28x28xf32, #tpu.memory_space<vmem>>
    %c2_140 = arith.constant 2 : index
    %c0_141 = arith.constant 0 : index
    %173 = tpu.strided_load %172[%c2_140, %c0_141] {strides = array<i32: 2, 1>} : memref<28x28xf32, #tpu.memory_space<vmem>>, vector<12x28xf32>
    %174 = arith.truncf %173 : vector<12x28xf32> to vector<12x28xbf16>
    %c2_142 = arith.constant 2 : index
    %c0_143 = arith.constant 0 : index
    %c0_144 = arith.constant 0 : index
    %175 = vector.load %arg2[%c2_142, %c0_143, %c0_144] : memref<6x28x512xbf16, #tpu.memory_space<vmem>>, vector<1x28x512xbf16>
    %176 = vector.shape_cast %175 : vector<1x28x512xbf16> to vector<28x512xbf16>
    %cst_145 = arith.constant dense<0.000000e+00> : vector<12x512xf32>
    %177 = tpu.matmul %174, %176, %cst_145 {dimension_numbers = #tpu.dot_dimension_numbers<[1], [0], [0], [1], [0, 0, 1, 1], [], []>} : vector<12x28xbf16>, vector<28x512xbf16>, vector<12x512xf32> -> vector<12x512xf32>
    %178 = arith.addf %170, %177 : vector<12x512xf32>
    %c1_i32_146 = arith.constant 1 : i32
    %c0_i32_147 = arith.constant 0 : i32
    %c0_i32_148 = arith.constant 0 : i32
    %179 = tpu.memref_slice %arg1[%c1_i32_146, %c0_i32_147, %c0_i32_148] : memref<4x28x28xf32, #tpu.memory_space<vmem>> -> memref<1x28x28xf32, #tpu.memory_space<vmem>>
    %180 = tpu.memref_squeeze %179 : memref<1x28x28xf32, #tpu.memory_space<vmem>> -> memref<28x28xf32, #tpu.memory_space<vmem>>
    %c3_149 = arith.constant 3 : index
    %c0_150 = arith.constant 0 : index
    %181 = tpu.strided_load %180[%c3_149, %c0_150] {strides = array<i32: 2, 1>} : memref<28x28xf32, #tpu.memory_space<vmem>>, vector<12x28xf32>
    %182 = arith.truncf %181 : vector<12x28xf32> to vector<12x28xbf16>
    %c3_151 = arith.constant 3 : index
    %c0_152 = arith.constant 0 : index
    %c0_153 = arith.constant 0 : index
    %183 = vector.load %arg2[%c3_151, %c0_152, %c0_153] : memref<6x28x512xbf16, #tpu.memory_space<vmem>>, vector<1x28x512xbf16>
    %184 = vector.shape_cast %183 : vector<1x28x512xbf16> to vector<28x512xbf16>
    %cst_154 = arith.constant dense<0.000000e+00> : vector<12x512xf32>
    %185 = tpu.matmul %182, %184, %cst_154 {dimension_numbers = #tpu.dot_dimension_numbers<[1], [0], [0], [1], [0, 0, 1, 1], [], []>} : vector<12x28xbf16>, vector<28x512xbf16>, vector<12x512xf32> -> vector<12x512xf32>
    %186 = arith.addf %178, %185 : vector<12x512xf32>
    %c1_i32_155 = arith.constant 1 : i32
    %c0_i32_156 = arith.constant 0 : i32
    %c0_i32_157 = arith.constant 0 : i32
    %187 = tpu.memref_slice %arg1[%c1_i32_155, %c0_i32_156, %c0_i32_157] : memref<4x28x28xf32, #tpu.memory_space<vmem>> -> memref<1x28x28xf32, #tpu.memory_space<vmem>>
    %188 = tpu.memref_squeeze %187 : memref<1x28x28xf32, #tpu.memory_space<vmem>> -> memref<28x28xf32, #tpu.memory_space<vmem>>
    %c4_158 = arith.constant 4 : index
    %c0_159 = arith.constant 0 : index
    %189 = tpu.strided_load %188[%c4_158, %c0_159] {strides = array<i32: 2, 1>} : memref<28x28xf32, #tpu.memory_space<vmem>>, vector<12x28xf32>
    %190 = arith.truncf %189 : vector<12x28xf32> to vector<12x28xbf16>
    %c4_160 = arith.constant 4 : index
    %c0_161 = arith.constant 0 : index
    %c0_162 = arith.constant 0 : index
    %191 = vector.load %arg2[%c4_160, %c0_161, %c0_162] : memref<6x28x512xbf16, #tpu.memory_space<vmem>>, vector<1x28x512xbf16>
    %192 = vector.shape_cast %191 : vector<1x28x512xbf16> to vector<28x512xbf16>
    %cst_163 = arith.constant dense<0.000000e+00> : vector<12x512xf32>
    %193 = tpu.matmul %190, %192, %cst_163 {dimension_numbers = #tpu.dot_dimension_numbers<[1], [0], [0], [1], [0, 0, 1, 1], [], []>} : vector<12x28xbf16>, vector<28x512xbf16>, vector<12x512xf32> -> vector<12x512xf32>
    %194 = arith.addf %186, %193 : vector<12x512xf32>
    %c1_i32_164 = arith.constant 1 : i32
    %c0_i32_165 = arith.constant 0 : i32
    %c0_i32_166 = arith.constant 0 : i32
    %195 = tpu.memref_slice %arg1[%c1_i32_164, %c0_i32_165, %c0_i32_166] : memref<4x28x28xf32, #tpu.memory_space<vmem>> -> memref<1x28x28xf32, #tpu.memory_space<vmem>>
    %196 = tpu.memref_squeeze %195 : memref<1x28x28xf32, #tpu.memory_space<vmem>> -> memref<28x28xf32, #tpu.memory_space<vmem>>
    %c5_167 = arith.constant 5 : index
    %c0_168 = arith.constant 0 : index
    %197 = tpu.strided_load %196[%c5_167, %c0_168] {strides = array<i32: 2, 1>} : memref<28x28xf32, #tpu.memory_space<vmem>>, vector<12x28xf32>
    %198 = arith.truncf %197 : vector<12x28xf32> to vector<12x28xbf16>
    %c5_169 = arith.constant 5 : index
    %c0_170 = arith.constant 0 : index
    %c0_171 = arith.constant 0 : index
    %199 = vector.load %arg2[%c5_169, %c0_170, %c0_171] : memref<6x28x512xbf16, #tpu.memory_space<vmem>>, vector<1x28x512xbf16>
    %200 = vector.shape_cast %199 : vector<1x28x512xbf16> to vector<28x512xbf16>
    %cst_172 = arith.constant dense<0.000000e+00> : vector<12x512xf32>
    %201 = tpu.matmul %198, %200, %cst_172 {dimension_numbers = #tpu.dot_dimension_numbers<[1], [0], [0], [1], [0, 0, 1, 1], [], []>} : vector<12x28xbf16>, vector<28x512xbf16>, vector<12x512xf32> -> vector<12x512xf32>
    %202 = arith.addf %194, %201 : vector<12x512xf32>
    %203 = vector.extract_strided_slice %202 {offsets = [0, 0], sizes = [12, 128], strides = [1, 1]} : vector<12x512xf32> to vector<12x128xf32>
    %204 = vector.extract_strided_slice %202 {offsets = [0, 128], sizes = [12, 128], strides = [1, 1]} : vector<12x512xf32> to vector<12x128xf32>
    %205 = arith.maximumf %203, %204 : vector<12x128xf32>
    %206 = vector.extract_strided_slice %202 {offsets = [0, 256], sizes = [12, 128], strides = [1, 1]} : vector<12x512xf32> to vector<12x128xf32>
    %207 = vector.extract_strided_slice %202 {offsets = [0, 384], sizes = [12, 128], strides = [1, 1]} : vector<12x512xf32> to vector<12x128xf32>
    %208 = arith.maximumf %206, %207 : vector<12x128xf32>
    %209 = arith.maximumf %205, %208 : vector<12x128xf32>
    %c0_173 = arith.constant 0 : index
    %c0_174 = arith.constant 0 : index
    %210 = vector.load %arg3[%c0_173, %c0_174] : memref<1x128xf32, #tpu.memory_space<vmem>>, vector<1x128xf32>
    %211 = vector.broadcast %210 : vector<1x128xf32> to vector<12x128xf32>
    %212 = arith.addf %209, %211 : vector<12x128xf32>
    %cst_175 = arith.constant 0.000000e+00 : f32
    %213 = vector.broadcast %cst_175 : f32 to vector<12x128xf32>
    %214 = arith.maximumf %212, %213 : vector<12x128xf32>
    %c0_176 = arith.constant 0 : index
    %c0_177 = arith.constant 0 : index
    %215 = vector.load %arg11[%c0_176, %c0_177] : memref<12x128xf32, #tpu.memory_space<vmem>>, vector<12x128xf32>
    tpu.vector_store %arg11[%c0_176, %c0_177], %214 {strides = array<i32>} : memref<12x128xf32, #tpu.memory_space<vmem>>, vector<12x128xf32>,
    %cst_178 = arith.constant 0.000000e+00 : f32
    %216 = vector.broadcast %cst_178 : f32 to vector<4x512xf32>
    %c0_179 = arith.constant 0 : index
    %c0_180 = arith.constant 0 : index
    %217 = tpu.strided_load %arg11[%c0_179, %c0_180] {strides = array<i32: 2, 1>} : memref<12x128xf32, #tpu.memory_space<vmem>>, vector<4x128xf32>
    %218 = arith.truncf %217 : vector<4x128xf32> to vector<4x128xbf16>
    %c0_181 = arith.constant 0 : index
    %c0_182 = arith.constant 0 : index
    %c0_183 = arith.constant 0 : index
    %219 = vector.load %arg4[%c0_181, %c0_182, %c0_183] : memref<6x128x512xbf16, #tpu.memory_space<vmem>>, vector<1x128x512xbf16>
    %220 = vector.shape_cast %219 : vector<1x128x512xbf16> to vector<128x512xbf16>
    %cst_184 = arith.constant dense<0.000000e+00> : vector<4x512xf32>
    %221 = tpu.matmul %218, %220, %cst_184 {dimension_numbers = #tpu.dot_dimension_numbers<[1], [0], [0], [1], [0, 0, 1, 1], [], []>} : vector<4x128xbf16>, vector<128x512xbf16>, vector<4x512xf32> -> vector<4x512xf32>
    %222 = arith.addf %216, %221 : vector<4x512xf32>
    %c1_185 = arith.constant 1 : index
    %c0_186 = arith.constant 0 : index
    %223 = tpu.strided_load %arg11[%c1_185, %c0_186] {strides = array<i32: 2, 1>} : memref<12x128xf32, #tpu.memory_space<vmem>>, vector<4x128xf32>
    %224 = arith.truncf %223 : vector<4x128xf32> to vector<4x128xbf16>
    %c1_187 = arith.constant 1 : index
    %c0_188 = arith.constant 0 : index
    %c0_189 = arith.constant 0 : index
    %225 = vector.load %arg4[%c1_187, %c0_188, %c0_189] : memref<6x128x512xbf16, #tpu.memory_space<vmem>>, vector<1x128x512xbf16>
    %226 = vector.shape_cast %225 : vector<1x128x512xbf16> to vector<128x512xbf16>
    %cst_190 = arith.constant dense<0.000000e+00> : vector<4x512xf32>
    %227 = tpu.matmul %224, %226, %cst_190 {dimension_numbers = #tpu.dot_dimension_numbers<[1], [0], [0], [1], [0, 0, 1, 1], [], []>} : vector<4x128xbf16>, vector<128x512xbf16>, vector<4x512xf32> -> vector<4x512xf32>
    %228 = arith.addf %222, %227 : vector<4x512xf32>
    %c2_191 = arith.constant 2 : index
    %c0_192 = arith.constant 0 : index
    %229 = tpu.strided_load %arg11[%c2_191, %c0_192] {strides = array<i32: 2, 1>} : memref<12x128xf32, #tpu.memory_space<vmem>>, vector<4x128xf32>
    %230 = arith.truncf %229 : vector<4x128xf32> to vector<4x128xbf16>
    %c2_193 = arith.constant 2 : index
    %c0_194 = arith.constant 0 : index
    %c0_195 = arith.constant 0 : index
    %231 = vector.load %arg4[%c2_193, %c0_194, %c0_195] : memref<6x128x512xbf16, #tpu.memory_space<vmem>>, vector<1x128x512xbf16>
    %232 = vector.shape_cast %231 : vector<1x128x512xbf16> to vector<128x512xbf16>
    %cst_196 = arith.constant dense<0.000000e+00> : vector<4x512xf32>
    %233 = tpu.matmul %230, %232, %cst_196 {dimension_numbers = #tpu.dot_dimension_numbers<[1], [0], [0], [1], [0, 0, 1, 1], [], []>} : vector<4x128xbf16>, vector<128x512xbf16>, vector<4x512xf32> -> vector<4x512xf32>
    %234 = arith.addf %228, %233 : vector<4x512xf32>
    %c3_197 = arith.constant 3 : index
    %c0_198 = arith.constant 0 : index
    %235 = tpu.strided_load %arg11[%c3_197, %c0_198] {strides = array<i32: 2, 1>} : memref<12x128xf32, #tpu.memory_space<vmem>>, vector<4x128xf32>
    %236 = arith.truncf %235 : vector<4x128xf32> to vector<4x128xbf16>
    %c3_199 = arith.constant 3 : index
    %c0_200 = arith.constant 0 : index
    %c0_201 = arith.constant 0 : index
    %237 = vector.load %arg4[%c3_199, %c0_200, %c0_201] : memref<6x128x512xbf16, #tpu.memory_space<vmem>>, vector<1x128x512xbf16>
    %238 = vector.shape_cast %237 : vector<1x128x512xbf16> to vector<128x512xbf16>
    %cst_202 = arith.constant dense<0.000000e+00> : vector<4x512xf32>
    %239 = tpu.matmul %236, %238, %cst_202 {dimension_numbers = #tpu.dot_dimension_numbers<[1], [0], [0], [1], [0, 0, 1, 1], [], []>} : vector<4x128xbf16>, vector<128x512xbf16>, vector<4x512xf32> -> vector<4x512xf32>
    %240 = arith.addf %234, %239 : vector<4x512xf32>
    %c4_203 = arith.constant 4 : index
    %c0_204 = arith.constant 0 : index
    %241 = tpu.strided_load %arg11[%c4_203, %c0_204] {strides = array<i32: 2, 1>} : memref<12x128xf32, #tpu.memory_space<vmem>>, vector<4x128xf32>
    %242 = arith.truncf %241 : vector<4x128xf32> to vector<4x128xbf16>
    %c4_205 = arith.constant 4 : index
    %c0_206 = arith.constant 0 : index
    %c0_207 = arith.constant 0 : index
    %243 = vector.load %arg4[%c4_205, %c0_206, %c0_207] : memref<6x128x512xbf16, #tpu.memory_space<vmem>>, vector<1x128x512xbf16>
    %244 = vector.shape_cast %243 : vector<1x128x512xbf16> to vector<128x512xbf16>
    %cst_208 = arith.constant dense<0.000000e+00> : vector<4x512xf32>
    %245 = tpu.matmul %242, %244, %cst_208 {dimension_numbers = #tpu.dot_dimension_numbers<[1], [0], [0], [1], [0, 0, 1, 1], [], []>} : vector<4x128xbf16>, vector<128x512xbf16>, vector<4x512xf32> -> vector<4x512xf32>
    %246 = arith.addf %240, %245 : vector<4x512xf32>
    %c5_209 = arith.constant 5 : index
    %c0_210 = arith.constant 0 : index
    %247 = tpu.strided_load %arg11[%c5_209, %c0_210] {strides = array<i32: 2, 1>} : memref<12x128xf32, #tpu.memory_space<vmem>>, vector<4x128xf32>
    %248 = arith.truncf %247 : vector<4x128xf32> to vector<4x128xbf16>
    %c5_211 = arith.constant 5 : index
    %c0_212 = arith.constant 0 : index
    %c0_213 = arith.constant 0 : index
    %249 = vector.load %arg4[%c5_211, %c0_212, %c0_213] : memref<6x128x512xbf16, #tpu.memory_space<vmem>>, vector<1x128x512xbf16>
    %250 = vector.shape_cast %249 : vector<1x128x512xbf16> to vector<128x512xbf16>
    %cst_214 = arith.constant dense<0.000000e+00> : vector<4x512xf32>
    %251 = tpu.matmul %248, %250, %cst_214 {dimension_numbers = #tpu.dot_dimension_numbers<[1], [0], [0], [1], [0, 0, 1, 1], [], []>} : vector<4x128xbf16>, vector<128x512xbf16>, vector<4x512xf32> -> vector<4x512xf32>
    %252 = arith.addf %246, %251 : vector<4x512xf32>
    %253 = vector.extract_strided_slice %252 {offsets = [0, 0], sizes = [4, 128], strides = [1, 1]} : vector<4x512xf32> to vector<4x128xf32>
    %254 = vector.extract_strided_slice %252 {offsets = [0, 128], sizes = [4, 128], strides = [1, 1]} : vector<4x512xf32> to vector<4x128xf32>
    %255 = arith.maximumf %253, %254 : vector<4x128xf32>
    %256 = vector.extract_strided_slice %252 {offsets = [0, 256], sizes = [4, 128], strides = [1, 1]} : vector<4x512xf32> to vector<4x128xf32>
    %257 = vector.extract_strided_slice %252 {offsets = [0, 384], sizes = [4, 128], strides = [1, 1]} : vector<4x512xf32> to vector<4x128xf32>
    %258 = arith.maximumf %256, %257 : vector<4x128xf32>
    %259 = arith.maximumf %255, %258 : vector<4x128xf32>
    %c0_215 = arith.constant 0 : index
    %c0_216 = arith.constant 0 : index
    %260 = vector.load %arg5[%c0_215, %c0_216] : memref<1x128xf32, #tpu.memory_space<vmem>>, vector<1x128xf32>
    %261 = vector.broadcast %260 : vector<1x128xf32> to vector<4x128xf32>
    %262 = arith.addf %259, %261 : vector<4x128xf32>
    %cst_217 = arith.constant 0.000000e+00 : f32
    %263 = vector.broadcast %cst_217 : f32 to vector<4x128xf32>
    %264 = arith.maximumf %262, %263 : vector<4x128xf32>
    %265 = arith.truncf %264 : vector<4x128xf32> to vector<4x128xbf16>
    %cst_218 = arith.constant 0.000000e+00 : f32
    %266 = vector.broadcast %cst_218 : f32 to vector<1x128xf32>
    %267 = vector.extract_strided_slice %265 {offsets = [0, 0], sizes = [1, 128], strides = [1, 1]} : vector<4x128xbf16> to vector<1x128xbf16>
    %c0_219 = arith.constant 0 : index
    %c0_220 = arith.constant 0 : index
    %c0_221 = arith.constant 0 : index
    %268 = vector.load %arg6[%c0_219, %c0_220, %c0_221] : memref<4x128x128xbf16, #tpu.memory_space<vmem>>, vector<1x128x128xbf16>
    %269 = vector.shape_cast %268 : vector<1x128x128xbf16> to vector<128x128xbf16>
    %cst_222 = arith.constant dense<0.000000e+00> : vector<1x128xf32>
    %270 = tpu.matmul %267, %269, %cst_222 {dimension_numbers = #tpu.dot_dimension_numbers<[1], [0], [0], [1], [0, 0, 1, 1], [], []>} : vector<1x128xbf16>, vector<128x128xbf16>, vector<1x128xf32> -> vector<1x128xf32>
    %271 = arith.addf %266, %270 : vector<1x128xf32>
    %272 = vector.extract_strided_slice %265 {offsets = [1, 0], sizes = [1, 128], strides = [1, 1]} : vector<4x128xbf16> to vector<1x128xbf16>
    %c1_223 = arith.constant 1 : index
    %c0_224 = arith.constant 0 : index
    %c0_225 = arith.constant 0 : index
    %273 = vector.load %arg6[%c1_223, %c0_224, %c0_225] : memref<4x128x128xbf16, #tpu.memory_space<vmem>>, vector<1x128x128xbf16>
    %274 = vector.shape_cast %273 : vector<1x128x128xbf16> to vector<128x128xbf16>
    %cst_226 = arith.constant dense<0.000000e+00> : vector<1x128xf32>
    %275 = tpu.matmul %272, %274, %cst_226 {dimension_numbers = #tpu.dot_dimension_numbers<[1], [0], [0], [1], [0, 0, 1, 1], [], []>} : vector<1x128xbf16>, vector<128x128xbf16>, vector<1x128xf32> -> vector<1x128xf32>
    %276 = arith.addf %271, %275 : vector<1x128xf32>
    %277 = vector.extract_strided_slice %265 {offsets = [2, 0], sizes = [1, 128], strides = [1, 1]} : vector<4x128xbf16> to vector<1x128xbf16>
    %c2_227 = arith.constant 2 : index
    %c0_228 = arith.constant 0 : index
    %c0_229 = arith.constant 0 : index
    %278 = vector.load %arg6[%c2_227, %c0_228, %c0_229] : memref<4x128x128xbf16, #tpu.memory_space<vmem>>, vector<1x128x128xbf16>
    %279 = vector.shape_cast %278 : vector<1x128x128xbf16> to vector<128x128xbf16>
    %cst_230 = arith.constant dense<0.000000e+00> : vector<1x128xf32>
    %280 = tpu.matmul %277, %279, %cst_230 {dimension_numbers = #tpu.dot_dimension_numbers<[1], [0], [0], [1], [0, 0, 1, 1], [], []>} : vector<1x128xbf16>, vector<128x128xbf16>, vector<1x128xf32> -> vector<1x128xf32>
    %281 = arith.addf %276, %280 : vector<1x128xf32>
    %282 = vector.extract_strided_slice %265 {offsets = [3, 0], sizes = [1, 128], strides = [1, 1]} : vector<4x128xbf16> to vector<1x128xbf16>
    %c3_231 = arith.constant 3 : index
    %c0_232 = arith.constant 0 : index
    %c0_233 = arith.constant 0 : index
    %283 = vector.load %arg6[%c3_231, %c0_232, %c0_233] : memref<4x128x128xbf16, #tpu.memory_space<vmem>>, vector<1x128x128xbf16>
    %284 = vector.shape_cast %283 : vector<1x128x128xbf16> to vector<128x128xbf16>
    %cst_234 = arith.constant dense<0.000000e+00> : vector<1x128xf32>
    %285 = tpu.matmul %282, %284, %cst_234 {dimension_numbers = #tpu.dot_dimension_numbers<[1], [0], [0], [1], [0, 0, 1, 1], [], []>} : vector<1x128xbf16>, vector<128x128xbf16>, vector<1x128xf32> -> vector<1x128xf32>
    %286 = arith.addf %281, %285 : vector<1x128xf32>
    %c0_235 = arith.constant 0 : index
    %c0_236 = arith.constant 0 : index
    %287 = vector.load %arg7[%c0_235, %c0_236] : memref<1x128xf32, #tpu.memory_space<vmem>>, vector<1x128xf32>
    %288 = arith.addf %286, %287 : vector<1x128xf32>
    %cst_237 = arith.constant 0.000000e+00 : f32
    %289 = vector.broadcast %cst_237 : f32 to vector<1x128xf32>
    %290 = arith.maximumf %288, %289 : vector<1x128xf32>
    %291 = arith.truncf %290 : vector<1x128xf32> to vector<1x128xbf16>
    %c0_238 = arith.constant 0 : index
    %c0_239 = arith.constant 0 : index
    %292 = vector.load %arg8[%c0_238, %c0_239] : memref<128x128xbf16, #tpu.memory_space<vmem>>, vector<128x128xbf16>
    %cst_240 = arith.constant dense<0.000000e+00> : vector<1x128xf32>
    %293 = tpu.matmul %291, %292, %cst_240 {dimension_numbers = #tpu.dot_dimension_numbers<[1], [0], [0], [1], [0, 0, 1, 1], [], []>} : vector<1x128xbf16>, vector<128x128xbf16>, vector<1x128xf32> -> vector<1x128xf32>
    %c0_241 = arith.constant 0 : index
    %c0_242 = arith.constant 0 : index
    %294 = vector.load %arg9[%c0_241, %c0_242] : memref<1x128xf32, #tpu.memory_space<vmem>>, vector<1x128xf32>
    %295 = arith.addf %293, %294 : vector<1x128xf32>
    %cst_243 = arith.constant dense<0xFF800000> : vector<1xf32>
    %296 = vector.multi_reduction <maximumf>, %295, %cst_243 [1] : vector<1x128xf32> to vector<1xf32>
    %297 = vector.shape_cast %296 : vector<1xf32> to vector<1x1xf32>
    %298 = vector.broadcast %297 : vector<1x1xf32> to vector<1x128xf32>
    %299 = arith.subf %295, %298 : vector<1x128xf32>
    %300 = math.exp %299 : vector<1x128xf32>
    %cst_244 = arith.constant dense<0.000000e+00> : vector<1xf32>
    %301 = vector.multi_reduction <add>, %300, %cst_244 [1] : vector<1x128xf32> to vector<1xf32>
    %302 = vector.shape_cast %301 : vector<1xf32> to vector<1x1xf32>
    %303 = math.log %302 : vector<1x1xf32>
    %304 = vector.broadcast %297 : vector<1x1xf32> to vector<1x128xf32>
    %305 = arith.subf %295, %304 : vector<1x128xf32>
    %306 = vector.broadcast %303 : vector<1x1xf32> to vector<1x128xf32>
    %307 = arith.subf %305, %306 : vector<1x128xf32>
    %cst_245 = arith.constant 0.000000e+00 : f32
    %308 = vector.broadcast %cst_245 : f32 to vector<12x512xf32>
    %c2_i32 = arith.constant 2 : i32
    %c0_i32_246 = arith.constant 0 : i32
    %c0_i32_247 = arith.constant 0 : i32
    %309 = tpu.memref_slice %arg1[%c2_i32, %c0_i32_246, %c0_i32_247] : memref<4x28x28xf32, #tpu.memory_space<vmem>> -> memref<1x28x28xf32, #tpu.memory_space<vmem>>
    %310 = tpu.memref_squeeze %309 : memref<1x28x28xf32, #tpu.memory_space<vmem>> -> memref<28x28xf32, #tpu.memory_space<vmem>>
    %c0_248 = arith.constant 0 : index
    %c0_249 = arith.constant 0 : index
    %311 = tpu.strided_load %310[%c0_248, %c0_249] {strides = array<i32: 2, 1>} : memref<28x28xf32, #tpu.memory_space<vmem>>, vector<12x28xf32>
    %312 = arith.truncf %311 : vector<12x28xf32> to vector<12x28xbf16>
    %c0_250 = arith.constant 0 : index
    %c0_251 = arith.constant 0 : index
    %c0_252 = arith.constant 0 : index
    %313 = vector.load %arg2[%c0_250, %c0_251, %c0_252] : memref<6x28x512xbf16, #tpu.memory_space<vmem>>, vector<1x28x512xbf16>
    %314 = vector.shape_cast %313 : vector<1x28x512xbf16> to vector<28x512xbf16>
    %cst_253 = arith.constant dense<0.000000e+00> : vector<12x512xf32>
    %315 = tpu.matmul %312, %314, %cst_253 {dimension_numbers = #tpu.dot_dimension_numbers<[1], [0], [0], [1], [0, 0, 1, 1], [], []>} : vector<12x28xbf16>, vector<28x512xbf16>, vector<12x512xf32> -> vector<12x512xf32>
    %316 = arith.addf %308, %315 : vector<12x512xf32>
    %c2_i32_254 = arith.constant 2 : i32
    %c0_i32_255 = arith.constant 0 : i32
    %c0_i32_256 = arith.constant 0 : i32
    %317 = tpu.memref_slice %arg1[%c2_i32_254, %c0_i32_255, %c0_i32_256] : memref<4x28x28xf32, #tpu.memory_space<vmem>> -> memref<1x28x28xf32, #tpu.memory_space<vmem>>
    %318 = tpu.memref_squeeze %317 : memref<1x28x28xf32, #tpu.memory_space<vmem>> -> memref<28x28xf32, #tpu.memory_space<vmem>>
    %c1_257 = arith.constant 1 : index
    %c0_258 = arith.constant 0 : index
    %319 = tpu.strided_load %318[%c1_257, %c0_258] {strides = array<i32: 2, 1>} : memref<28x28xf32, #tpu.memory_space<vmem>>, vector<12x28xf32>
    %320 = arith.truncf %319 : vector<12x28xf32> to vector<12x28xbf16>
    %c1_259 = arith.constant 1 : index
    %c0_260 = arith.constant 0 : index
    %c0_261 = arith.constant 0 : index
    %321 = vector.load %arg2[%c1_259, %c0_260, %c0_261] : memref<6x28x512xbf16, #tpu.memory_space<vmem>>, vector<1x28x512xbf16>
    %322 = vector.shape_cast %321 : vector<1x28x512xbf16> to vector<28x512xbf16>
    %cst_262 = arith.constant dense<0.000000e+00> : vector<12x512xf32>
    %323 = tpu.matmul %320, %322, %cst_262 {dimension_numbers = #tpu.dot_dimension_numbers<[1], [0], [0], [1], [0, 0, 1, 1], [], []>} : vector<12x28xbf16>, vector<28x512xbf16>, vector<12x512xf32> -> vector<12x512xf32>
    %324 = arith.addf %316, %323 : vector<12x512xf32>
    %c2_i32_263 = arith.constant 2 : i32
    %c0_i32_264 = arith.constant 0 : i32
    %c0_i32_265 = arith.constant 0 : i32
    %325 = tpu.memref_slice %arg1[%c2_i32_263, %c0_i32_264, %c0_i32_265] : memref<4x28x28xf32, #tpu.memory_space<vmem>> -> memref<1x28x28xf32, #tpu.memory_space<vmem>>
    %326 = tpu.memref_squeeze %325 : memref<1x28x28xf32, #tpu.memory_space<vmem>> -> memref<28x28xf32, #tpu.memory_space<vmem>>
    %c2_266 = arith.constant 2 : index
    %c0_267 = arith.constant 0 : index
    %327 = tpu.strided_load %326[%c2_266, %c0_267] {strides = array<i32: 2, 1>} : memref<28x28xf32, #tpu.memory_space<vmem>>, vector<12x28xf32>
    %328 = arith.truncf %327 : vector<12x28xf32> to vector<12x28xbf16>
    %c2_268 = arith.constant 2 : index
    %c0_269 = arith.constant 0 : index
    %c0_270 = arith.constant 0 : index
    %329 = vector.load %arg2[%c2_268, %c0_269, %c0_270] : memref<6x28x512xbf16, #tpu.memory_space<vmem>>, vector<1x28x512xbf16>
    %330 = vector.shape_cast %329 : vector<1x28x512xbf16> to vector<28x512xbf16>
    %cst_271 = arith.constant dense<0.000000e+00> : vector<12x512xf32>
    %331 = tpu.matmul %328, %330, %cst_271 {dimension_numbers = #tpu.dot_dimension_numbers<[1], [0], [0], [1], [0, 0, 1, 1], [], []>} : vector<12x28xbf16>, vector<28x512xbf16>, vector<12x512xf32> -> vector<12x512xf32>
    %332 = arith.addf %324, %331 : vector<12x512xf32>
    %c2_i32_272 = arith.constant 2 : i32
    %c0_i32_273 = arith.constant 0 : i32
    %c0_i32_274 = arith.constant 0 : i32
    %333 = tpu.memref_slice %arg1[%c2_i32_272, %c0_i32_273, %c0_i32_274] : memref<4x28x28xf32, #tpu.memory_space<vmem>> -> memref<1x28x28xf32, #tpu.memory_space<vmem>>
    %334 = tpu.memref_squeeze %333 : memref<1x28x28xf32, #tpu.memory_space<vmem>> -> memref<28x28xf32, #tpu.memory_space<vmem>>
    %c3_275 = arith.constant 3 : index
    %c0_276 = arith.constant 0 : index
    %335 = tpu.strided_load %334[%c3_275, %c0_276] {strides = array<i32: 2, 1>} : memref<28x28xf32, #tpu.memory_space<vmem>>, vector<12x28xf32>
    %336 = arith.truncf %335 : vector<12x28xf32> to vector<12x28xbf16>
    %c3_277 = arith.constant 3 : index
    %c0_278 = arith.constant 0 : index
    %c0_279 = arith.constant 0 : index
    %337 = vector.load %arg2[%c3_277, %c0_278, %c0_279] : memref<6x28x512xbf16, #tpu.memory_space<vmem>>, vector<1x28x512xbf16>
    %338 = vector.shape_cast %337 : vector<1x28x512xbf16> to vector<28x512xbf16>
    %cst_280 = arith.constant dense<0.000000e+00> : vector<12x512xf32>
    %339 = tpu.matmul %336, %338, %cst_280 {dimension_numbers = #tpu.dot_dimension_numbers<[1], [0], [0], [1], [0, 0, 1, 1], [], []>} : vector<12x28xbf16>, vector<28x512xbf16>, vector<12x512xf32> -> vector<12x512xf32>
    %340 = arith.addf %332, %339 : vector<12x512xf32>
    %c2_i32_281 = arith.constant 2 : i32
    %c0_i32_282 = arith.constant 0 : i32
    %c0_i32_283 = arith.constant 0 : i32
    %341 = tpu.memref_slice %arg1[%c2_i32_281, %c0_i32_282, %c0_i32_283] : memref<4x28x28xf32, #tpu.memory_space<vmem>> -> memref<1x28x28xf32, #tpu.memory_space<vmem>>
    %342 = tpu.memref_squeeze %341 : memref<1x28x28xf32, #tpu.memory_space<vmem>> -> memref<28x28xf32, #tpu.memory_space<vmem>>
    %c4_284 = arith.constant 4 : index
    %c0_285 = arith.constant 0 : index
    %343 = tpu.strided_load %342[%c4_284, %c0_285] {strides = array<i32: 2, 1>} : memref<28x28xf32, #tpu.memory_space<vmem>>, vector<12x28xf32>
    %344 = arith.truncf %343 : vector<12x28xf32> to vector<12x28xbf16>
    %c4_286 = arith.constant 4 : index
    %c0_287 = arith.constant 0 : index
    %c0_288 = arith.constant 0 : index
    %345 = vector.load %arg2[%c4_286, %c0_287, %c0_288] : memref<6x28x512xbf16, #tpu.memory_space<vmem>>, vector<1x28x512xbf16>
    %346 = vector.shape_cast %345 : vector<1x28x512xbf16> to vector<28x512xbf16>
    %cst_289 = arith.constant dense<0.000000e+00> : vector<12x512xf32>
    %347 = tpu.matmul %344, %346, %cst_289 {dimension_numbers = #tpu.dot_dimension_numbers<[1], [0], [0], [1], [0, 0, 1, 1], [], []>} : vector<12x28xbf16>, vector<28x512xbf16>, vector<12x512xf32> -> vector<12x512xf32>
    %348 = arith.addf %340, %347 : vector<12x512xf32>
    %c2_i32_290 = arith.constant 2 : i32
    %c0_i32_291 = arith.constant 0 : i32
    %c0_i32_292 = arith.constant 0 : i32
    %349 = tpu.memref_slice %arg1[%c2_i32_290, %c0_i32_291, %c0_i32_292] : memref<4x28x28xf32, #tpu.memory_space<vmem>> -> memref<1x28x28xf32, #tpu.memory_space<vmem>>
    %350 = tpu.memref_squeeze %349 : memref<1x28x28xf32, #tpu.memory_space<vmem>> -> memref<28x28xf32, #tpu.memory_space<vmem>>
    %c5_293 = arith.constant 5 : index
    %c0_294 = arith.constant 0 : index
    %351 = tpu.strided_load %350[%c5_293, %c0_294] {strides = array<i32: 2, 1>} : memref<28x28xf32, #tpu.memory_space<vmem>>, vector<12x28xf32>
    %352 = arith.truncf %351 : vector<12x28xf32> to vector<12x28xbf16>
    %c5_295 = arith.constant 5 : index
    %c0_296 = arith.constant 0 : index
    %c0_297 = arith.constant 0 : index
    %353 = vector.load %arg2[%c5_295, %c0_296, %c0_297] : memref<6x28x512xbf16, #tpu.memory_space<vmem>>, vector<1x28x512xbf16>
    %354 = vector.shape_cast %353 : vector<1x28x512xbf16> to vector<28x512xbf16>
    %cst_298 = arith.constant dense<0.000000e+00> : vector<12x512xf32>
    %355 = tpu.matmul %352, %354, %cst_298 {dimension_numbers = #tpu.dot_dimension_numbers<[1], [0], [0], [1], [0, 0, 1, 1], [], []>} : vector<12x28xbf16>, vector<28x512xbf16>, vector<12x512xf32> -> vector<12x512xf32>
    %356 = arith.addf %348, %355 : vector<12x512xf32>
    %357 = vector.extract_strided_slice %356 {offsets = [0, 0], sizes = [12, 128], strides = [1, 1]} : vector<12x512xf32> to vector<12x128xf32>
    %358 = vector.extract_strided_slice %356 {offsets = [0, 128], sizes = [12, 128], strides = [1, 1]} : vector<12x512xf32> to vector<12x128xf32>
    %359 = arith.maximumf %357, %358 : vector<12x128xf32>
    %360 = vector.extract_strided_slice %356 {offsets = [0, 256], sizes = [12, 128], strides = [1, 1]} : vector<12x512xf32> to vector<12x128xf32>
    %361 = vector.extract_strided_slice %356 {offsets = [0, 384], sizes = [12, 128], strides = [1, 1]} : vector<12x512xf32> to vector<12x128xf32>
    %362 = arith.maximumf %360, %361 : vector<12x128xf32>
    %363 = arith.maximumf %359, %362 : vector<12x128xf32>
    %c0_299 = arith.constant 0 : index
    %c0_300 = arith.constant 0 : index
    %364 = vector.load %arg3[%c0_299, %c0_300] : memref<1x128xf32, #tpu.memory_space<vmem>>, vector<1x128xf32>
    %365 = vector.broadcast %364 : vector<1x128xf32> to vector<12x128xf32>
    %366 = arith.addf %363, %365 : vector<12x128xf32>
    %cst_301 = arith.constant 0.000000e+00 : f32
    %367 = vector.broadcast %cst_301 : f32 to vector<12x128xf32>
    %368 = arith.maximumf %366, %367 : vector<12x128xf32>
    %c0_302 = arith.constant 0 : index
    %c0_303 = arith.constant 0 : index
    %369 = vector.load %arg11[%c0_302, %c0_303] : memref<12x128xf32, #tpu.memory_space<vmem>>, vector<12x128xf32>
    tpu.vector_store %arg11[%c0_302, %c0_303], %368 {strides = array<i32>} : memref<12x128xf32, #tpu.memory_space<vmem>>, vector<12x128xf32>,
    %cst_304 = arith.constant 0.000000e+00 : f32
    %370 = vector.broadcast %cst_304 : f32 to vector<4x512xf32>
    %c0_305 = arith.constant 0 : index
    %c0_306 = arith.constant 0 : index
    %371 = tpu.strided_load %arg11[%c0_305, %c0_306] {strides = array<i32: 2, 1>} : memref<12x128xf32, #tpu.memory_space<vmem>>, vector<4x128xf32>
    %372 = arith.truncf %371 : vector<4x128xf32> to vector<4x128xbf16>
    %c0_307 = arith.constant 0 : index
    %c0_308 = arith.constant 0 : index
    %c0_309 = arith.constant 0 : index
    %373 = vector.load %arg4[%c0_307, %c0_308, %c0_309] : memref<6x128x512xbf16, #tpu.memory_space<vmem>>, vector<1x128x512xbf16>
    %374 = vector.shape_cast %373 : vector<1x128x512xbf16> to vector<128x512xbf16>
    %cst_310 = arith.constant dense<0.000000e+00> : vector<4x512xf32>
    %375 = tpu.matmul %372, %374, %cst_310 {dimension_numbers = #tpu.dot_dimension_numbers<[1], [0], [0], [1], [0, 0, 1, 1], [], []>} : vector<4x128xbf16>, vector<128x512xbf16>, vector<4x512xf32> -> vector<4x512xf32>
    %376 = arith.addf %370, %375 : vector<4x512xf32>
    %c1_311 = arith.constant 1 : index
    %c0_312 = arith.constant 0 : index
    %377 = tpu.strided_load %arg11[%c1_311, %c0_312] {strides = array<i32: 2, 1>} : memref<12x128xf32, #tpu.memory_space<vmem>>, vector<4x128xf32>
    %378 = arith.truncf %377 : vector<4x128xf32> to vector<4x128xbf16>
    %c1_313 = arith.constant 1 : index
    %c0_314 = arith.constant 0 : index
    %c0_315 = arith.constant 0 : index
    %379 = vector.load %arg4[%c1_313, %c0_314, %c0_315] : memref<6x128x512xbf16, #tpu.memory_space<vmem>>, vector<1x128x512xbf16>
    %380 = vector.shape_cast %379 : vector<1x128x512xbf16> to vector<128x512xbf16>
    %cst_316 = arith.constant dense<0.000000e+00> : vector<4x512xf32>
    %381 = tpu.matmul %378, %380, %cst_316 {dimension_numbers = #tpu.dot_dimension_numbers<[1], [0], [0], [1], [0, 0, 1, 1], [], []>} : vector<4x128xbf16>, vector<128x512xbf16>, vector<4x512xf32> -> vector<4x512xf32>
    %382 = arith.addf %376, %381 : vector<4x512xf32>
    %c2_317 = arith.constant 2 : index
    %c0_318 = arith.constant 0 : index
    %383 = tpu.strided_load %arg11[%c2_317, %c0_318] {strides = array<i32: 2, 1>} : memref<12x128xf32, #tpu.memory_space<vmem>>, vector<4x128xf32>
    %384 = arith.truncf %383 : vector<4x128xf32> to vector<4x128xbf16>
    %c2_319 = arith.constant 2 : index
    %c0_320 = arith.constant 0 : index
    %c0_321 = arith.constant 0 : index
    %385 = vector.load %arg4[%c2_319, %c0_320, %c0_321] : memref<6x128x512xbf16, #tpu.memory_space<vmem>>, vector<1x128x512xbf16>
    %386 = vector.shape_cast %385 : vector<1x128x512xbf16> to vector<128x512xbf16>
    %cst_322 = arith.constant dense<0.000000e+00> : vector<4x512xf32>
    %387 = tpu.matmul %384, %386, %cst_322 {dimension_numbers = #tpu.dot_dimension_numbers<[1], [0], [0], [1], [0, 0, 1, 1], [], []>} : vector<4x128xbf16>, vector<128x512xbf16>, vector<4x512xf32> -> vector<4x512xf32>
    %388 = arith.addf %382, %387 : vector<4x512xf32>
    %c3_323 = arith.constant 3 : index
    %c0_324 = arith.constant 0 : index
    %389 = tpu.strided_load %arg11[%c3_323, %c0_324] {strides = array<i32: 2, 1>} : memref<12x128xf32, #tpu.memory_space<vmem>>, vector<4x128xf32>
    %390 = arith.truncf %389 : vector<4x128xf32> to vector<4x128xbf16>
    %c3_325 = arith.constant 3 : index
    %c0_326 = arith.constant 0 : index
    %c0_327 = arith.constant 0 : index
    %391 = vector.load %arg4[%c3_325, %c0_326, %c0_327] : memref<6x128x512xbf16, #tpu.memory_space<vmem>>, vector<1x128x512xbf16>
    %392 = vector.shape_cast %391 : vector<1x128x512xbf16> to vector<128x512xbf16>
    %cst_328 = arith.constant dense<0.000000e+00> : vector<4x512xf32>
    %393 = tpu.matmul %390, %392, %cst_328 {dimension_numbers = #tpu.dot_dimension_numbers<[1], [0], [0], [1], [0, 0, 1, 1], [], []>} : vector<4x128xbf16>, vector<128x512xbf16>, vector<4x512xf32> -> vector<4x512xf32>
    %394 = arith.addf %388, %393 : vector<4x512xf32>
    %c4_329 = arith.constant 4 : index
    %c0_330 = arith.constant 0 : index
    %395 = tpu.strided_load %arg11[%c4_329, %c0_330] {strides = array<i32: 2, 1>} : memref<12x128xf32, #tpu.memory_space<vmem>>, vector<4x128xf32>
    %396 = arith.truncf %395 : vector<4x128xf32> to vector<4x128xbf16>
    %c4_331 = arith.constant 4 : index
    %c0_332 = arith.constant 0 : index
    %c0_333 = arith.constant 0 : index
    %397 = vector.load %arg4[%c4_331, %c0_332, %c0_333] : memref<6x128x512xbf16, #tpu.memory_space<vmem>>, vector<1x128x512xbf16>
    %398 = vector.shape_cast %397 : vector<1x128x512xbf16> to vector<128x512xbf16>
    %cst_334 = arith.constant dense<0.000000e+00> : vector<4x512xf32>
    %399 = tpu.matmul %396, %398, %cst_334 {dimension_numbers = #tpu.dot_dimension_numbers<[1], [0], [0], [1], [0, 0, 1, 1], [], []>} : vector<4x128xbf16>, vector<128x512xbf16>, vector<4x512xf32> -> vector<4x512xf32>
    %400 = arith.addf %394, %399 : vector<4x512xf32>
    %c5_335 = arith.constant 5 : index
    %c0_336 = arith.constant 0 : index
    %401 = tpu.strided_load %arg11[%c5_335, %c0_336] {strides = array<i32: 2, 1>} : memref<12x128xf32, #tpu.memory_space<vmem>>, vector<4x128xf32>
    %402 = arith.truncf %401 : vector<4x128xf32> to vector<4x128xbf16>
    %c5_337 = arith.constant 5 : index
    %c0_338 = arith.constant 0 : index
    %c0_339 = arith.constant 0 : index
    %403 = vector.load %arg4[%c5_337, %c0_338, %c0_339] : memref<6x128x512xbf16, #tpu.memory_space<vmem>>, vector<1x128x512xbf16>
    %404 = vector.shape_cast %403 : vector<1x128x512xbf16> to vector<128x512xbf16>
    %cst_340 = arith.constant dense<0.000000e+00> : vector<4x512xf32>
    %405 = tpu.matmul %402, %404, %cst_340 {dimension_numbers = #tpu.dot_dimension_numbers<[1], [0], [0], [1], [0, 0, 1, 1], [], []>} : vector<4x128xbf16>, vector<128x512xbf16>, vector<4x512xf32> -> vector<4x512xf32>
    %406 = arith.addf %400, %405 : vector<4x512xf32>
    %407 = vector.extract_strided_slice %406 {offsets = [0, 0], sizes = [4, 128], strides = [1, 1]} : vector<4x512xf32> to vector<4x128xf32>
    %408 = vector.extract_strided_slice %406 {offsets = [0, 128], sizes = [4, 128], strides = [1, 1]} : vector<4x512xf32> to vector<4x128xf32>
    %409 = arith.maximumf %407, %408 : vector<4x128xf32>
    %410 = vector.extract_strided_slice %406 {offsets = [0, 256], sizes = [4, 128], strides = [1, 1]} : vector<4x512xf32> to vector<4x128xf32>
    %411 = vector.extract_strided_slice %406 {offsets = [0, 384], sizes = [4, 128], strides = [1, 1]} : vector<4x512xf32> to vector<4x128xf32>
    %412 = arith.maximumf %410, %411 : vector<4x128xf32>
    %413 = arith.maximumf %409, %412 : vector<4x128xf32>
    %c0_341 = arith.constant 0 : index
    %c0_342 = arith.constant 0 : index
    %414 = vector.load %arg5[%c0_341, %c0_342] : memref<1x128xf32, #tpu.memory_space<vmem>>, vector<1x128xf32>
    %415 = vector.broadcast %414 : vector<1x128xf32> to vector<4x128xf32>
    %416 = arith.addf %413, %415 : vector<4x128xf32>
    %cst_343 = arith.constant 0.000000e+00 : f32
    %417 = vector.broadcast %cst_343 : f32 to vector<4x128xf32>
    %418 = arith.maximumf %416, %417 : vector<4x128xf32>
    %419 = arith.truncf %418 : vector<4x128xf32> to vector<4x128xbf16>
    %cst_344 = arith.constant 0.000000e+00 : f32
    %420 = vector.broadcast %cst_344 : f32 to vector<1x128xf32>
    %421 = vector.extract_strided_slice %419 {offsets = [0, 0], sizes = [1, 128], strides = [1, 1]} : vector<4x128xbf16> to vector<1x128xbf16>
    %c0_345 = arith.constant 0 : index
    %c0_346 = arith.constant 0 : index
    %c0_347 = arith.constant 0 : index
    %422 = vector.load %arg6[%c0_345, %c0_346, %c0_347] : memref<4x128x128xbf16, #tpu.memory_space<vmem>>, vector<1x128x128xbf16>
    %423 = vector.shape_cast %422 : vector<1x128x128xbf16> to vector<128x128xbf16>
    %cst_348 = arith.constant dense<0.000000e+00> : vector<1x128xf32>
    %424 = tpu.matmul %421, %423, %cst_348 {dimension_numbers = #tpu.dot_dimension_numbers<[1], [0], [0], [1], [0, 0, 1, 1], [], []>} : vector<1x128xbf16>, vector<128x128xbf16>, vector<1x128xf32> -> vector<1x128xf32>
    %425 = arith.addf %420, %424 : vector<1x128xf32>
    %426 = vector.extract_strided_slice %419 {offsets = [1, 0], sizes = [1, 128], strides = [1, 1]} : vector<4x128xbf16> to vector<1x128xbf16>
    %c1_349 = arith.constant 1 : index
    %c0_350 = arith.constant 0 : index
    %c0_351 = arith.constant 0 : index
    %427 = vector.load %arg6[%c1_349, %c0_350, %c0_351] : memref<4x128x128xbf16, #tpu.memory_space<vmem>>, vector<1x128x128xbf16>
    %428 = vector.shape_cast %427 : vector<1x128x128xbf16> to vector<128x128xbf16>
    %cst_352 = arith.constant dense<0.000000e+00> : vector<1x128xf32>
    %429 = tpu.matmul %426, %428, %cst_352 {dimension_numbers = #tpu.dot_dimension_numbers<[1], [0], [0], [1], [0, 0, 1, 1], [], []>} : vector<1x128xbf16>, vector<128x128xbf16>, vector<1x128xf32> -> vector<1x128xf32>
    %430 = arith.addf %425, %429 : vector<1x128xf32>
    %431 = vector.extract_strided_slice %419 {offsets = [2, 0], sizes = [1, 128], strides = [1, 1]} : vector<4x128xbf16> to vector<1x128xbf16>
    %c2_353 = arith.constant 2 : index
    %c0_354 = arith.constant 0 : index
    %c0_355 = arith.constant 0 : index
    %432 = vector.load %arg6[%c2_353, %c0_354, %c0_355] : memref<4x128x128xbf16, #tpu.memory_space<vmem>>, vector<1x128x128xbf16>
    %433 = vector.shape_cast %432 : vector<1x128x128xbf16> to vector<128x128xbf16>
    %cst_356 = arith.constant dense<0.000000e+00> : vector<1x128xf32>
    %434 = tpu.matmul %431, %433, %cst_356 {dimension_numbers = #tpu.dot_dimension_numbers<[1], [0], [0], [1], [0, 0, 1, 1], [], []>} : vector<1x128xbf16>, vector<128x128xbf16>, vector<1x128xf32> -> vector<1x128xf32>
    %435 = arith.addf %430, %434 : vector<1x128xf32>
    %436 = vector.extract_strided_slice %419 {offsets = [3, 0], sizes = [1, 128], strides = [1, 1]} : vector<4x128xbf16> to vector<1x128xbf16>
    %c3_357 = arith.constant 3 : index
    %c0_358 = arith.constant 0 : index
    %c0_359 = arith.constant 0 : index
    %437 = vector.load %arg6[%c3_357, %c0_358, %c0_359] : memref<4x128x128xbf16, #tpu.memory_space<vmem>>, vector<1x128x128xbf16>
    %438 = vector.shape_cast %437 : vector<1x128x128xbf16> to vector<128x128xbf16>
    %cst_360 = arith.constant dense<0.000000e+00> : vector<1x128xf32>
    %439 = tpu.matmul %436, %438, %cst_360 {dimension_numbers = #tpu.dot_dimension_numbers<[1], [0], [0], [1], [0, 0, 1, 1], [], []>} : vector<1x128xbf16>, vector<128x128xbf16>, vector<1x128xf32> -> vector<1x128xf32>
    %440 = arith.addf %435, %439 : vector<1x128xf32>
    %c0_361 = arith.constant 0 : index
    %c0_362 = arith.constant 0 : index
    %441 = vector.load %arg7[%c0_361, %c0_362] : memref<1x128xf32, #tpu.memory_space<vmem>>, vector<1x128xf32>
    %442 = arith.addf %440, %441 : vector<1x128xf32>
    %cst_363 = arith.constant 0.000000e+00 : f32
    %443 = vector.broadcast %cst_363 : f32 to vector<1x128xf32>
    %444 = arith.maximumf %442, %443 : vector<1x128xf32>
    %445 = arith.truncf %444 : vector<1x128xf32> to vector<1x128xbf16>
    %c0_364 = arith.constant 0 : index
    %c0_365 = arith.constant 0 : index
    %446 = vector.load %arg8[%c0_364, %c0_365] : memref<128x128xbf16, #tpu.memory_space<vmem>>, vector<128x128xbf16>
    %cst_366 = arith.constant dense<0.000000e+00> : vector<1x128xf32>
    %447 = tpu.matmul %445, %446, %cst_366 {dimension_numbers = #tpu.dot_dimension_numbers<[1], [0], [0], [1], [0, 0, 1, 1], [], []>} : vector<1x128xbf16>, vector<128x128xbf16>, vector<1x128xf32> -> vector<1x128xf32>
    %c0_367 = arith.constant 0 : index
    %c0_368 = arith.constant 0 : index
    %448 = vector.load %arg9[%c0_367, %c0_368] : memref<1x128xf32, #tpu.memory_space<vmem>>, vector<1x128xf32>
    %449 = arith.addf %447, %448 : vector<1x128xf32>
    %cst_369 = arith.constant dense<0xFF800000> : vector<1xf32>
    %450 = vector.multi_reduction <maximumf>, %449, %cst_369 [1] : vector<1x128xf32> to vector<1xf32>
    %451 = vector.shape_cast %450 : vector<1xf32> to vector<1x1xf32>
    %452 = vector.broadcast %451 : vector<1x1xf32> to vector<1x128xf32>
    %453 = arith.subf %449, %452 : vector<1x128xf32>
    %454 = math.exp %453 : vector<1x128xf32>
    %cst_370 = arith.constant dense<0.000000e+00> : vector<1xf32>
    %455 = vector.multi_reduction <add>, %454, %cst_370 [1] : vector<1x128xf32> to vector<1xf32>
    %456 = vector.shape_cast %455 : vector<1xf32> to vector<1x1xf32>
    %457 = math.log %456 : vector<1x1xf32>
    %458 = vector.broadcast %451 : vector<1x1xf32> to vector<1x128xf32>
    %459 = arith.subf %449, %458 : vector<1x128xf32>
    %460 = vector.broadcast %457 : vector<1x1xf32> to vector<1x128xf32>
    %461 = arith.subf %459, %460 : vector<1x128xf32>
    %cst_371 = arith.constant 0.000000e+00 : f32
    %462 = vector.broadcast %cst_371 : f32 to vector<12x512xf32>
    %c3_i32 = arith.constant 3 : i32
    %c0_i32_372 = arith.constant 0 : i32
    %c0_i32_373 = arith.constant 0 : i32
    %463 = tpu.memref_slice %arg1[%c3_i32, %c0_i32_372, %c0_i32_373] : memref<4x28x28xf32, #tpu.memory_space<vmem>> -> memref<1x28x28xf32, #tpu.memory_space<vmem>>
    %464 = tpu.memref_squeeze %463 : memref<1x28x28xf32, #tpu.memory_space<vmem>> -> memref<28x28xf32, #tpu.memory_space<vmem>>
    %c0_374 = arith.constant 0 : index
    %c0_375 = arith.constant 0 : index
    %465 = tpu.strided_load %464[%c0_374, %c0_375] {strides = array<i32: 2, 1>} : memref<28x28xf32, #tpu.memory_space<vmem>>, vector<12x28xf32>
    %466 = arith.truncf %465 : vector<12x28xf32> to vector<12x28xbf16>
    %c0_376 = arith.constant 0 : index
    %c0_377 = arith.constant 0 : index
    %c0_378 = arith.constant 0 : index
    %467 = vector.load %arg2[%c0_376, %c0_377, %c0_378] : memref<6x28x512xbf16, #tpu.memory_space<vmem>>, vector<1x28x512xbf16>
    %468 = vector.shape_cast %467 : vector<1x28x512xbf16> to vector<28x512xbf16>
    %cst_379 = arith.constant dense<0.000000e+00> : vector<12x512xf32>
    %469 = tpu.matmul %466, %468, %cst_379 {dimension_numbers = #tpu.dot_dimension_numbers<[1], [0], [0], [1], [0, 0, 1, 1], [], []>} : vector<12x28xbf16>, vector<28x512xbf16>, vector<12x512xf32> -> vector<12x512xf32>
    %470 = arith.addf %462, %469 : vector<12x512xf32>
    %c3_i32_380 = arith.constant 3 : i32
    %c0_i32_381 = arith.constant 0 : i32
    %c0_i32_382 = arith.constant 0 : i32
    %471 = tpu.memref_slice %arg1[%c3_i32_380, %c0_i32_381, %c0_i32_382] : memref<4x28x28xf32, #tpu.memory_space<vmem>> -> memref<1x28x28xf32, #tpu.memory_space<vmem>>
    %472 = tpu.memref_squeeze %471 : memref<1x28x28xf32, #tpu.memory_space<vmem>> -> memref<28x28xf32, #tpu.memory_space<vmem>>
    %c1_383 = arith.constant 1 : index
    %c0_384 = arith.constant 0 : index
    %473 = tpu.strided_load %472[%c1_383, %c0_384] {strides = array<i32: 2, 1>} : memref<28x28xf32, #tpu.memory_space<vmem>>, vector<12x28xf32>
    %474 = arith.truncf %473 : vector<12x28xf32> to vector<12x28xbf16>
    %c1_385 = arith.constant 1 : index
    %c0_386 = arith.constant 0 : index
    %c0_387 = arith.constant 0 : index
    %475 = vector.load %arg2[%c1_385, %c0_386, %c0_387] : memref<6x28x512xbf16, #tpu.memory_space<vmem>>, vector<1x28x512xbf16>
    %476 = vector.shape_cast %475 : vector<1x28x512xbf16> to vector<28x512xbf16>
    %cst_388 = arith.constant dense<0.000000e+00> : vector<12x512xf32>
    %477 = tpu.matmul %474, %476, %cst_388 {dimension_numbers = #tpu.dot_dimension_numbers<[1], [0], [0], [1], [0, 0, 1, 1], [], []>} : vector<12x28xbf16>, vector<28x512xbf16>, vector<12x512xf32> -> vector<12x512xf32>
    %478 = arith.addf %470, %477 : vector<12x512xf32>
    %c3_i32_389 = arith.constant 3 : i32
    %c0_i32_390 = arith.constant 0 : i32
    %c0_i32_391 = arith.constant 0 : i32
    %479 = tpu.memref_slice %arg1[%c3_i32_389, %c0_i32_390, %c0_i32_391] : memref<4x28x28xf32, #tpu.memory_space<vmem>> -> memref<1x28x28xf32, #tpu.memory_space<vmem>>
    %480 = tpu.memref_squeeze %479 : memref<1x28x28xf32, #tpu.memory_space<vmem>> -> memref<28x28xf32, #tpu.memory_space<vmem>>
    %c2_392 = arith.constant 2 : index
    %c0_393 = arith.constant 0 : index
    %481 = tpu.strided_load %480[%c2_392, %c0_393] {strides = array<i32: 2, 1>} : memref<28x28xf32, #tpu.memory_space<vmem>>, vector<12x28xf32>
    %482 = arith.truncf %481 : vector<12x28xf32> to vector<12x28xbf16>
    %c2_394 = arith.constant 2 : index
    %c0_395 = arith.constant 0 : index
    %c0_396 = arith.constant 0 : index
    %483 = vector.load %arg2[%c2_394, %c0_395, %c0_396] : memref<6x28x512xbf16, #tpu.memory_space<vmem>>, vector<1x28x512xbf16>
    %484 = vector.shape_cast %483 : vector<1x28x512xbf16> to vector<28x512xbf16>
    %cst_397 = arith.constant dense<0.000000e+00> : vector<12x512xf32>
    %485 = tpu.matmul %482, %484, %cst_397 {dimension_numbers = #tpu.dot_dimension_numbers<[1], [0], [0], [1], [0, 0, 1, 1], [], []>} : vector<12x28xbf16>, vector<28x512xbf16>, vector<12x512xf32> -> vector<12x512xf32>
    %486 = arith.addf %478, %485 : vector<12x512xf32>
    %c3_i32_398 = arith.constant 3 : i32
    %c0_i32_399 = arith.constant 0 : i32
    %c0_i32_400 = arith.constant 0 : i32
    %487 = tpu.memref_slice %arg1[%c3_i32_398, %c0_i32_399, %c0_i32_400] : memref<4x28x28xf32, #tpu.memory_space<vmem>> -> memref<1x28x28xf32, #tpu.memory_space<vmem>>
    %488 = tpu.memref_squeeze %487 : memref<1x28x28xf32, #tpu.memory_space<vmem>> -> memref<28x28xf32, #tpu.memory_space<vmem>>
    %c3_401 = arith.constant 3 : index
    %c0_402 = arith.constant 0 : index
    %489 = tpu.strided_load %488[%c3_401, %c0_402] {strides = array<i32: 2, 1>} : memref<28x28xf32, #tpu.memory_space<vmem>>, vector<12x28xf32>
    %490 = arith.truncf %489 : vector<12x28xf32> to vector<12x28xbf16>
    %c3_403 = arith.constant 3 : index
    %c0_404 = arith.constant 0 : index
    %c0_405 = arith.constant 0 : index
    %491 = vector.load %arg2[%c3_403, %c0_404, %c0_405] : memref<6x28x512xbf16, #tpu.memory_space<vmem>>, vector<1x28x512xbf16>
    %492 = vector.shape_cast %491 : vector<1x28x512xbf16> to vector<28x512xbf16>
    %cst_406 = arith.constant dense<0.000000e+00> : vector<12x512xf32>
    %493 = tpu.matmul %490, %492, %cst_406 {dimension_numbers = #tpu.dot_dimension_numbers<[1], [0], [0], [1], [0, 0, 1, 1], [], []>} : vector<12x28xbf16>, vector<28x512xbf16>, vector<12x512xf32> -> vector<12x512xf32>
    %494 = arith.addf %486, %493 : vector<12x512xf32>
    %c3_i32_407 = arith.constant 3 : i32
    %c0_i32_408 = arith.constant 0 : i32
    %c0_i32_409 = arith.constant 0 : i32
    %495 = tpu.memref_slice %arg1[%c3_i32_407, %c0_i32_408, %c0_i32_409] : memref<4x28x28xf32, #tpu.memory_space<vmem>> -> memref<1x28x28xf32, #tpu.memory_space<vmem>>
    %496 = tpu.memref_squeeze %495 : memref<1x28x28xf32, #tpu.memory_space<vmem>> -> memref<28x28xf32, #tpu.memory_space<vmem>>
    %c4_410 = arith.constant 4 : index
    %c0_411 = arith.constant 0 : index
    %497 = tpu.strided_load %496[%c4_410, %c0_411] {strides = array<i32: 2, 1>} : memref<28x28xf32, #tpu.memory_space<vmem>>, vector<12x28xf32>
    %498 = arith.truncf %497 : vector<12x28xf32> to vector<12x28xbf16>
    %c4_412 = arith.constant 4 : index
    %c0_413 = arith.constant 0 : index
    %c0_414 = arith.constant 0 : index
    %499 = vector.load %arg2[%c4_412, %c0_413, %c0_414] : memref<6x28x512xbf16, #tpu.memory_space<vmem>>, vector<1x28x512xbf16>
    %500 = vector.shape_cast %499 : vector<1x28x512xbf16> to vector<28x512xbf16>
    %cst_415 = arith.constant dense<0.000000e+00> : vector<12x512xf32>
    %501 = tpu.matmul %498, %500, %cst_415 {dimension_numbers = #tpu.dot_dimension_numbers<[1], [0], [0], [1], [0, 0, 1, 1], [], []>} : vector<12x28xbf16>, vector<28x512xbf16>, vector<12x512xf32> -> vector<12x512xf32>
    %502 = arith.addf %494, %501 : vector<12x512xf32>
    %c3_i32_416 = arith.constant 3 : i32
    %c0_i32_417 = arith.constant 0 : i32
    %c0_i32_418 = arith.constant 0 : i32
    %503 = tpu.memref_slice %arg1[%c3_i32_416, %c0_i32_417, %c0_i32_418] : memref<4x28x28xf32, #tpu.memory_space<vmem>> -> memref<1x28x28xf32, #tpu.memory_space<vmem>>
    %504 = tpu.memref_squeeze %503 : memref<1x28x28xf32, #tpu.memory_space<vmem>> -> memref<28x28xf32, #tpu.memory_space<vmem>>
    %c5_419 = arith.constant 5 : index
    %c0_420 = arith.constant 0 : index
    %505 = tpu.strided_load %504[%c5_419, %c0_420] {strides = array<i32: 2, 1>} : memref<28x28xf32, #tpu.memory_space<vmem>>, vector<12x28xf32>
    %506 = arith.truncf %505 : vector<12x28xf32> to vector<12x28xbf16>
    %c5_421 = arith.constant 5 : index
    %c0_422 = arith.constant 0 : index
    %c0_423 = arith.constant 0 : index
    %507 = vector.load %arg2[%c5_421, %c0_422, %c0_423] : memref<6x28x512xbf16, #tpu.memory_space<vmem>>, vector<1x28x512xbf16>
    %508 = vector.shape_cast %507 : vector<1x28x512xbf16> to vector<28x512xbf16>
    %cst_424 = arith.constant dense<0.000000e+00> : vector<12x512xf32>
    %509 = tpu.matmul %506, %508, %cst_424 {dimension_numbers = #tpu.dot_dimension_numbers<[1], [0], [0], [1], [0, 0, 1, 1], [], []>} : vector<12x28xbf16>, vector<28x512xbf16>, vector<12x512xf32> -> vector<12x512xf32>
    %510 = arith.addf %502, %509 : vector<12x512xf32>
    %511 = vector.extract_strided_slice %510 {offsets = [0, 0], sizes = [12, 128], strides = [1, 1]} : vector<12x512xf32> to vector<12x128xf32>
    %512 = vector.extract_strided_slice %510 {offsets = [0, 128], sizes = [12, 128], strides = [1, 1]} : vector<12x512xf32> to vector<12x128xf32>
    %513 = arith.maximumf %511, %512 : vector<12x128xf32>
    %514 = vector.extract_strided_slice %510 {offsets = [0, 256], sizes = [12, 128], strides = [1, 1]} : vector<12x512xf32> to vector<12x128xf32>
    %515 = vector.extract_strided_slice %510 {offsets = [0, 384], sizes = [12, 128], strides = [1, 1]} : vector<12x512xf32> to vector<12x128xf32>
    %516 = arith.maximumf %514, %515 : vector<12x128xf32>
    %517 = arith.maximumf %513, %516 : vector<12x128xf32>
    %c0_425 = arith.constant 0 : index
    %c0_426 = arith.constant 0 : index
    %518 = vector.load %arg3[%c0_425, %c0_426] : memref<1x128xf32, #tpu.memory_space<vmem>>, vector<1x128xf32>
    %519 = vector.broadcast %518 : vector<1x128xf32> to vector<12x128xf32>
    %520 = arith.addf %517, %519 : vector<12x128xf32>
    %cst_427 = arith.constant 0.000000e+00 : f32
    %521 = vector.broadcast %cst_427 : f32 to vector<12x128xf32>
    %522 = arith.maximumf %520, %521 : vector<12x128xf32>
    %c0_428 = arith.constant 0 : index
    %c0_429 = arith.constant 0 : index
    %523 = vector.load %arg11[%c0_428, %c0_429] : memref<12x128xf32, #tpu.memory_space<vmem>>, vector<12x128xf32>
    tpu.vector_store %arg11[%c0_428, %c0_429], %522 {strides = array<i32>} : memref<12x128xf32, #tpu.memory_space<vmem>>, vector<12x128xf32>,
    %cst_430 = arith.constant 0.000000e+00 : f32
    %524 = vector.broadcast %cst_430 : f32 to vector<4x512xf32>
    %c0_431 = arith.constant 0 : index
    %c0_432 = arith.constant 0 : index
    %525 = tpu.strided_load %arg11[%c0_431, %c0_432] {strides = array<i32: 2, 1>} : memref<12x128xf32, #tpu.memory_space<vmem>>, vector<4x128xf32>
    %526 = arith.truncf %525 : vector<4x128xf32> to vector<4x128xbf16>
    %c0_433 = arith.constant 0 : index
    %c0_434 = arith.constant 0 : index
    %c0_435 = arith.constant 0 : index
    %527 = vector.load %arg4[%c0_433, %c0_434, %c0_435] : memref<6x128x512xbf16, #tpu.memory_space<vmem>>, vector<1x128x512xbf16>
    %528 = vector.shape_cast %527 : vector<1x128x512xbf16> to vector<128x512xbf16>
    %cst_436 = arith.constant dense<0.000000e+00> : vector<4x512xf32>
    %529 = tpu.matmul %526, %528, %cst_436 {dimension_numbers = #tpu.dot_dimension_numbers<[1], [0], [0], [1], [0, 0, 1, 1], [], []>} : vector<4x128xbf16>, vector<128x512xbf16>, vector<4x512xf32> -> vector<4x512xf32>
    %530 = arith.addf %524, %529 : vector<4x512xf32>
    %c1_437 = arith.constant 1 : index
    %c0_438 = arith.constant 0 : index
    %531 = tpu.strided_load %arg11[%c1_437, %c0_438] {strides = array<i32: 2, 1>} : memref<12x128xf32, #tpu.memory_space<vmem>>, vector<4x128xf32>
    %532 = arith.truncf %531 : vector<4x128xf32> to vector<4x128xbf16>
    %c1_439 = arith.constant 1 : index
    %c0_440 = arith.constant 0 : index
    %c0_441 = arith.constant 0 : index
    %533 = vector.load %arg4[%c1_439, %c0_440, %c0_441] : memref<6x128x512xbf16, #tpu.memory_space<vmem>>, vector<1x128x512xbf16>
    %534 = vector.shape_cast %533 : vector<1x128x512xbf16> to vector<128x512xbf16>
    %cst_442 = arith.constant dense<0.000000e+00> : vector<4x512xf32>
    %535 = tpu.matmul %532, %534, %cst_442 {dimension_numbers = #tpu.dot_dimension_numbers<[1], [0], [0], [1], [0, 0, 1, 1], [], []>} : vector<4x128xbf16>, vector<128x512xbf16>, vector<4x512xf32> -> vector<4x512xf32>
    %536 = arith.addf %530, %535 : vector<4x512xf32>
    %c2_443 = arith.constant 2 : index
    %c0_444 = arith.constant 0 : index
    %537 = tpu.strided_load %arg11[%c2_443, %c0_444] {strides = array<i32: 2, 1>} : memref<12x128xf32, #tpu.memory_space<vmem>>, vector<4x128xf32>
    %538 = arith.truncf %537 : vector<4x128xf32> to vector<4x128xbf16>
    %c2_445 = arith.constant 2 : index
    %c0_446 = arith.constant 0 : index
    %c0_447 = arith.constant 0 : index
    %539 = vector.load %arg4[%c2_445, %c0_446, %c0_447] : memref<6x128x512xbf16, #tpu.memory_space<vmem>>, vector<1x128x512xbf16>
    %540 = vector.shape_cast %539 : vector<1x128x512xbf16> to vector<128x512xbf16>
    %cst_448 = arith.constant dense<0.000000e+00> : vector<4x512xf32>
    %541 = tpu.matmul %538, %540, %cst_448 {dimension_numbers = #tpu.dot_dimension_numbers<[1], [0], [0], [1], [0, 0, 1, 1], [], []>} : vector<4x128xbf16>, vector<128x512xbf16>, vector<4x512xf32> -> vector<4x512xf32>
    %542 = arith.addf %536, %541 : vector<4x512xf32>
    %c3_449 = arith.constant 3 : index
    %c0_450 = arith.constant 0 : index
    %543 = tpu.strided_load %arg11[%c3_449, %c0_450] {strides = array<i32: 2, 1>} : memref<12x128xf32, #tpu.memory_space<vmem>>, vector<4x128xf32>
    %544 = arith.truncf %543 : vector<4x128xf32> to vector<4x128xbf16>
    %c3_451 = arith.constant 3 : index
    %c0_452 = arith.constant 0 : index
    %c0_453 = arith.constant 0 : index
    %545 = vector.load %arg4[%c3_451, %c0_452, %c0_453] : memref<6x128x512xbf16, #tpu.memory_space<vmem>>, vector<1x128x512xbf16>
    %546 = vector.shape_cast %545 : vector<1x128x512xbf16> to vector<128x512xbf16>
    %cst_454 = arith.constant dense<0.000000e+00> : vector<4x512xf32>
    %547 = tpu.matmul %544, %546, %cst_454 {dimension_numbers = #tpu.dot_dimension_numbers<[1], [0], [0], [1], [0, 0, 1, 1], [], []>} : vector<4x128xbf16>, vector<128x512xbf16>, vector<4x512xf32> -> vector<4x512xf32>
    %548 = arith.addf %542, %547 : vector<4x512xf32>
    %c4_455 = arith.constant 4 : index
    %c0_456 = arith.constant 0 : index
    %549 = tpu.strided_load %arg11[%c4_455, %c0_456] {strides = array<i32: 2, 1>} : memref<12x128xf32, #tpu.memory_space<vmem>>, vector<4x128xf32>
    %550 = arith.truncf %549 : vector<4x128xf32> to vector<4x128xbf16>
    %c4_457 = arith.constant 4 : index
    %c0_458 = arith.constant 0 : index
    %c0_459 = arith.constant 0 : index
    %551 = vector.load %arg4[%c4_457, %c0_458, %c0_459] : memref<6x128x512xbf16, #tpu.memory_space<vmem>>, vector<1x128x512xbf16>
    %552 = vector.shape_cast %551 : vector<1x128x512xbf16> to vector<128x512xbf16>
    %cst_460 = arith.constant dense<0.000000e+00> : vector<4x512xf32>
    %553 = tpu.matmul %550, %552, %cst_460 {dimension_numbers = #tpu.dot_dimension_numbers<[1], [0], [0], [1], [0, 0, 1, 1], [], []>} : vector<4x128xbf16>, vector<128x512xbf16>, vector<4x512xf32> -> vector<4x512xf32>
    %554 = arith.addf %548, %553 : vector<4x512xf32>
    %c5_461 = arith.constant 5 : index
    %c0_462 = arith.constant 0 : index
    %555 = tpu.strided_load %arg11[%c5_461, %c0_462] {strides = array<i32: 2, 1>} : memref<12x128xf32, #tpu.memory_space<vmem>>, vector<4x128xf32>
    %556 = arith.truncf %555 : vector<4x128xf32> to vector<4x128xbf16>
    %c5_463 = arith.constant 5 : index
    %c0_464 = arith.constant 0 : index
    %c0_465 = arith.constant 0 : index
    %557 = vector.load %arg4[%c5_463, %c0_464, %c0_465] : memref<6x128x512xbf16, #tpu.memory_space<vmem>>, vector<1x128x512xbf16>
    %558 = vector.shape_cast %557 : vector<1x128x512xbf16> to vector<128x512xbf16>
    %cst_466 = arith.constant dense<0.000000e+00> : vector<4x512xf32>
    %559 = tpu.matmul %556, %558, %cst_466 {dimension_numbers = #tpu.dot_dimension_numbers<[1], [0], [0], [1], [0, 0, 1, 1], [], []>} : vector<4x128xbf16>, vector<128x512xbf16>, vector<4x512xf32> -> vector<4x512xf32>
    %560 = arith.addf %554, %559 : vector<4x512xf32>
    %561 = vector.extract_strided_slice %560 {offsets = [0, 0], sizes = [4, 128], strides = [1, 1]} : vector<4x512xf32> to vector<4x128xf32>
    %562 = vector.extract_strided_slice %560 {offsets = [0, 128], sizes = [4, 128], strides = [1, 1]} : vector<4x512xf32> to vector<4x128xf32>
    %563 = arith.maximumf %561, %562 : vector<4x128xf32>
    %564 = vector.extract_strided_slice %560 {offsets = [0, 256], sizes = [4, 128], strides = [1, 1]} : vector<4x512xf32> to vector<4x128xf32>
    %565 = vector.extract_strided_slice %560 {offsets = [0, 384], sizes = [4, 128], strides = [1, 1]} : vector<4x512xf32> to vector<4x128xf32>
    %566 = arith.maximumf %564, %565 : vector<4x128xf32>
    %567 = arith.maximumf %563, %566 : vector<4x128xf32>
    %c0_467 = arith.constant 0 : index
    %c0_468 = arith.constant 0 : index
    %568 = vector.load %arg5[%c0_467, %c0_468] : memref<1x128xf32, #tpu.memory_space<vmem>>, vector<1x128xf32>
    %569 = vector.broadcast %568 : vector<1x128xf32> to vector<4x128xf32>
    %570 = arith.addf %567, %569 : vector<4x128xf32>
    %cst_469 = arith.constant 0.000000e+00 : f32
    %571 = vector.broadcast %cst_469 : f32 to vector<4x128xf32>
    %572 = arith.maximumf %570, %571 : vector<4x128xf32>
    %573 = arith.truncf %572 : vector<4x128xf32> to vector<4x128xbf16>
    %cst_470 = arith.constant 0.000000e+00 : f32
    %574 = vector.broadcast %cst_470 : f32 to vector<1x128xf32>
    %575 = vector.extract_strided_slice %573 {offsets = [0, 0], sizes = [1, 128], strides = [1, 1]} : vector<4x128xbf16> to vector<1x128xbf16>
    %c0_471 = arith.constant 0 : index
    %c0_472 = arith.constant 0 : index
    %c0_473 = arith.constant 0 : index
    %576 = vector.load %arg6[%c0_471, %c0_472, %c0_473] : memref<4x128x128xbf16, #tpu.memory_space<vmem>>, vector<1x128x128xbf16>
    %577 = vector.shape_cast %576 : vector<1x128x128xbf16> to vector<128x128xbf16>
    %cst_474 = arith.constant dense<0.000000e+00> : vector<1x128xf32>
    %578 = tpu.matmul %575, %577, %cst_474 {dimension_numbers = #tpu.dot_dimension_numbers<[1], [0], [0], [1], [0, 0, 1, 1], [], []>} : vector<1x128xbf16>, vector<128x128xbf16>, vector<1x128xf32> -> vector<1x128xf32>
    %579 = arith.addf %574, %578 : vector<1x128xf32>
    %580 = vector.extract_strided_slice %573 {offsets = [1, 0], sizes = [1, 128], strides = [1, 1]} : vector<4x128xbf16> to vector<1x128xbf16>
    %c1_475 = arith.constant 1 : index
    %c0_476 = arith.constant 0 : index
    %c0_477 = arith.constant 0 : index
    %581 = vector.load %arg6[%c1_475, %c0_476, %c0_477] : memref<4x128x128xbf16, #tpu.memory_space<vmem>>, vector<1x128x128xbf16>
    %582 = vector.shape_cast %581 : vector<1x128x128xbf16> to vector<128x128xbf16>
    %cst_478 = arith.constant dense<0.000000e+00> : vector<1x128xf32>
    %583 = tpu.matmul %580, %582, %cst_478 {dimension_numbers = #tpu.dot_dimension_numbers<[1], [0], [0], [1], [0, 0, 1, 1], [], []>} : vector<1x128xbf16>, vector<128x128xbf16>, vector<1x128xf32> -> vector<1x128xf32>
    %584 = arith.addf %579, %583 : vector<1x128xf32>
    %585 = vector.extract_strided_slice %573 {offsets = [2, 0], sizes = [1, 128], strides = [1, 1]} : vector<4x128xbf16> to vector<1x128xbf16>
    %c2_479 = arith.constant 2 : index
    %c0_480 = arith.constant 0 : index
    %c0_481 = arith.constant 0 : index
    %586 = vector.load %arg6[%c2_479, %c0_480, %c0_481] : memref<4x128x128xbf16, #tpu.memory_space<vmem>>, vector<1x128x128xbf16>
    %587 = vector.shape_cast %586 : vector<1x128x128xbf16> to vector<128x128xbf16>
    %cst_482 = arith.constant dense<0.000000e+00> : vector<1x128xf32>
    %588 = tpu.matmul %585, %587, %cst_482 {dimension_numbers = #tpu.dot_dimension_numbers<[1], [0], [0], [1], [0, 0, 1, 1], [], []>} : vector<1x128xbf16>, vector<128x128xbf16>, vector<1x128xf32> -> vector<1x128xf32>
    %589 = arith.addf %584, %588 : vector<1x128xf32>
    %590 = vector.extract_strided_slice %573 {offsets = [3, 0], sizes = [1, 128], strides = [1, 1]} : vector<4x128xbf16> to vector<1x128xbf16>
    %c3_483 = arith.constant 3 : index
    %c0_484 = arith.constant 0 : index
    %c0_485 = arith.constant 0 : index
    %591 = vector.load %arg6[%c3_483, %c0_484, %c0_485] : memref<4x128x128xbf16, #tpu.memory_space<vmem>>, vector<1x128x128xbf16>
    %592 = vector.shape_cast %591 : vector<1x128x128xbf16> to vector<128x128xbf16>
    %cst_486 = arith.constant dense<0.000000e+00> : vector<1x128xf32>
    %593 = tpu.matmul %590, %592, %cst_486 {dimension_numbers = #tpu.dot_dimension_numbers<[1], [0], [0], [1], [0, 0, 1, 1], [], []>} : vector<1x128xbf16>, vector<128x128xbf16>, vector<1x128xf32> -> vector<1x128xf32>
    %594 = arith.addf %589, %593 : vector<1x128xf32>
    %c0_487 = arith.constant 0 : index
    %c0_488 = arith.constant 0 : index
    %595 = vector.load %arg7[%c0_487, %c0_488] : memref<1x128xf32, #tpu.memory_space<vmem>>, vector<1x128xf32>
    %596 = arith.addf %594, %595 : vector<1x128xf32>
    %cst_489 = arith.constant 0.000000e+00 : f32
    %597 = vector.broadcast %cst_489 : f32 to vector<1x128xf32>
    %598 = arith.maximumf %596, %597 : vector<1x128xf32>
    %599 = arith.truncf %598 : vector<1x128xf32> to vector<1x128xbf16>
    %c0_490 = arith.constant 0 : index
    %c0_491 = arith.constant 0 : index
    %600 = vector.load %arg8[%c0_490, %c0_491] : memref<128x128xbf16, #tpu.memory_space<vmem>>, vector<128x128xbf16>
    %cst_492 = arith.constant dense<0.000000e+00> : vector<1x128xf32>
    %601 = tpu.matmul %599, %600, %cst_492 {dimension_numbers = #tpu.dot_dimension_numbers<[1], [0], [0], [1], [0, 0, 1, 1], [], []>} : vector<1x128xbf16>, vector<128x128xbf16>, vector<1x128xf32> -> vector<1x128xf32>
    %c0_493 = arith.constant 0 : index
    %c0_494 = arith.constant 0 : index
    %602 = vector.load %arg9[%c0_493, %c0_494] : memref<1x128xf32, #tpu.memory_space<vmem>>, vector<1x128xf32>
    %603 = arith.addf %601, %602 : vector<1x128xf32>
    %cst_495 = arith.constant dense<0xFF800000> : vector<1xf32>
    %604 = vector.multi_reduction <maximumf>, %603, %cst_495 [1] : vector<1x128xf32> to vector<1xf32>
    %605 = vector.shape_cast %604 : vector<1xf32> to vector<1x1xf32>
    %606 = vector.broadcast %605 : vector<1x1xf32> to vector<1x128xf32>
    %607 = arith.subf %603, %606 : vector<1x128xf32>
    %608 = math.exp %607 : vector<1x128xf32>
    %cst_496 = arith.constant dense<0.000000e+00> : vector<1xf32>
    %609 = vector.multi_reduction <add>, %608, %cst_496 [1] : vector<1x128xf32> to vector<1xf32>
    %610 = vector.shape_cast %609 : vector<1xf32> to vector<1x1xf32>
    %611 = math.log %610 : vector<1x1xf32>
    %612 = vector.broadcast %605 : vector<1x1xf32> to vector<1x128xf32>
    %613 = arith.subf %603, %612 : vector<1x128xf32>
    %614 = vector.broadcast %611 : vector<1x1xf32> to vector<1x128xf32>
    %615 = arith.subf %613, %614 : vector<1x128xf32>
    %616 = tpu.concatenate %153, %307, %461, %615 in 0 : vector<1x128xf32>, vector<1x128xf32>, vector<1x128xf32>, vector<1x128xf32> -> vector<4x128xf32>
    %c0_497 = arith.constant 0 : index
    %c0_498 = arith.constant 0 : index
    %c0_499 = arith.constant 0 : index
    %617 = vector.load %arg10[%c0_497, %c0_498, %c0_499] : memref<1x4x128xf32, #tpu.memory_space<vmem>>, vector<1x4x128xf32>
    %618 = vector.shape_cast %617 : vector<1x4x128xf32> to vector<4x128xf32>
    %619 = vector.shape_cast %616 : vector<4x128xf32> to vector<1x4x128xf32>
    tpu.vector_store %arg10[%c0_497, %c0_498, %c0_499], %619 {strides = array<i32>} : memref<1x4x128xf32, #tpu.memory_space<vmem>>, vector<1x4x128xf32>,
    return
  }
  func.func @transform_0(%arg0: i32) -> (i32, i32, i32) {
    %c0_i32 = arith.constant 0 : i32
    %c0_i32_0 = arith.constant 0 : i32
    %c0_i32_1 = arith.constant 0 : i32
    return %arg0, %c0_i32, %c0_i32_0 : i32, i32, i32
  }
  func.func @transform_1(%arg0: i32) -> (i32, i32, i32) {
    %c0_i32 = arith.constant 0 : i32
    %c0_i32_0 = arith.constant 0 : i32
    %c0_i32_1 = arith.constant 0 : i32
    %c0_i32_2 = arith.constant 0 : i32
    return %c0_i32, %c0_i32_0, %c0_i32_1 : i32, i32, i32
  }
  func.func @transform_2(%arg0: i32) -> (i32, i32) {
    %c0_i32 = arith.constant 0 : i32
    %c0_i32_0 = arith.constant 0 : i32
    %c0_i32_1 = arith.constant 0 : i32
    return %c0_i32, %c0_i32_0 : i32, i32
  }
  func.func @transform_3(%arg0: i32) -> (i32, i32, i32) {
    %c0_i32 = arith.constant 0 : i32
    %c0_i32_0 = arith.constant 0 : i32
    %c0_i32_1 = arith.constant 0 : i32
    %c0_i32_2 = arith.constant 0 : i32
    return %c0_i32, %c0_i32_0, %c0_i32_1 : i32, i32, i32
  }
  func.func @transform_4(%arg0: i32) -> (i32, i32) {
    %c0_i32 = arith.constant 0 : i32
    %c0_i32_0 = arith.constant 0 : i32
    %c0_i32_1 = arith.constant 0 : i32
    return %c0_i32, %c0_i32_0 : i32, i32
  }
  func.func @transform_5(%arg0: i32) -> (i32, i32, i32) {
    %c0_i32 = arith.constant 0 : i32
    %c0_i32_0 = arith.constant 0 : i32
    %c0_i32_1 = arith.constant 0 : i32
    %c0_i32_2 = arith.constant 0 : i32
    return %c0_i32, %c0_i32_0, %c0_i32_1 : i32, i32, i32
  }
  func.func @transform_6(%arg0: i32) -> (i32, i32) {
    %c0_i32 = arith.constant 0 : i32
    %c0_i32_0 = arith.constant 0 : i32
    %c0_i32_1 = arith.constant 0 : i32
    return %c0_i32, %c0_i32_0 : i32, i32
  }
  func.func @transform_7(%arg0: i32) -> (i32, i32) {
    %c0_i32 = arith.constant 0 : i32
    %c0_i32_0 = arith.constant 0 : i32
    %c0_i32_1 = arith.constant 0 : i32
    return %c0_i32, %c0_i32_0 : i32, i32
  }
  func.func @transform_8(%arg0: i32) -> (i32, i32) {
    %c0_i32 = arith.constant 0 : i32
    %c0_i32_0 = arith.constant 0 : i32
    %c0_i32_1 = arith.constant 0 : i32
    return %c0_i32, %c0_i32_0 : i32, i32
  }
  func.func @transform_9(%arg0: i32) -> (i32, i32, i32) {
    %c0_i32 = arith.constant 0 : i32
    %c0_i32_0 = arith.constant 0 : i32
    %c0_i32_1 = arith.constant 0 : i32
    return %arg0, %c0_i32, %c0_i32_0 : i32, i32, i32
  }
}

</mosaic_0001>

<bundles_post_ra>
// kernel: forward.1
= control target key start
LH: loop header
LB: loop body
LE: loop exit
PB: predicated region body
PF: predicated region fallthrough
CT: control target
= control target key end

     0   :  { %s19789_s0 = inlined_call_operand.vmem [shape: f32[8,28,28], index: 0, kind: input, shape index: {}]   ;;  %s19790_s1 = inlined_call_operand.vmem [shape: bf16[6,28,512], index: 1, kind: input, shape index: {}]   ;;  %s19791_s2 = inlined_call_operand.vmem [shape: f32[1,128], index: 2, kind: input, shape index: {}]   ;;  %s19792_s3 = inlined_call_operand.hbm [shape: bf16[6,128,512], index: 3, kind: input, shape index: {}]   ;;  %s19793_s4 = inlined_call_operand.vmem [shape: f32[1,128], index: 4, kind: input, shape index: {}]   ;;  %s19794_s5 = inlined_call_operand.hbm [shape: bf16[4,128,128], index: 5, kind: input, shape index: {}]   ;;  %s19795_s6 = inlined_call_operand.vmem [shape: f32[1,128], index: 6, kind: input, shape index: {}]   ;;  %s19796_s7 = inlined_call_operand.vmem [shape: bf16[128,128], index: 7, kind: input, shape index: {}]   ;;  %s19797_s8 = inlined_call_operand.vmem [shape: f32[1,128], index: 8, kind: input, shape index: {}]   ;;  %s19798_s9 = inlined_call_operand.hbm [shape: f32[2,4,128], index: 9, kind: output, shape index: {}]  }
   0x1   :  { %19799 = sst [smem:[#allocation12_spill]] %s19792_s3 }
   0x2   :  { %14 = vsyncpa [#allocation4], 0 }
   0x3   :  { %15 = vsyncpa [#allocation7], 0 }
   0x4   :  { %16 = vsyncpa [#allocation5], 0 }
   0x5   :  { %18 = vsyncpa [#allocation5 + $0x1], 0  ;;  %s17472_s30 = smov 0   ;;  %s17474_s10 = smov 0  }
   0x6   :  { %s17476_s11 = smov 0   ;;  %s17478_s12 = smov 0  }
   0x7 LB: > { %s17493_s13 = sadd.s32 4294967295, %s17414_s12   ;;  %s11276_s14 = sadd.s32 4294967294, %s17414_s12   ;;  %s17414_s12 = sphi %s17478_s12, %s19807_s12   ;;  %s17410_s11 = sphi %s17476_s11, %s19806_s11   ;;  %s17406_s10 = sphi %s17474_s10, %s19805_s10   ;;  %s17402_s30 = sphi %s17472_s30, %s19804_s30  }
   0x8   : > { %s17497_s15 = sadd.s32 1, %s17414_s12   ;;  %s225_s16 = sadd.s32 1, %s17410_s11 }
   0x9   : > { %s222_s17 = ssub.s32 %s17414_s12, %s17497_s15  ;;  %p235_p0 = scmp.ne.s32.totalorder %s17410_s11, %s17406_s10 }
   0xa   : > { %p223_p1 = scmp.eq.s32.totalorder %s222_s17, 0  ;;  %p236_p2 = scmp.eq.s32.totalorder %s17493_s13, 1 }
   0xb   : > { %p241_p3 = scmp.ne.s32.totalorder %s17406_s10, %s17402_s30  ;;  %p242_p4 = scmp.eq.s32.totalorder %s11276_s14, 1 }
   0xc   : > { %s17508_s18 = scalar_select %p223_p1, %s17410_s11, %s225_s16  }
   0xd   : > { %p17510_p5 = por %p236_p2, %p235_p0  ;;  %p17514_p6 = por %p242_p4, %p241_p3 }
   0xe   : > { %p11277_p7 = scmp.ge.s32.totalorder %s17414_s12, 1  ;;  %p249_p8 = scmp.lt.s32.totalorder %s17414_s12, 3 }
   0xf   : > { %p17217_p9 = scmp.eq.s32.totalorder %s17493_s13, 0  ;;  %s19803_s3 = sld [smem:[#allocation12_spill]] }
  0x10   : > { %p17521_p10 = pnand %p11277_p7, %p249_p8  ;;  %s17416_s25 = smov [#allocation3]  }
  0x11   : > { %s268_s26 = sshll.u32 %s17416_s25, 4  ;;  %s283_s29 = sshll.u32 %s19794_s5, 4  ;;  %s269_s26 = int_to_ptr.vmem [resolvable:$true] %s268_s26  ;;  %s284_s29 = int_to_ptr.hbm [resolvable:$true] %s283_s29 }
  0x12   : > { %p17206_p11 = pneg %p17521_p10  ;;  %s17417_s14 = smov 256  }
  0x13   : > { %s17418_s16 = smov 16   ;;  %s17419_s17 = smov [#allocation6]  }
  0x14   : > { %p17207_p12 = pnand %p17217_p9, %p17206_p11  ;;  %s285_s22 = sshll.u32 %s17419_s17, 4  ;;  %s286_s22 = int_to_ptr.vmem [resolvable:$true] %s285_s22 }
  0x15   : > { %s266_s24 = sshll.u32 %s19803_s3, 4  ;;  %s17420_s23 = smov 64   ;;  %s267_s24 = int_to_ptr.hbm [resolvable:$true] %s266_s24 }
  0x16   : > { %17209 = dma.hbm_to_vmem [thread:$0]  (!%p17207_p12), %s267_s24, 24576, %s269_s26, [#allocation4], %s17417_s14, %s17417_s14, %s17418_s16  }
  0x17   : > { %s17421_s3 = smov 4   ;;  %320 = sbr.rel (%p17521_p10) target bundleno = 3062 (0xbf6), region = 56 }
  0x18   : > { %17212 = dma.hbm_to_vmem [thread:$0]  (!%p17207_p12), %s284_s29, 4096, %s286_s22, [#allocation7], %s17420_s23, %s17420_s23, %s17421_s3  }
  0x1c   : > { %17389 = dma.done.wait (%p17217_p9), [#allocation4], 24576  }
  0x1d   : > { %17391 = vsyncadd (%p17217_p9), [#allocation4], 4294942720 }
  0x1e   : > { %17393 = dma.done.wait (%p17217_p9), [#allocation7], 4096  }
  0x1f   : > { %17395 = vsyncadd (%p17217_p9), [#allocation7], 4294963200  ;;  %s17546_s24 = sshll.u32 %s17493_s13, 2  ;;  %vm437_vm0 = vcmask 1045504   ;;  %v11317_v0 = vld [vmem:[%s19790_s1 + $0x60] sm:$0xf] }
  0x20   : > { %p364_p13 = scmp.lt.s32.totalorder %s17546_s24, 7  ;;  %v16090_v1 = vld [vmem:[%s19790_s1 + $0x6c] sm:$0x30]  ;;  %v16088_v2 = vld [vmem:[%s19790_s1 + $0x64] sm:$0xf]  ;;  %vm433_vm1 = vcmask 228352  }
  0x21   : > { %v11318_v3 = vor.u32 %v16090_v1, %v11317_v0  ;;  %v11319_v4 = vld [vmem:[%s19790_s1 + $0x70] sm:$0x30]  ;;  %v11325_v5 = vld [vmem:[%s19790_s1 + $0x68] sm:$0xf]  ;;  %v16091_v6 = vld [vmem:[%s19790_s1 + $0x74] sm:$0x30] }
  0x22   : > { %s365_s3 = scalar_select %p364_p13, %s17546_s24, 7  ;;  %v11322_v7 = vor.u32 %v16088_v2, %v11319_v4  ;;  %v11326_v8 = vor.u32 %v16091_v6, %v11325_v5  ;;  %v11361_v9 = vld [vmem:[%s19790_s1 + $0x28] sm:$0xf]  ;;  %v16083_v10 = vld [vmem:[%s19790_s1 + $0x34] sm:$0x30]  ;;  %vm3063_vm2 = vcmask 1040384  }
  0x23   : > { %v11301_v11 = vld [vmem:[%s19790_s1 + $0x40] sm:$0xf]  ;;  %v439_v12 = vsel %vm437_vm0, %v11318_v3, 0  ;;  %v11362_v13 = vor.u32 %v16083_v10, %v11361_v9  ;;  %v16086_v14 = vld [vmem:[%s19790_s1 + $0x4c] sm:$0xf0]  ;;  %s360_s16 = sand.u32 1, %s17406_s10  }
  0x24   : > { %s16075_s21 = sshll.u32 %s365_s3, 5  ;;  %v16084_v15 = vld [vmem:[%s19790_s1 + $0x44] sm:$0xf]  ;;  %456 = vmatpush.bf16.msra.mxu0 %v439_v12  ;;  %v442_v16 = vsel %vm437_vm0, %v11322_v7, 0  ;;  %v445_v17 = vsel %vm437_vm0, %v11326_v8, 0  ;;  %v11302_v18 = vor.u32 %v16086_v14, %v11301_v11  ;;  %s11284_s17 = sshll.u32 %s360_s16, 2 }
  0x25   : > { %s17587_s25 = scalar_lea.vmem %s19789_s0, %s16075_s21  ;;  %v11303_v19 = vld [vmem:[%s19790_s1 + $0x50] sm:$0xf0]  ;;  %v11309_v20 = vld [vmem:[%s19790_s1 + $0x48] sm:$0xf]  ;;  %470 = vmatpush.bf16.msra.mxu1 %v442_v16  ;;  %484 = vmatpush.bf16.msra.mxu3 %v445_v17  ;;  %v552_v21 = vsel %vm437_vm0, %v11362_v13, 0  ;;  %s11157_s3 = scalar_lea.hbm %s19798_s9, %s17546_s24  ;;  %vm11141_vm3 = vcmask 1041408  }
  0x26   : > { %v11306_v22 = vor.u32 %v16084_v15, %v11303_v19  ;;  %v16087_v23 = vld [vmem:[%s19790_s1 + $0x54] sm:$0xf0]  ;;  %v11345_v24 = vld [vmem:[%s19790_s1 + $0x8] sm:$0xf]  ;;  %591 = vmatpush.bf16.msra.mxu2 %v552_v21  ;;  %v16089_v33 = vld [vmem:[%s19790_s1 + $0x6c] sm:$0xf] }
  0x27   : > { %v11310_v25 = vor.u32 %v16087_v23, %v11309_v20  ;;  %v16079_v26 = vld [vmem:[%s19790_s1 + $0x14] sm:$0xf0]  ;;  %v11289_v27 = vld [vmem:[%s17587_s25 + $0x1] ss:$2 sm:$0xff]  ;;  %v371_v28 = vld [vmem:[%s17587_s25] ss:$2 sm:$0xff] }
  0x28   : > { %v11346_v29 = vor.u32 %v16079_v26, %v11345_v24  ;;  %v11290_v30 = vld [vmem:[%s17587_s25 + $0x11] ss:$2 sm:$0xf]  ;;  %v11288_v31 = vld [vmem:[%s17587_s25 + $0x10] ss:$2 sm:$0xf]  ;;  %457 = vmatpush.bf16.msra.mxu0 %v11302_v18 }
  0x29   : > { %v17611_v32 = vpack.c.bf16 %v11290_v30, %v11289_v27  ;;  %v11327_v34 = vld [vmem:[%s19790_s1 + $0x78] sm:$0x30]  ;;  %v11353_v35 = vld [vmem:[%s19790_s1 + $0x20] sm:$0xf]  ;;  %471 = vmatpush.bf16.msra.mxu1 %v11306_v22  ;;  %485 = vmatpush.bf16.msra.mxu3 %v11310_v25  ;;  %v17622_v36 = vpack.c.bf16 %v11288_v31, %v371_v28  ;;  %v16082_v38 = vld [vmem:[%s19790_s1 + $0x2c] sm:$0x30] }
  0x2a   : > { %v11330_v37 = vor.u32 %v16089_v33, %v11327_v34  ;;  %v16080_v39 = vld [vmem:[%s19790_s1 + $0x24] sm:$0xf]  ;;  %v11355_v40 = vld [vmem:[%s19790_s1 + $0x30] sm:$0x30]  ;;  %592 = vmatpush.bf16.msra.mxu2 %v11346_v29  ;;  %v11354_v41 = vor.u32 %v16082_v38, %v11353_v35  ;;  %v11407_v43 = vld [vmem:[%s19790_s1 + $0xa8] sm:$0xf] }
  0x2b   : > { %v11358_v42 = vor.u32 %v16080_v39, %v11355_v40  ;;  %v16099_v44 = vld [vmem:[%s19790_s1 + $0xb4] sm:$0x30]  ;;  %v16085_v45 = vld [vmem:[%s19790_s1 + $0x4c] sm:$0xf]  ;;  %11331 = vmatmul.msk.bf16.vlgmr.msra.gmra.mxu0 %vm433_vm1, %v17611_v32  ;;  %v11311_v48 = vld [vmem:[%s19790_s1 + $0x58] sm:$0xf0] }
  0x2c   : > { %v448_v46 = vsel %vm437_vm0, %v11330_v37, 0  ;;  %v11408_v47 = vor.u32 %v16099_v44, %v11407_v43  ;;  %v11337_v49 = vld [vmem:[%s19790_s1] sm:$0xf]  ;;  %11332 = vmatmul.msk.bf16.vlgmr.msra.gmra.mxu1 %vm433_vm1, %v17611_v32  ;;  %11333 = vmatmul.msk.bf16.vlgmr.msra.gmra.mxu3 %vm433_vm1, %v17611_v32  ;;  %v546_v50 = vsel %vm437_vm0, %v11354_v41, 0  ;;  %v16078_v52 = vld [vmem:[%s19790_s1 + $0xc] sm:$0xf0]  ;;  %v11314_v55 = vor.u32 %v16085_v45, %v11311_v48 }
  0x2d   : > { %v549_v51 = vsel %vm437_vm0, %v11358_v42, 0  ;;  %v16076_v53 = vld [vmem:[%s19790_s1 + $0x4] sm:$0xf]  ;;  %11369 = vmatmul.msk.bf16.vlgmr.msra.gmra.mxu2 %vm433_vm1, %v17622_v36  ;;  %498 = vmatpush.bf16.msrb.mxu3 %v448_v46  ;;  %v11339_v56 = vld [vmem:[%s19790_s1 + $0x10] sm:$0xf0]  ;;  %v11338_v58 = vor.u32 %v16078_v52, %v11337_v49  ;;  %s362_s26 = scalar_lea.vmem [#allocation8], %s11284_s17 }
  0x2e   : > { %v673_v54 = vsel %vm437_vm0, %v11408_v47, 0  ;;  %v11391_v57 = vld [vmem:[%s19790_s1 + $0x88] sm:$0xf]  ;;  %563 = vmatpush.bf16.msrb.mxu0 %v546_v50  ;;  %577 = vmatpush.bf16.msrb.mxu1 %v549_v51  ;;  %v11342_v59 = vor.u32 %v16076_v53, %v11339_v56  ;;  %v16095_v60 = vld [vmem:[%s19790_s1 + $0x94] sm:$0xf0]  ;;  %s11159_s27 = sshll.u32 %s362_s26, 4  ;;  %s11160_s27 = int_to_ptr.vmem [resolvable:$true] %s11159_s27 }
  0x2f   : > { %v16081_v61 = vld [vmem:[%s19790_s1 + $0x2c] sm:$0xf]  ;;  %712 = vmatpush.bf16.msrb.mxu2 %v673_v54  ;;  %v11392_v62 = vor.u32 %v16095_v60, %v11391_v57  ;;  %v11363_v63 = vld [vmem:[%s19790_s1 + $0x38] sm:$0x30]  ;;  %v11399_v1 = vld [vmem:[%s19790_s1 + $0xa0] sm:$0xf] }
  0x30   : > { %v11366_v0 = vor.u32 %v16081_v61, %v11363_v63  ;;  %v16098_v2 = vld [vmem:[%s19790_s1 + $0xac] sm:$0x30]  ;;  %v16096_v3 = vld [vmem:[%s19790_s1 + $0xa4] sm:$0xf]  ;;  %v11401_v5 = vld [vmem:[%s19790_s1 + $0xb0] sm:$0x30] }
  0x31   : > { %499 = vmatpush.bf16.msrb.mxu3 %v11314_v55  ;;  %v11400_v4 = vor.u32 %v16098_v2, %v11399_v1  ;;  %v11453_v6 = vld [vmem:[%s19790_s1 + $0xe8] sm:$0xf]  ;;  %v16107_v7 = vld [vmem:[%s19790_s1 + $0xf4] sm:$0x30]  ;;  %v11404_v9 = vor.u32 %v16096_v3, %v11401_v5  ;;  %v16077_v11 = vld [vmem:[%s19790_s1 + $0xc] sm:$0xf] }
  0x32   : > { %564 = vmatpush.bf16.msrb.mxu0 %v11338_v58  ;;  %578 = vmatpush.bf16.msrb.mxu1 %v11342_v59  ;;  %v555_v8 = vsel %vm437_vm0, %v11366_v0, 0  ;;  %v11454_v10 = vor.u32 %v16107_v7, %v11453_v6  ;;  %v11347_v12 = vld [vmem:[%s19790_s1 + $0x18] sm:$0xf0]  ;;  %v11383_v15 = vld [vmem:[%s19790_s1 + $0x80] sm:$0xf]  ;;  %s11161_s28 = sshll.u32 %s11157_s3, 4  ;;  %s11162_s28 = int_to_ptr.hbm [resolvable:$true] %s11161_s28 }
  0x33   : > { %713 = vmatpush.bf16.msrb.mxu2 %v11392_v62  ;;  %v667_v13 = vsel %vm437_vm0, %v11400_v4, 0  ;;  %v11350_v14 = vor.u32 %v16077_v11, %v11347_v12  ;;  %v16094_v16 = vld [vmem:[%s19790_s1 + $0x8c] sm:$0xf0]  ;;  %v670_v17 = vsel %vm437_vm0, %v11404_v9, 0  ;;  %v16092_v20 = vld [vmem:[%s19790_s1 + $0x84] sm:$0xf] }
  0x34   : > { %v802_v18 = vsel %vm437_vm0, %v11454_v10, 0  ;;  %v11384_v19 = vor.u32 %v16094_v16, %v11383_v15  ;;  %v11385_v21 = vld [vmem:[%s19790_s1 + $0x90] sm:$0xf0]  ;;  %v11371_v22 = vld [vmem:[%s17587_s25 + $0x2] ss:$2 sm:$0xff]  ;;  %vm11143_vm4 = vcmask 1042432  }
  0x35   : > { %605 = vmatpush.bf16.msra.mxu3 %v555_v8  ;;  %v11388_v23 = vor.u32 %v16092_v20, %v11385_v21  ;;  %v11437_v24 = vld [vmem:[%s19790_s1 + $0xc8] sm:$0xf]  ;;  %v16103_v25 = vld [vmem:[%s19790_s1 + $0xd4] sm:$0xf0]  ;;  %v16097_v28 = vld [vmem:[%s19790_s1 + $0xac] sm:$0xf] }
  0x36   : > { %684 = vmatpush.bf16.msra.mxu0 %v667_v13  ;;  %698 = vmatpush.bf16.msra.mxu1 %v670_v17  ;;  %v11372_v26 = vld [vmem:[%s17587_s25 + $0x12] ss:$2 sm:$0xf]  ;;  %v11438_v27 = vor.u32 %v16103_v25, %v11437_v24  ;;  %v11409_v29 = vld [vmem:[%s19790_s1 + $0xb8] sm:$0x30]  ;;  %s11147_s24 = scalar_lea.sflag [#allocation5], %s360_s16 }
  0x37   : > { %841 = vmatpush.bf16.msra.mxu2 %v802_v18  ;;  %v11445_v30 = vld [vmem:[%s19790_s1 + $0xe0] sm:$0xf]  ;;  %v16106_v31 = vld [vmem:[%s19790_s1 + $0xec] sm:$0x30]  ;;  %v11412_v33 = vor.u32 %v16097_v28, %v11409_v29  ;;  %v16104_v35 = vld [vmem:[%s19790_s1 + $0xe4] sm:$0xf]  ;;  %v17750_v39 = vpack.c.bf16 %v11372_v26, %v11371_v22 }
  0x38   : > { %v11446_v34 = vor.u32 %v16106_v31, %v11445_v30  ;;  %v11447_v37 = vld [vmem:[%s19790_s1 + $0xf0] sm:$0x30]  ;;  %v11499_v38 = vld [vmem:[%s19790_s1 + $0x128] sm:$0xf]  ;;  %v16115_v41 = vld [vmem:[%s19790_s1 + $0x134] sm:$0x30] }
  0x39   : > { %606 = vmatpush.bf16.msra.mxu3 %v11350_v14  ;;  %v11450_v40 = vor.u32 %v16104_v35, %v11447_v37  ;;  %v16093_v42 = vld [vmem:[%s19790_s1 + $0x8c] sm:$0xf]  ;;  %v11393_v43 = vld [vmem:[%s19790_s1 + $0x98] sm:$0xf0]  ;;  %v676_v44 = vsel %vm437_vm0, %v11412_v33, 0  ;;  %v11500_v45 = vor.u32 %v16115_v41, %v11499_v38  ;;  %s17358_s29 = sshra.s32 %s11162_s28, 4  ;;  %s17359_s29 = int_to_ptr.hbm [resolvable:$true] %s17358_s29 }
  0x3a   : > { %685 = vmatpush.bf16.msra.mxu0 %v11384_v19  ;;  %699 = vmatpush.bf16.msra.mxu1 %v11388_v23  ;;  %v11429_v46 = vld [vmem:[%s19790_s1 + $0xc0] sm:$0xf]  ;;  %v16102_v47 = vld [vmem:[%s19790_s1 + $0xcc] sm:$0xf0]  ;;  %v796_v48 = vsel %vm437_vm0, %v11446_v34, 0  ;;  %v11396_v55 = vor.u32 %v16093_v42, %v11393_v43  ;;  %s17360_s21 = scalar_lea.hbm %s17359_s29, 4  ;;  %p17365_p3 = scmp.lt.s32.totalorder %s17359_s29, %s19798_s9 }
  0x3b   : > { %842 = vmatpush.bf16.msra.mxu2 %v11438_v27  ;;  %11367 = vmatmul.msk.bf16.vlgmr.msrb.gmra.mxu0 %vm433_vm1, %v17622_v36  ;;  %v799_v49 = vsel %vm437_vm0, %v11450_v40, 0  ;;  %v16100_v50 = vld [vmem:[%s19790_s1 + $0xc4] sm:$0xf]  ;;  %v11431_v51 = vld [vmem:[%s19790_s1 + $0xd0] sm:$0xf0]  ;;  %v931_v52 = vsel %vm437_vm0, %v11500_v45, 0  ;;  %p17361_p0 = scmp.ne.s32.totalorder %s17359_s29, %s17360_s21 }
  0x3c   : > { %11334 = vmatmul.msk.bf16.vlgmr.msrb.gmra.mxu3 %vm433_vm1, %v17611_v32  ;;  %11368 = vmatmul.msk.bf16.vlgmr.msrb.gmra.mxu1 %vm433_vm1, %v17622_v36  ;;  %v11483_v53 = vld [vmem:[%s19790_s1 + $0x108] sm:$0xf]  ;;  %v16111_v54 = vld [vmem:[%s19790_s1 + $0x114] sm:$0xf0]  ;;  %v11430_v32 = vor.u32 %v16102_v47, %v11429_v46  ;;  %v11434_v56 = vor.u32 %v16100_v50, %v11431_v51  ;;  %v16105_v58 = vld [vmem:[%s19790_s1 + $0xec] sm:$0xf] }
  0x3d   : > { %11415 = vmatmul.msk.bf16.vlgmr.msrb.gmra.mxu2 %vm433_vm1, %v17750_v39  ;;  %726 = vmatpush.bf16.msrb.mxu3 %v676_v44  ;;  %v11484_v57 = vor.u32 %v16111_v54, %v11483_v53  ;;  %v11455_v59 = vld [vmem:[%s19790_s1 + $0xf8] sm:$0x30]  ;;  %v11491_v60 = vld [vmem:[%s19790_s1 + $0x120] sm:$0xf]  ;;  %v16114_v61 = vld [vmem:[%s19790_s1 + $0x12c] sm:$0x30]  ;;  %p17362_p1 = pnand %p17361_p0, %p17510_p5 }
  0x3e   : > { %813 = vmatpush.bf16.msrb.mxu0 %v796_v48  ;;  %827 = vmatpush.bf16.msrb.mxu1 %v799_v49  ;;  %v16112_v62 = vld [vmem:[%s19790_s1 + $0x124] sm:$0xf]  ;;  %v11493_v63 = vld [vmem:[%s19790_s1 + $0x130] sm:$0x30]  ;;  %v11545_v0 = vld [vmem:[%s19790_s1 + $0x168] sm:$0xf]  ;;  %v11458_v4 = vor.u32 %v16105_v58, %v11455_v59  ;;  %v11492_v5 = vor.u32 %v16114_v61, %v11491_v60 }
  0x3f   : > { %970 = vmatpush.bf16.msrb.mxu2 %v931_v52  ;;  %v11417_v1 = vld [vmem:[%s17587_s25 + $0x3] ss:$2 sm:$0xff]  ;;  %v11418_v2 = vld [vmem:[%s17587_s25 + $0x13] ss:$2 sm:$0xf]  ;;  %v11496_v6 = vor.u32 %v16112_v62, %v11493_v63  ;;  %p17363_p2 = pneg %p17362_p1  ;;  %s17364_s13 = scalar_lea.hbm %s19798_s9, 8 }
  0x40   : > { %v16123_v3 = vld [vmem:[%s19790_s1 + $0x174] sm:$0x30]  ;;  %v17817_v8 = vpack.c.bf16 %v11418_v2, %v11417_v1  ;;  %v805_v9 = vsel %vm437_vm0, %v11458_v4, 0  ;;  %v16101_v10 = vld [vmem:[%s19790_s1 + $0xcc] sm:$0xf]  ;;  %v925_v11 = vsel %vm437_vm0, %v11492_v5, 0  ;;  %p17366_p4 = scmp.lt.s32.totalorder %s17364_s13, %s17360_s21 }
  0x41   : > { %727 = vmatpush.bf16.msrb.mxu3 %v11396_v55  ;;  %v11546_v7 = vor.u32 %v16123_v3, %v11545_v0  ;;  %v928_v12 = vsel %vm437_vm0, %v11496_v6, 0  ;;  %v11439_v13 = vld [vmem:[%s19790_s1 + $0xd8] sm:$0xf0]  ;;  %v11475_v14 = vld [vmem:[%s19790_s1 + $0x100] sm:$0xf] }
  0x42   : > { %814 = vmatpush.bf16.msrb.mxu0 %v11430_v32  ;;  %828 = vmatpush.bf16.msrb.mxu1 %v11434_v56  ;;  %v16110_v15 = vld [vmem:[%s19790_s1 + $0x10c] sm:$0xf0]  ;;  %v16108_v16 = vld [vmem:[%s19790_s1 + $0x104] sm:$0xf]  ;;  %v11477_v17 = vld [vmem:[%s19790_s1 + $0x110] sm:$0xf0]  ;;  %v11442_v21 = vor.u32 %v16101_v10, %v11439_v13  ;;  %p17367_p7 = por %p17366_p4, %p17365_p3 }
  0x43   : > { %971 = vmatpush.bf16.msrb.mxu2 %v11484_v57  ;;  %v1060_v18 = vsel %vm437_vm0, %v11546_v7, 0  ;;  %v11529_v19 = vld [vmem:[%s19790_s1 + $0x148] sm:$0xf]  ;;  %v16119_v20 = vld [vmem:[%s19790_s1 + $0x154] sm:$0xf0]  ;;  %v11480_v22 = vor.u32 %v16108_v16, %v11477_v17 }
  0x44   : > { %v11530_v23 = vor.u32 %v16119_v20, %v11529_v19  ;;  %v16113_v24 = vld [vmem:[%s19790_s1 + $0x12c] sm:$0xf]  ;;  %v11501_v25 = vld [vmem:[%s19790_s1 + $0x138] sm:$0x30]  ;;  %v11537_v26 = vld [vmem:[%s19790_s1 + $0x160] sm:$0xf]  ;;  %p17368_p8 = pnand %p17367_p7, %p17363_p2 }
  0x45   : > { %v16122_v27 = vld [vmem:[%s19790_s1 + $0x16c] sm:$0x30]  ;;  %v16120_v28 = vld [vmem:[%s19790_s1 + $0x164] sm:$0xf]  ;;  %v11539_v29 = vld [vmem:[%s19790_s1 + $0x170] sm:$0x30]  ;;  %v11504_v33 = vor.u32 %v16113_v24, %v11501_v25 }
  0x46   : > { %v11463_v30 = vld [vmem:[%s17587_s25 + $0x4] ss:$2 sm:$0xff]  ;;  %v11464_v31 = vld [vmem:[%s17587_s25 + $0x14] ss:$2 sm:$0xf]  ;;  %v11538_v34 = vor.u32 %v16122_v27, %v11537_v26  ;;  %v11542_v35 = vor.u32 %v16120_v28, %v11539_v29 }
  0x47   : > { %v875_v37 = vpack.c.bf16 %v11464_v31, %v11463_v30  ;;  %v16109_v38 = vld [vmem:[%s19790_s1 + $0x10c] sm:$0xf]  ;;  %v11485_v40 = vld [vmem:[%s19790_s1 + $0x118] sm:$0xf0]  ;;  %v934_v41 = vsel %vm437_vm0, %v11504_v33, 0 }
  0x48   : > { %v11521_v42 = vld [vmem:[%s19790_s1 + $0x140] sm:$0xf]  ;;  %v16118_v43 = vld [vmem:[%s19790_s1 + $0x14c] sm:$0xf0]  ;;  %v1054_v44 = vsel %vm437_vm0, %v11538_v34, 0  ;;  %v1057_v45 = vsel %vm437_vm0, %v11542_v35, 0  ;;  %v11488_v48 = vor.u32 %v16109_v38, %v11485_v40 }
  0x49   : > { %v16116_v46 = vld [vmem:[%s19790_s1 + $0x144] sm:$0xf]  ;;  %v11523_v47 = vld [vmem:[%s19790_s1 + $0x150] sm:$0xf0]  ;;  %v11522_v49 = vor.u32 %v16118_v43, %v11521_v42  ;;  %v16121_v51 = vld [vmem:[%s19790_s1 + $0x16c] sm:$0xf] }
  0x4a   : > { %v11526_v50 = vor.u32 %v16116_v46, %v11523_v47  ;;  %v11509_v52 = vld [vmem:[%s17587_s25 + $0x5] ss:$2 sm:$0xff]  ;;  %v11510_v53 = vld [vmem:[%s17587_s25 + $0x15] ss:$2 sm:$0xf] }
  0x4b   : > { %11413 = vmatmul.msk.bf16.vlgmr.msra.gmra.mxu0 %vm433_vm1, %v17750_v39  ;;  %v1004_v55 = vpack.c.bf16 %v11510_v53, %v11509_v52  ;;  %v16117_v56 = vld [vmem:[%s19790_s1 + $0x14c] sm:$0xf]  ;;  %v11531_v57 = vld [vmem:[%s19790_s1 + $0x158] sm:$0xf0]  ;;  %v11669_v10 = vld [vmem:[#allocation3 + $0x1e0] sm:$0xf] }
  0x4c   : > { %11370 = vmatmul.msk.bf16.vlgmr.msra.gmra.mxu3 %vm433_vm1, %v17622_v36  ;;  %11414 = vmatmul.msk.bf16.vlgmr.msra.gmra.mxu1 %vm433_vm1, %v17750_v39  ;;  %v11476_v36 = vor.u32 %v16110_v15, %v11475_v14  ;;  %v11534_v58 = vor.u32 %v16117_v56, %v11531_v57  ;;  %v11671_v15 = vld [vmem:[#allocation3 + $0x1f0] sm:$0xf0]  ;;  %v11677_v16 = vld [vmem:[#allocation3 + $0x1e8] sm:$0xf]  ;;  %v16187_v17 = vld [vmem:[#allocation3 + $0x1f4] sm:$0xf0] }
  0x4d   : > { %11461 = vmatmul.msk.bf16.vlgmr.msra.gmra.mxu2 %vm433_vm1, %v17817_v8  ;;  %855 = vmatpush.bf16.msra.mxu3 %v805_v9  ;;  %v11678_v19 = vor.u32 %v16187_v17, %v11677_v16  ;;  %v16185_v20 = vld [vmem:[#allocation3 + $0x1ec] sm:$0xf]  ;;  %v16180_v24 = vld [vmem:[#allocation3 + $0x1c4] sm:$0xf]  ;;  %v11655_v25 = vld [vmem:[#allocation3 + $0x1d0] sm:$0xf0] }
  0x4e   : > { %942 = vmatpush.bf16.msra.mxu0 %v925_v11  ;;  %956 = vmatpush.bf16.msra.mxu1 %v928_v12  ;;  %v16186_v11 = vld [vmem:[#allocation3 + $0x1ec] sm:$0xf0]  ;;  %v16184_v12 = vld [vmem:[#allocation3 + $0x1e4] sm:$0xf]  ;;  %v11658_v27 = vor.u32 %v16180_v24, %v11655_v25  ;;  %v11661_v28 = vld [vmem:[#allocation3 + $0x1c8] sm:$0xf] }
  0x4f   : > { %1099 = vmatpush.bf16.msra.mxu2 %v1060_v18  ;;  %v11670_v14 = vor.u32 %v16186_v11, %v11669_v10  ;;  %v11674_v18 = vor.u32 %v16184_v12, %v11671_v15  ;;  %v16183_v29 = vld [vmem:[#allocation3 + $0x1d4] sm:$0xf0]  ;;  %v16181_v30 = vld [vmem:[#allocation3 + $0x1cc] sm:$0xf]  ;;  %v11663_v33 = vld [vmem:[#allocation3 + $0x1d8] sm:$0xf0] }
  0x50   : > { %v11662_v31 = vor.u32 %v16183_v29, %v11661_v28  ;;  %v11666_v34 = vor.u32 %v16181_v30, %v11663_v33  ;;  %v11637_v40 = vld [vmem:[#allocation3 + $0x1a0] sm:$0xf]  ;;  %v16176_v42 = vld [vmem:[#allocation3 + $0x1a4] sm:$0xf]  ;;  %v11645_v46 = vld [vmem:[#allocation3 + $0x1a8] sm:$0xf] }
  0x51   : > { %856 = vmatpush.bf16.msra.mxu3 %v11442_v21  ;;  %v11679_v21 = vld [vmem:[#allocation3 + $0x1f8] sm:$0xf0]  ;;  %v16179_v47 = vld [vmem:[#allocation3 + $0x1b4] sm:$0xf0]  ;;  %v16174_v53 = vld [vmem:[#allocation3 + $0x18c] sm:$0xf0] }
  0x52   : > { %943 = vmatpush.bf16.msra.mxu0 %v11476_v36  ;;  %957 = vmatpush.bf16.msra.mxu1 %v11480_v22  ;;  %v11653_v36 = vld [vmem:[#allocation3 + $0x1c0] sm:$0xf]  ;;  %v11682_v22 = vor.u32 %v16185_v20, %v11679_v21  ;;  %v11629_v57 = vld [vmem:[#allocation3 + $0x188] sm:$0xf]  ;;  %v16173_v10 = vld [vmem:[#allocation3 + $0x18c] sm:$0xf] }
  0x53   : > { %1100 = vmatpush.bf16.msra.mxu2 %v11530_v23  ;;  %v16182_v23 = vld [vmem:[#allocation3 + $0x1cc] sm:$0xf0]  ;;  %v11631_v12 = vld [vmem:[#allocation3 + $0x198] sm:$0xf0]  ;;  %v11605_v17 = vld [vmem:[#allocation3 + $0x160] sm:$0xf] }
  0x54   : > { %v11654_v26 = vor.u32 %v16182_v23, %v11653_v36  ;;  %v11613_v23 = vld [vmem:[#allocation3 + $0x168] sm:$0xf]  ;;  %v16171_v24 = vld [vmem:[#allocation3 + $0x174] sm:$0xf0]  ;;  %v11615_v28 = vld [vmem:[#allocation3 + $0x178] sm:$0xf0] }
  0x55   : > { %v11589_v30 = vld [vmem:[#allocation3 + $0x140] sm:$0xf]  ;;  %v16164_v33 = vld [vmem:[#allocation3 + $0x144] sm:$0xf] }
  0x5b   : > { %11459 = vmatmul.msk.bf16.vlgmr.msrb.gmra.mxu0 %vm433_vm1, %v17817_v8 }
  0x5c   : > { %11416 = vmatmul.msk.bf16.vlgmr.msrb.gmra.mxu3 %vm433_vm1, %v17750_v39  ;;  %11460 = vmatmul.msk.bf16.vlgmr.msrb.gmra.mxu1 %vm433_vm1, %v17817_v8  ;;  %v11547_v39 = vld [vmem:[%s19790_s1 + $0x178] sm:$0x30] }
  0x5d   : > { %11507 = vmatmul.msk.bf16.vlgmr.msrb.gmra.mxu2 %vm433_vm1, %v875_v37  ;;  %984 = vmatpush.bf16.msrb.mxu3 %v934_v41  ;;  %v11550_v54 = vor.u32 %v16121_v51, %v11547_v39  ;;  %v16178_v41 = vld [vmem:[#allocation3 + $0x1ac] sm:$0xf0]  ;;  %v11647_v51 = vld [vmem:[#allocation3 + $0x1b8] sm:$0xf0]  ;;  %v11621_v39 = vld [vmem:[#allocation3 + $0x180] sm:$0xf] }
  0x5e   : > { %1071 = vmatpush.bf16.msrb.mxu0 %v1054_v44  ;;  %1085 = vmatpush.bf16.msrb.mxu1 %v1057_v45  ;;  %v11638_v44 = vor.u32 %v16178_v41, %v11637_v40  ;;  %v11639_v45 = vld [vmem:[#allocation3 + $0x1b0] sm:$0xf0]  ;;  %v11597_v41 = vld [vmem:[#allocation3 + $0x148] sm:$0xf] }
  0x5f   : > { %v1063_v32 = vsel %vm437_vm0, %v11550_v54, 0  ;;  %1401 = vmatpush.bf16.msrb.mxu2 %v11678_v19  ;;  %v16172_v54 = vld [vmem:[#allocation3 + $0x184] sm:$0xf]  ;;  %v11591_v40 = vld [vmem:[#allocation3 + $0x150] sm:$0xf0] }
  0x60   : > { %v16168_v19 = vld [vmem:[#allocation3 + $0x164] sm:$0xf] }
  0x61   : > { %985 = vmatpush.bf16.msrb.mxu3 %v11488_v48  ;;  %v11642_v48 = vor.u32 %v16176_v42, %v11639_v45  ;;  %v16167_v42 = vld [vmem:[#allocation3 + $0x154] sm:$0xf0] }
  0x62   : > { %1072 = vmatpush.bf16.msrb.mxu0 %v11522_v49  ;;  %1086 = vmatpush.bf16.msrb.mxu1 %v11526_v50  ;;  %v11646_v49 = vor.u32 %v16179_v47, %v11645_v46  ;;  %v16177_v50 = vld [vmem:[#allocation3 + $0x1ac] sm:$0xf]  ;;  %v11598_v45 = vor.u32 %v16167_v42, %v11597_v41  ;;  %v11599_v47 = vld [vmem:[#allocation3 + $0x158] sm:$0xf0] }
  0x63   : > { %1402 = vmatpush.bf16.msrb.mxu2 %v11662_v31  ;;  %v11650_v52 = vor.u32 %v16177_v50, %v11647_v51  ;;  %v16166_v31 = vld [vmem:[#allocation3 + $0x14c] sm:$0xf0]  ;;  %v16165_v46 = vld [vmem:[#allocation3 + $0x14c] sm:$0xf]  ;;  %v11573_v51 = vld [vmem:[#allocation3 + $0x120] sm:$0xf] }
  0x67   : > { %1403 = vmatpush.bf16.msrb.mxu2 %v11646_v49  ;;  %v11602_v49 = vor.u32 %v16165_v46, %v11599_v47  ;;  %v16155_v46 = vld [vmem:[#allocation3 + $0xf4] sm:$0xf0]  ;;  %v16153_v47 = vld [vmem:[#allocation3 + $0xec] sm:$0xf] }
  0x6b   : > { %11505 = vmatmul.msk.bf16.vlgmr.msra.gmra.mxu0 %vm433_vm1, %v875_v37 }
  0x6c   : > { %11462 = vmatmul.msk.bf16.vlgmr.msra.gmra.mxu3 %vm433_vm1, %v17817_v8  ;;  %11506 = vmatmul.msk.bf16.vlgmr.msra.gmra.mxu1 %vm433_vm1, %v875_v37 }
  0x6d   : > { %11553 = vmatmul.msk.bf16.vlgmr.msra.gmra.mxu2 %vm433_vm1, %v1004_v55  ;;  %1113 = vmatpush.bf16.msra.mxu3 %v1063_v32  ;;  %v11622_v32 = vor.u32 %v16174_v53, %v11621_v39  ;;  %v16162_v39 = vld [vmem:[#allocation3 + $0x12c] sm:$0xf0] }
  0x6e   : > { %1375 = vmatpush.bf16.msra.mxu0 %v11670_v14  ;;  %1388 = vmatpush.bf16.msra.mxu1 %v11674_v18  ;;  %v11634_v14 = vor.u32 %v16173_v10, %v11631_v12  ;;  %v16170_v18 = vld [vmem:[#allocation3 + $0x16c] sm:$0xf0]  ;;  %v16161_v10 = vld [vmem:[#allocation3 + $0x12c] sm:$0xf] }
  0x6f   : > { %v11606_v36 = vor.u32 %v16170_v18, %v11605_v17  ;;  %v11557_v17 = vld [vmem:[#allocation3 + $0x100] sm:$0xf]  ;;  %v16158_v18 = vld [vmem:[#allocation3 + $0x10c] sm:$0xf0] }
  0x71   : > { %1114 = vmatpush.bf16.msra.mxu3 %v11534_v58  ;;  %v16175_v58 = vld [vmem:[#allocation3 + $0x194] sm:$0xf0] }
  0x72   : > { %1376 = vmatpush.bf16.msra.mxu0 %v11654_v26  ;;  %1389 = vmatpush.bf16.msra.mxu1 %v11658_v27  ;;  %v11630_v11 = vor.u32 %v16175_v58, %v11629_v57  ;;  %v11614_v26 = vor.u32 %v16171_v24, %v11613_v23  ;;  %v16169_v27 = vld [vmem:[#allocation3 + $0x16c] sm:$0xf]  ;;  %v11565_v23 = vld [vmem:[#allocation3 + $0x108] sm:$0xf]  ;;  %v16159_v24 = vld [vmem:[#allocation3 + $0x114] sm:$0xf0] }
  0x73   : > { %v11618_v29 = vor.u32 %v16169_v27, %v11615_v28  ;;  %v16157_v27 = vld [vmem:[#allocation3 + $0x10c] sm:$0xf]  ;;  %v11567_v28 = vld [vmem:[#allocation3 + $0x118] sm:$0xf0] }
  0x74   : > { %1404 = vmatpush.bf16.msrb.mxu2 %v11630_v11  ;;  %v11583_v11 = vld [vmem:[#allocation3 + $0x138] sm:$0xf0] }
  0x76   : > { %1377 = vmatpush.bf16.msra.mxu0 %v11638_v44  ;;  %1390 = vmatpush.bf16.msra.mxu1 %v11642_v48  ;;  %v11594_v44 = vor.u32 %v16164_v33, %v11591_v40  ;;  %v16154_v33 = vld [vmem:[#allocation3 + $0xec] sm:$0xf0]  ;;  %v11799_v40 = vld [vmem:[#allocation3 + $0xf0] sm:$0xf0] }
  0x78   : > { %1405 = vmatpush.bf16.msrb.mxu2 %v11614_v26  ;;  %v11566_v26 = vor.u32 %v16159_v24, %v11565_v23  ;;  %v16146_v23 = vld [vmem:[#allocation3 + $0xac] sm:$0xf0]  ;;  %v16144_v24 = vld [vmem:[#allocation3 + $0xa4] sm:$0xf] }
  0x7a   : > { %1378 = vmatpush.bf16.msra.mxu0 %v11622_v32  ;;  %v11581_v32 = vld [vmem:[#allocation3 + $0x128] sm:$0xf] }
  0x7b   : > { %11551 = vmatmul.msk.bf16.vlgmr.msrb.gmra.mxu0 %vm433_vm1, %v1004_v55 }
  0x7c   : > { %11508 = vmatmul.msk.bf16.vlgmr.msrb.gmra.mxu3 %vm433_vm1, %v875_v37  ;;  %11552 = vmatmul.msk.bf16.vlgmr.msrb.gmra.mxu1 %vm433_vm1, %v1004_v55 }
  0x7d   : > { %1414 = vmatpush.bf16.msrb.mxu3 %v11682_v22  ;;  %v11607_v22 = vld [vmem:[#allocation3 + $0x170] sm:$0xf0]  ;;  %1406 = vmatpush.bf16.msrb.mxu2 %v11598_v45  ;;  %v11805_v45 = vld [vmem:[#allocation3 + $0xe8] sm:$0xf] }
  0x7e   : > { %v11610_v25 = vor.u32 %v16168_v19, %v11607_v22  ;;  %1379 = vmatpush.bf16.msra.mxu0 %v11606_v36  ;;  %v16156_v19 = vld [vmem:[#allocation3 + $0x104] sm:$0xf]  ;;  %v11558_v36 = vor.u32 %v16158_v18, %v11557_v17  ;;  %v11559_v22 = vld [vmem:[#allocation3 + $0x110] sm:$0xf0]  ;;  %v11791_v17 = vld [vmem:[#allocation3 + $0xd8] sm:$0xf0] }
  0x81   : > { %1415 = vmatpush.bf16.msrb.mxu3 %v11666_v34  ;;  %v11590_v34 = vor.u32 %v16166_v31, %v11589_v30  ;;  %v11570_v31 = vor.u32 %v16157_v27, %v11567_v28  ;;  %v11773_v27 = vld [vmem:[#allocation3 + $0xa8] sm:$0xf]  ;;  %v16147_v28 = vld [vmem:[#allocation3 + $0xb4] sm:$0xf0] }
  0x83   : > { %1380 = vmatpush.bf16.msra.mxu0 %v11590_v34  ;;  %v16152_v34 = vld [vmem:[#allocation3 + $0xe4] sm:$0xf] }
  0x85   : > { %1416 = vmatpush.bf16.msrb.mxu3 %v11650_v52  ;;  %v16160_v52 = vld [vmem:[#allocation3 + $0x124] sm:$0xf] }
  0x89   : > { %1417 = vmatpush.bf16.msrb.mxu3 %v11634_v14  ;;  %v11586_v14 = vor.u32 %v16161_v10, %v11583_v11  ;;  %v16151_v11 = vld [vmem:[#allocation3 + $0xd4] sm:$0xf0] }
  0x8c   : > { %11554 = vmatmul.msk.bf16.vlgmr.msra.gmra.mxu3 %vm433_vm1, %v1004_v55  ;;  %v11623_v55 = vld [vmem:[#allocation3 + $0x190] sm:$0xf0] }
  0x8d   : > { %v11626_v56 = vor.u32 %v16172_v54, %v11623_v55  ;;  %1418 = vmatpush.bf16.msrb.mxu3 %v11618_v29  ;;  %v11574_v54 = vor.u32 %v16162_v39, %v11573_v51  ;;  %v11575_v55 = vld [vmem:[#allocation3 + $0x130] sm:$0xf0]  ;;  %v11797_v29 = vld [vmem:[#allocation3 + $0xe0] sm:$0xf]  ;;  %v11806_v51 = vor.u32 %v16155_v46, %v11805_v45  ;;  %v11807_v39 = vld [vmem:[#allocation3 + $0xf8] sm:$0xf0] }
  0x8e   : > { %v11578_v57 = vor.u32 %v16160_v52, %v11575_v55  ;;  %v11798_v42 = vor.u32 %v16154_v33, %v11797_v29  ;;  %v11781_v52 = vld [vmem:[#allocation3 + $0xc0] sm:$0xf]  ;;  %v11810_v55 = vor.u32 %v16153_v47, %v11807_v39  ;;  %v11774_v33 = vor.u32 %v16147_v28, %v11773_v27  ;;  %v16140_v39 = vld [vmem:[#allocation3 + $0x84] sm:$0xf]  ;;  %v16137_v28 = vld [vmem:[#allocation3 + $0x6c] sm:$0xf] }
  0x8f   : > { %1391 = vmatpush.bf16.msra.mxu1 %v11626_v56  ;;  %v16163_v56 = vld [vmem:[#allocation3 + $0x134] sm:$0xf0]  ;;  %1381 = vmatpush.bf16.msra.mxu0 %v11574_v54  ;;  %v16150_v54 = vld [vmem:[#allocation3 + $0xcc] sm:$0xf0]  ;;  %v11749_v47 = vld [vmem:[#allocation3 + $0x80] sm:$0xf] }
  0x90   : > { %v11582_v58 = vor.u32 %v16163_v56, %v11581_v32  ;;  %v11782_v32 = vor.u32 %v16150_v54, %v11781_v52  ;;  %v16148_v56 = vld [vmem:[#allocation3 + $0xc4] sm:$0xf] }
  0x91   : > { %1419 = vmatpush.bf16.msrb.mxu3 %v11602_v49 }
  0x92   : > { %1407 = vmatpush.bf16.msrb.mxu2 %v11582_v58  ;;  %v11789_v58 = vld [vmem:[#allocation3 + $0xc8] sm:$0xf] }
  0x93   : > { %1392 = vmatpush.bf16.msra.mxu1 %v11610_v25  ;;  %v11562_v25 = vor.u32 %v16156_v19, %v11559_v22  ;;  %1382 = vmatpush.bf16.msra.mxu0 %v11558_v36  ;;  %v11790_v18 = vor.u32 %v16151_v11, %v11789_v58  ;;  %v11765_v22 = vld [vmem:[#allocation3 + $0xa0] sm:$0xf] }
  0x95   : > { %1420 = vmatpush.bf16.msrb.mxu3 %v11586_v14  ;;  %v16149_v14 = vld [vmem:[#allocation3 + $0xcc] sm:$0xf] }
  0x96   : > { %1408 = vmatpush.bf16.msrb.mxu2 %v11566_v26  ;;  %v11794_v19 = vor.u32 %v16149_v14, %v11791_v17  ;;  %v11767_v26 = vld [vmem:[#allocation3 + $0xb0] sm:$0xf0] }
  0x97   : > { %1393 = vmatpush.bf16.msra.mxu1 %v11594_v44  ;;  %v11802_v44 = vor.u32 %v16152_v34, %v11799_v40  ;;  %1587 = vmatpush.bf16.msrb.mxu0 %v11798_v42  ;;  %v16145_v34 = vld [vmem:[#allocation3 + $0xac] sm:$0xf]  ;;  %v11775_v40 = vld [vmem:[#allocation3 + $0xb8] sm:$0xf0] }
  0x99   : > { %1421 = vmatpush.bf16.msrb.mxu3 %v11570_v31  ;;  %v11770_v31 = vor.u32 %v16144_v24, %v11767_v26  ;;  %v16139_v24 = vld [vmem:[#allocation3 + $0x74] sm:$0xf0] }
  0x9a   : > { %1613 = vmatpush.bf16.msra.mxu2 %v11806_v51  ;;  %v16142_v51 = vld [vmem:[#allocation3 + $0x8c] sm:$0xf0] }
  0x9b   : > { %1394 = vmatpush.bf16.msra.mxu1 %v11578_v57  ;;  %v11783_v57 = vld [vmem:[#allocation3 + $0xd0] sm:$0xf0]  ;;  %1588 = vmatpush.bf16.msrb.mxu0 %v11782_v32  ;;  %v11750_v54 = vor.u32 %v16142_v51, %v11749_v47  ;;  %v11757_v32 = vld [vmem:[#allocation3 + $0x88] sm:$0xf]  ;;  %v16134_v47 = vld [vmem:[#allocation3 + $0x4c] sm:$0xf0] }
  0x9c   : > { %v11786_v10 = vor.u32 %v16148_v56, %v11783_v57  ;;  %v16143_v56 = vld [vmem:[#allocation3 + $0x94] sm:$0xf0]  ;;  %v16132_v51 = vld [vmem:[#allocation3 + $0x44] sm:$0xf] }
  0x9d   : > { %1626 = vmatpush.bf16.msra.mxu3 %v11810_v55  ;;  %v11751_v55 = vld [vmem:[#allocation3 + $0x90] sm:$0xf0] }
  0x9e   : > { %1614 = vmatpush.bf16.msra.mxu2 %v11790_v18  ;;  %v11754_v58 = vor.u32 %v16140_v39, %v11751_v55  ;;  %v16136_v18 = vld [vmem:[#allocation3 + $0x64] sm:$0xf]  ;;  %v16135_v55 = vld [vmem:[#allocation3 + $0x54] sm:$0xf0] }
  0x9f   : > { %1395 = vmatpush.bf16.msra.mxu1 %v11562_v25  ;;  %v11766_v25 = vor.u32 %v16146_v23, %v11765_v22  ;;  %v11741_v23 = vld [vmem:[#allocation3 + $0x68] sm:$0xf] }
  0xa1   : > { %1627 = vmatpush.bf16.msra.mxu3 %v11794_v19  ;;  %1589 = vmatpush.bf16.msrb.mxu0 %v11766_v25 }
  0xa2   : > { %1615 = vmatpush.bf16.msra.mxu2 %v11774_v33 }
  0xa3   : > { %1600 = vmatpush.bf16.msrb.mxu1 %v11802_v44  ;;  %v11778_v44 = vor.u32 %v16145_v34, %v11775_v40 }
  0xa5   : > { %1628 = vmatpush.bf16.msra.mxu3 %v11778_v44  ;;  %1590 = vmatpush.bf16.msrb.mxu0 %v11750_v54  ;;  %v11725_v54 = vld [vmem:[#allocation3 + $0x48] sm:$0xf] }
  0xa7   : > { %1601 = vmatpush.bf16.msrb.mxu1 %v11786_v10  ;;  %v11758_v10 = vor.u32 %v16143_v56, %v11757_v32  ;;  %v16133_v56 = vld [vmem:[#allocation3 + $0x4c] sm:$0xf] }
  0xa8   : > { %v17927_v59 = vpop.f32.mrf.mxu0 }
  0xa9   : > { %v17929_v60 = vpop.f32.mrf.mxu1  ;;  %1616 = vmatpush.bf16.msra.mxu2 %v11758_v10 }
  0xab   : > { %1602 = vmatpush.bf16.msrb.mxu1 %v11770_v31  ;;  %v11743_v31 = vld [vmem:[#allocation3 + $0x78] sm:$0xf0] }
  0xac   : > { %v11746_v34 = vor.u32 %v16137_v28, %v11743_v31  ;;  %v16124_v28 = vld [vmem:[#allocation3 + $0x4] sm:$0xf] }
  0xaf   : > { %v17931_v61 = vpop.f32.mrf.mxu3  ;;  %1603 = vmatpush.bf16.msrb.mxu1 %v11754_v58 }
  0xb0   : > { %v17933_v62 = vpop.f32.mrf.mxu0  ;;  %v17943_v3 = vpop.f32.mrf.mxu2 }
  0xb1   : > { %v17935_v63 = vpop.f32.mrf.mxu1 }
  0xb7   : > { %v17937_v0 = vpop.f32.mrf.mxu3 }
  0xb8   : > { %v17939_v1 = vpop.f32.mrf.mxu0  ;;  %v17951_v7 = vpop.f32.mrf.mxu2 }
  0xb9   : > { %v17941_v2 = vpop.f32.mrf.mxu1  ;;  %v567_v45 = vadd.f32 %v17939_v1, %v17927_v59  ;;  %v16141_v59 = vld [vmem:[#allocation3 + $0x8c] sm:$0xf]  ;;  %v11759_v1 = vld [vmem:[#allocation3 + $0x98] sm:$0xf0] }
  0xba   : > { %v581_v52 = vadd.f32 %v17941_v2, %v17929_v60  ;;  %v11762_v14 = vor.u32 %v16141_v59, %v11759_v1  ;;  %v11733_v60 = vld [vmem:[#allocation3 + $0x60] sm:$0xf]  ;;  %v16138_v2 = vld [vmem:[#allocation3 + $0x6c] sm:$0xf0] }
  0xbb   : > { %v11734_v22 = vor.u32 %v16138_v2, %v11733_v60  ;;  %v11701_v59 = vld [vmem:[#allocation3 + $0x20] sm:$0xf]  ;;  %v16130_v1 = vld [vmem:[#allocation3 + $0x2c] sm:$0xf0]  ;;  %v11709_v60 = vld [vmem:[#allocation3 + $0x28] sm:$0xf] }
  0xbc   : > { %1629 = vmatpush.bf16.msra.mxu3 %v11762_v14  ;;  %v11702_v14 = vor.u32 %v16130_v1, %v11701_v59  ;;  %v16131_v2 = vld [vmem:[#allocation3 + $0x34] sm:$0xf0] }
  0xbd   : > { %1591 = vmatpush.bf16.msrb.mxu0 %v11734_v22  ;;  %v11710_v22 = vor.u32 %v16131_v2, %v11709_v60 }
  0xbf   : > { %v17945_v4 = vpop.f32.mrf.mxu3 }
  0xc0   : > { %v17947_v5 = vpop.f32.mrf.mxu0  ;;  %v17959_v35 = vpop.f32.mrf.mxu2  ;;  %1630 = vmatpush.bf16.msra.mxu3 %v11746_v34  ;;  %v16127_v34 = vld [vmem:[#allocation3 + $0x14] sm:$0xf0] }
  0xc1   : > { %v17949_v6 = vpop.f32.mrf.mxu1  ;;  %v569_v59 = vadd.f32 %v17947_v5, %v17933_v62 }
  0xc2   : > { %v583_v1 = vadd.f32 %v17949_v6, %v17935_v63 }
  0xc7   : > { %v17953_v8 = vpop.f32.mrf.mxu3 }
  0xc8   : > { %v17955_v9 = vpop.f32.mrf.mxu0  ;;  %v17971_v20 = vpop.f32.mrf.mxu2 }
  0xc9   : > { %v17957_v13 = vpop.f32.mrf.mxu1  ;;  %v734_v57 = vadd.f32 %v17955_v9, %v567_v45  ;;  %v11735_v9 = vld [vmem:[#allocation3 + $0x70] sm:$0xf0]  ;;  %v11717_v45 = vld [vmem:[#allocation3 + $0x40] sm:$0xf] }
  0xca   : > { %v735_v11 = vadd.f32 %v17957_v13, %v581_v52  ;;  %v11738_v27 = vor.u32 %v16136_v18, %v11735_v9  ;;  %v11719_v52 = vld [vmem:[#allocation3 + $0x50] sm:$0xf0]  ;;  %v16129_v9 = vld [vmem:[#allocation3 + $0x2c] sm:$0xf] }
  0xcb   : > { %v11722_v32 = vor.u32 %v16132_v51, %v11719_v52  ;;  %v11695_v51 = vld [vmem:[#allocation3 + $0x18] sm:$0xf0] }
  0xcc   : > { %1604 = vmatpush.bf16.msrb.mxu1 %v11738_v27  ;;  %v11685_v27 = vld [vmem:[#allocation3] sm:$0xf] }
  0xcf   : > { %v17961_v37 = vpop.f32.mrf.mxu3 }
  0xd0   : > { %v17963_v38 = vpop.f32.mrf.mxu0  ;;  %v17981_v12 = vpop.f32.mrf.mxu2  ;;  %1605 = vmatpush.bf16.msrb.mxu1 %v11722_v32 }
  0xd1   : > { %v17965_v43 = vpop.f32.mrf.mxu1 }
  0xd7   : > { %v17967_v15 = vpop.f32.mrf.mxu3 }
  0xd8   : > { %v17969_v16 = vpop.f32.mrf.mxu0  ;;  %v17989_v36 = vpop.f32.mrf.mxu2 }
  0xd9   : > { %v17973_v21 = vpop.f32.mrf.mxu1  ;;  %v863_v17 = vadd.f32 %v17969_v16, %v734_v57  ;;  %v11742_v16 = vor.u32 %v16139_v24, %v11741_v23  ;;  %v11727_v57 = vld [vmem:[#allocation3 + $0x58] sm:$0xf0] }
  0xda   : > { %v864_v19 = vadd.f32 %v17973_v21, %v735_v11  ;;  %v11730_v10 = vor.u32 %v16133_v56, %v11727_v57  ;;  %v16128_v11 = vld [vmem:[#allocation3 + $0x24] sm:$0xf]  ;;  %v11711_v23 = vld [vmem:[#allocation3 + $0x38] sm:$0xf0] }
  0xdb   : > { %1617 = vmatpush.bf16.msra.mxu2 %v11742_v16  ;;  %v11714_v24 = vor.u32 %v16129_v9, %v11711_v23  ;;  %v16126_v16 = vld [vmem:[#allocation3 + $0xc] sm:$0xf0] }
  0xdc   : > { %1631 = vmatpush.bf16.msra.mxu3 %v11730_v10  ;;  %v11686_v31 = vor.u32 %v16126_v16, %v11685_v27  ;;  %v16216_v27 = vld [vmem:[#allocation3 + $0x2e4] sm:$0xf]  ;;  %v16217_v16 = vld [vmem:[#allocation3 + $0x2ec] sm:$0xf] }
  0xdf   : > { %v17975_v48 = vpop.f32.mrf.mxu3 }
  0xe0   : > { %v17977_v50 = vpop.f32.mrf.mxu0  ;;  %v18005_v25 = vpop.f32.mrf.mxu2  ;;  %1632 = vmatpush.bf16.msra.mxu3 %v11714_v24  ;;  %v16218_v24 = vld [vmem:[#allocation3 + $0x2ec] sm:$0xf0] }
  0xe1   : > { %v17979_v53 = vpop.f32.mrf.mxu1 }
  0xe7   : > { %v17983_v30 = vpop.f32.mrf.mxu3 }
  0xe8   : > { %v17985_v41 = vpop.f32.mrf.mxu0 }
  0xe9   : > { %v17987_v49 = vpop.f32.mrf.mxu1  ;;  %v992_v26 = vadd.f32 %v17985_v41, %v863_v17  ;;  %v11718_v41 = vor.u32 %v16134_v47, %v11717_v45  ;;  %v11703_v17 = vld [vmem:[#allocation3 + $0x30] sm:$0xf0]  ;;  %v16125_v47 = vld [vmem:[#allocation3 + $0xc] sm:$0xf] }
  0xea   : > { %v993_v33 = vadd.f32 %v17987_v49, %v864_v19  ;;  %v11726_v49 = vor.u32 %v16135_v55, %v11725_v54  ;;  %v11706_v19 = vor.u32 %v16128_v11, %v11703_v17  ;;  %v595_v54 = vadd.f32 %v17943_v3, %v17931_v61 }
  0xeb   : > { %1592 = vmatpush.bf16.msrb.mxu0 %v11718_v41  ;;  %v11698_v41 = vor.u32 %v16125_v47, %v11695_v51  ;;  %v609_v55 = vadd.f32 %v17961_v37, %v17945_v4  ;;  %v597_v4 = vadd.f32 %v17951_v7, %v17937_v0  ;;  %v17260_v0 = vld [vmem:[%s19791_s2] ss:$0 sm:$0xff] }
  0xec   : > { %1618 = vmatpush.bf16.msra.mxu2 %v11726_v49  ;;  %1606 = vmatpush.bf16.msrb.mxu1 %v11706_v19  ;;  %v736_v32 = vadd.f32 %v17959_v35, %v595_v54  ;;  %v738_v35 = vadd.f32 %v17963_v38, %v569_v59  ;;  %v11917_v54 = vld [vmem:[#allocation3 + $0x2c8] sm:$0xf]  ;;  %v16210_v59 = vld [vmem:[#allocation3 + $0x2ac] sm:$0xf0] }
  0xed   : > { %1633 = vmatpush.bf16.msra.mxu3 %v11698_v41  ;;  %v737_v49 = vadd.f32 %v17975_v48, %v609_v55  ;;  %v739_v48 = vadd.f32 %v17965_v43, %v583_v1  ;;  %v740_v62 = vadd.f32 %v17971_v20, %v597_v4  ;;  %v16212_v41 = vld [vmem:[#allocation3 + $0x2c4] sm:$0xf]  ;;  %v16215_v55 = vld [vmem:[#allocation3 + $0x2d4] sm:$0xf0]  ;;  %v11895_v4 = vld [vmem:[#allocation3 + $0x2b0] sm:$0xf0] }
  0xee   : > { %v865_v57 = vadd.f32 %v17981_v12, %v736_v32  ;;  %v611_v12 = vadd.f32 %v17967_v15, %v17953_v8  ;;  %v867_v63 = vadd.f32 %v17977_v50, %v738_v35  ;;  %v16213_v32 = vld [vmem:[#allocation3 + $0x2cc] sm:$0xf]  ;;  %v11918_v1 = vor.u32 %v16215_v55, %v11917_v54  ;;  %v11901_v35 = vld [vmem:[#allocation3 + $0x2a8] sm:$0xf]  ;;  %v11839_v55 = vld [vmem:[#allocation3 + $0x238] sm:$0xf0] }
  0xef   : > { %v17991_v29 = vpop.f32.mrf.mxu3  ;;  %1593 = vmatpush.bf16.msrb.mxu0 %v11702_v14  ;;  %v868_v5 = vadd.f32 %v17979_v53, %v739_v48  ;;  %v869_v7 = vadd.f32 %v17989_v36, %v740_v62  ;;  %v16209_v48 = vld [vmem:[#allocation3 + $0x2ac] sm:$0xf]  ;;  %v11877_v62 = vld [vmem:[#allocation3 + $0x280] sm:$0xf] }
  0xf0   : > { %v17993_v42 = vpop.f32.mrf.mxu0  ;;  %1619 = vmatpush.bf16.msra.mxu2 %v11710_v22  ;;  %v866_v10 = vadd.f32 %v17991_v29, %v737_v49  ;;  %v994_v61 = vadd.f32 %v18005_v25, %v865_v57  ;;  %v741_v6 = vadd.f32 %v17983_v30, %v611_v12  ;;  %v11919_v49 = vld [vmem:[#allocation3 + $0x2d8] sm:$0xf0]  ;;  %v16193_v54 = vld [vmem:[#allocation3 + $0x22c] sm:$0xf] }
  0xf1   : > { %v17997_v46 = vpop.f32.mrf.mxu1  ;;  %v996_v8 = vadd.f32 %v17993_v42, %v867_v63  ;;  %v11903_v12 = vld [vmem:[#allocation3 + $0x2b8] sm:$0xf0]  ;;  %v16206_v63 = vld [vmem:[#allocation3 + $0x28c] sm:$0xf0] }
  0xf2   : > { %v997_v15 = vadd.f32 %v17997_v46, %v868_v5 }
  0xf3   : > { %1594 = vmatpush.bf16.msrb.mxu0 %v11686_v31 }
  0xf7   : > { %v18008_v13 = vpop.f32.mrf.mxu3 }
  0xf8   : > { %v1074_v21 = vpop.f32.mrf.mxu0  ;;  %v870_v20 = vadd.f32 %v18008_v13, %v741_v6  ;;  %v11925_v13 = vld [vmem:[#allocation3 + $0x2e0] sm:$0xf]  ;;  %v11906_v6 = vor.u32 %v16209_v48, %v11903_v12  ;;  %v16250_v12 = vld [vmem:[#allocation3 + $0x3ec] sm:$0xf0] }
  0xf9   : > { %v18011_v40 = vadd.f32 %v1074_v21, %v992_v26  ;;  %v1088_v44 = vpop.f32.mrf.mxu1  ;;  %v975_v26 = vpop.f32.mrf.mxu2  ;;  %v11693_v21 = vld [vmem:[#allocation3 + $0x8] sm:$0xf]  ;;  %v12053_v48 = vld [vmem:[#allocation3 + $0x3e0] sm:$0xf] }
  0xfa   : > { %v18013_v39 = vadd.f32 %v1088_v44, %v993_v33  ;;  %v11687_v33 = vld [vmem:[#allocation3 + $0x10] sm:$0xf0]  ;;  %v11694_v45 = vor.u32 %v16127_v34, %v11693_v21  ;;  %v998_v53 = vadd.f32 %v975_v26, %v869_v7  ;;  %v11926_v21 = vor.u32 %v16218_v24, %v11925_v13  ;;  %v11885_v7 = vld [vmem:[#allocation3 + $0x288] sm:$0xf]  ;;  %v16198_v13 = vld [vmem:[#allocation3 + $0x24c] sm:$0xf0] }
  0xfb   : > { %v11690_v44 = vor.u32 %v16124_v28, %v11687_v33  ;;  %v11935_v28 = vld [vmem:[#allocation3 + $0x2f8] sm:$0xf0] }
  0xfc   : > { %v1129_v58 = vmax.f32 %v18011_v40, %v18013_v39  ;;  %1620 = vmatpush.bf16.msra.mxu2 %v11694_v45  ;;  %v11927_v40 = vld [vmem:[#allocation3 + $0x2f0] sm:$0xf0]  ;;  %v11933_v39 = vld [vmem:[#allocation3 + $0x2e8] sm:$0xf]  ;;  %v16214_v45 = vld [vmem:[#allocation3 + $0x2cc] sm:$0xf0]  ;;  %v11938_v51 = vor.u32 %v16217_v16, %v11935_v28 }
  0xfd   : > { %1607 = vmatpush.bf16.msrb.mxu1 %v11690_v44  ;;  %v11930_v34 = vor.u32 %v16216_v27, %v11927_v40  ;;  %v11909_v44 = vld [vmem:[#allocation3 + $0x2c0] sm:$0xf]  ;;  %v16196_v40 = vld [vmem:[#allocation3 + $0x244] sm:$0xf]  ;;  %v16197_v16 = vld [vmem:[#allocation3 + $0x24c] sm:$0xf] }
  0xfe   : > { %v11855_v28 = vld [vmem:[#allocation3 + $0x258] sm:$0xf0] }
  0xff   : > { %v987_v18 = vpop.f32.mrf.mxu3 }
 0x100   : > { %v995_v3 = vadd.f32 %v987_v18, %v866_v10  ;;  %v1076_v38 = vpop.f32.mrf.mxu0  ;;  %v11893_v10 = vld [vmem:[#allocation3 + $0x2a0] sm:$0xf] }
 0x101   : > { %v1102_v56 = vpop.f32.mrf.mxu2  ;;  %v1090_v43 = vpop.f32.mrf.mxu1  ;;  %v1125_v14 = vadd.f32 %v1076_v38, %v996_v8  ;;  %v16207_v38 = vld [vmem:[#allocation3 + $0x294] sm:$0xf0]  ;;  %v11887_v8 = vld [vmem:[#allocation3 + $0x298] sm:$0xf0] }
 0x102   : > { %v1123_v29 = vadd.f32 %v1102_v56, %v994_v61  ;;  %v1126_v17 = vadd.f32 %v1090_v43, %v997_v15  ;;  %v11910_v56 = vor.u32 %v16214_v45, %v11909_v44  ;;  %v11922_v61 = vor.u32 %v16213_v32, %v11919_v49  ;;  %v16205_v43 = vld [vmem:[#allocation3 + $0x28c] sm:$0xf]  ;;  %v11861_v15 = vld [vmem:[#allocation3 + $0x260] sm:$0xf] }
 0x103   : > { %v11858_v45 = vor.u32 %v16197_v16, %v11855_v28  ;;  %v11813_v32 = vld [vmem:[#allocation3 + $0x200] sm:$0xf] }
 0x104   : > { %v1130_v9 = vmax.f32 %v1125_v14, %v1126_v17  ;;  %v11863_v14 = vld [vmem:[#allocation3 + $0x270] sm:$0xf0]  ;;  %v11886_v17 = vor.u32 %v16207_v38, %v11885_v7 }
 0x107   : > { %v989_v52 = vpop.f32.mrf.mxu3 }
 0x108   : > { %v999_v60 = vadd.f32 %v989_v52, %v870_v20  ;;  %v11911_v52 = vld [vmem:[#allocation3 + $0x2d0] sm:$0xf0]  ;;  %v11878_v20 = vor.u32 %v16206_v63, %v11877_v62  ;;  %v12061_v62 = vld [vmem:[#allocation3 + $0x3e8] sm:$0xf] }
 0x109   : > { %v1104_v30 = vpop.f32.mrf.mxu2  ;;  %v11914_v57 = vor.u32 %v16212_v41, %v11911_v52  ;;  %v11837_v41 = vld [vmem:[#allocation3 + $0x228] sm:$0xf]  ;;  %v16195_v52 = vld [vmem:[#allocation3 + $0x234] sm:$0xf0] }
 0x10a   : > { %v1127_v36 = vadd.f32 %v1104_v30, %v998_v53  ;;  %v16202_v53 = vld [vmem:[#allocation3 + $0x26c] sm:$0xf0]  ;;  %v16200_v30 = vld [vmem:[#allocation3 + $0x264] sm:$0xf] }
 0x10f   : > { %v1116_v37 = vpop.f32.mrf.mxu3 }
 0x110   : > { %v1124_v11 = vadd.f32 %v1116_v37, %v995_v3  ;;  %v16208_v3 = vld [vmem:[#allocation3 + $0x2a4] sm:$0xf]  ;;  %v16211_v37 = vld [vmem:[#allocation3 + $0x2b4] sm:$0xf0] }
 0x111   : > { %v11902_v5 = vor.u32 %v16211_v37, %v11901_v35  ;;  %v16189_v35 = vld [vmem:[#allocation3 + $0x20c] sm:$0xf]  ;;  %v11823_v37 = vld [vmem:[#allocation3 + $0x218] sm:$0xf0] }
 0x112   : > { %v1131_v25 = vmax.f32 %v1123_v29, %v1124_v11  ;;  %v11894_v29 = vor.u32 %v16210_v59, %v11893_v10  ;;  %v11898_v11 = vor.u32 %v16208_v3, %v11895_v4  ;;  %v16188_v10 = vld [vmem:[#allocation3 + $0x204] sm:$0xf]  ;;  %v11815_v59 = vld [vmem:[#allocation3 + $0x210] sm:$0xf0]  ;;  %v11821_v3 = vld [vmem:[#allocation3 + $0x208] sm:$0xf]  ;;  %v11826_v38 = vor.u32 %v16189_v35, %v11823_v37 }
 0x113   : > { %v16191_v4 = vld [vmem:[#allocation3 + $0x214] sm:$0xf0] }
 0x114   : > { %v1133_v50 = vmax.f32 %v1129_v58, %v1131_v25  ;;  %v16219_v58 = vld [vmem:[#allocation3 + $0x2f4] sm:$0xf0]  ;;  %v16204_v25 = vld [vmem:[#allocation3 + $0x284] sm:$0xf]  ;;  %v11822_v7 = vor.u32 %v16191_v4, %v11821_v3  ;;  %v16233_v3 = vld [vmem:[#allocation3 + $0x36c] sm:$0xf] }
 0x115   : > { %v11934_v47 = vor.u32 %v16219_v58, %v11933_v39  ;;  %v11847_v39 = vld [vmem:[#allocation3 + $0x250] sm:$0xf0]  ;;  %v11853_v58 = vld [vmem:[#allocation3 + $0x248] sm:$0xf]  ;;  %v11999_v4 = vld [vmem:[#allocation3 + $0x378] sm:$0xf0] }
 0x116   : > { %v1139_v2 = vadd.f32 %v17260_v0, %v1133_v50 }
 0x117   : > { %v1118_v18 = vpop.f32.mrf.mxu3 }
 0x118   : > { %v1141_v19 = vmax.f32 %v1139_v2, 0.0  ;;  %v1128_v22 = vadd.f32 %v1118_v18, %v999_v60  ;;  %v11890_v60 = vor.u32 %v16205_v43, %v11887_v8  ;;  %v11869_v18 = vld [vmem:[#allocation3 + $0x268] sm:$0xf]  ;;  %v12037_v43 = vld [vmem:[#allocation3 + $0x3c0] sm:$0xf]  ;;  %v12054_v8 = vor.u32 %v16250_v12, %v12053_v48 }
 0x119   : > { %v11973_v48 = vld [vmem:[#allocation3 + $0x340] sm:$0xf]  ;;  %v16230_v12 = vld [vmem:[#allocation3 + $0x34c] sm:$0xf0] }
 0x11a   : > { %1143 = vst [vmem:[#allocation2] sm:$0xff] %v1141_v19  ;;  %v1132_v42 = vmax.f32 %v1127_v36, %v1128_v22  ;;  %v16203_v36 = vld [vmem:[#allocation3 + $0x274] sm:$0xf0]  ;;  %v16201_v19 = vld [vmem:[#allocation3 + $0x26c] sm:$0xf] }
 0x11b   : > { %v11871_v22 = vld [vmem:[#allocation3 + $0x278] sm:$0xf0]  ;;  %v11870_v24 = vor.u32 %v16203_v36, %v11869_v18  ;;  %v16245_v18 = vld [vmem:[#allocation3 + $0x3cc] sm:$0xf] }
 0x11c   : > { %v1134_v46 = vmax.f32 %v1130_v9, %v1132_v42  ;;  %v11862_v42 = vor.u32 %v16202_v53, %v11861_v15  ;;  %v11874_v27 = vor.u32 %v16201_v19, %v11871_v22  ;;  %v12039_v53 = vld [vmem:[#allocation3 + $0x3d0] sm:$0xf0]  ;;  %v12047_v36 = vld [vmem:[#allocation3 + $0x3d8] sm:$0xf0] }
 0x11e   : > { %v1140_v23 = vadd.f32 %v17260_v0, %v1134_v46  ;;  %v11879_v0 = vld [vmem:[#allocation3 + $0x290] sm:$0xf0]  ;;  %v11866_v46 = vor.u32 %v16200_v30, %v11863_v14 }
 0x11f   : > { %v11882_v50 = vor.u32 %v16204_v25, %v11879_v0  ;;  %v16249_v25 = vld [vmem:[#allocation3 + $0x3ec] sm:$0xf]  ;;  %v12063_v0 = vld [vmem:[#allocation3 + $0x3f8] sm:$0xf0] }
 0x120   : > { %v1142_v26 = vmax.f32 %v1140_v23, 0.0  ;;  %v11845_v23 = vld [vmem:[#allocation3 + $0x240] sm:$0xf]  ;;  %v12066_v14 = vor.u32 %v16249_v25, %v12063_v0  ;;  %v16229_v25 = vld [vmem:[#allocation3 + $0x34c] sm:$0xf] }
 0x121   : > { %v1180_v31 = vld [vmem:[#allocation2 + $0x1] ss:$2 sm:$0xf]  ;;  %v1145_v2 = vld [vmem:[#allocation2] ss:$2 sm:$0xf] }
 0x122   : > { %1144 = vst [vmem:[#allocation2 + $0x8] sm:$0xf] %v1142_v26  ;;  %v1181_v33 = vpack.c.bf16 %v1180_v31, %v1180_v31  ;;  %v1146_v9 = vpack.c.bf16 %v1145_v2, %v1145_v2  ;;  %v16199_v26 = vld [vmem:[#allocation3 + $0x254] sm:$0xf0]  ;;  %v11846_v31 = vor.u32 %v16198_v13, %v11845_v23  ;;  %v12050_v13 = vor.u32 %v16245_v18, %v12047_v36  ;;  %v11983_v0 = vld [vmem:[#allocation3 + $0x358] sm:$0xf0] }
 0x123   : > { %v11854_v44 = vor.u32 %v16199_v26, %v11853_v58  ;;  %v16247_v2 = vld [vmem:[#allocation3 + $0x3d4] sm:$0xf0]  ;;  %v16241_v58 = vld [vmem:[#allocation3 + $0x3ac] sm:$0xf]  ;;  %v12031_v26 = vld [vmem:[#allocation3 + $0x3b8] sm:$0xf0] }
 0x124   : > { %1383 = vmatmul.bf16.vlgmr.msra.gmra.mxu0 %v1181_v33  ;;  %1396 = vmatmul.bf16.vlgmr.msra.gmra.mxu1 %v1181_v33 }
 0x125   : > { %1409 = vmatmul.bf16.vlgmr.msrb.gmra.mxu2 %v1181_v33  ;;  %1422 = vmatmul.bf16.vlgmr.msrb.gmra.mxu3 %v1181_v33  ;;  %v11850_v33 = vor.u32 %v16196_v40, %v11847_v39  ;;  %v12029_v40 = vld [vmem:[#allocation3 + $0x3a8] sm:$0xf]  ;;  %v16243_v39 = vld [vmem:[#allocation3 + $0x3b4] sm:$0xf0] }
 0x126   : > { %1835 = vmatpush.bf16.msra.mxu0 %v11926_v21  ;;  %1848 = vmatpush.bf16.msra.mxu1 %v11930_v34  ;;  %v11829_v21 = vld [vmem:[#allocation3 + $0x220] sm:$0xf]  ;;  %v16194_v34 = vld [vmem:[#allocation3 + $0x22c] sm:$0xf0] }
 0x127   : > { %1861 = vmatpush.bf16.msrb.mxu2 %v11934_v47  ;;  %1874 = vmatpush.bf16.msrb.mxu3 %v11938_v51  ;;  %v16192_v47 = vld [vmem:[#allocation3 + $0x224] sm:$0xf]  ;;  %v11831_v51 = vld [vmem:[#allocation3 + $0x230] sm:$0xf0]  ;;  %v11830_v49 = vor.u32 %v16194_v34, %v11829_v21  ;;  %v12030_v21 = vor.u32 %v16243_v39, %v12029_v40  ;;  %v12034_v34 = vor.u32 %v16241_v58, %v12031_v26  ;;  %v12181_v40 = vld [vmem:[#allocation3 + $0x4e0] sm:$0xf] }
 0x128   : > { %v16282_v39 = vld [vmem:[#allocation3 + $0x4ec] sm:$0xf0]  ;;  %v16280_v58 = vld [vmem:[#allocation3 + $0x4e4] sm:$0xf]  ;;  %v12183_v26 = vld [vmem:[#allocation3 + $0x4f0] sm:$0xf0] }
 0x12a   : > { %1836 = vmatpush.bf16.msra.mxu0 %v11910_v56  ;;  %1849 = vmatpush.bf16.msra.mxu1 %v11914_v57  ;;  %v11834_v56 = vor.u32 %v16192_v47, %v11831_v51  ;;  %v16190_v57 = vld [vmem:[#allocation3 + $0x20c] sm:$0xf0]  ;;  %v12013_v47 = vld [vmem:[#allocation3 + $0x388] sm:$0xf]  ;;  %v16239_v51 = vld [vmem:[#allocation3 + $0x394] sm:$0xf0] }
 0x12b   : > { %1862 = vmatpush.bf16.msrb.mxu2 %v11918_v1  ;;  %1875 = vmatpush.bf16.msrb.mxu3 %v11922_v61  ;;  %v11838_v1 = vor.u32 %v16195_v52, %v11837_v41  ;;  %v11842_v61 = vor.u32 %v16193_v54, %v11839_v55  ;;  %v11814_v63 = vor.u32 %v16190_v57, %v11813_v32  ;;  %v16237_v41 = vld [vmem:[#allocation3 + $0x38c] sm:$0xf]  ;;  %v12015_v52 = vld [vmem:[#allocation3 + $0x398] sm:$0xf0]  ;;  %v11989_v32 = vld [vmem:[#allocation3 + $0x360] sm:$0xf] }
 0x12c   : > { %v12018_v57 = vor.u32 %v16237_v41, %v12015_v52  ;;  %v12186_v41 = vor.u32 %v16280_v58, %v12183_v26  ;;  %v12165_v52 = vld [vmem:[#allocation3 + $0x4c0] sm:$0xf] }
 0x12e   : > { %1837 = vmatpush.bf16.msra.mxu0 %v11894_v29  ;;  %1850 = vmatpush.bf16.msra.mxu1 %v11898_v11  ;;  %v16248_v29 = vld [vmem:[#allocation3 + $0x3e4] sm:$0xf]  ;;  %v12055_v11 = vld [vmem:[#allocation3 + $0x3f0] sm:$0xf0] }
 0x12f   : > { %1863 = vmatpush.bf16.msrb.mxu2 %v11902_v5  ;;  %1876 = vmatpush.bf16.msrb.mxu3 %v11906_v6  ;;  %v11818_v5 = vor.u32 %v16188_v10, %v11815_v59  ;;  %v16251_v6 = vld [vmem:[#allocation3 + $0x3f4] sm:$0xf0]  ;;  %v12058_v15 = vor.u32 %v16248_v29, %v12055_v11  ;;  %v16232_v10 = vld [vmem:[#allocation3 + $0x364] sm:$0xf]  ;;  %v11991_v59 = vld [vmem:[#allocation3 + $0x370] sm:$0xf0]  ;;  %v12002_v11 = vor.u32 %v16233_v3, %v11999_v4 }
 0x130   : > { %v12062_v30 = vor.u32 %v16251_v6, %v12061_v62  ;;  %v11994_v37 = vor.u32 %v16232_v10, %v11991_v59  ;;  %v16228_v62 = vld [vmem:[#allocation3 + $0x344] sm:$0xf]  ;;  %v16231_v6 = vld [vmem:[#allocation3 + $0x354] sm:$0xf0]  ;;  %v16277_v59 = vld [vmem:[#allocation3 + $0x4cc] sm:$0xf] }
 0x131   : > { %v16279_v10 = vld [vmem:[#allocation3 + $0x4d4] sm:$0xf0] }
 0x132   : > { %1838 = vmatpush.bf16.msra.mxu0 %v11878_v20  ;;  %1851 = vmatpush.bf16.msra.mxu1 %v11882_v50  ;;  %v16246_v20 = vld [vmem:[#allocation3 + $0x3cc] sm:$0xf0]  ;;  %v16244_v50 = vld [vmem:[#allocation3 + $0x3c4] sm:$0xf] }
 0x133   : > { %1864 = vmatpush.bf16.msrb.mxu2 %v11886_v17  ;;  %1877 = vmatpush.bf16.msrb.mxu3 %v11890_v60  ;;  %v1640_v17 = vld [vmem:[#allocation2 + $0x2] ss:$2 sm:$0xf]  ;;  %v12045_v60 = vld [vmem:[#allocation3 + $0x3c8] sm:$0xf]  ;;  %v12038_v22 = vor.u32 %v16246_v20, %v12037_v43  ;;  %v11986_v20 = vor.u32 %v16229_v25, %v11983_v0 }
 0x134   : > { %1595 = vmatmul.bf16.vlgmr.msrb.gmra.mxu0 %v1146_v9  ;;  %1608 = vmatmul.bf16.vlgmr.msrb.gmra.mxu1 %v1146_v9  ;;  %v1641_v19 = vpack.c.bf16 %v1640_v17, %v1640_v17  ;;  %v12046_v23 = vor.u32 %v16247_v2, %v12045_v60  ;;  %v11957_v43 = vld [vmem:[#allocation3 + $0x320] sm:$0xf]  ;;  %v16225_v17 = vld [vmem:[#allocation3 + $0x32c] sm:$0xf]  ;;  %v11967_v60 = vld [vmem:[#allocation3 + $0x338] sm:$0xf0] }
 0x135   : > { %1621 = vmatmul.bf16.vlgmr.msra.gmra.mxu2 %v1146_v9  ;;  %1634 = vmatmul.bf16.vlgmr.msra.gmra.mxu3 %v1146_v9  ;;  %v12042_v9 = vor.u32 %v16244_v50, %v12039_v53  ;;  %v16224_v50 = vld [vmem:[#allocation3 + $0x324] sm:$0xf]  ;;  %v11959_v53 = vld [vmem:[#allocation3 + $0x330] sm:$0xf0]  ;;  %v11941_v2 = vld [vmem:[#allocation3 + $0x300] sm:$0xf] }
 0x136   : > { %1839 = vmatpush.bf16.msra.mxu0 %v11862_v42  ;;  %1852 = vmatpush.bf16.msra.mxu1 %v11866_v46  ;;  %v12021_v42 = vld [vmem:[#allocation3 + $0x3a0] sm:$0xf]  ;;  %v16242_v46 = vld [vmem:[#allocation3 + $0x3ac] sm:$0xf0]  ;;  %v11962_v36 = vor.u32 %v16224_v50, %v11959_v53  ;;  %v12141_v50 = vld [vmem:[#allocation3 + $0x488] sm:$0xf] }
 0x137   : > { %1865 = vmatpush.bf16.msrb.mxu2 %v11870_v24  ;;  %1878 = vmatpush.bf16.msrb.mxu3 %v11874_v27  ;;  %v16240_v24 = vld [vmem:[#allocation3 + $0x3a4] sm:$0xf]  ;;  %v12023_v27 = vld [vmem:[#allocation3 + $0x3b0] sm:$0xf0]  ;;  %v12022_v16 = vor.u32 %v16242_v46, %v12021_v42  ;;  %v11970_v46 = vor.u32 %v16225_v17, %v11967_v60  ;;  %v16271_v53 = vld [vmem:[#allocation3 + $0x494] sm:$0xf0] }
 0x138   : > { %v12026_v28 = vor.u32 %v16240_v24, %v12023_v27  ;;  %v16221_v24 = vld [vmem:[#allocation3 + $0x30c] sm:$0xf]  ;;  %v11951_v27 = vld [vmem:[#allocation3 + $0x318] sm:$0xf0] }
 0x13a   : > { %1840 = vmatpush.bf16.msra.mxu0 %v11846_v31  ;;  %1853 = vmatpush.bf16.msra.mxu1 %v11850_v33  ;;  %v12005_v31 = vld [vmem:[#allocation3 + $0x380] sm:$0xf]  ;;  %v16238_v33 = vld [vmem:[#allocation3 + $0x38c] sm:$0xf0] }
 0x13b   : > { %1866 = vmatpush.bf16.msrb.mxu2 %v11854_v44  ;;  %1879 = vmatpush.bf16.msrb.mxu3 %v11858_v45  ;;  %v16236_v44 = vld [vmem:[#allocation3 + $0x384] sm:$0xf]  ;;  %v12007_v45 = vld [vmem:[#allocation3 + $0x390] sm:$0xf0]  ;;  %v12006_v54 = vor.u32 %v16238_v33, %v12005_v31  ;;  %v16283_v33 = vld [vmem:[#allocation3 + $0x4f4] sm:$0xf0] }
 0x13c   : > { %v12010_v55 = vor.u32 %v16236_v44, %v12007_v45  ;;  %v11954_v45 = vor.u32 %v16221_v24, %v11951_v27 }
 0x13e   : > { %1841 = vmatpush.bf16.msra.mxu0 %v11830_v49  ;;  %1854 = vmatpush.bf16.msra.mxu1 %v11834_v56  ;;  %v16234_v49 = vld [vmem:[#allocation3 + $0x36c] sm:$0xf0]  ;;  %v12014_v56 = vor.u32 %v16239_v51, %v12013_v47  ;;  %v12182_v51 = vor.u32 %v16282_v39, %v12181_v40  ;;  %v12101_v40 = vld [vmem:[#allocation3 + $0x440] sm:$0xf] }
 0x13f   : > { %1867 = vmatpush.bf16.msrb.mxu2 %v11838_v1  ;;  %1880 = vmatpush.bf16.msrb.mxu3 %v11842_v61  ;;  %v11997_v1 = vld [vmem:[#allocation3 + $0x368] sm:$0xf]  ;;  %v16235_v61 = vld [vmem:[#allocation3 + $0x374] sm:$0xf0]  ;;  %v11990_v35 = vor.u32 %v16234_v49, %v11989_v32  ;;  %v16276_v49 = vld [vmem:[#allocation3 + $0x4c4] sm:$0xf] }
 0x140   : > { %v11998_v29 = vor.u32 %v16235_v61, %v11997_v1  ;;  %v1892_v47 = vld [vmem:[#allocation2 + $0x3] ss:$2 sm:$0xf]  ;;  %v12175_v1 = vld [vmem:[#allocation3 + $0x4d8] sm:$0xf0] }
 0x141   : > { %v1893_v61 = vpack.c.bf16 %v1892_v47, %v1892_v47  ;;  %v16262_v39 = vld [vmem:[#allocation3 + $0x44c] sm:$0xf0]  ;;  %v12085_v47 = vld [vmem:[#allocation3 + $0x420] sm:$0xf] }
 0x142   : > { %1842 = vmatpush.bf16.msra.mxu0 %v11814_v63  ;;  %1855 = vmatpush.bf16.msra.mxu1 %v11818_v5  ;;  %v11975_v63 = vld [vmem:[#allocation3 + $0x350] sm:$0xf0]  ;;  %v11981_v5 = vld [vmem:[#allocation3 + $0x348] sm:$0xf] }
 0x143   : > { %1868 = vmatpush.bf16.msrb.mxu2 %v11822_v7  ;;  %1881 = vmatpush.bf16.msrb.mxu3 %v11826_v38  ;;  %v11974_v7 = vor.u32 %v16230_v12, %v11973_v48  ;;  %v11978_v38 = vor.u32 %v16228_v62, %v11975_v63  ;;  %v12178_v12 = vor.u32 %v16277_v59, %v12175_v1  ;;  %v12157_v62 = vld [vmem:[#allocation3 + $0x4a8] sm:$0xf]  ;;  %v16275_v63 = vld [vmem:[#allocation3 + $0x4b4] sm:$0xf0] }
 0x145   : > { %1843 = vmatmul.bf16.vlgmr.msra.gmra.mxu0 %v1641_v19  ;;  %1856 = vmatmul.bf16.vlgmr.msra.gmra.mxu1 %v1641_v19 }
 0x146   : > { %2087 = vmatpush.bf16.msrb.mxu0 %v12054_v8  ;;  %2100 = vmatpush.bf16.msrb.mxu1 %v12058_v15  ;;  %v16226_v8 = vld [vmem:[#allocation3 + $0x32c] sm:$0xf0]  ;;  %v11982_v15 = vor.u32 %v16231_v6, %v11981_v5  ;;  %v16273_v5 = vld [vmem:[#allocation3 + $0x4ac] sm:$0xf]  ;;  %v12159_v6 = vld [vmem:[#allocation3 + $0x4b8] sm:$0xf0] }
 0x147   : > { %2113 = vmatpush.bf16.msra.mxu2 %v12062_v30  ;;  %2126 = vmatpush.bf16.msra.mxu3 %v12066_v14  ;;  %v11965_v30 = vld [vmem:[#allocation3 + $0x328] sm:$0xf]  ;;  %v16227_v14 = vld [vmem:[#allocation3 + $0x334] sm:$0xf0]  ;;  %v11958_v18 = vor.u32 %v16226_v8, %v11957_v43  ;;  %v12158_v43 = vor.u32 %v16275_v63, %v12157_v62  ;;  %v12162_v8 = vor.u32 %v16273_v5, %v12159_v6  ;;  %v12309_v62 = vld [vmem:[#allocation3 + $0x5e0] sm:$0xf] }
 0x148   : > { %1869 = vmatmul.bf16.vlgmr.msrb.gmra.mxu2 %v1641_v19  ;;  %1882 = vmatmul.bf16.vlgmr.msrb.gmra.mxu3 %v1641_v19  ;;  %v16222_v19 = vld [vmem:[#allocation3 + $0x30c] sm:$0xf0]  ;;  %v11966_v42 = vor.u32 %v16227_v14, %v11965_v30  ;;  %v16269_v30 = vld [vmem:[#allocation3 + $0x48c] sm:$0xf]  ;;  %v12143_v14 = vld [vmem:[#allocation3 + $0x498] sm:$0xf0] }
 0x149   : > { %v16314_v63 = vld [vmem:[#allocation3 + $0x5ec] sm:$0xf0]  ;;  %v16312_v5 = vld [vmem:[#allocation3 + $0x5e4] sm:$0xf]  ;;  %v12311_v6 = vld [vmem:[#allocation3 + $0x5f0] sm:$0xf0] }
 0x14a   : > { %2088 = vmatpush.bf16.msrb.mxu0 %v12038_v22  ;;  %2101 = vmatpush.bf16.msrb.mxu1 %v12042_v9  ;;  %v16220_v22 = vld [vmem:[#allocation3 + $0x304] sm:$0xf]  ;;  %v11943_v9 = vld [vmem:[#allocation3 + $0x310] sm:$0xf0] }
 0x14b   : > { %2114 = vmatpush.bf16.msra.mxu2 %v12046_v23  ;;  %2127 = vmatpush.bf16.msra.mxu3 %v12050_v13  ;;  %v11949_v23 = vld [vmem:[#allocation3 + $0x308] sm:$0xf]  ;;  %v16223_v13 = vld [vmem:[#allocation3 + $0x314] sm:$0xf0]  ;;  %v11946_v31 = vor.u32 %v16220_v22, %v11943_v9  ;;  %v16264_v22 = vld [vmem:[#allocation3 + $0x464] sm:$0xf] }
 0x14c   : > { %v11950_v44 = vor.u32 %v16223_v13, %v11949_v23  ;;  %v12119_v9 = vld [vmem:[#allocation3 + $0x470] sm:$0xf0]  ;;  %v16265_v23 = vld [vmem:[#allocation3 + $0x46c] sm:$0xf]  ;;  %v12127_v13 = vld [vmem:[#allocation3 + $0x478] sm:$0xf0] }
 0x14d   : > { %v12122_v27 = vor.u32 %v16264_v22, %v12119_v9  ;;  %v12130_v26 = vor.u32 %v16265_v23, %v12127_v13  ;;  %v16311_v22 = vld [vmem:[#allocation3 + $0x5d4] sm:$0xf0]  ;;  %v16309_v9 = vld [vmem:[#allocation3 + $0x5cc] sm:$0xf] }
 0x14e   : > { %2089 = vmatpush.bf16.msrb.mxu0 %v12022_v16  ;;  %2102 = vmatpush.bf16.msrb.mxu1 %v12026_v28  ;;  %v12189_v16 = vld [vmem:[#allocation3 + $0x4e8] sm:$0xf]  ;;  %v11942_v28 = vor.u32 %v16222_v19, %v11941_v2  ;;  %v12117_v2 = vld [vmem:[#allocation3 + $0x460] sm:$0xf]  ;;  %v12146_v19 = vor.u32 %v16269_v30, %v12143_v14  ;;  %v12314_v30 = vor.u32 %v16312_v5, %v12311_v6 }
 0x14f   : > { %2115 = vmatpush.bf16.msra.mxu2 %v12030_v21  ;;  %2128 = vmatpush.bf16.msra.mxu3 %v12034_v34  ;;  %v16281_v21 = vld [vmem:[#allocation3 + $0x4ec] sm:$0xf]  ;;  %v12191_v34 = vld [vmem:[#allocation3 + $0x4f8] sm:$0xf0]  ;;  %v12293_v14 = vld [vmem:[#allocation3 + $0x5c0] sm:$0xf] }
 0x150   : > { %v12194_v32 = vor.u32 %v16281_v21, %v12191_v34  ;;  %v16261_v21 = vld [vmem:[#allocation3 + $0x44c] sm:$0xf]  ;;  %v12111_v34 = vld [vmem:[#allocation3 + $0x458] sm:$0xf0] }
 0x152   : > { %2090 = vmatpush.bf16.msrb.mxu0 %v12006_v54  ;;  %2103 = vmatpush.bf16.msrb.mxu1 %v12010_v55  ;;  %v16278_v54 = vld [vmem:[#allocation3 + $0x4cc] sm:$0xf0]  ;;  %v12190_v55 = vor.u32 %v16283_v33, %v12189_v16  ;;  %v16260_v16 = vld [vmem:[#allocation3 + $0x444] sm:$0xf]  ;;  %v16263_v33 = vld [vmem:[#allocation3 + $0x454] sm:$0xf0] }
 0x153   : > { %2116 = vmatpush.bf16.msra.mxu2 %v12014_v56  ;;  %2129 = vmatpush.bf16.msra.mxu3 %v12018_v57  ;;  %v12167_v56 = vld [vmem:[#allocation3 + $0x4d0] sm:$0xf0]  ;;  %v12173_v57 = vld [vmem:[#allocation3 + $0x4c8] sm:$0xf]  ;;  %v12166_v3 = vor.u32 %v16278_v54, %v12165_v52  ;;  %v12114_v52 = vor.u32 %v16261_v21, %v12111_v34  ;;  %v16256_v54 = vld [vmem:[#allocation3 + $0x424] sm:$0xf] }
 0x154   : > { %v12170_v4 = vor.u32 %v16276_v49, %v12167_v56  ;;  %v12174_v48 = vor.u32 %v16279_v10, %v12173_v57  ;;  %v16259_v49 = vld [vmem:[#allocation3 + $0x434] sm:$0xf0]  ;;  %v16257_v56 = vld [vmem:[#allocation3 + $0x42c] sm:$0xf]  ;;  %v12095_v57 = vld [vmem:[#allocation3 + $0x438] sm:$0xf0] }
 0x155   : > { %v12069_v10 = vld [vmem:[#allocation3 + $0x400] sm:$0xf] }
 0x156   : > { %2091 = vmatpush.bf16.msrb.mxu0 %v11990_v35  ;;  %2104 = vmatpush.bf16.msrb.mxu1 %v11994_v37  ;;  %v12149_v35 = vld [vmem:[#allocation3 + $0x4a0] sm:$0xf]  ;;  %v16274_v37 = vld [vmem:[#allocation3 + $0x4ac] sm:$0xf0] }
 0x157   : > { %2117 = vmatpush.bf16.msra.mxu2 %v11998_v29  ;;  %2130 = vmatpush.bf16.msra.mxu3 %v12002_v11  ;;  %v16272_v29 = vld [vmem:[#allocation3 + $0x4a4] sm:$0xf]  ;;  %v12151_v11 = vld [vmem:[#allocation3 + $0x4b0] sm:$0xf0]  ;;  %v12150_v25 = vor.u32 %v16274_v37, %v12149_v35  ;;  %v12098_v37 = vor.u32 %v16257_v56, %v12095_v57 }
 0x158   : > { %v12154_v0 = vor.u32 %v16272_v29, %v12151_v11  ;;  %v16253_v29 = vld [vmem:[#allocation3 + $0x40c] sm:$0xf]  ;;  %v12079_v11 = vld [vmem:[#allocation3 + $0x418] sm:$0xf0] }
 0x15a   : > { %2092 = vmatpush.bf16.msrb.mxu0 %v11974_v7  ;;  %2105 = vmatpush.bf16.msrb.mxu1 %v11978_v38  ;;  %v12133_v7 = vld [vmem:[#allocation3 + $0x480] sm:$0xf]  ;;  %v16270_v38 = vld [vmem:[#allocation3 + $0x48c] sm:$0xf0] }
 0x15b   : > { %2118 = vmatpush.bf16.msra.mxu2 %v11982_v15  ;;  %2131 = vmatpush.bf16.msra.mxu3 %v11986_v20  ;;  %v16268_v15 = vld [vmem:[#allocation3 + $0x484] sm:$0xf]  ;;  %v12135_v20 = vld [vmem:[#allocation3 + $0x490] sm:$0xf0]  ;;  %v12134_v17 = vor.u32 %v16270_v38, %v12133_v7  ;;  %v16315_v38 = vld [vmem:[#allocation3 + $0x5f4] sm:$0xf0] }
 0x15c   : > { %v12138_v60 = vor.u32 %v16268_v15, %v12135_v20  ;;  %v12082_v20 = vor.u32 %v16253_v29, %v12079_v11 }
 0x15e   : > { %2093 = vmatpush.bf16.msrb.mxu0 %v11958_v18  ;;  %2106 = vmatpush.bf16.msrb.mxu1 %v11962_v36  ;;  %v16266_v18 = vld [vmem:[#allocation3 + $0x46c] sm:$0xf0]  ;;  %v12142_v36 = vor.u32 %v16271_v53, %v12141_v50  ;;  %v2144_v50 = vld [vmem:[#allocation2 + $0x4] ss:$2 sm:$0xf]  ;;  %v12310_v53 = vor.u32 %v16314_v63, %v12309_v62 }
 0x15f   : > { %2119 = vmatpush.bf16.msra.mxu2 %v11966_v42  ;;  %2132 = vmatpush.bf16.msra.mxu3 %v11970_v46  ;;  %v12125_v42 = vld [vmem:[#allocation3 + $0x468] sm:$0xf]  ;;  %v16267_v46 = vld [vmem:[#allocation3 + $0x474] sm:$0xf0]  ;;  %v12118_v24 = vor.u32 %v16266_v18, %v12117_v2  ;;  %v16308_v18 = vld [vmem:[#allocation3 + $0x5c4] sm:$0xf] }
 0x160   : > { %v12126_v58 = vor.u32 %v16267_v46, %v12125_v42  ;;  %v12303_v42 = vld [vmem:[#allocation3 + $0x5d8] sm:$0xf0]  ;;  %v2145_v46 = vpack.c.bf16 %v2144_v50, %v2144_v50  ;;  %v12229_v62 = vld [vmem:[#allocation3 + $0x540] sm:$0xf]  ;;  %v16294_v63 = vld [vmem:[#allocation3 + $0x54c] sm:$0xf0] }
 0x161   : > { %v12213_v50 = vld [vmem:[#allocation3 + $0x520] sm:$0xf] }
 0x162   : > { %2094 = vmatpush.bf16.msrb.mxu0 %v11942_v28  ;;  %2107 = vmatpush.bf16.msrb.mxu1 %v11946_v31  ;;  %v12103_v28 = vld [vmem:[#allocation3 + $0x450] sm:$0xf0]  ;;  %v12109_v31 = vld [vmem:[#allocation3 + $0x448] sm:$0xf] }
 0x163   : > { %2120 = vmatpush.bf16.msra.mxu2 %v11950_v44  ;;  %2133 = vmatpush.bf16.msra.mxu3 %v11954_v45  ;;  %v12102_v44 = vor.u32 %v16262_v39, %v12101_v40  ;;  %v12106_v45 = vor.u32 %v16260_v16, %v12103_v28  ;;  %v12306_v39 = vor.u32 %v16309_v9, %v12303_v42  ;;  %v12285_v16 = vld [vmem:[#allocation3 + $0x5a8] sm:$0xf]  ;;  %v16307_v28 = vld [vmem:[#allocation3 + $0x5b4] sm:$0xf0]  ;;  %v12197_v42 = vld [vmem:[#allocation3 + $0x500] sm:$0xf] }
 0x165   : > { %2095 = vmatmul.bf16.vlgmr.msrb.gmra.mxu0 %v1893_v61  ;;  %2108 = vmatmul.bf16.vlgmr.msrb.gmra.mxu1 %v1893_v61 }
 0x166   : > { %2339 = vmatpush.bf16.msra.mxu0 %v12182_v51  ;;  %2352 = vmatpush.bf16.msra.mxu1 %v12186_v41  ;;  %v16258_v51 = vld [vmem:[#allocation3 + $0x42c] sm:$0xf0]  ;;  %v12110_v41 = vor.u32 %v16263_v33, %v12109_v31  ;;  %v16305_v31 = vld [vmem:[#allocation3 + $0x5ac] sm:$0xf]  ;;  %v12287_v33 = vld [vmem:[#allocation3 + $0x5b8] sm:$0xf0] }
 0x167   : > { %2365 = vmatpush.bf16.msrb.mxu2 %v12190_v55  ;;  %2378 = vmatpush.bf16.msrb.mxu3 %v12194_v32  ;;  %v12087_v55 = vld [vmem:[#allocation3 + $0x430] sm:$0xf0]  ;;  %v12093_v32 = vld [vmem:[#allocation3 + $0x428] sm:$0xf]  ;;  %v12086_v59 = vor.u32 %v16258_v51, %v12085_v47  ;;  %v12286_v47 = vor.u32 %v16307_v28, %v12285_v16  ;;  %v12290_v51 = vor.u32 %v16305_v31, %v12287_v33 }
 0x168   : > { %2121 = vmatmul.bf16.vlgmr.msra.gmra.mxu2 %v1893_v61  ;;  %2134 = vmatmul.bf16.vlgmr.msra.gmra.mxu3 %v1893_v61  ;;  %v12090_v1 = vor.u32 %v16256_v54, %v12087_v55  ;;  %v16254_v61 = vld [vmem:[#allocation3 + $0x40c] sm:$0xf0]  ;;  %v12094_v35 = vor.u32 %v16259_v49, %v12093_v32  ;;  %v12269_v54 = vld [vmem:[#allocation3 + $0x588] sm:$0xf]  ;;  %v16303_v55 = vld [vmem:[#allocation3 + $0x594] sm:$0xf0] }
 0x169   : > { %v16301_v32 = vld [vmem:[#allocation3 + $0x58c] sm:$0xf]  ;;  %v12271_v49 = vld [vmem:[#allocation3 + $0x598] sm:$0xf0] }
 0x16a   : > { %2340 = vmatpush.bf16.msra.mxu0 %v12166_v3  ;;  %2353 = vmatpush.bf16.msra.mxu1 %v12170_v4  ;;  %v16252_v3 = vld [vmem:[#allocation3 + $0x404] sm:$0xf]  ;;  %v12071_v4 = vld [vmem:[#allocation3 + $0x410] sm:$0xf0] }
 0x16b   : > { %2366 = vmatpush.bf16.msrb.mxu2 %v12174_v48  ;;  %2379 = vmatpush.bf16.msrb.mxu3 %v12178_v12  ;;  %v12077_v48 = vld [vmem:[#allocation3 + $0x408] sm:$0xf]  ;;  %v16255_v12 = vld [vmem:[#allocation3 + $0x414] sm:$0xf0]  ;;  %v12074_v7 = vor.u32 %v16252_v3, %v12071_v4  ;;  %v16296_v3 = vld [vmem:[#allocation3 + $0x564] sm:$0xf] }
 0x16c   : > { %v12078_v15 = vor.u32 %v16255_v12, %v12077_v48  ;;  %v12247_v4 = vld [vmem:[#allocation3 + $0x570] sm:$0xf0]  ;;  %v16297_v48 = vld [vmem:[#allocation3 + $0x56c] sm:$0xf]  ;;  %v12255_v12 = vld [vmem:[#allocation3 + $0x578] sm:$0xf0] }
 0x16d   : > { %v12250_v11 = vor.u32 %v16296_v3, %v12247_v4  ;;  %v12258_v6 = vor.u32 %v16297_v48, %v12255_v12 }
 0x16e   : > { %2341 = vmatpush.bf16.msra.mxu0 %v12150_v25  ;;  %2354 = vmatpush.bf16.msra.mxu1 %v12154_v0  ;;  %v12317_v25 = vld [vmem:[#allocation3 + $0x5e8] sm:$0xf]  ;;  %v12070_v0 = vor.u32 %v16254_v61, %v12069_v10  ;;  %v12245_v10 = vld [vmem:[#allocation3 + $0x560] sm:$0xf]  ;;  %v12274_v61 = vor.u32 %v16301_v32, %v12271_v49 }
 0x16f   : > { %2367 = vmatpush.bf16.msrb.mxu2 %v12158_v43  ;;  %2380 = vmatpush.bf16.msrb.mxu3 %v12162_v8  ;;  %v16313_v43 = vld [vmem:[#allocation3 + $0x5ec] sm:$0xf]  ;;  %v12319_v8 = vld [vmem:[#allocation3 + $0x5f8] sm:$0xf0] }
 0x170   : > { %v12322_v2 = vor.u32 %v16313_v43, %v12319_v8  ;;  %v16293_v43 = vld [vmem:[#allocation3 + $0x54c] sm:$0xf]  ;;  %v12239_v8 = vld [vmem:[#allocation3 + $0x558] sm:$0xf0] }
 0x172   : > { %2342 = vmatpush.bf16.msra.mxu0 %v12134_v17  ;;  %2355 = vmatpush.bf16.msra.mxu1 %v12138_v60  ;;  %v16310_v17 = vld [vmem:[#allocation3 + $0x5cc] sm:$0xf0]  ;;  %v12318_v60 = vor.u32 %v16315_v38, %v12317_v25  ;;  %v16292_v25 = vld [vmem:[#allocation3 + $0x544] sm:$0xf]  ;;  %v16295_v38 = vld [vmem:[#allocation3 + $0x554] sm:$0xf0] }
 0x173   : > { %2368 = vmatpush.bf16.msrb.mxu2 %v12142_v36  ;;  %2381 = vmatpush.bf16.msrb.mxu3 %v12146_v19  ;;  %v12295_v36 = vld [vmem:[#allocation3 + $0x5d0] sm:$0xf0]  ;;  %v12301_v19 = vld [vmem:[#allocation3 + $0x5c8] sm:$0xf]  ;;  %v12294_v23 = vor.u32 %v16310_v17, %v12293_v14  ;;  %v12242_v14 = vor.u32 %v16293_v43, %v12239_v8  ;;  %v16288_v17 = vld [vmem:[#allocation3 + $0x524] sm:$0xf] }
 0x174   : > { %v12298_v13 = vor.u32 %v16308_v18, %v12295_v36  ;;  %v12302_v40 = vor.u32 %v16311_v22, %v12301_v19  ;;  %v16291_v18 = vld [vmem:[#allocation3 + $0x534] sm:$0xf0]  ;;  %v16289_v36 = vld [vmem:[#allocation3 + $0x52c] sm:$0xf]  ;;  %v12223_v19 = vld [vmem:[#allocation3 + $0x538] sm:$0xf0] }
 0x176   : > { %2343 = vmatpush.bf16.msra.mxu0 %v12118_v24  ;;  %2356 = vmatpush.bf16.msra.mxu1 %v12122_v27  ;;  %v12277_v24 = vld [vmem:[#allocation3 + $0x5a0] sm:$0xf]  ;;  %v16306_v27 = vld [vmem:[#allocation3 + $0x5ac] sm:$0xf0] }
 0x177   : > { %2369 = vmatpush.bf16.msrb.mxu2 %v12126_v58  ;;  %2382 = vmatpush.bf16.msrb.mxu3 %v12130_v26  ;;  %v16304_v58 = vld [vmem:[#allocation3 + $0x5a4] sm:$0xf]  ;;  %v12279_v26 = vld [vmem:[#allocation3 + $0x5b0] sm:$0xf0]  ;;  %v12278_v21 = vor.u32 %v16306_v27, %v12277_v24 }
 0x178   : > { %v12282_v34 = vor.u32 %v16304_v58, %v12279_v26  ;;  %v16284_v24 = vld [vmem:[#allocation3 + $0x504] sm:$0xf]  ;;  %v12199_v27 = vld [vmem:[#allocation3 + $0x510] sm:$0xf0]  ;;  %v16285_v58 = vld [vmem:[#allocation3 + $0x50c] sm:$0xf] }
 0x179   : > { %v12207_v26 = vld [vmem:[#allocation3 + $0x518] sm:$0xf0]  ;;  %v12202_v28 = vor.u32 %v16284_v24, %v12199_v27 }
 0x17a   : > { %2344 = vmatpush.bf16.msra.mxu0 %v12102_v44  ;;  %2357 = vmatpush.bf16.msra.mxu1 %v12106_v45  ;;  %v12261_v44 = vld [vmem:[#allocation3 + $0x580] sm:$0xf]  ;;  %v16302_v45 = vld [vmem:[#allocation3 + $0x58c] sm:$0xf0]  ;;  %v12210_v33 = vor.u32 %v16285_v58, %v12207_v26 }
 0x17b   : > { %2370 = vmatpush.bf16.msrb.mxu2 %v12110_v41  ;;  %2383 = vmatpush.bf16.msrb.mxu3 %v12114_v52  ;;  %v16300_v41 = vld [vmem:[#allocation3 + $0x584] sm:$0xf]  ;;  %v12263_v52 = vld [vmem:[#allocation3 + $0x590] sm:$0xf0]  ;;  %v12262_v56 = vor.u32 %v16302_v45, %v12261_v44 }
 0x17c   : > { %v12266_v57 = vor.u32 %v16300_v41, %v12263_v52  ;;  %v16328_v58 = vld [vmem:[#allocation6 + $0x60] sm:$0xff] }
 0x17d   : > { %v16336_v26 = vld [vmem:[#allocation6 + $0xa0] sm:$0xff] }
 0x17e   : > { %2345 = vmatpush.bf16.msra.mxu0 %v12086_v59  ;;  %2358 = vmatpush.bf16.msra.mxu1 %v12090_v1  ;;  %v16298_v59 = vld [vmem:[#allocation3 + $0x56c] sm:$0xf0]  ;;  %v12270_v1 = vor.u32 %v16303_v55, %v12269_v54 }
 0x17f   : > { %2371 = vmatpush.bf16.msrb.mxu2 %v12094_v35  ;;  %2384 = vmatpush.bf16.msrb.mxu3 %v12098_v37  ;;  %v12253_v35 = vld [vmem:[#allocation3 + $0x568] sm:$0xf]  ;;  %v16299_v37 = vld [vmem:[#allocation3 + $0x574] sm:$0xf0]  ;;  %v12246_v29 = vor.u32 %v16298_v59, %v12245_v10 }
 0x180   : > { %v12254_v5 = vor.u32 %v16299_v37, %v12253_v35 }
 0x182   : > { %2346 = vmatpush.bf16.msra.mxu0 %v12070_v0  ;;  %2359 = vmatpush.bf16.msra.mxu1 %v12074_v7  ;;  %v12231_v0 = vld [vmem:[#allocation3 + $0x550] sm:$0xf0]  ;;  %v12237_v7 = vld [vmem:[#allocation3 + $0x548] sm:$0xf] }
 0x183   : > { %2372 = vmatpush.bf16.msrb.mxu2 %v12078_v15  ;;  %2385 = vmatpush.bf16.msrb.mxu3 %v12082_v20  ;;  %v12230_v15 = vor.u32 %v16294_v63, %v12229_v62  ;;  %v12234_v20 = vor.u32 %v16292_v25, %v12231_v0 }
 0x185   : > { %2347 = vmatmul.bf16.vlgmr.msra.gmra.mxu0 %v2145_v46  ;;  %2360 = vmatmul.bf16.vlgmr.msra.gmra.mxu1 %v2145_v46 }
 0x186   : > { %2591 = vmatpush.bf16.msrb.mxu0 %v12310_v53  ;;  %2604 = vmatpush.bf16.msrb.mxu1 %v12314_v30  ;;  %v16290_v53 = vld [vmem:[#allocation3 + $0x52c] sm:$0xf0]  ;;  %v12238_v30 = vor.u32 %v16295_v38, %v12237_v7 }
 0x187   : > { %2617 = vmatpush.bf16.msra.mxu2 %v12318_v60  ;;  %2630 = vmatpush.bf16.msra.mxu3 %v12322_v2  ;;  %v12215_v60 = vld [vmem:[#allocation3 + $0x530] sm:$0xf0]  ;;  %v12221_v2 = vld [vmem:[#allocation3 + $0x528] sm:$0xf]  ;;  %v12214_v22 = vor.u32 %v16290_v53, %v12213_v50 }
 0x188   : > { %2373 = vmatmul.bf16.vlgmr.msrb.gmra.mxu2 %v2145_v46  ;;  %2386 = vmatmul.bf16.vlgmr.msrb.gmra.mxu3 %v2145_v46  ;;  %v12218_v9 = vor.u32 %v16288_v17, %v12215_v60  ;;  %v16286_v46 = vld [vmem:[#allocation3 + $0x50c] sm:$0xf0]  ;;  %v16339_v17 = vld [vmem:[#allocation6 + $0xb8] sm:$0xff] }
 0x189   : > { %v12198_v16 = vor.u32 %v16286_v46, %v12197_v42  ;;  %v16347_v60 = vld [vmem:[#allocation6 + $0xf8] sm:$0xff]  ;;  %v16320_v42 = vld [vmem:[#allocation6 + $0x20] sm:$0xff]  ;;  %v16346_v46 = vld [vmem:[#allocation6 + $0xf0] sm:$0xff] }
 0x18a   : > { %2592 = vmatpush.bf16.msrb.mxu0 %v12294_v23  ;;  %2605 = vmatpush.bf16.msrb.mxu1 %v12298_v13  ;;  %v12222_v23 = vor.u32 %v16291_v18, %v12221_v2  ;;  %v12226_v13 = vor.u32 %v16289_v36, %v12223_v19  ;;  %v16322_v36 = vld [vmem:[#allocation6 + $0x30] sm:$0xff] }
 0x18b   : > { %2618 = vmatpush.bf16.msra.mxu2 %v12302_v40  ;;  %2631 = vmatpush.bf16.msra.mxu3 %v12306_v39  ;;  %v12205_v40 = vld [vmem:[#allocation3 + $0x508] sm:$0xf]  ;;  %v16287_v39 = vld [vmem:[#allocation3 + $0x514] sm:$0xf0]  ;;  %v16330_v19 = vld [vmem:[#allocation6 + $0x70] sm:$0xff] }
 0x18c   : > { %v12206_v31 = vor.u32 %v16287_v39, %v12205_v40  ;;  %v16319_v40 = vld [vmem:[#allocation6 + $0x18] sm:$0xff]  ;;  %v16345_v39 = vld [vmem:[#allocation6 + $0xe8] sm:$0xff] }
 0x18e   : > { %2593 = vmatpush.bf16.msrb.mxu0 %v12278_v21  ;;  %2606 = vmatpush.bf16.msrb.mxu1 %v12282_v34  ;;  %v2396_v21 = vld [vmem:[#allocation2 + $0x5] ss:$2 sm:$0xf] }
 0x18f   : > { %2619 = vmatpush.bf16.msra.mxu2 %v12286_v47  ;;  %2632 = vmatpush.bf16.msra.mxu3 %v12290_v51  ;;  %v2397_v34 = vpack.c.bf16 %v2396_v21, %v2396_v21  ;;  %v16327_v21 = vld [vmem:[#allocation6 + $0x58] sm:$0xff] }
 0x192   : > { %2594 = vmatpush.bf16.msrb.mxu0 %v12262_v56  ;;  %2607 = vmatpush.bf16.msrb.mxu1 %v12266_v57 }
 0x193   : > { %2620 = vmatpush.bf16.msra.mxu2 %v12270_v1  ;;  %2633 = vmatpush.bf16.msra.mxu3 %v12274_v61 }
 0x196   : > { %2595 = vmatpush.bf16.msrb.mxu0 %v12246_v29  ;;  %2608 = vmatpush.bf16.msrb.mxu1 %v12250_v11 }
 0x197   : > { %2621 = vmatpush.bf16.msra.mxu2 %v12254_v5  ;;  %2634 = vmatpush.bf16.msra.mxu3 %v12258_v6 }
 0x19a   : > { %2596 = vmatpush.bf16.msrb.mxu0 %v12230_v15  ;;  %2609 = vmatpush.bf16.msrb.mxu1 %v12234_v20 }
 0x19b   : > { %2622 = vmatpush.bf16.msra.mxu2 %v12238_v30  ;;  %2635 = vmatpush.bf16.msra.mxu3 %v12242_v14  ;;  %v16323_v30 = vld [vmem:[#allocation6 + $0x38] sm:$0xff] }
 0x19c   : > { %v16331_v14 = vld [vmem:[#allocation6 + $0x78] sm:$0xff] }
 0x19e   : > { %2597 = vmatpush.bf16.msrb.mxu0 %v12214_v22  ;;  %2610 = vmatpush.bf16.msrb.mxu1 %v12218_v9  ;;  %v16338_v22 = vld [vmem:[#allocation6 + $0xb0] sm:$0xff]  ;;  %v16321_v9 = vld [vmem:[#allocation6 + $0x28] sm:$0xff] }
 0x19f   : > { %2623 = vmatpush.bf16.msra.mxu2 %v12222_v23  ;;  %2636 = vmatpush.bf16.msra.mxu3 %v12226_v13  ;;  %v16329_v23 = vld [vmem:[#allocation6 + $0x68] sm:$0xff] }
 0x1a0   : > { %v16337_v13 = vld [vmem:[#allocation6 + $0xa8] sm:$0xff] }
 0x1a1   : > { %v1384_v44 = vpop.f32.mrf.mxu0  ;;  %v1397_v45 = vpop.f32.mrf.mxu1 }
 0x1a2   : > { %2598 = vmatpush.bf16.msrb.mxu0 %v12198_v16  ;;  %2611 = vmatpush.bf16.msrb.mxu1 %v12202_v28  ;;  %v16318_v16 = vld [vmem:[#allocation6 + $0x10] sm:$0xff]  ;;  %v16344_v28 = vld [vmem:[#allocation6 + $0xe0] sm:$0xff] }
 0x1a3   : > { %2624 = vmatpush.bf16.msra.mxu2 %v12206_v31  ;;  %2637 = vmatpush.bf16.msra.mxu3 %v12210_v33 }
 0x1a5   : > { %2599 = vmatmul.bf16.vlgmr.msrb.gmra.mxu0 %v2397_v34  ;;  %2612 = vmatmul.bf16.vlgmr.msrb.gmra.mxu1 %v2397_v34 }
 0x1a6   : > { %2625 = vmatmul.bf16.vlgmr.msra.gmra.mxu2 %v2397_v34  ;;  %2638 = vmatmul.bf16.vlgmr.msra.gmra.mxu3 %v2397_v34  ;;  %v16335_v34 = vld [vmem:[#allocation6 + $0x98] sm:$0xff] }
 0x1a7   : > { %2806 = vmatpush.bf16.msra.mxu1 %v16323_v30  ;;  %2745 = vmatpush.bf16.msra.mxu0 %v16331_v14 }
 0x1a8   : > { %v1410_v47 = vpop.f32.mrf.mxu2  ;;  %v1423_v51 = vpop.f32.mrf.mxu3  ;;  %2886 = vmatpush.bf16.msrb.mxu2 %v16339_v17  ;;  %2967 = vmatpush.bf16.msrb.mxu3 %v16347_v60 }
 0x1a9   : > { %v1386_v41 = vpop.f32.mrf.mxu0  ;;  %v1399_v52 = vpop.f32.mrf.mxu1 }
 0x1aa   : > { %v16326_v41 = vld [vmem:[#allocation6 + $0x50] sm:$0xff] }
 0x1ab   : > { %2807 = vmatpush.bf16.msra.mxu1 %v16322_v36  ;;  %2746 = vmatpush.bf16.msra.mxu0 %v16330_v19  ;;  %v16334_v52 = vld [vmem:[#allocation6 + $0x90] sm:$0xff] }
 0x1ac   : > { %2887 = vmatpush.bf16.msrb.mxu2 %v16338_v22  ;;  %2968 = vmatpush.bf16.msrb.mxu3 %v16346_v46 }
 0x1af   : > { %2808 = vmatpush.bf16.msra.mxu1 %v16321_v9  ;;  %2747 = vmatpush.bf16.msra.mxu0 %v16329_v23 }
 0x1b0   : > { %v1412_v54 = vpop.f32.mrf.mxu2  ;;  %v1425_v55 = vpop.f32.mrf.mxu3  ;;  %2888 = vmatpush.bf16.msrb.mxu2 %v16337_v13  ;;  %2969 = vmatpush.bf16.msrb.mxu3 %v16345_v39 }
 0x1b1   : > { %v1596_v32 = vpop.f32.mrf.mxu0  ;;  %v1609_v49 = vpop.f32.mrf.mxu1  ;;  %v16316_v54 = vld [vmem:[#allocation6] sm:$0xff]  ;;  %v16342_v55 = vld [vmem:[#allocation6 + $0xd0] sm:$0xff] }
 0x1b2   : > { %v1597_v56 = vadd.f32 %v1596_v32, %v1384_v44  ;;  %v1610_v57 = vadd.f32 %v1609_v49, %v1397_v45 }
 0x1b3   : > { %2809 = vmatpush.bf16.msra.mxu1 %v16320_v42  ;;  %2748 = vmatpush.bf16.msra.mxu0 %v16328_v58 }
 0x1b4   : > { %2889 = vmatpush.bf16.msrb.mxu2 %v16336_v26  ;;  %2970 = vmatpush.bf16.msrb.mxu3 %v16344_v28 }
 0x1b7   : > { %2810 = vmatpush.bf16.msra.mxu1 %v16319_v40  ;;  %2749 = vmatpush.bf16.msra.mxu0 %v16327_v21  ;;  %v16369_v21 = vld [vmem:[%s19790_s1 + $0x6c] sm:$0xf] }
 0x1b8   : > { %v1622_v10 = vpop.f32.mrf.mxu2  ;;  %v1635_v59 = vpop.f32.mrf.mxu3  ;;  %2890 = vmatpush.bf16.msrb.mxu2 %v16335_v34  ;;  %v12523_v34 = vld [vmem:[%s19790_s1 + $0x78] sm:$0x30] }
 0x1b9   : > { %v1623_v1 = vadd.f32 %v1622_v10, %v1410_v47  ;;  %v1636_v61 = vadd.f32 %v1635_v59, %v1423_v51  ;;  %v1598_v3 = vpop.f32.mrf.mxu0  ;;  %v1611_v4 = vpop.f32.mrf.mxu1  ;;  %v16317_v47 = vld [vmem:[#allocation6 + $0x8] sm:$0xff]  ;;  %v16343_v51 = vld [vmem:[#allocation6 + $0xd8] sm:$0xff]  ;;  %v16324_v59 = vld [vmem:[#allocation6 + $0x40] sm:$0xff] }
 0x1ba   : > { %2971 = vmatpush.bf16.msrb.mxu3 %v16343_v51  ;;  %v16341_v10 = vld [vmem:[#allocation6 + $0xc8] sm:$0xff]  ;;  %v16368_v3 = vld [vmem:[%s19790_s1 + $0x64] sm:$0xf]  ;;  %v12515_v4 = vld [vmem:[%s19790_s1 + $0x70] sm:$0x30]  ;;  %v12526_v51 = vor.u32 %v16369_v21, %v12523_v34 }
 0x1bb   : > { %2811 = vmatpush.bf16.msra.mxu1 %v16318_v16  ;;  %2750 = vmatpush.bf16.msra.mxu0 %v16326_v41 }
 0x1bc   : > { %2891 = vmatpush.bf16.msrb.mxu2 %v16334_v52  ;;  %v16360_v52 = vld [vmem:[%s19790_s1 + $0x24] sm:$0xf] }
 0x1be   : > { %2972 = vmatpush.bf16.msrb.mxu3 %v16342_v55  ;;  %v3151_v55 = vsel %vm437_vm0, %v12526_v51, 0  ;;  %v16380_v51 = vld [vmem:[%s19790_s1 + $0xc4] sm:$0xf] }
 0x1bf   : > { %2812 = vmatpush.bf16.msra.mxu1 %v16317_v47  ;;  %v16362_v47 = vld [vmem:[%s19790_s1 + $0x2c] sm:$0x30] }
 0x1c0   : > { %v1624_v35 = vpop.f32.mrf.mxu2  ;;  %v1637_v37 = vpop.f32.mrf.mxu3 }
 0x1c1   : > { %v12521_v35 = vld [vmem:[%s19790_s1 + $0x68] sm:$0xf] }
 0x1c2   : > { %v1844_v48 = vpop.f32.mrf.mxu0  ;;  %v1857_v12 = vpop.f32.mrf.mxu1  ;;  %2973 = vmatpush.bf16.msrb.mxu3 %v16341_v10  ;;  %v12533_v10 = vld [vmem:[%s19790_s1] sm:$0xf] }
 0x1c3   : > { %v18050_v29 = vadd.f32 %v1844_v48, %v1597_v56  ;;  %v18052_v11 = vadd.f32 %v1857_v12, %v1610_v57  ;;  %2813 = vmatpush.bf16.msra.mxu1 %v16316_v54  ;;  %v16325_v56 = vld [vmem:[#allocation6 + $0x48] sm:$0xff]  ;;  %v12518_v12 = vor.u32 %v16368_v3, %v12515_v4  ;;  %v12551_v54 = vld [vmem:[%s19790_s1 + $0x30] sm:$0x30]  ;;  %v16358_v3 = vld [vmem:[%s19790_s1 + $0xc] sm:$0xf0] }
 0x1c4   : > { %v16333_v57 = vld [vmem:[#allocation6 + $0x88] sm:$0xff]  ;;  %2751 = vmatpush.bf16.msra.mxu0 %v16325_v56 }
 0x1c5   : > { %2892 = vmatpush.bf16.msrb.mxu2 %v16333_v57  ;;  %v12554_v57 = vor.u32 %v16360_v52, %v12551_v54  ;;  %v16373_v54 = vld [vmem:[%s19790_s1 + $0x8c] sm:$0xf] }
 0x1c8   : > { %2752 = vmatpush.bf16.msra.mxu0 %v16324_v59 }
 0x1ca   : > { %v1846_v25 = vpop.f32.mrf.mxu0  ;;  %v1859_v0 = vpop.f32.mrf.mxu1 }
 0x1cb   : > { %v1870_v62 = vpop.f32.mrf.mxu2  ;;  %v1883_v63 = vpop.f32.mrf.mxu3  ;;  %v12499_v25 = vld [vmem:[%s19790_s1 + $0x50] sm:$0xf0] }
 0x1cc   : > { %v18054_v5 = vadd.f32 %v1870_v62, %v1623_v1  ;;  %v18056_v6 = vadd.f32 %v1883_v63, %v1636_v61  ;;  %v16332_v1 = vld [vmem:[#allocation6 + $0x80] sm:$0xff]  ;;  %v16371_v62 = vld [vmem:[%s19790_s1 + $0x74] sm:$0x30]  ;;  %v16364_v63 = vld [vmem:[%s19790_s1 + $0x44] sm:$0xf] }
 0x1cd   : > { %v16340_v61 = vld [vmem:[#allocation6 + $0xc0] sm:$0xff]  ;;  %2893 = vmatpush.bf16.msrb.mxu2 %v16332_v1  ;;  %v12522_v0 = vor.u32 %v16371_v62, %v12521_v35  ;;  %v12502_v17 = vor.u32 %v16364_v63, %v12499_v25  ;;  %v3252_v35 = vsel %vm437_vm0, %v12554_v57, 0  ;;  %v16365_v62 = vld [vmem:[%s19790_s1 + $0x4c] sm:$0xf]  ;;  %v12507_v63 = vld [vmem:[%s19790_s1 + $0x58] sm:$0xf0] }
 0x1ce   : > { %2974 = vmatpush.bf16.msrb.mxu3 %v16340_v61  ;;  %v12651_v57 = vld [vmem:[%s19790_s1 + $0xf8] sm:$0x30] }
 0x1cf   : > { %v3148_v14 = vsel %vm437_vm0, %v12522_v0, 0  ;;  %v12510_v0 = vor.u32 %v16365_v62, %v12507_v63 }
 0x1d2   : > { %3187 = vmatpush.bf16.msra.mxu3 %v3148_v14  ;;  %v16376_v14 = vld [vmem:[%s19790_s1 + $0xa4] sm:$0xf] }
 0x1d3   : > { %v1872_v7 = vpop.f32.mrf.mxu2  ;;  %v1885_v38 = vpop.f32.mrf.mxu3 }
 0x1d4   : > { %v12513_v7 = vld [vmem:[%s19790_s1 + $0x60] sm:$0xf] }
 0x1e2   : > { %v18058_v43 = vpop.f32.mrf.mxu0  ;;  %v18060_v8 = vpop.f32.mrf.mxu1 }
 0x1e3   : > { %v2139_v37 = vadd.f32 %v18058_v43, %v18050_v29  ;;  %v2140_v48 = vadd.f32 %v18060_v8, %v18052_v11  ;;  %v12505_v29 = vld [vmem:[%s19790_s1 + $0x48] sm:$0xf]  ;;  %v16367_v11 = vld [vmem:[%s19790_s1 + $0x54] sm:$0xf0]  ;;  %v3145_v8 = vsel %vm437_vm0, %v12518_v12, 0  ;;  %v12534_v12 = vor.u32 %v16358_v3, %v12533_v10 }
 0x1e4   : > { %3173 = vmatpush.bf16.msra.mxu2 %v3145_v8  ;;  %v12506_v36 = vor.u32 %v16367_v11, %v12505_v29  ;;  %v12486_v29 = vld [vmem:[%s17587_s25 + $0x31] ss:$2 sm:$0xf]  ;;  %v12485_v11 = vld [vmem:[%s17587_s25 + $0x21] ss:$2 sm:$0xff] }
 0x1e5   : > { %v12595_v8 = vld [vmem:[%s19790_s1 + $0xa0] sm:$0xf] }
 0x1e6   : > { %3188 = vmatpush.bf16.msra.mxu3 %v12506_v36  ;;  %v12579_v36 = vld [vmem:[%s19790_s1 + $0x80] sm:$0xf] }
 0x1e8   : > { %3174 = vmatpush.bf16.msra.mxu2 %v12502_v17  ;;  %v12597_v17 = vld [vmem:[%s19790_s1 + $0xb0] sm:$0x30] }
 0x1ea   : > { %v2098_v50 = vpop.f32.mrf.mxu0  ;;  %v2111_v53 = vpop.f32.mrf.mxu1 }
 0x1eb   : > { %v18062_v15 = vpop.f32.mrf.mxu2  ;;  %v18064_v20 = vpop.f32.mrf.mxu3  ;;  %v16370_v50 = vld [vmem:[%s19790_s1 + $0x6c] sm:$0x30] }
 0x1ec   : > { %v12514_v60 = vor.u32 %v16370_v50, %v12513_v7  ;;  %v2141_v9 = vadd.f32 %v18062_v15, %v18054_v5  ;;  %v2142_v42 = vadd.f32 %v18064_v20, %v18056_v6  ;;  %v17261_v5 = vld [vmem:[%s19793_s4] ss:$0 sm:$0xff]  ;;  %v16366_v20 = vld [vmem:[%s19790_s1 + $0x4c] sm:$0xf0]  ;;  %v16361_v7 = vld [vmem:[%s19790_s1 + $0x2c] sm:$0xf] }
 0x1ed   : > { %v12497_v6 = vld [vmem:[%s19790_s1 + $0x40] sm:$0xf]  ;;  %v16378_v50 = vld [vmem:[%s19790_s1 + $0xac] sm:$0x30] }
 0x1ee   : > { %v3142_v19 = vsel %vm437_vm0, %v12514_v60, 0  ;;  %v12498_v16 = vor.u32 %v16366_v20, %v12497_v6  ;;  %v12596_v60 = vor.u32 %v16378_v50, %v12595_v8  ;;  %v12483_v20 = vld [vmem:[%s17587_s25 + $0x20] ss:$2 sm:$0xff]  ;;  %v12635_v8 = vld [vmem:[%s19790_s1 + $0xd8] sm:$0xf0] }
 0x1ef   : > { %3159 = vmatpush.bf16.msrb.mxu1 %v3142_v19  ;;  %v16374_v19 = vld [vmem:[%s19790_s1 + $0x8c] sm:$0xf0]  ;;  %v16355_v50 = vld [vmem:[%s19796_s7 + $0x38] sm:$0xff] }
 0x1f0   : > { %3050 = vmatpush.bf16.msrb.mxu0 %v16355_v50  ;;  %v2981_v50 = vld [vmem:[%s19795_s6] sm:$0x1] }
 0x1f3   : > { %v2124_v2 = vpop.f32.mrf.mxu2  ;;  %v2137_v18 = vpop.f32.mrf.mxu3  ;;  %3160 = vmatpush.bf16.msrb.mxu1 %v12498_v16  ;;  %v16384_v16 = vld [vmem:[%s19790_s1 + $0xe4] sm:$0xf] }
 0x202   : > { %v18066_v24 = vpop.f32.mrf.mxu0  ;;  %v18068_v27 = vpop.f32.mrf.mxu1 }
 0x203   : > { %v2391_v38 = vadd.f32 %v18066_v24, %v2139_v37  ;;  %v2392_v43 = vadd.f32 %v18068_v27, %v2140_v48  ;;  %v16356_v37 = vld [vmem:[%s19790_s1 + $0x4] sm:$0xf]  ;;  %v12535_v48 = vld [vmem:[%s19790_s1 + $0x10] sm:$0xf0] }
 0x204   : > { %v12538_v25 = vor.u32 %v16356_v37, %v12535_v48  ;;  %v12689_v37 = vld [vmem:[%s19790_s1 + $0x130] sm:$0x30] }
 0x20a   : > { %v2350_v44 = vpop.f32.mrf.mxu0  ;;  %v2363_v45 = vpop.f32.mrf.mxu1 }
 0x20b   : > { %v18070_v31 = vpop.f32.mrf.mxu2  ;;  %v18072_v33 = vpop.f32.mrf.mxu3  ;;  %v12549_v45 = vld [vmem:[%s19790_s1 + $0x20] sm:$0xf] }
 0x20c   : > { %v2393_v46 = vadd.f32 %v18070_v31, %v2141_v9  ;;  %v2394_v23 = vadd.f32 %v18072_v33, %v2142_v42  ;;  %v16372_v9 = vld [vmem:[%s19790_s1 + $0x84] sm:$0xf]  ;;  %v12581_v42 = vld [vmem:[%s19790_s1 + $0x90] sm:$0xf0] }
 0x213   : > { %v2376_v32 = vpop.f32.mrf.mxu2  ;;  %v2389_v49 = vpop.f32.mrf.mxu3 }
 0x214   : > { %v12550_v49 = vor.u32 %v16362_v47, %v12549_v45  ;;  %v16382_v45 = vld [vmem:[%s19790_s1 + $0xcc] sm:$0xf0] }
 0x216   : > { %v3249_v61 = vsel %vm437_vm0, %v12550_v49, 0 }
 0x222   : > { %v2600_v53 = vpop.f32.mrf.mxu0  ;;  %v2613_v30 = vpop.f32.mrf.mxu1 }
 0x223   : > { %v2643_v2 = vadd.f32 %v2600_v53, %v2391_v38  ;;  %v2644_v18 = vadd.f32 %v2613_v30, %v2392_v43  ;;  %v12559_v38 = vld [vmem:[%s19790_s1 + $0x38] sm:$0x30]  ;;  %v3093_v53 = vpack.c.bf16 %v12486_v29, %v12485_v11  ;;  %v16388_v11 = vld [vmem:[%s19790_s1 + $0x104] sm:$0xf] }
 0x224   : > { %v12562_v43 = vor.u32 %v16361_v7, %v12559_v38  ;;  %v12673_v7 = vld [vmem:[%s19790_s1 + $0x110] sm:$0xf0] }
 0x225   : > { %v2647_v22 = vmax.f32 %v2643_v2, %v2644_v18  ;;  %v12600_v2 = vor.u32 %v16376_v14, %v12597_v17  ;;  %v3369_v18 = vsel %vm437_vm0, %v12596_v60, 0  ;;  %v16354_v14 = vld [vmem:[%s19796_s7 + $0x30] sm:$0xff]  ;;  %v12733_v17 = vld [vmem:[%s19790_s1 + $0x160] sm:$0xf] }
 0x226   : > { %v3258_v30 = vsel %vm437_vm0, %v12562_v43, 0  ;;  %v16381_v43 = vld [vmem:[%s19790_s1 + $0xcc] sm:$0xf]  ;;  %v16402_v60 = vld [vmem:[%s19790_s1 + $0x16c] sm:$0x30]  ;;  %3051 = vmatpush.bf16.msrb.mxu0 %v16354_v14 }
 0x229   : > { %v2626_v13 = vpop.f32.mrf.mxu2  ;;  %v2639_v24 = vpop.f32.mrf.mxu3 }
 0x22a   : > { %v2645_v27 = vadd.f32 %v2626_v13, %v2393_v46  ;;  %v2646_v40 = vadd.f32 %v2639_v24, %v2394_v23  ;;  %v2602_v39 = vpop.f32.mrf.mxu0  ;;  %v2615_v58 = vpop.f32.mrf.mxu1  ;;  %v12580_v46 = vor.u32 %v16374_v19, %v12579_v36  ;;  %v16357_v23 = vld [vmem:[%s19790_s1 + $0xc] sm:$0xf]  ;;  %v12543_v13 = vld [vmem:[%s19790_s1 + $0x18] sm:$0xf0]  ;;  %v12584_v24 = vor.u32 %v16372_v9, %v12581_v42  ;;  %v16400_v36 = vld [vmem:[%s19790_s1 + $0x164] sm:$0xf] }
 0x22b   : > { %v12605_v39 = vld [vmem:[%s19790_s1 + $0xb8] sm:$0x30]  ;;  %v12735_v19 = vld [vmem:[%s19790_s1 + $0x170] sm:$0x30] }
 0x22c   : > { %v2648_v26 = vmax.f32 %v2645_v27, %v2646_v40  ;;  %v12546_v27 = vor.u32 %v16357_v23, %v12543_v13  ;;  %v16377_v40 = vld [vmem:[%s19790_s1 + $0xac] sm:$0xf]  ;;  %v12738_v42 = vor.u32 %v16400_v36, %v12735_v19  ;;  %v12717_v23 = vld [vmem:[%s19790_s1 + $0x140] sm:$0xf]  ;;  %v16398_v13 = vld [vmem:[%s19790_s1 + $0x14c] sm:$0xf0] }
 0x22d   : > { %v12608_v58 = vor.u32 %v16377_v40, %v12605_v39  ;;  %v12719_v40 = vld [vmem:[%s19790_s1 + $0x150] sm:$0xf0]  ;;  %v12718_v39 = vor.u32 %v16398_v13, %v12717_v23 }
 0x22e   : > { %v2649_v15 = vmax.f32 %v2647_v22, %v2648_v26  ;;  %v3372_v22 = vsel %vm437_vm0, %v12600_v2, 0  ;;  %v12641_v26 = vld [vmem:[%s19790_s1 + $0xe0] sm:$0xf]  ;;  %v12614_v2 = vld [vmem:[%s17587_s25 + $0x33] ss:$2 sm:$0xf] }
 0x22f   : > { %v3378_v6 = vsel %vm437_vm0, %v12608_v58, 0 }
 0x230   : > { %v2654_v28 = vadd.f32 %v17261_v5, %v2649_v15  ;;  %v16386_v5 = vld [vmem:[%s19790_s1 + $0xec] sm:$0x30] }
 0x231   : > { %v2628_v31 = vpop.f32.mrf.mxu2  ;;  %v2641_v33 = vpop.f32.mrf.mxu3  ;;  %v12484_v15 = vld [vmem:[%s17587_s25 + $0x30] ss:$2 sm:$0xf] }
 0x232   : > { %v2655_v44 = vmax.f32 %v2654_v28, 0.0  ;;  %v12643_v28 = vld [vmem:[%s19790_s1 + $0xf0] sm:$0x30]  ;;  %v12642_v31 = vor.u32 %v16386_v5, %v12641_v26  ;;  %v18233_v33 = vpack.c.bf16 %v12484_v15, %v12483_v20  ;;  %v12659_v26 = vld [vmem:[%s17587_s25 + $0x24] ss:$2 sm:$0xff] }
 0x233   : > { %v12646_v21 = vor.u32 %v16384_v16, %v12643_v28  ;;  %v12660_v5 = vld [vmem:[%s17587_s25 + $0x34] ss:$2 sm:$0xf]  ;;  %v12697_v20 = vld [vmem:[%s19790_s1 + $0x138] sm:$0x30]  ;;  %v16353_v28 = vld [vmem:[%s19796_s7 + $0x28] sm:$0xff] }
 0x234   : > { %v2656_v41 = vpack.c.bf16 %v2655_v44, %v2655_v44  ;;  %v3497_v34 = vsel %vm437_vm0, %v12642_v31, 0  ;;  %v12625_v44 = vld [vmem:[%s19790_s1 + $0xc0] sm:$0xf]  ;;  %v18354_v15 = vpack.c.bf16 %v12660_v5, %v12659_v26  ;;  %3052 = vmatpush.bf16.msrb.mxu0 %v16353_v28  ;;  %v12633_v5 = vld [vmem:[%s19790_s1 + $0xc8] sm:$0xf] }
 0x235   : > { %v3500_v47 = vsel %vm437_vm0, %v12646_v21, 0  ;;  %v12626_v52 = vor.u32 %v16382_v45, %v12625_v44  ;;  %v16389_v21 = vld [vmem:[%s19790_s1 + $0x10c] sm:$0xf]  ;;  %v16352_v44 = vld [vmem:[%s19796_s7 + $0x20] sm:$0xff] }
 0x236   : > { %v2691_v32 = vunpack.c.l.b16 %v2656_v41  ;;  %2814 = vmatmul.bf16.vlgmr.msra.gmra.mxu1 %v2656_v41  ;;  %v12627_v41 = vld [vmem:[%s19790_s1 + $0xd0] sm:$0xf0] }
 0x237   : > { %3201 = vmatpush.bf16.msra.mxu1 %v3151_v55  ;;  %v12589_v55 = vld [vmem:[%s19790_s1 + $0x98] sm:$0xf0] }
 0x238   : > { %v2692_v56 = vpack.c.b16 %v2691_v32, %v2691_v32  ;;  %v12630_v32 = vor.u32 %v16380_v51, %v12627_v41  ;;  %v12592_v49 = vor.u32 %v16373_v54, %v12589_v55  ;;  %v12706_v51 = vld [vmem:[%s17587_s25 + $0x35] ss:$2 sm:$0xf]  ;;  %3053 = vmatpush.bf16.msrb.mxu0 %v16352_v44  ;;  %v16401_v55 = vld [vmem:[%s19790_s1 + $0x16c] sm:$0xf] }
 0x239   : > { %v16350_v54 = vld [vmem:[%s19796_s7 + $0x10] sm:$0xff] }
 0x23a   : > { %v2694_v59 = vshrl.u32 %v2692_v56, 16  ;;  %v2836_v1 = vrot.slane %v2692_v56, 1  ;;  %v16385_v56 = vld [vmem:[%s19790_s1 + $0xec] sm:$0xf] }
 0x23b   : > { %3202 = vmatpush.bf16.msra.mxu1 %v12510_v0  ;;  %v12654_v10 = vor.u32 %v16385_v56, %v12651_v57  ;;  %v16390_v0 = vld [vmem:[%s19790_s1 + $0x10c] sm:$0xf0]  ;;  %v16349_v56 = vld [vmem:[%s19796_s7 + $0x8] sm:$0xff] }
 0x23c   : > { %2753 = vmatmul.bf16.vlgmr.msra.gmra.mxu0 %v2694_v59  ;;  %2894 = vmatmul.bf16.vlgmr.msrb.gmra.mxu2 %v2836_v1  ;;  %v2917_v4 = vrot.slane %v2694_v59, 1  ;;  %v12687_v59 = vld [vmem:[%s19790_s1 + $0x120] sm:$0xf]  ;;  %v16394_v1 = vld [vmem:[%s19790_s1 + $0x12c] sm:$0x30] }
 0x23d   : > { %3266 = vmatpush.bf16.msrb.mxu2 %v3249_v61  ;;  %v12568_v61 = vld [vmem:[%s17587_s25 + $0x32] ss:$2 sm:$0xf]  ;;  %v3506_v3 = vsel %vm437_vm0, %v12654_v10, 0  ;;  %v12688_v48 = vor.u32 %v16394_v1, %v12687_v59  ;;  %v16397_v10 = vld [vmem:[%s19790_s1 + $0x14c] sm:$0xf] }
 0x23e   : > { %2975 = vmatmul.bf16.vlgmr.msrb.gmra.mxu3 %v2917_v4  ;;  %v12567_v4 = vld [vmem:[%s17587_s25 + $0x22] ss:$2 sm:$0xff]  ;;  %v12727_v59 = vld [vmem:[%s19790_s1 + $0x158] sm:$0xf0] }
 0x23f   : > { %3280 = vmatpush.bf16.msrb.mxu3 %v3252_v35  ;;  %v16392_v35 = vld [vmem:[%s19790_s1 + $0x124] sm:$0xf]  ;;  %v3625_v63 = vsel %vm437_vm0, %v12688_v48, 0  ;;  %v16359_v48 = vld [vmem:[%s19790_s1 + $0x14] sm:$0xf0] }
 0x240   : > { %v12692_v62 = vor.u32 %v16392_v35, %v12689_v37  ;;  %v16348_v1 = vld [vmem:[%s19796_s7] sm:$0xff]  ;;  %v12541_v37 = vld [vmem:[%s19790_s1 + $0x8] sm:$0xf] }
 0x241   : > { %3267 = vmatpush.bf16.msrb.mxu2 %v12534_v12  ;;  %v18282_v12 = vpack.c.bf16 %v12568_v61, %v12567_v4  ;;  %v12730_v61 = vor.u32 %v16397_v10, %v12727_v59  ;;  %v16363_v4 = vld [vmem:[%s19790_s1 + $0x34] sm:$0x30] }
 0x242   : > { %v3628_v29 = vsel %vm437_vm0, %v12692_v62, 0 }
 0x243   : > { %3281 = vmatpush.bf16.msrb.mxu3 %v12538_v25  ;;  %v12671_v25 = vld [vmem:[%s19790_s1 + $0x100] sm:$0xf] }
 0x244   : > { %v12672_v38 = vor.u32 %v16390_v0, %v12671_v25 }
 0x246   : > { %12527 = vmatmul.msk.bf16.vlgmr.msrb.gmra.mxu1 %vm433_vm1, %v3093_v53 }
 0x247   : > { %3308 = vmatpush.bf16.msrb.mxu1 %v3258_v30  ;;  %v12638_v30 = vor.u32 %v16381_v43, %v12635_v8 }
 0x24b   : > { %3309 = vmatpush.bf16.msrb.mxu1 %v12546_v27  ;;  %v16396_v27 = vld [vmem:[%s19790_s1 + $0x144] sm:$0xf] }
 0x24c   : > { %12528 = vmatmul.msk.bf16.vlgmr.msra.gmra.mxu2 %vm433_vm1, %v3093_v53  ;;  %v12722_v58 = vor.u32 %v16396_v27, %v12719_v40  ;;  %v12649_v27 = vld [vmem:[%s19790_s1 + $0xe8] sm:$0xf]  ;;  %v16387_v40 = vld [vmem:[%s19790_s1 + $0xf4] sm:$0x30] }
 0x24d   : > { %3386 = vmatpush.bf16.msra.mxu2 %v3369_v18  ;;  %v12613_v18 = vld [vmem:[%s17587_s25 + $0x23] ss:$2 sm:$0xff] }
 0x24e   : > { %12529 = vmatmul.msk.bf16.vlgmr.msra.gmra.mxu3 %vm433_vm1, %v3093_v53  ;;  %v18330_v9 = vpack.c.bf16 %v12614_v2, %v12613_v18 }
 0x24f   : > { %3400 = vmatpush.bf16.msra.mxu3 %v3372_v22  ;;  %v12734_v22 = vor.u32 %v16402_v60, %v12733_v17 }
 0x251   : > { %3387 = vmatpush.bf16.msra.mxu2 %v12580_v46  ;;  %v3753_v46 = vsel %vm437_vm0, %v12734_v22, 0  ;;  %v12587_v22 = vld [vmem:[%s19790_s1 + $0x88] sm:$0xf] }
 0x253   : > { %3401 = vmatpush.bf16.msra.mxu3 %v12584_v24  ;;  %v3756_v24 = vsel %vm437_vm0, %v12738_v42, 0  ;;  %v16375_v42 = vld [vmem:[%s19790_s1 + $0x94] sm:$0xf0] }
 0x254   : > { %v12588_v23 = vor.u32 %v16375_v42, %v12587_v22 }
 0x256   : > { %12530 = vmatmul.msk.bf16.vlgmr.msra.gmra.mxu1 %vm433_vm1, %v3093_v53  ;;  %v12676_v53 = vor.u32 %v16388_v11, %v12673_v7 }
 0x257   : > { %3428 = vmatpush.bf16.msra.mxu1 %v3378_v6  ;;  %v16393_v6 = vld [vmem:[%s19790_s1 + $0x12c] sm:$0xf] }
 0x258   : > { %v12700_v16 = vor.u32 %v16393_v6, %v12697_v20  ;;  %v16383_v6 = vld [vmem:[%s19790_s1 + $0xd4] sm:$0xf0] }
 0x25a   : > { %v3634_v31 = vsel %vm437_vm0, %v12700_v16, 0  ;;  %v12634_v16 = vor.u32 %v16383_v6, %v12633_v5  ;;  %v12867_v5 = vld [vmem:[#allocation3 + $0x1f0] sm:$0xf0]  ;;  %v12873_v6 = vld [vmem:[#allocation3 + $0x1e8] sm:$0xf] }
 0x25b   : > { %3429 = vmatpush.bf16.msra.mxu1 %v12592_v49 }
 0x25c   : > { %12563 = vmatmul.msk.bf16.vlgmr.msrb.gmra.mxu2 %vm433_vm1, %v18233_v33 }
 0x25d   : > { %3514 = vmatpush.bf16.msrb.mxu2 %v3497_v34  ;;  %v12681_v34 = vld [vmem:[%s19790_s1 + $0x118] sm:$0xf0] }
 0x25e   : > { %12564 = vmatmul.msk.bf16.vlgmr.msrb.gmra.mxu3 %vm433_vm1, %v18233_v33  ;;  %v12684_v45 = vor.u32 %v16389_v21, %v12681_v34  ;;  %v12695_v21 = vld [vmem:[%s19790_s1 + $0x128] sm:$0xf]  ;;  %v16395_v34 = vld [vmem:[%s19790_s1 + $0x134] sm:$0x30] }
 0x25f   : > { %3528 = vmatpush.bf16.msrb.mxu3 %v3500_v47  ;;  %v12705_v47 = vld [vmem:[%s17587_s25 + $0x25] ss:$2 sm:$0xff]  ;;  %v12696_v44 = vor.u32 %v16395_v34, %v12695_v21  ;;  %v16465_v21 = vld [vmem:[#allocation3 + $0x1ec] sm:$0xf] }
 0x260   : > { %v18381_v41 = vpack.c.bf16 %v12706_v51, %v12705_v47  ;;  %v16391_v51 = vld [vmem:[%s19790_s1 + $0x114] sm:$0xf0]  ;;  %v12875_v34 = vld [vmem:[#allocation3 + $0x1f8] sm:$0xf0] }
 0x261   : > { %3515 = vmatpush.bf16.msrb.mxu2 %v12626_v52  ;;  %v16351_v52 = vld [vmem:[%s19796_s7 + $0x18] sm:$0xff]  ;;  %v3631_v47 = vsel %vm437_vm0, %v12696_v44, 0  ;;  %v12849_v44 = vld [vmem:[#allocation3 + $0x1c0] sm:$0xf] }
 0x262   : > { %3054 = vmatpush.bf16.msrb.mxu0 %v16351_v52 }
 0x263   : > { %3529 = vmatpush.bf16.msrb.mxu3 %v12630_v32  ;;  %v12743_v32 = vld [vmem:[%s19790_s1 + $0x178] sm:$0x30] }
 0x264   : > { %v12746_v49 = vor.u32 %v16401_v55, %v12743_v32 }
 0x266   : > { %12566 = vmatmul.msk.bf16.vlgmr.msrb.gmra.mxu1 %vm433_vm1, %v18233_v33  ;;  %3055 = vmatpush.bf16.msrb.mxu0 %v16350_v54  ;;  %v3762_v57 = vsel %vm437_vm0, %v12746_v49, 0  ;;  %v12741_v49 = vld [vmem:[%s19790_s1 + $0x168] sm:$0xf] }
 0x267   : > { %3556 = vmatpush.bf16.msrb.mxu1 %v3506_v3  ;;  %v12557_v3 = vld [vmem:[%s19790_s1 + $0x28] sm:$0xf] }
 0x268   : > { %v12558_v35 = vor.u32 %v16363_v4, %v12557_v3 }
 0x26a   : > { %3056 = vmatpush.bf16.msrb.mxu0 %v16349_v56  ;;  %v3255_v62 = vsel %vm437_vm0, %v12558_v35, 0  ;;  %v16403_v56 = vld [vmem:[%s19790_s1 + $0x174] sm:$0x30] }
 0x26b   : > { %3557 = vmatpush.bf16.msrb.mxu1 %v12638_v30  ;;  %v16379_v30 = vld [vmem:[%s19790_s1 + $0xb4] sm:$0x30] }
 0x26c   : > { %12609 = vmatmul.msk.bf16.vlgmr.msra.gmra.mxu2 %vm433_vm1, %v18282_v12 }
 0x26d   : > { %3642 = vmatpush.bf16.msra.mxu2 %v3625_v63  ;;  %v12542_v63 = vor.u32 %v16359_v48, %v12541_v37 }
 0x26e   : > { %12610 = vmatmul.msk.bf16.vlgmr.msra.gmra.mxu3 %vm433_vm1, %v18282_v12  ;;  %3057 = vmatpush.bf16.msrb.mxu0 %v16348_v1  ;;  %v16399_v1 = vld [vmem:[%s19790_s1 + $0x154] sm:$0xf0] }
 0x26f   : > { %3656 = vmatpush.bf16.msra.mxu3 %v3628_v29 }
 0x271   : > { %3643 = vmatpush.bf16.msra.mxu2 %v12672_v38 }
 0x272   : > { %3294 = vmatpush.bf16.msra.mxu0 %v3255_v62 }
 0x273   : > { %3657 = vmatpush.bf16.msra.mxu3 %v12676_v53  ;;  %v12603_v53 = vld [vmem:[%s19790_s1 + $0xa8] sm:$0xf] }
 0x274   : > { %v12604_v60 = vor.u32 %v16379_v30, %v12603_v53 }
 0x276   : > { %12612 = vmatmul.msk.bf16.vlgmr.msra.gmra.mxu1 %vm433_vm1, %v18282_v12  ;;  %3295 = vmatpush.bf16.msra.mxu0 %v12542_v63  ;;  %v3375_v19 = vsel %vm437_vm0, %v12604_v60, 0 }
 0x277   : > { %3684 = vmatpush.bf16.msra.mxu1 %v3634_v31 }
 0x27b   : > { %3685 = vmatpush.bf16.msra.mxu1 %v12684_v45 }
 0x27c   : > { %12655 = vmatmul.msk.bf16.vlgmr.msrb.gmra.mxu2 %vm433_vm1, %v18330_v9 }
 0x27d   : > { %3770 = vmatpush.bf16.msrb.mxu2 %v3753_v46 }
 0x27e   : > { %12656 = vmatmul.msk.bf16.vlgmr.msrb.gmra.mxu3 %vm433_vm1, %v18330_v9 }
 0x27f   : > { %3784 = vmatpush.bf16.msrb.mxu3 %v3756_v24 }
 0x281   : > { %3771 = vmatpush.bf16.msrb.mxu2 %v12718_v39  ;;  %v12650_v39 = vor.u32 %v16387_v40, %v12649_v27  ;;  %v12865_v27 = vld [vmem:[#allocation3 + $0x1e0] sm:$0xf]  ;;  %v16466_v40 = vld [vmem:[#allocation3 + $0x1ec] sm:$0xf0] }
 0x283   : > { %3785 = vmatpush.bf16.msrb.mxu3 %v12722_v58  ;;  %v3503_v26 = vsel %vm437_vm0, %v12650_v39, 0  ;;  %v16464_v39 = vld [vmem:[#allocation3 + $0x1e4] sm:$0xf] }
 0x286   : > { %12658 = vmatmul.msk.bf16.vlgmr.msrb.gmra.mxu1 %vm433_vm1, %v18330_v9 }
 0x287   : > { %3812 = vmatpush.bf16.msrb.mxu1 %v3762_v57  ;;  %v12742_v57 = vor.u32 %v16403_v56, %v12741_v49  ;;  %v12857_v49 = vld [vmem:[#allocation3 + $0x1c8] sm:$0xf]  ;;  %v16463_v56 = vld [vmem:[#allocation3 + $0x1d4] sm:$0xf0] }
 0x289   : > { %v3759_v59 = vsel %vm437_vm0, %v12742_v57, 0  ;;  %v16461_v57 = vld [vmem:[#allocation3 + $0x1cc] sm:$0xf] }
 0x28b   : > { %3813 = vmatpush.bf16.msrb.mxu1 %v12730_v61 }
 0x28c   : > { %12701 = vmatmul.msk.bf16.vlgmr.msra.gmra.mxu2 %vm433_vm1, %v18354_v15 }
 0x28e   : > { %12702 = vmatmul.msk.bf16.vlgmr.msra.gmra.mxu3 %vm433_vm1, %v18354_v15 }
 0x296   : > { %12704 = vmatmul.msk.bf16.vlgmr.msra.gmra.mxu1 %vm433_vm1, %v18354_v15 }
 0x29c   : > { %12747 = vmatmul.msk.bf16.vlgmr.msrb.gmra.mxu2 %vm433_vm1, %v18381_v41 }
 0x29e   : > { %12748 = vmatmul.msk.bf16.vlgmr.msrb.gmra.mxu3 %vm433_vm1, %v18381_v41 }
 0x2a6   : > { %12750 = vmatmul.msk.bf16.vlgmr.msrb.gmra.mxu1 %vm433_vm1, %v18381_v41 }
 0x2b3   : > { %v2815_v25 = vpop.f32.mrf.mxu1 }
 0x2b9   : > { %v2754_v0 = vpop.f32.mrf.mxu0 }
 0x2ba   : > { %v2816_v11 = vadd.f32 %v2815_v25, %v2754_v0 }
 0x2bb   : > { %v2817_v29 = vpop.f32.mrf.mxu1 }
 0x2bf   : > { %v2895_v7 = vpop.f32.mrf.mxu2 }
 0x2c0   : > { %v2899_v38 = vadd.f32 %v2895_v7, %v2816_v11 }
 0x2c1   : > { %v2756_v43 = vpop.f32.mrf.mxu0  ;;  %v2976_v8 = vpop.f32.mrf.mxu3 }
 0x2c2   : > { %v2980_v14 = vadd.f32 %v2976_v8, %v2899_v38 }
 0x2c3   : > { %v3162_v62 = vpop.f32.mrf.mxu1 }
 0x2c4   : > { %v2982_v17 = vadd.f32 %v2981_v50, %v2980_v14 }
 0x2c6   : > { %v2983_v2 = vmax.f32 %v2982_v17, 0.0 }
 0x2c7   : > { %v2897_v18 = vpop.f32.mrf.mxu2 }
 0x2c8   : > { %v2984_v36 = vpack.c.bf16 %v2983_v2, %v2983_v2 }
 0x2c9   : > { %v2978_v46 = vpop.f32.mrf.mxu3 }
 0x2ca   : > { %3058 = vmatmul.bf16.vlgmr.msrb.gmra.mxu0 %v2984_v36 }
 0x2cb   : > { %3414 = vmatpush.bf16.msrb.mxu0 %v3375_v19  ;;  %v18522_v2 = vpop.f32.mrf.mxu1 }
 0x2cf   : > { %v3176_v13 = vpop.f32.mrf.mxu2  ;;  %3415 = vmatpush.bf16.msrb.mxu0 %v12588_v23 }
 0x2d1   : > { %v18445_v24 = vpop.f32.mrf.mxu3 }
 0x2d3   : > { %v18524_v18 = vpop.f32.mrf.mxu1 }
 0x2d7   : > { %v18453_v58 = vpop.f32.mrf.mxu2 }
 0x2d9   : > { %v18462_v20 = vpop.f32.mrf.mxu3 }
 0x2da   : > { %12565 = vmatmul.msk.bf16.vlgmr.msra.gmra.mxu0 %vm433_vm1, %v18233_v33  ;;  %v12679_v33 = vld [vmem:[%s19790_s1 + $0x108] sm:$0xf] }
 0x2db   : > { %3542 = vmatpush.bf16.msra.mxu0 %v3503_v26  ;;  %v12680_v54 = vor.u32 %v16391_v51, %v12679_v33  ;;  %v18526_v36 = vpop.f32.mrf.mxu1  ;;  %v12866_v26 = vor.u32 %v16466_v40, %v12865_v27  ;;  %v16462_v33 = vld [vmem:[#allocation3 + $0x1cc] sm:$0xf0]  ;;  %v16460_v51 = vld [vmem:[#allocation3 + $0x1c4] sm:$0xf]  ;;  %v12825_v27 = vld [vmem:[#allocation3 + $0x188] sm:$0xf] }
 0x2dc   : > { %v16455_v40 = vld [vmem:[#allocation3 + $0x194] sm:$0xf0] }
 0x2dd   : > { %4072 = vmatpush.bf16.msra.mxu2 %v12866_v26  ;;  %v12826_v26 = vor.u32 %v16455_v40, %v12825_v27  ;;  %v16441_v27 = vld [vmem:[#allocation3 + $0x12c] sm:$0xf]  ;;  %v12779_v40 = vld [vmem:[#allocation3 + $0x138] sm:$0xf0] }
 0x2df   : > { %v3269_v28 = vpop.f32.mrf.mxu2  ;;  %3543 = vmatpush.bf16.msra.mxu0 %v12634_v16  ;;  %v16467_v16 = vld [vmem:[#allocation3 + $0x1f4] sm:$0xf0] }
 0x2e0   : > { %v3270_v25 = vadd.f32 %v3269_v28, %v3162_v62  ;;  %v12870_v28 = vor.u32 %v16464_v39, %v12867_v5  ;;  %v16458_v62 = vld [vmem:[#allocation3 + $0x1ac] sm:$0xf0]  ;;  %v16453_v39 = vld [vmem:[#allocation3 + $0x18c] sm:$0xf]  ;;  %v12827_v5 = vld [vmem:[#allocation3 + $0x198] sm:$0xf0] }
 0x2e1   : > { %v3283_v31 = vpop.f32.mrf.mxu3 }
 0x2e2   : > { %v3284_v29 = vadd.f32 %v3283_v31, %v3176_v13  ;;  %v12874_v31 = vor.u32 %v16467_v16, %v12873_v6  ;;  %4085 = vmatpush.bf16.msra.mxu3 %v12870_v28  ;;  %v12830_v6 = vor.u32 %v16453_v39, %v12827_v5  ;;  %v12801_v28 = vld [vmem:[#allocation3 + $0x160] sm:$0xf]  ;;  %v12782_v5 = vor.u32 %v16441_v27, %v12779_v40  ;;  %v12987_v27 = vld [vmem:[#allocation3 + $0xd8] sm:$0xf0] }
 0x2e3   : > { %v18528_v19 = vpop.f32.mrf.mxu1  ;;  %v12753_v39 = vld [vmem:[#allocation3 + $0x100] sm:$0xf] }
 0x2e7   : > { %v18472_v45 = vpop.f32.mrf.mxu2 }
 0x2e9   : > { %v18481_v52 = vpop.f32.mrf.mxu3 }
 0x2ea   : > { %12611 = vmatmul.msk.bf16.vlgmr.msrb.gmra.mxu0 %vm433_vm1, %v18282_v12  ;;  %v12725_v12 = vld [vmem:[%s19790_s1 + $0x148] sm:$0xf] }
 0x2eb   : > { %3670 = vmatpush.bf16.msrb.mxu0 %v3631_v47  ;;  %v12726_v3 = vor.u32 %v16399_v1, %v12725_v12  ;;  %v18537_v23 = vpop.f32.mrf.mxu1  ;;  %v12878_v47 = vor.u32 %v16465_v21, %v12875_v34  ;;  %v12859_v12 = vld [vmem:[#allocation3 + $0x1d8] sm:$0xf0]  ;;  %v16448_v21 = vld [vmem:[#allocation3 + $0x164] sm:$0xf] }
 0x2ec   : > { %v12862_v1 = vor.u32 %v16461_v57, %v12859_v12  ;;  %v16444_v12 = vld [vmem:[#allocation3 + $0x144] sm:$0xf] }
 0x2ed   : > { %4111 = vmatpush.bf16.msra.mxu1 %v12878_v47  ;;  %v12803_v47 = vld [vmem:[#allocation3 + $0x170] sm:$0xf0] }
 0x2ef   : > { %v3389_v55 = vpop.f32.mrf.mxu2  ;;  %3671 = vmatpush.bf16.msrb.mxu0 %v12680_v54  ;;  %v12851_v54 = vld [vmem:[#allocation3 + $0x1d0] sm:$0xf0] }
 0x2f0   : > { %v3436_v11 = vadd.f32 %v3389_v55, %v3270_v25  ;;  %v12850_v55 = vor.u32 %v16462_v33, %v12849_v44  ;;  %v12809_v33 = vld [vmem:[#allocation3 + $0x168] sm:$0xf] }
 0x2f1   : > { %v3403_v32 = vpop.f32.mrf.mxu3  ;;  %4112 = vmatpush.bf16.msra.mxu1 %v12862_v1  ;;  %v12787_v1 = vld [vmem:[#allocation3 + $0x150] sm:$0xf0] }
 0x2f2   : > { %v3437_v7 = vadd.f32 %v3403_v32, %v3284_v29  ;;  %v12854_v32 = vor.u32 %v16460_v51, %v12851_v54  ;;  %4073 = vmatpush.bf16.msra.mxu2 %v12850_v55  ;;  %v12841_v29 = vld [vmem:[#allocation3 + $0x1a8] sm:$0xf]  ;;  %v16451_v51 = vld [vmem:[#allocation3 + $0x174] sm:$0xf0]  ;;  %v12806_v54 = vor.u32 %v16448_v21, %v12803_v47 }
 0x2f3   : > { %v12810_v55 = vor.u32 %v16451_v51, %v12809_v33  ;;  %v12761_v47 = vld [vmem:[#allocation3 + $0x108] sm:$0xf]  ;;  %v16439_v33 = vld [vmem:[#allocation3 + $0x114] sm:$0xf0]  ;;  %v16437_v51 = vld [vmem:[#allocation3 + $0x10c] sm:$0xf] }
 0x2f4   : > { %4086 = vmatpush.bf16.msra.mxu3 %v12854_v32  ;;  %v16449_v32 = vld [vmem:[#allocation3 + $0x16c] sm:$0xf] }
 0x2f7   : > { %v18491_v10 = vpop.f32.mrf.mxu2 }
 0x2f9   : > { %v18500_v61 = vpop.f32.mrf.mxu3 }
 0x2fa   : > { %12657 = vmatmul.msk.bf16.vlgmr.msra.gmra.mxu0 %vm433_vm1, %v18330_v9 }
 0x2fb   : > { %3798 = vmatpush.bf16.msra.mxu0 %v3759_v59  ;;  %v12858_v59 = vor.u32 %v16463_v56, %v12857_v49  ;;  %v12811_v49 = vld [vmem:[#allocation3 + $0x178] sm:$0xf0]  ;;  %v12785_v56 = vld [vmem:[#allocation3 + $0x140] sm:$0xf] }
 0x2fc   : > { %v12814_v57 = vor.u32 %v16449_v32, %v12811_v49  ;;  %v12993_v32 = vld [vmem:[#allocation3 + $0xe0] sm:$0xf]  ;;  %v16434_v49 = vld [vmem:[#allocation3 + $0xec] sm:$0xf0] }
 0x2ff   : > { %v3517_v4 = vpop.f32.mrf.mxu2  ;;  %3799 = vmatpush.bf16.msra.mxu0 %v12726_v3  ;;  %v18539_v3 = vpop.f32.mrf.mxu1 }
 0x300   : > { %v3564_v38 = vadd.f32 %v3517_v4, %v3436_v11  ;;  %v16459_v11 = vld [vmem:[#allocation3 + $0x1b4] sm:$0xf0] }
 0x301   : > { %v3531_v35 = vpop.f32.mrf.mxu3 }
 0x302   : > { %v3565_v8 = vadd.f32 %v3531_v35, %v3437_v7  ;;  %v12833_v35 = vld [vmem:[#allocation3 + $0x1a0] sm:$0xf] }
 0x303   : > { %v12834_v25 = vor.u32 %v16458_v62, %v12833_v35  ;;  %v12790_v62 = vor.u32 %v16444_v12, %v12787_v1  ;;  %v12995_v12 = vld [vmem:[#allocation3 + $0xf0] sm:$0xf0]  ;;  %v13001_v1 = vld [vmem:[#allocation3 + $0xe8] sm:$0xf] }
 0x305   : > { %4074 = vmatpush.bf16.msra.mxu2 %v12834_v25  ;;  %v16447_v25 = vld [vmem:[#allocation3 + $0x154] sm:$0xf0] }
 0x307   : > { %v18504_v37 = vpop.f32.mrf.mxu2  ;;  %v18545_v34 = vpop.f32.mrf.mxu1 }
 0x309   : > { %v18506_v48 = vpop.f32.mrf.mxu3 }
 0x30a   : > { %12703 = vmatmul.msk.bf16.vlgmr.msrb.gmra.mxu0 %vm433_vm1, %v18354_v15 }
 0x30b   : > { %4098 = vmatpush.bf16.msrb.mxu0 %v12874_v31  ;;  %v16450_v31 = vld [vmem:[#allocation3 + $0x16c] sm:$0xf0] }
 0x30c   : > { %v12802_v44 = vor.u32 %v16450_v31, %v12801_v28  ;;  %v16436_v28 = vld [vmem:[#allocation3 + $0x104] sm:$0xf]  ;;  %v12755_v31 = vld [vmem:[#allocation3 + $0x110] sm:$0xf0] }
 0x30f   : > { %v3645_v63 = vpop.f32.mrf.mxu2  ;;  %4099 = vmatpush.bf16.msrb.mxu0 %v12858_v59  ;;  %v16446_v59 = vld [vmem:[#allocation3 + $0x14c] sm:$0xf0] }
 0x310   : > { %v3692_v50 = vadd.f32 %v3645_v63, %v3564_v38  ;;  %v16456_v63 = vld [vmem:[#allocation3 + $0x1a4] sm:$0xf]  ;;  %v12842_v38 = vor.u32 %v16459_v11, %v12841_v29  ;;  %v12786_v35 = vor.u32 %v16446_v59, %v12785_v56  ;;  %v12795_v11 = vld [vmem:[#allocation3 + $0x158] sm:$0xf0] }
 0x311   : > { %v3659_v0 = vpop.f32.mrf.mxu3  ;;  %v16432_v59 = vld [vmem:[#allocation3 + $0xe4] sm:$0xf] }
 0x312   : > { %v3693_v53 = vadd.f32 %v3659_v0, %v3565_v8  ;;  %v12835_v0 = vld [vmem:[#allocation3 + $0x1b0] sm:$0xf0]  ;;  %v16457_v8 = vld [vmem:[#allocation3 + $0x1ac] sm:$0xf] }
 0x313   : > { %v12838_v7 = vor.u32 %v16456_v63, %v12835_v0  ;;  %4100 = vmatpush.bf16.msrb.mxu0 %v12842_v38  ;;  %v12793_v63 = vld [vmem:[#allocation3 + $0x148] sm:$0xf]  ;;  %v16445_v0 = vld [vmem:[#allocation3 + $0x14c] sm:$0xf] }
 0x314   : > { %v12794_v29 = vor.u32 %v16447_v25, %v12793_v63  ;;  %v16435_v63 = vld [vmem:[#allocation3 + $0xf4] sm:$0xf0]  ;;  %v16433_v25 = vld [vmem:[#allocation3 + $0xec] sm:$0xf] }
 0x315   : > { %4087 = vmatpush.bf16.msra.mxu3 %v12838_v7  ;;  %v12798_v7 = vor.u32 %v16445_v0, %v12795_v11  ;;  %v13003_v0 = vld [vmem:[#allocation3 + $0xf8] sm:$0xf0] }
 0x316   : > { %v13006_v11 = vor.u32 %v16433_v25, %v13003_v0 }
 0x317   : > { %v18510_v9 = vpop.f32.mrf.mxu2  ;;  %4101 = vmatpush.bf16.msrb.mxu0 %v12826_v26  ;;  %v18549_v26 = vpop.f32.mrf.mxu1 }
 0x319   : > { %v18512_v43 = vpop.f32.mrf.mxu3 }
 0x31a   : > { %12749 = vmatmul.msk.bf16.vlgmr.msra.gmra.mxu0 %vm433_vm1, %v18381_v41  ;;  %v3001_v41 = vld [vmem:[%s19797_s8] sm:$0x1] }
 0x31b   : > { %4102 = vmatpush.bf16.msrb.mxu0 %v12810_v55  ;;  %v12763_v55 = vld [vmem:[#allocation3 + $0x118] sm:$0xf0] }
 0x31c   : > { %v12766_v56 = vor.u32 %v16437_v51, %v12763_v55  ;;  %v16425_v55 = vld [vmem:[#allocation3 + $0xac] sm:$0xf] }
 0x31f   : > { %v3773_v30 = vpop.f32.mrf.mxu2  ;;  %4103 = vmatpush.bf16.msrb.mxu0 %v12794_v29  ;;  %v13002_v29 = vor.u32 %v16435_v63, %v13001_v1  ;;  %v12947_v1 = vld [vmem:[#allocation3 + $0x90] sm:$0xf0]  ;;  %v16423_v63 = vld [vmem:[#allocation3 + $0x94] sm:$0xf0] }
 0x320   : > { %v18516_v15 = vadd.f32 %v3773_v30, %v3692_v50  ;;  %v12843_v50 = vld [vmem:[#allocation3 + $0x1b8] sm:$0xf0] }
 0x321   : > { %v3787_v14 = vpop.f32.mrf.mxu3  ;;  %v12846_v30 = vor.u32 %v16457_v8, %v12843_v50  ;;  %v12769_v8 = vld [vmem:[#allocation3 + $0x120] sm:$0xf]  ;;  %v16442_v50 = vld [vmem:[#allocation3 + $0x12c] sm:$0xf0] }
 0x322   : > { %v18518_v17 = vadd.f32 %v3787_v14, %v3693_v53  ;;  %v12817_v53 = vld [vmem:[#allocation3 + $0x180] sm:$0xf]  ;;  %v16454_v14 = vld [vmem:[#allocation3 + $0x18c] sm:$0xf0] }
 0x323   : > { %4113 = vmatpush.bf16.msra.mxu1 %v12846_v30  ;;  %v12770_v30 = vor.u32 %v16442_v50, %v12769_v8  ;;  %v16430_v8 = vld [vmem:[#allocation3 + $0xcc] sm:$0xf0]  ;;  %v16428_v50 = vld [vmem:[#allocation3 + $0xc4] sm:$0xf] }
 0x324   : > { %v3828_v60 = vmax.f32 %v18516_v15, %v18518_v17  ;;  %v13129_v15 = vld [vmem:[#allocation3 + $0x2e8] sm:$0xf]  ;;  %v16499_v17 = vld [vmem:[#allocation3 + $0x2f4] sm:$0xf0] }
 0x327   : > { %4114 = vmatpush.bf16.msra.mxu1 %v12830_v6  ;;  %v16438_v6 = vld [vmem:[#allocation3 + $0x10c] sm:$0xf0] }
 0x328   : > { %v12754_v21 = vor.u32 %v16438_v6, %v12753_v39  ;;  %v18553_v39 = vpop.f32.mrf.mxu1  ;;  %v16426_v6 = vld [vmem:[#allocation3 + $0xac] sm:$0xf0] }
 0x32b   : > { %4115 = vmatpush.bf16.msra.mxu1 %v12814_v57  ;;  %v12994_v57 = vor.u32 %v16434_v49, %v12993_v32  ;;  %v12971_v32 = vld [vmem:[#allocation3 + $0xb8] sm:$0xf0] }
 0x32c   : > { %v12974_v49 = vor.u32 %v16425_v55, %v12971_v32  ;;  %v16415_v55 = vld [vmem:[#allocation3 + $0x54] sm:$0xf0] }
 0x32f   : > { %4116 = vmatpush.bf16.msra.mxu1 %v12798_v7  ;;  %v12977_v7 = vld [vmem:[#allocation3 + $0xc0] sm:$0xf] }
 0x333   : > { %4117 = vmatpush.bf16.msra.mxu1 %v12782_v5  ;;  %v12961_v5 = vld [vmem:[#allocation3 + $0xa0] sm:$0xf] }
 0x337   : > { %4118 = vmatpush.bf16.msra.mxu1 %v12766_v56  ;;  %v12945_v56 = vld [vmem:[#allocation3 + $0x80] sm:$0xf] }
 0x33b   : > { %4323 = vmatpush.bf16.msrb.mxu1 %v13006_v11  ;;  %v12955_v11 = vld [vmem:[#allocation3 + $0x98] sm:$0xf0] }
 0x347   : > { %v3059_v22 = vpop.f32.mrf.mxu0 }
 0x348   : > { %v18533_v42 = vadd.f32 %v3059_v22, %v3001_v41  ;;  %v16452_v41 = vld [vmem:[#allocation3 + $0x184] sm:$0xf]  ;;  %v12819_v22 = vld [vmem:[#allocation3 + $0x190] sm:$0xf0] }
 0x34a   : > { %v3064_v46 = vsel %vm3063_vm2, %v18533_v42, -inf }
 0x34b   : > { %3065 = vmax.xlane.f32.xlu1 %v3064_v46  ;;  %v12818_v46 = vor.u32 %v16454_v14, %v12817_v53  ;;  %v16440_v53 = vld [vmem:[#allocation3 + $0x124] sm:$0xf]  ;;  %v12771_v14 = vld [vmem:[#allocation3 + $0x130] sm:$0xf0] }
 0x34d   : > { %4075 = vmatpush.bf16.msra.mxu2 %v12818_v46  ;;  %v12774_v46 = vor.u32 %v16440_v53, %v12771_v14  ;;  %v12978_v53 = vor.u32 %v16430_v8, %v12977_v7  ;;  %v12985_v14 = vld [vmem:[#allocation3 + $0xc8] sm:$0xf]  ;;  %v12929_v8 = vld [vmem:[#allocation3 + $0x60] sm:$0xf] }
 0x34f   : > { %v3061_v13 = vpop.f32.mrf.mxu0 }
 0x350   : > { %v12822_v13 = vor.u32 %v16452_v41, %v12819_v22  ;;  %v12777_v41 = vld [vmem:[#allocation3 + $0x128] sm:$0xf]  ;;  %v16443_v22 = vld [vmem:[#allocation3 + $0x134] sm:$0xf0] }
 0x351   : > { %4076 = vmatpush.bf16.msra.mxu2 %v12802_v44  ;;  %v12758_v44 = vor.u32 %v16436_v28, %v12755_v31  ;;  %v16424_v28 = vld [vmem:[#allocation3 + $0xa4] sm:$0xf]  ;;  %v12962_v31 = vor.u32 %v16426_v6, %v12961_v5  ;;  %v16417_v5 = vld [vmem:[#allocation3 + $0x6c] sm:$0xf]  ;;  %v12939_v6 = vld [vmem:[#allocation3 + $0x78] sm:$0xf0] }
 0x352   : > { %4088 = vmatpush.bf16.msra.mxu3 %v12822_v13  ;;  %v12778_v13 = vor.u32 %v16443_v22, %v12777_v41  ;;  %v16431_v41 = vld [vmem:[#allocation3 + $0xd4] sm:$0xf0] }
 0x354   : > { %4104 = vmatpush.bf16.msrb.mxu0 %v12778_v13  ;;  %v16429_v13 = vld [vmem:[#allocation3 + $0xcc] sm:$0xf] }
 0x355   : > { %4077 = vmatpush.bf16.msra.mxu2 %v12786_v35  ;;  %v12990_v40 = vor.u32 %v16429_v13, %v12987_v27 }
 0x356   : > { %4089 = vmatpush.bf16.msra.mxu3 %v12806_v54  ;;  %v12762_v54 = vor.u32 %v16439_v33, %v12761_v47  ;;  %v16427_v47 = vld [vmem:[#allocation3 + $0xb4] sm:$0xf0] }
 0x357   : > { %v18541_v4 = vpop.f32.mrf.mxu0  ;;  %4324 = vmatpush.bf16.msrb.mxu1 %v12990_v40 }
 0x358   : > { %4105 = vmatpush.bf16.msrb.mxu0 %v12762_v54 }
 0x359   : > { %4078 = vmatpush.bf16.msra.mxu2 %v12770_v30  ;;  %v12979_v30 = vld [vmem:[#allocation3 + $0xd0] sm:$0xf0] }
 0x35a   : > { %4090 = vmatpush.bf16.msra.mxu3 %v12790_v62  ;;  %v12998_v62 = vor.u32 %v16432_v59, %v12995_v12  ;;  %v12982_v22 = vor.u32 %v16428_v50, %v12979_v30  ;;  %v16420_v59 = vld [vmem:[#allocation3 + $0x84] sm:$0xf]  ;;  %v16418_v50 = vld [vmem:[#allocation3 + $0x6c] sm:$0xf0] }
 0x35b   : > { %4325 = vmatpush.bf16.msrb.mxu1 %v12974_v49  ;;  %v12950_v25 = vor.u32 %v16420_v59, %v12947_v1  ;;  %v12930_v30 = vor.u32 %v16418_v50, %v12929_v8  ;;  %v16410_v1 = vld [vmem:[#allocation3 + $0x2c] sm:$0xf0]  ;;  %v16409_v50 = vld [vmem:[#allocation3 + $0x2c] sm:$0xf] }
 0x35c   : > { %4310 = vmatpush.bf16.msra.mxu0 %v13002_v29  ;;  %v16421_v29 = vld [vmem:[#allocation3 + $0x8c] sm:$0xf] }
 0x35d   : > { %4079 = vmatpush.bf16.msra.mxu2 %v12754_v21  ;;  %v12963_v21 = vld [vmem:[#allocation3 + $0xb0] sm:$0xf0]  ;;  %v12958_v7 = vor.u32 %v16421_v29, %v12955_v11  ;;  %v16411_v29 = vld [vmem:[#allocation3 + $0x34] sm:$0xf0] }
 0x35e   : > { %4091 = vmatpush.bf16.msra.mxu3 %v12774_v46  ;;  %v12986_v46 = vor.u32 %v16431_v41, %v12985_v14  ;;  %v12966_v51 = vor.u32 %v16424_v28, %v12963_v21  ;;  %v12931_v14 = vld [vmem:[#allocation3 + $0x70] sm:$0xf0]  ;;  %v12937_v41 = vld [vmem:[#allocation3 + $0x68] sm:$0xf]  ;;  %v12942_v28 = vor.u32 %v16417_v5, %v12939_v6  ;;  %v16414_v21 = vld [vmem:[#allocation3 + $0x4c] sm:$0xf0] }
 0x35f   : > { %v18543_v16 = vpop.f32.mrf.mxu0  ;;  %4326 = vmatpush.bf16.msrb.mxu1 %v12958_v7  ;;  %v12883_v6 = vld [vmem:[#allocation3 + $0x10] sm:$0xf0] }
 0x360   : > { %4311 = vmatpush.bf16.msra.mxu0 %v12986_v46  ;;  %v18557_v46 = vpop.f32.mrf.mxu1 }
 0x361   : > { %4284 = vmatpush.bf16.msrb.mxu2 %v12994_v57  ;;  %v16422_v57 = vld [vmem:[#allocation3 + $0x8c] sm:$0xf0] }
 0x362   : > { %4092 = vmatpush.bf16.msra.mxu3 %v12758_v44  ;;  %v12969_v44 = vld [vmem:[#allocation3 + $0xa8] sm:$0xf]  ;;  %v12946_v12 = vor.u32 %v16422_v57, %v12945_v56  ;;  %v16413_v56 = vld [vmem:[#allocation3 + $0x4c] sm:$0xf]  ;;  %v12923_v57 = vld [vmem:[#allocation3 + $0x58] sm:$0xf0] }
 0x363   : > { %v12970_v54 = vor.u32 %v16427_v47, %v12969_v44  ;;  %v16412_v44 = vld [vmem:[#allocation3 + $0x44] sm:$0xf]  ;;  %4327 = vmatpush.bf16.msrb.mxu1 %v12942_v28  ;;  %v12926_v59 = vor.u32 %v16413_v56, %v12923_v57  ;;  %v12889_v28 = vld [vmem:[#allocation3 + $0x8] sm:$0xf] }
 0x365   : > { %4285 = vmatpush.bf16.msrb.mxu2 %v12978_v53  ;;  %4312 = vmatpush.bf16.msra.mxu0 %v12970_v54  ;;  %v16416_v53 = vld [vmem:[#allocation3 + $0x64] sm:$0xf]  ;;  %v12921_v54 = vld [vmem:[#allocation3 + $0x48] sm:$0xf] }
 0x366   : > { %4297 = vmatpush.bf16.msrb.mxu3 %v12998_v62  ;;  %v12953_v62 = vld [vmem:[#allocation3 + $0x88] sm:$0xf]  ;;  %v12934_v27 = vor.u32 %v16416_v53, %v12931_v14  ;;  %v12922_v49 = vor.u32 %v16415_v55, %v12921_v54  ;;  %v12907_v53 = vld [vmem:[#allocation3 + $0x38] sm:$0xf0]  ;;  %v3286_v55 = vadd.f32 %v18481_v52, %v18453_v58 }
 0x367   : > { %v18547_v38 = vpop.f32.mrf.mxu0  ;;  %v12954_v0 = vor.u32 %v16423_v63, %v12953_v62  ;;  %v16408_v62 = vld [vmem:[#allocation3 + $0x24] sm:$0xf]  ;;  %4328 = vmatpush.bf16.msrb.mxu1 %v12926_v59  ;;  %v12910_v14 = vor.u32 %v16409_v50, %v12907_v53 }
 0x368   : > { %v3441_v59 = vadd.f32 %v18500_v61, %v3286_v55  ;;  %v3300_v61 = vadd.f32 %v18543_v16, %v18462_v20  ;;  %v16495_v55 = vld [vmem:[#allocation3 + $0x2d4] sm:$0xf0] }
 0x369   : > { %4286 = vmatpush.bf16.msrb.mxu2 %v12962_v31  ;;  %4313 = vmatpush.bf16.msra.mxu0 %v12954_v0  ;;  %v12913_v31 = vld [vmem:[#allocation3 + $0x40] sm:$0xf]  ;;  %v12905_v0 = vld [vmem:[#allocation3 + $0x28] sm:$0xf] }
 0x36a   : > { %4298 = vmatpush.bf16.msrb.mxu3 %v12982_v22  ;;  %v16419_v22 = vld [vmem:[#allocation3 + $0x74] sm:$0xf0]  ;;  %v12914_v47 = vor.u32 %v16414_v21, %v12913_v31  ;;  %v12906_v8 = vor.u32 %v16411_v29, %v12905_v0 }
 0x36b   : > { %v12938_v40 = vor.u32 %v16419_v22, %v12937_v41  ;;  %v3689_v41 = vpop.f32.mrf.mxu1  ;;  %v12881_v22 = vld [vmem:[#allocation3] sm:$0xf]  ;;  %v16407_v31 = vld [vmem:[#allocation3 + $0x14] sm:$0xf0]  ;;  %4329 = vmatpush.bf16.msrb.mxu1 %v12910_v14 }
 0x36c   : > { %v13121_v14 = vld [vmem:[#allocation3 + $0x2e0] sm:$0xf] }
 0x36d   : > { %4287 = vmatpush.bf16.msrb.mxu2 %v12946_v12  ;;  %4314 = vmatpush.bf16.msra.mxu0 %v12938_v40  ;;  %v12897_v12 = vld [vmem:[#allocation3 + $0x20] sm:$0xf]  ;;  %v16404_v40 = vld [vmem:[#allocation3 + $0x4] sm:$0xf] }
 0x36e   : > { %4299 = vmatpush.bf16.msrb.mxu3 %v12966_v51  ;;  %v12915_v51 = vld [vmem:[#allocation3 + $0x50] sm:$0xf0]  ;;  %v12898_v63 = vor.u32 %v16410_v1, %v12897_v12  ;;  %v12886_v21 = vor.u32 %v16404_v40, %v12883_v6  ;;  %v13131_v40 = vld [vmem:[#allocation3 + $0x2f8] sm:$0xf0] }
 0x36f   : > { %v18551_v35 = vpop.f32.mrf.mxu0  ;;  %v12918_v32 = vor.u32 %v16412_v44, %v12915_v51  ;;  %v12890_v44 = vor.u32 %v16407_v31, %v12889_v28  ;;  %v12891_v51 = vld [vmem:[#allocation3 + $0x18] sm:$0xf0] }
 0x371   : > { %4288 = vmatpush.bf16.msrb.mxu2 %v12930_v30  ;;  %4315 = vmatpush.bf16.msra.mxu0 %v12922_v49  ;;  %v3312_v30 = vadd.f32 %v18528_v19, %v18524_v18  ;;  %v3272_v19 = vadd.f32 %v18472_v45, %v18522_v2  ;;  %v3314_v49 = vadd.f32 %v18537_v23, %v18526_v36 }
 0x372   : > { %4300 = vmatpush.bf16.msrb.mxu3 %v12950_v25  ;;  %v12899_v25 = vld [vmem:[#allocation3 + $0x30] sm:$0xf0]  ;;  %v3569_v23 = vadd.f32 %v18506_v48, %v3441_v59  ;;  %v3775_v48 = vpop.f32.mrf.mxu2  ;;  %v16490_v59 = vld [vmem:[#allocation3 + $0x2ac] sm:$0xf0] }
 0x373   : > { %v12902_v7 = vor.u32 %v16408_v62, %v12899_v25  ;;  %v3439_v54 = vadd.f32 %v18539_v3, %v3312_v30  ;;  %v3298_v3 = vadd.f32 %v18541_v4, %v18445_v24  ;;  %v3440_v57 = vadd.f32 %v18491_v10, %v3272_v19  ;;  %v3815_v2 = vpop.f32.mrf.mxu1  ;;  %v3789_v62 = vpop.f32.mrf.mxu3  ;;  %v13113_v19 = vld [vmem:[#allocation3 + $0x2c8] sm:$0xf] }
 0x374   : > { %v3443_v58 = vadd.f32 %v18545_v34, %v3314_v49  ;;  %v3697_v34 = vadd.f32 %v18512_v43, %v3569_v23  ;;  %v13115_v49 = vld [vmem:[#allocation3 + $0x2d8] sm:$0xf0]  ;;  %v16489_v23 = vld [vmem:[#allocation3 + $0x2ac] sm:$0xf] }
 0x375   : > { %4289 = vmatpush.bf16.msrb.mxu2 %v12914_v47  ;;  %4316 = vmatpush.bf16.msra.mxu0 %v12906_v8  ;;  %v16405_v47 = vld [vmem:[#allocation3 + $0xc] sm:$0xf]  ;;  %v3567_v56 = vadd.f32 %v18549_v26, %v3439_v54  ;;  %v3438_v45 = vadd.f32 %v18547_v38, %v3298_v3  ;;  %v3568_v36 = vadd.f32 %v18504_v37, %v3440_v57  ;;  %v17262_v37 = vld [vmem:[%s19791_s2] ss:$0 sm:$0xff]  ;;  %v16492_v54 = vld [vmem:[#allocation3 + $0x2c4] sm:$0xf] }
 0x376   : > { %4301 = vmatpush.bf16.msrb.mxu3 %v12934_v27  ;;  %v16406_v27 = vld [vmem:[#allocation3 + $0xc] sm:$0xf0]  ;;  %v12894_v18 = vor.u32 %v16405_v47, %v12891_v51  ;;  %v3571_v24 = vadd.f32 %v18553_v39, %v3443_v58  ;;  %v3825_v25 = vadd.f32 %v3789_v62, %v3697_v34  ;;  %v13130_v47 = vor.u32 %v16499_v17, %v13129_v15  ;;  %v13089_v57 = vld [vmem:[#allocation3 + $0x2a0] sm:$0xf]  ;;  %v16488_v58 = vld [vmem:[#allocation3 + $0x2a4] sm:$0xf] }
 0x377   : > { %v18555_v33 = vpop.f32.mrf.mxu0  ;;  %v12882_v5 = vor.u32 %v16406_v27, %v12881_v22  ;;  %v3695_v52 = vadd.f32 %v18557_v46, %v3567_v56  ;;  %v3696_v38 = vadd.f32 %v18510_v9, %v3568_v36  ;;  %v3442_v46 = vadd.f32 %v18551_v35, %v3300_v61  ;;  %v13123_v22 = vld [vmem:[#allocation3 + $0x2f0] sm:$0xf0]  ;;  %v16497_v27 = vld [vmem:[#allocation3 + $0x2ec] sm:$0xf]  ;;  %v16491_v36 = vld [vmem:[#allocation3 + $0x2b4] sm:$0xf0] }
 0x378   : > { %4330 = vmatpush.bf16.msrb.mxu1 %v12894_v18  ;;  %v3566_v12 = vadd.f32 %v18555_v33, %v3438_v45  ;;  %v13134_v51 = vor.u32 %v16497_v27, %v13131_v40  ;;  %v13107_v18 = vld [vmem:[#allocation3 + $0x2d0] sm:$0xf0]  ;;  %v13114_v45 = vor.u32 %v16495_v55, %v13113_v19  ;;  %v16486_v61 = vld [vmem:[#allocation3 + $0x28c] sm:$0xf0]  ;;  %v16484_v34 = vld [vmem:[#allocation3 + $0x284] sm:$0xf] }
 0x379   : > { %4290 = vmatpush.bf16.msrb.mxu2 %v12898_v63  ;;  %4317 = vmatpush.bf16.msra.mxu0 %v12890_v44  ;;  %v3823_v10 = vadd.f32 %v3815_v2, %v3695_v52  ;;  %v3699_v63 = vadd.f32 %v3689_v41, %v3571_v24  ;;  %v3824_v9 = vadd.f32 %v3775_v48, %v3696_v38  ;;  %v16496_v41 = vld [vmem:[#allocation3 + $0x2e4] sm:$0xf]  ;;  %v16494_v44 = vld [vmem:[#allocation3 + $0x2cc] sm:$0xf0]  ;;  %v13091_v52 = vld [vmem:[#allocation3 + $0x2b0] sm:$0xf0] }
 0x37a   : > { %4302 = vmatpush.bf16.msrb.mxu3 %v12918_v32  ;;  %v13126_v31 = vor.u32 %v16496_v41, %v13123_v22  ;;  %v13110_v3 = vor.u32 %v16492_v54, %v13107_v18  ;;  %v13094_v24 = vor.u32 %v16488_v58, %v13091_v52  ;;  %v16485_v48 = vld [vmem:[#allocation3 + $0x28c] sm:$0xf]  ;;  %v13083_v62 = vld [vmem:[#allocation3 + $0x298] sm:$0xf0]  ;;  %v16476_v15 = vld [vmem:[#allocation3 + $0x244] sm:$0xf] }
 0x37b   : > { %v3817_v16 = vpop.f32.mrf.mxu1  ;;  %v3829_v8 = vmax.f32 %v3824_v9, %v3825_v25  ;;  %v16480_v9 = vld [vmem:[#allocation3 + $0x264] sm:$0xf]  ;;  %v13059_v25 = vld [vmem:[#allocation3 + $0x270] sm:$0xf0]  ;;  %v16479_v27 = vld [vmem:[#allocation3 + $0x254] sm:$0xf0] }
 0x37c   : > { %v3827_v29 = vadd.f32 %v3817_v16, %v3699_v63  ;;  %v13057_v63 = vld [vmem:[#allocation3 + $0x260] sm:$0xf]  ;;  %v16482_v16 = vld [vmem:[#allocation3 + $0x26c] sm:$0xf0]  ;;  %v13043_v17 = vld [vmem:[#allocation3 + $0x250] sm:$0xf0] }
 0x37d   : > { %4291 = vmatpush.bf16.msrb.mxu2 %v12882_v5  ;;  %v16477_v40 = vld [vmem:[#allocation3 + $0x24c] sm:$0xf]  ;;  %v13027_v54 = vld [vmem:[#allocation3 + $0x230] sm:$0xf0]  ;;  %v13033_v18 = vld [vmem:[#allocation3 + $0x228] sm:$0xf] }
 0x37e   : > { %4303 = vmatpush.bf16.msrb.mxu3 %v12902_v7  ;;  %v16475_v19 = vld [vmem:[#allocation3 + $0x234] sm:$0xf0]  ;;  %v16473_v55 = vld [vmem:[#allocation3 + $0x22c] sm:$0xf]  ;;  %v13017_v52 = vld [vmem:[#allocation3 + $0x208] sm:$0xf] }
 0x37f   : > { %v18559_v13 = vpop.f32.mrf.mxu0 }
 0x380   : > { %v3570_v39 = vadd.f32 %v18559_v13, %v3442_v46  ;;  %v16498_v13 = vld [vmem:[#allocation3 + $0x2ec] sm:$0xf0]  ;;  %v13075_v46 = vld [vmem:[#allocation3 + $0x290] sm:$0xf0] }
 0x381   : > { %v13122_v28 = vor.u32 %v16498_v13, %v13121_v14  ;;  %v13041_v14 = vld [vmem:[#allocation3 + $0x240] sm:$0xf]  ;;  %v16478_v13 = vld [vmem:[#allocation3 + $0x24c] sm:$0xf0] }
 0x382   : > { %4304 = vmatpush.bf16.msrb.mxu3 %v12886_v21  ;;  %v13105_v21 = vld [vmem:[#allocation3 + $0x2c0] sm:$0xf] }
 0x383   : > { %v13106_v56 = vor.u32 %v16494_v44, %v13105_v21  ;;  %v16474_v21 = vld [vmem:[#allocation3 + $0x22c] sm:$0xf0] }
 0x387   : > { %v3673_v11 = vpop.f32.mrf.mxu0 }
 0x388   : > { %v3694_v26 = vadd.f32 %v3673_v11, %v3566_v12  ;;  %v13097_v12 = vld [vmem:[#allocation3 + $0x2a8] sm:$0xf] }
 0x38f   : > { %v3675_v32 = vpop.f32.mrf.mxu0 }
 0x390   : > { %v3698_v43 = vadd.f32 %v3675_v32, %v3570_v39  ;;  %v16493_v32 = vld [vmem:[#allocation3 + $0x2cc] sm:$0xf] }
 0x391   : > { %v13118_v2 = vor.u32 %v16493_v32, %v13115_v49  ;;  %v13035_v32 = vld [vmem:[#allocation3 + $0x238] sm:$0xf0]  ;;  %v13009_v49 = vld [vmem:[#allocation3 + $0x200] sm:$0xf] }
 0x392   : > { %v13038_v58 = vor.u32 %v16473_v55, %v13035_v32  ;;  %v13211_v55 = vld [vmem:[#allocation3 + $0x398] sm:$0xf0] }
 0x397   : > { %v3801_v1 = vpop.f32.mrf.mxu0 }
 0x398   : > { %v3822_v4 = vadd.f32 %v3801_v1, %v3694_v26  ;;  %v13099_v26 = vld [vmem:[#allocation3 + $0x2b8] sm:$0xf0]  ;;  %v13090_v1 = vor.u32 %v16490_v59, %v13089_v57  ;;  %v16470_v57 = vld [vmem:[#allocation3 + $0x20c] sm:$0xf0]  ;;  %v16468_v59 = vld [vmem:[#allocation3 + $0x204] sm:$0xf] }
 0x399   : > { %v13102_v38 = vor.u32 %v16489_v23, %v13099_v26  ;;  %v13019_v23 = vld [vmem:[#allocation3 + $0x218] sm:$0xf0]  ;;  %v13249_v26 = vld [vmem:[#allocation3 + $0x3e0] sm:$0xf] }
 0x39a   : > { %v3830_v33 = vmax.f32 %v3822_v4, %v3823_v10  ;;  %v13073_v10 = vld [vmem:[#allocation3 + $0x280] sm:$0xf]  ;;  %v13098_v4 = vor.u32 %v16491_v36, %v13097_v12  ;;  %v16471_v12 = vld [vmem:[#allocation3 + $0x214] sm:$0xf0]  ;;  %v16469_v36 = vld [vmem:[#allocation3 + $0x20c] sm:$0xf] }
 0x39b   : > { %v13074_v39 = vor.u32 %v16486_v61, %v13073_v10  ;;  %v13251_v10 = vld [vmem:[#allocation3 + $0x3f0] sm:$0xf0]  ;;  %v13257_v61 = vld [vmem:[#allocation3 + $0x3e8] sm:$0xf] }
 0x39c   : > { %v3832_v20 = vmax.f32 %v3828_v60, %v3830_v33  ;;  %v13081_v33 = vld [vmem:[#allocation3 + $0x288] sm:$0xf] }
 0x39e   : > { %v3838_v0 = vadd.f32 %v17262_v37, %v3832_v20  ;;  %v13078_v20 = vor.u32 %v16484_v34, %v13075_v46  ;;  %v16531_v34 = vld [vmem:[#allocation3 + $0x3f4] sm:$0xf0]  ;;  %v16529_v46 = vld [vmem:[#allocation3 + $0x3ec] sm:$0xf] }
 0x39f   : > { %v3803_v35 = vpop.f32.mrf.mxu0 }
 0x3a0   : > { %v3840_v11 = vmax.f32 %v3838_v0, 0.0  ;;  %v3826_v7 = vadd.f32 %v3803_v35, %v3698_v43  ;;  %v13086_v0 = vor.u32 %v16485_v48, %v13083_v62  ;;  %v13022_v48 = vor.u32 %v16469_v36, %v13019_v23  ;;  %v13233_v62 = vld [vmem:[#allocation3 + $0x3c0] sm:$0xf]  ;;  %v13195_v36 = vld [vmem:[#allocation3 + $0x378] sm:$0xf0] }
 0x3a2   : > { %3842 = vst [vmem:[#allocation2] sm:$0xff] %v3840_v11  ;;  %v3831_v50 = vmax.f32 %v3826_v7, %v3827_v29  ;;  %v13065_v29 = vld [vmem:[#allocation3 + $0x268] sm:$0xf]  ;;  %v16483_v11 = vld [vmem:[#allocation3 + $0x274] sm:$0xf0] }
 0x3a3   : > { %v16481_v7 = vld [vmem:[#allocation3 + $0x26c] sm:$0xf]  ;;  %v13066_v41 = vor.u32 %v16483_v11, %v13065_v29  ;;  %v16527_v29 = vld [vmem:[#allocation3 + $0x3d4] sm:$0xf0] }
 0x3a4   : > { %v3833_v53 = vmax.f32 %v3829_v8, %v3831_v50  ;;  %v13067_v8 = vld [vmem:[#allocation3 + $0x278] sm:$0xf0]  ;;  %v16525_v11 = vld [vmem:[#allocation3 + $0x3cc] sm:$0xf] }
 0x3a5   : > { %v13070_v22 = vor.u32 %v16481_v7, %v13067_v8  ;;  %v13243_v7 = vld [vmem:[#allocation3 + $0x3d8] sm:$0xf0] }
 0x3a6   : > { %v3839_v30 = vadd.f32 %v17262_v37, %v3833_v53  ;;  %v16487_v37 = vld [vmem:[#allocation3 + $0x294] sm:$0xf0]  ;;  %v13058_v53 = vor.u32 %v16482_v16, %v13057_v63  ;;  %v16524_v16 = vld [vmem:[#allocation3 + $0x3c4] sm:$0xf] }
 0x3a7   : > { %v13082_v43 = vor.u32 %v16487_v37, %v13081_v33  ;;  %v13259_v33 = vld [vmem:[#allocation3 + $0x3f8] sm:$0xf0]  ;;  %v13018_v37 = vor.u32 %v16471_v12, %v13017_v52  ;;  %v16515_v52 = vld [vmem:[#allocation3 + $0x374] sm:$0xf0]  ;;  %v16513_v12 = vld [vmem:[#allocation3 + $0x36c] sm:$0xf] }
 0x3a8   : > { %v3841_v60 = vmax.f32 %v3839_v30, 0.0  ;;  %v13062_v30 = vor.u32 %v16480_v9, %v13059_v25  ;;  %v13235_v9 = vld [vmem:[#allocation3 + $0x3d0] sm:$0xf0]  ;;  %v13258_v25 = vor.u32 %v16531_v34, %v13257_v61  ;;  %v13198_v61 = vor.u32 %v16513_v12, %v13195_v36  ;;  %v13177_v34 = vld [vmem:[#allocation3 + $0x348] sm:$0xf] }
 0x3a9   : > { %v3878_v5 = vld [vmem:[#allocation2 + $0x1] ss:$2 sm:$0xf]  ;;  %v3844_v35 = vld [vmem:[#allocation2] ss:$2 sm:$0xf] }
 0x3aa   : > { %3843 = vst [vmem:[#allocation2 + $0x8] sm:$0xf] %v3841_v60  ;;  %v3879_v6 = vpack.c.bf16 %v3878_v5, %v3878_v5  ;;  %v3845_v50 = vpack.c.bf16 %v3844_v35, %v3844_v35  ;;  %v13049_v60 = vld [vmem:[#allocation3 + $0x248] sm:$0xf]  ;;  %v13051_v5 = vld [vmem:[#allocation3 + $0x258] sm:$0xf0] }
 0x3ab   : > { %v13050_v44 = vor.u32 %v16479_v27, %v13049_v60  ;;  %v13241_v35 = vld [vmem:[#allocation3 + $0x3c8] sm:$0xf]  ;;  %v16523_v60 = vld [vmem:[#allocation3 + $0x3b4] sm:$0xf0]  ;;  %v16521_v27 = vld [vmem:[#allocation3 + $0x3ac] sm:$0xf] }
 0x3ac   : > { %4080 = vmatmul.bf16.vlgmr.msra.gmra.mxu2 %v3879_v6  ;;  %4093 = vmatmul.bf16.vlgmr.msra.gmra.mxu3 %v3879_v6 }
 0x3ad   : > { %4106 = vmatmul.bf16.vlgmr.msrb.gmra.mxu0 %v3879_v6  ;;  %4119 = vmatmul.bf16.vlgmr.msra.gmra.mxu1 %v3879_v6  ;;  %v13042_v6 = vor.u32 %v16478_v13, %v13041_v14  ;;  %v16522_v14 = vld [vmem:[#allocation3 + $0x3ac] sm:$0xf0]  ;;  %v13242_v13 = vor.u32 %v16527_v29, %v13241_v35  ;;  %v16505_v35 = vld [vmem:[#allocation3 + $0x32c] sm:$0xf]  ;;  %v13163_v29 = vld [vmem:[#allocation3 + $0x338] sm:$0xf0] }
 0x3ae   : > { %4530 = vmatpush.bf16.msra.mxu2 %v13122_v28  ;;  %4543 = vmatpush.bf16.msra.mxu3 %v13126_v31  ;;  %v13046_v28 = vor.u32 %v16476_v15, %v13043_v17  ;;  %v13025_v31 = vld [vmem:[#allocation3 + $0x220] sm:$0xf]  ;;  %v13219_v15 = vld [vmem:[#allocation3 + $0x3b0] sm:$0xf0]  ;;  %v13225_v17 = vld [vmem:[#allocation3 + $0x3a8] sm:$0xf] }
 0x3af   : > { %4556 = vmatpush.bf16.msrb.mxu0 %v13130_v47  ;;  %4569 = vmatpush.bf16.msra.mxu1 %v13134_v51  ;;  %v13054_v47 = vor.u32 %v16477_v40, %v13051_v5  ;;  %v16472_v51 = vld [vmem:[#allocation3 + $0x224] sm:$0xf]  ;;  %v13227_v40 = vld [vmem:[#allocation3 + $0x3b8] sm:$0xf0] }
 0x3b2   : > { %4531 = vmatpush.bf16.msra.mxu2 %v13106_v56  ;;  %4544 = vmatpush.bf16.msra.mxu3 %v13110_v3  ;;  %v13026_v56 = vor.u32 %v16474_v21, %v13025_v31  ;;  %v13030_v3 = vor.u32 %v16472_v51, %v13027_v54  ;;  %v16518_v31 = vld [vmem:[#allocation3 + $0x38c] sm:$0xf0]  ;;  %v13226_v21 = vor.u32 %v16523_v60, %v13225_v17  ;;  %v13203_v51 = vld [vmem:[#allocation3 + $0x390] sm:$0xf0]  ;;  %v13209_v54 = vld [vmem:[#allocation3 + $0x388] sm:$0xf] }
 0x3b3   : > { %4557 = vmatpush.bf16.msrb.mxu0 %v13114_v45  ;;  %4570 = vmatpush.bf16.msra.mxu1 %v13118_v2  ;;  %v13011_v45 = vld [vmem:[#allocation3 + $0x210] sm:$0xf0]  ;;  %v13034_v2 = vor.u32 %v16475_v19, %v13033_v18  ;;  %v16519_v18 = vld [vmem:[#allocation3 + $0x394] sm:$0xf0]  ;;  %v16517_v19 = vld [vmem:[#allocation3 + $0x38c] sm:$0xf] }
 0x3b4   : > { %v13147_v17 = vld [vmem:[#allocation3 + $0x318] sm:$0xf0]  ;;  %v13377_v60 = vld [vmem:[#allocation3 + $0x4e0] sm:$0xf] }
 0x3b6   : > { %4532 = vmatpush.bf16.msra.mxu2 %v13090_v1  ;;  %4545 = vmatpush.bf16.msra.mxu3 %v13094_v24  ;;  %v16530_v1 = vld [vmem:[#allocation3 + $0x3ec] sm:$0xf0]  ;;  %v16528_v24 = vld [vmem:[#allocation3 + $0x3e4] sm:$0xf] }
 0x3b7   : > { %4558 = vmatpush.bf16.msrb.mxu0 %v13098_v4  ;;  %4571 = vmatpush.bf16.msra.mxu1 %v13102_v38  ;;  %v13010_v4 = vor.u32 %v16470_v57, %v13009_v49  ;;  %v13014_v38 = vor.u32 %v16468_v59, %v13011_v45  ;;  %v13250_v63 = vor.u32 %v16530_v1, %v13249_v26  ;;  %v16512_v45 = vld [vmem:[#allocation3 + $0x364] sm:$0xf]  ;;  %v13169_v1 = vld [vmem:[#allocation3 + $0x340] sm:$0xf] }
 0x3b8   : > { %v13210_v57 = vor.u32 %v16519_v18, %v13209_v54  ;;  %v13214_v59 = vor.u32 %v16517_v19, %v13211_v55  ;;  %v4586_v18 = vld [vmem:[#allocation2 + $0x3] ss:$2 sm:$0xf] }
 0x3b9   : > { %v4587_v12 = vpack.c.bf16 %v4586_v18, %v4586_v18 }
 0x3ba   : > { %4533 = vmatpush.bf16.msra.mxu2 %v13074_v39  ;;  %4546 = vmatpush.bf16.msra.mxu3 %v13078_v20  ;;  %v13254_v39 = vor.u32 %v16528_v24, %v13251_v10  ;;  %v16526_v20 = vld [vmem:[#allocation3 + $0x3cc] sm:$0xf0] }
 0x3bb   : > { %4559 = vmatpush.bf16.msrb.mxu0 %v13082_v43  ;;  %4572 = vmatpush.bf16.msra.mxu1 %v13086_v0  ;;  %v13262_v43 = vor.u32 %v16529_v46, %v13259_v33  ;;  %v4336_v0 = vld [vmem:[#allocation2 + $0x2] ss:$2 sm:$0xf]  ;;  %v16509_v33 = vld [vmem:[#allocation3 + $0x34c] sm:$0xf] }
 0x3bc   : > { %4292 = vmatmul.bf16.vlgmr.msrb.gmra.mxu2 %v3845_v50  ;;  %4305 = vmatmul.bf16.vlgmr.msrb.gmra.mxu3 %v3845_v50  ;;  %v4337_v8 = vpack.c.bf16 %v4336_v0, %v4336_v0  ;;  %v16510_v24 = vld [vmem:[#allocation3 + $0x34c] sm:$0xf0]  ;;  %v16511_v46 = vld [vmem:[#allocation3 + $0x354] sm:$0xf0] }
 0x3bd   : > { %4318 = vmatmul.bf16.vlgmr.msra.gmra.mxu0 %v3845_v50  ;;  %4331 = vmatmul.bf16.vlgmr.msrb.gmra.mxu1 %v3845_v50  ;;  %v13234_v50 = vor.u32 %v16526_v20, %v13233_v62  ;;  %v13178_v20 = vor.u32 %v16511_v46, %v13177_v34  ;;  %v16507_v0 = vld [vmem:[#allocation3 + $0x334] sm:$0xf0]  ;;  %v16553_v46 = vld [vmem:[#allocation3 + $0x4ac] sm:$0xf] }
 0x3be   : > { %4534 = vmatpush.bf16.msra.mxu2 %v13058_v53  ;;  %4547 = vmatpush.bf16.msra.mxu3 %v13062_v30  ;;  %v13238_v53 = vor.u32 %v16524_v16, %v13235_v9  ;;  %v13217_v30 = vld [vmem:[#allocation3 + $0x3a0] sm:$0xf]  ;;  %v16504_v9 = vld [vmem:[#allocation3 + $0x324] sm:$0xf]  ;;  %v16555_v34 = vld [vmem:[#allocation3 + $0x4b4] sm:$0xf0] }
 0x3bf   : > { %4560 = vmatpush.bf16.msrb.mxu0 %v13066_v41  ;;  %4573 = vmatpush.bf16.msra.mxu1 %v13070_v22  ;;  %v13246_v41 = vor.u32 %v16525_v11, %v13243_v7  ;;  %v16520_v22 = vld [vmem:[#allocation3 + $0x3a4] sm:$0xf]  ;;  %v13218_v5 = vor.u32 %v16522_v14, %v13217_v30  ;;  %v13137_v11 = vld [vmem:[#allocation3 + $0x300] sm:$0xf]  ;;  %v13139_v30 = vld [vmem:[#allocation3 + $0x310] sm:$0xf0] }
 0x3c2   : > { %4535 = vmatpush.bf16.msra.mxu2 %v13042_v6  ;;  %4548 = vmatpush.bf16.msra.mxu3 %v13046_v28  ;;  %v13222_v6 = vor.u32 %v16520_v22, %v13219_v15  ;;  %v13201_v28 = vld [vmem:[#allocation3 + $0x380] sm:$0xf]  ;;  %v16503_v22 = vld [vmem:[#allocation3 + $0x314] sm:$0xf0]  ;;  %v16501_v15 = vld [vmem:[#allocation3 + $0x30c] sm:$0xf] }
 0x3c3   : > { %4561 = vmatpush.bf16.msrb.mxu0 %v13050_v44  ;;  %4574 = vmatpush.bf16.msra.mxu1 %v13054_v47  ;;  %v13230_v44 = vor.u32 %v16521_v27, %v13227_v40  ;;  %v16516_v47 = vld [vmem:[#allocation3 + $0x384] sm:$0xf]  ;;  %v13202_v32 = vor.u32 %v16518_v31, %v13201_v28  ;;  %v16562_v27 = vld [vmem:[#allocation3 + $0x4ec] sm:$0xf0]  ;;  %v13150_v54 = vor.u32 %v16501_v15, %v13147_v17  ;;  %v13323_v15 = vld [vmem:[#allocation3 + $0x478] sm:$0xf0] }
 0x3c4   : > { %v13206_v49 = vor.u32 %v16516_v47, %v13203_v51  ;;  %v16560_v40 = vld [vmem:[#allocation3 + $0x4e4] sm:$0xf]  ;;  %v13387_v47 = vld [vmem:[#allocation3 + $0x4f8] sm:$0xf0]  ;;  %v13378_v19 = vor.u32 %v16562_v27, %v13377_v60  ;;  %v13297_v27 = vld [vmem:[#allocation3 + $0x440] sm:$0xf] }
 0x3c6   : > { %4536 = vmatpush.bf16.msra.mxu2 %v13026_v56  ;;  %4549 = vmatpush.bf16.msra.mxu3 %v13030_v3  ;;  %v13185_v56 = vld [vmem:[#allocation3 + $0x360] sm:$0xf]  ;;  %v16514_v3 = vld [vmem:[#allocation3 + $0x36c] sm:$0xf0] }
 0x3c7   : > { %4562 = vmatpush.bf16.msrb.mxu0 %v13034_v2  ;;  %4575 = vmatpush.bf16.msra.mxu1 %v13038_v58  ;;  %v13187_v2 = vld [vmem:[#allocation3 + $0x370] sm:$0xf0]  ;;  %v13193_v58 = vld [vmem:[#allocation3 + $0x368] sm:$0xf]  ;;  %v13186_v23 = vor.u32 %v16514_v3, %v13185_v56 }
 0x3c8   : > { %v13190_v26 = vor.u32 %v16512_v45, %v13187_v2  ;;  %v13194_v10 = vor.u32 %v16515_v52, %v13193_v58  ;;  %v13369_v45 = vld [vmem:[#allocation3 + $0x4c8] sm:$0xf]  ;;  %v16559_v2 = vld [vmem:[#allocation3 + $0x4d4] sm:$0xf0]  ;;  %v16557_v58 = vld [vmem:[#allocation3 + $0x4cc] sm:$0xf] }
 0x3c9   : > { %v13371_v52 = vld [vmem:[#allocation3 + $0x4d8] sm:$0xf0] }
 0x3ca   : > { %4537 = vmatpush.bf16.msra.mxu2 %v13010_v4  ;;  %4550 = vmatpush.bf16.msra.mxu3 %v13014_v38  ;;  %v16508_v4 = vld [vmem:[#allocation3 + $0x344] sm:$0xf]  ;;  %v13171_v38 = vld [vmem:[#allocation3 + $0x350] sm:$0xf0] }
 0x3cb   : > { %4563 = vmatpush.bf16.msrb.mxu0 %v13018_v37  ;;  %4576 = vmatpush.bf16.msra.mxu1 %v13022_v48  ;;  %v13179_v37 = vld [vmem:[#allocation3 + $0x358] sm:$0xf0]  ;;  %v13170_v48 = vor.u32 %v16510_v24, %v13169_v1  ;;  %v13174_v62 = vor.u32 %v16508_v4, %v13171_v38  ;;  %v16554_v1 = vld [vmem:[#allocation3 + $0x4ac] sm:$0xf0]  ;;  %v13370_v24 = vor.u32 %v16559_v2, %v13369_v45  ;;  %v13347_v4 = vld [vmem:[#allocation3 + $0x4b0] sm:$0xf0] }
 0x3cc   : > { %v13182_v16 = vor.u32 %v16509_v33, %v13179_v37  ;;  %v13353_v38 = vld [vmem:[#allocation3 + $0x4a8] sm:$0xf]  ;;  %v13355_v33 = vld [vmem:[#allocation3 + $0x4b8] sm:$0xf0]  ;;  %v16537_v45 = vld [vmem:[#allocation3 + $0x42c] sm:$0xf] }
 0x3cd   : > { %4538 = vmatmul.bf16.vlgmr.msra.gmra.mxu2 %v4337_v8  ;;  %4551 = vmatmul.bf16.vlgmr.msra.gmra.mxu3 %v4337_v8  ;;  %v13291_v2 = vld [vmem:[#allocation3 + $0x438] sm:$0xf0] }
 0x3ce   : > { %4780 = vmatpush.bf16.msrb.mxu2 %v13250_v63  ;;  %4793 = vmatpush.bf16.msrb.mxu3 %v13254_v39  ;;  %v13153_v63 = vld [vmem:[#allocation3 + $0x320] sm:$0xf]  ;;  %v16506_v39 = vld [vmem:[#allocation3 + $0x32c] sm:$0xf0] }
 0x3cf   : > { %4806 = vmatpush.bf16.msra.mxu0 %v13258_v25  ;;  %4819 = vmatpush.bf16.msrb.mxu1 %v13262_v43  ;;  %v13155_v25 = vld [vmem:[#allocation3 + $0x330] sm:$0xf0]  ;;  %v13161_v43 = vld [vmem:[#allocation3 + $0x328] sm:$0xf]  ;;  %v13154_v7 = vor.u32 %v16506_v39, %v13153_v63  ;;  %v16550_v63 = vld [vmem:[#allocation3 + $0x48c] sm:$0xf0]  ;;  %v13354_v39 = vor.u32 %v16555_v34, %v13353_v38 }
 0x3d0   : > { %4564 = vmatmul.bf16.vlgmr.msrb.gmra.mxu0 %v4337_v8  ;;  %4577 = vmatmul.bf16.vlgmr.msra.gmra.mxu1 %v4337_v8  ;;  %v13158_v8 = vor.u32 %v16504_v9, %v13155_v25  ;;  %v13162_v14 = vor.u32 %v16507_v0, %v13161_v43  ;;  %v13331_v9 = vld [vmem:[#allocation3 + $0x490] sm:$0xf0]  ;;  %v13337_v25 = vld [vmem:[#allocation3 + $0x488] sm:$0xf]  ;;  %v16551_v43 = vld [vmem:[#allocation3 + $0x494] sm:$0xf0] }
 0x3d1   : > { %v16549_v0 = vld [vmem:[#allocation3 + $0x48c] sm:$0xf]  ;;  %v13275_v38 = vld [vmem:[#allocation3 + $0x418] sm:$0xf0]  ;;  %v13505_v34 = vld [vmem:[#allocation3 + $0x5e0] sm:$0xf] }
 0x3d2   : > { %4781 = vmatpush.bf16.msrb.mxu2 %v13234_v50  ;;  %4794 = vmatpush.bf16.msrb.mxu3 %v13238_v53  ;;  %v16502_v50 = vld [vmem:[#allocation3 + $0x30c] sm:$0xf0]  ;;  %v16500_v53 = vld [vmem:[#allocation3 + $0x304] sm:$0xf] }
 0x3d3   : > { %4807 = vmatpush.bf16.msra.mxu0 %v13242_v13  ;;  %4820 = vmatpush.bf16.msrb.mxu1 %v13246_v41  ;;  %v13166_v13 = vor.u32 %v16505_v35, %v13163_v29  ;;  %v13145_v41 = vld [vmem:[#allocation3 + $0x308] sm:$0xf]  ;;  %v13138_v28 = vor.u32 %v16502_v50, %v13137_v11  ;;  %v13142_v31 = vor.u32 %v16500_v53, %v13139_v30  ;;  %v13339_v35 = vld [vmem:[#allocation3 + $0x498] sm:$0xf0]  ;;  %v16544_v30 = vld [vmem:[#allocation3 + $0x464] sm:$0xf] }
 0x3d4   : > { %v13146_v51 = vor.u32 %v16503_v22, %v13145_v41  ;;  %v13338_v50 = vor.u32 %v16551_v43, %v13337_v25  ;;  %v13342_v53 = vor.u32 %v16549_v0, %v13339_v35  ;;  %v16547_v41 = vld [vmem:[#allocation3 + $0x474] sm:$0xf0]  ;;  %v16545_v22 = vld [vmem:[#allocation3 + $0x46c] sm:$0xf] }
 0x3d5   : > { %v4836_v43 = vld [vmem:[#allocation2 + $0x4] ss:$2 sm:$0xf] }
 0x3d6   : > { %4782 = vmatpush.bf16.msrb.mxu2 %v13218_v5  ;;  %4795 = vmatpush.bf16.msrb.mxu3 %v13222_v6  ;;  %v13379_v5 = vld [vmem:[#allocation3 + $0x4f0] sm:$0xf0]  ;;  %v13385_v6 = vld [vmem:[#allocation3 + $0x4e8] sm:$0xf] }
 0x3d7   : > { %4808 = vmatpush.bf16.msra.mxu0 %v13226_v21  ;;  %4821 = vmatpush.bf16.msrb.mxu1 %v13230_v44  ;;  %v16563_v21 = vld [vmem:[#allocation3 + $0x4f4] sm:$0xf0]  ;;  %v16561_v44 = vld [vmem:[#allocation3 + $0x4ec] sm:$0xf]  ;;  %v13382_v55 = vor.u32 %v16560_v40, %v13379_v5  ;;  %v16542_v40 = vld [vmem:[#allocation3 + $0x44c] sm:$0xf0] }
 0x3d8   : > { %v13386_v56 = vor.u32 %v16563_v21, %v13385_v6  ;;  %v13390_v3 = vor.u32 %v16561_v44, %v13387_v47  ;;  %v13326_v6 = vor.u32 %v16545_v22, %v13323_v15  ;;  %v13305_v21 = vld [vmem:[#allocation3 + $0x448] sm:$0xf]  ;;  %v16543_v44 = vld [vmem:[#allocation3 + $0x454] sm:$0xf0]  ;;  %v16541_v47 = vld [vmem:[#allocation3 + $0x44c] sm:$0xf]  ;;  %v4837_v22 = vpack.c.bf16 %v4836_v43, %v4836_v43 }
 0x3da   : > { %4783 = vmatpush.bf16.msrb.mxu2 %v13202_v32  ;;  %4796 = vmatpush.bf16.msrb.mxu3 %v13206_v49  ;;  %v13361_v32 = vld [vmem:[#allocation3 + $0x4c0] sm:$0xf]  ;;  %v16558_v49 = vld [vmem:[#allocation3 + $0x4cc] sm:$0xf0] }
 0x3db   : > { %4809 = vmatpush.bf16.msra.mxu0 %v13210_v57  ;;  %4822 = vmatpush.bf16.msrb.mxu1 %v13214_v59  ;;  %v16556_v57 = vld [vmem:[#allocation3 + $0x4c4] sm:$0xf]  ;;  %v13363_v59 = vld [vmem:[#allocation3 + $0x4d0] sm:$0xf0]  ;;  %v13362_v36 = vor.u32 %v16558_v49, %v13361_v32  ;;  %v13306_v32 = vor.u32 %v16543_v44, %v13305_v21  ;;  %v16587_v21 = vld [vmem:[#allocation3 + $0x5b4] sm:$0xf0] }
 0x3dc   : > { %v16585_v44 = vld [vmem:[#allocation3 + $0x5ac] sm:$0xf] }
 0x3de   : > { %4784 = vmatpush.bf16.msrb.mxu2 %v13186_v23  ;;  %4797 = vmatpush.bf16.msrb.mxu3 %v13190_v26  ;;  %v13366_v23 = vor.u32 %v16556_v57, %v13363_v59  ;;  %v13345_v26 = vld [vmem:[#allocation3 + $0x4a0] sm:$0xf]  ;;  %v13289_v57 = vld [vmem:[#allocation3 + $0x428] sm:$0xf]  ;;  %v16539_v59 = vld [vmem:[#allocation3 + $0x434] sm:$0xf0] }
 0x3df   : > { %4810 = vmatpush.bf16.msra.mxu0 %v13194_v10  ;;  %4823 = vmatpush.bf16.msrb.mxu1 %v13198_v61  ;;  %v13374_v10 = vor.u32 %v16557_v58, %v13371_v52  ;;  %v16552_v61 = vld [vmem:[#allocation3 + $0x4a4] sm:$0xf]  ;;  %v13346_v37 = vor.u32 %v16554_v1, %v13345_v26  ;;  %v13265_v58 = vld [vmem:[#allocation3 + $0x400] sm:$0xf]  ;;  %v13267_v26 = vld [vmem:[#allocation3 + $0x410] sm:$0xf0]  ;;  %v13290_v1 = vor.u32 %v16539_v59, %v13289_v57 }
 0x3e0   : > { %v16583_v57 = vld [vmem:[#allocation3 + $0x594] sm:$0xf0]  ;;  %v16581_v59 = vld [vmem:[#allocation3 + $0x58c] sm:$0xf] }
 0x3e2   : > { %4785 = vmatpush.bf16.msrb.mxu2 %v13170_v48  ;;  %4798 = vmatpush.bf16.msrb.mxu3 %v13174_v62  ;;  %v13350_v48 = vor.u32 %v16552_v61, %v13347_v4  ;;  %v13329_v62 = vld [vmem:[#allocation3 + $0x480] sm:$0xf]  ;;  %v16535_v61 = vld [vmem:[#allocation3 + $0x414] sm:$0xf0]  ;;  %v16533_v4 = vld [vmem:[#allocation3 + $0x40c] sm:$0xf] }
 0x3e3   : > { %4811 = vmatpush.bf16.msra.mxu0 %v13178_v20  ;;  %4824 = vmatpush.bf16.msrb.mxu1 %v13182_v16  ;;  %v13358_v20 = vor.u32 %v16553_v46, %v13355_v33  ;;  %v16548_v16 = vld [vmem:[#allocation3 + $0x484] sm:$0xf]  ;;  %v13330_v29 = vor.u32 %v16550_v63, %v13329_v62  ;;  %v16594_v46 = vld [vmem:[#allocation3 + $0x5ec] sm:$0xf0]  ;;  %v13278_v25 = vor.u32 %v16533_v4, %v13275_v38  ;;  %v13451_v4 = vld [vmem:[#allocation3 + $0x578] sm:$0xf0] }
 0x3e4   : > { %v13334_v11 = vor.u32 %v16548_v16, %v13331_v9  ;;  %v16592_v33 = vld [vmem:[#allocation3 + $0x5e4] sm:$0xf]  ;;  %v13515_v16 = vld [vmem:[#allocation3 + $0x5f8] sm:$0xf0]  ;;  %v13506_v0 = vor.u32 %v16594_v46, %v13505_v34  ;;  %v13425_v46 = vld [vmem:[#allocation3 + $0x540] sm:$0xf] }
 0x3e6   : > { %4786 = vmatpush.bf16.msrb.mxu2 %v13154_v7  ;;  %4799 = vmatpush.bf16.msrb.mxu3 %v13158_v8  ;;  %v13313_v7 = vld [vmem:[#allocation3 + $0x460] sm:$0xf]  ;;  %v16546_v8 = vld [vmem:[#allocation3 + $0x46c] sm:$0xf0] }
 0x3e7   : > { %4812 = vmatpush.bf16.msra.mxu0 %v13162_v14  ;;  %4825 = vmatpush.bf16.msrb.mxu1 %v13166_v13  ;;  %v13315_v14 = vld [vmem:[#allocation3 + $0x470] sm:$0xf0]  ;;  %v13321_v13 = vld [vmem:[#allocation3 + $0x468] sm:$0xf]  ;;  %v13314_v17 = vor.u32 %v16546_v8, %v13313_v7 }
 0x3e8   : > { %v13318_v60 = vor.u32 %v16544_v30, %v13315_v14  ;;  %v13322_v5 = vor.u32 %v16547_v41, %v13321_v13  ;;  %v13497_v30 = vld [vmem:[#allocation3 + $0x5c8] sm:$0xf]  ;;  %v16591_v14 = vld [vmem:[#allocation3 + $0x5d4] sm:$0xf0]  ;;  %v16589_v13 = vld [vmem:[#allocation3 + $0x5cc] sm:$0xf] }
 0x3e9   : > { %v13499_v41 = vld [vmem:[#allocation3 + $0x5d8] sm:$0xf0] }
 0x3ea   : > { %4787 = vmatpush.bf16.msrb.mxu2 %v13138_v28  ;;  %4800 = vmatpush.bf16.msrb.mxu3 %v13142_v31  ;;  %v16540_v28 = vld [vmem:[#allocation3 + $0x444] sm:$0xf]  ;;  %v13299_v31 = vld [vmem:[#allocation3 + $0x450] sm:$0xf0] }
 0x3eb   : > { %4813 = vmatpush.bf16.msra.mxu0 %v13146_v51  ;;  %4826 = vmatpush.bf16.msrb.mxu1 %v13150_v54  ;;  %v13307_v51 = vld [vmem:[#allocation3 + $0x458] sm:$0xf0]  ;;  %v13298_v54 = vor.u32 %v16542_v40, %v13297_v27  ;;  %v13302_v18 = vor.u32 %v16540_v28, %v13299_v31  ;;  %v16586_v27 = vld [vmem:[#allocation3 + $0x5ac] sm:$0xf0]  ;;  %v13498_v40 = vor.u32 %v16591_v14, %v13497_v30  ;;  %v13475_v28 = vld [vmem:[#allocation3 + $0x5b0] sm:$0xf0] }
 0x3ec   : > { %v13310_v49 = vor.u32 %v16541_v47, %v13307_v51  ;;  %v13481_v31 = vld [vmem:[#allocation3 + $0x5a8] sm:$0xf]  ;;  %v13483_v47 = vld [vmem:[#allocation3 + $0x5b8] sm:$0xf0]  ;;  %v16569_v30 = vld [vmem:[#allocation3 + $0x52c] sm:$0xf] }
 0x3ed   : > { %4788 = vmatmul.bf16.vlgmr.msrb.gmra.mxu2 %v4587_v12  ;;  %4801 = vmatmul.bf16.vlgmr.msrb.gmra.mxu3 %v4587_v12  ;;  %v13419_v14 = vld [vmem:[#allocation3 + $0x538] sm:$0xf0] }
 0x3ee   : > { %5030 = vmatpush.bf16.msra.mxu2 %v13378_v19  ;;  %5043 = vmatpush.bf16.msra.mxu3 %v13382_v55  ;;  %v13281_v19 = vld [vmem:[#allocation3 + $0x420] sm:$0xf]  ;;  %v16538_v55 = vld [vmem:[#allocation3 + $0x42c] sm:$0xf0] }
 0x3ef   : > { %5056 = vmatpush.bf16.msrb.mxu0 %v13386_v56  ;;  %5069 = vmatpush.bf16.msra.mxu1 %v13390_v3  ;;  %v16536_v56 = vld [vmem:[#allocation3 + $0x424] sm:$0xf]  ;;  %v13283_v3 = vld [vmem:[#allocation3 + $0x430] sm:$0xf0]  ;;  %v13282_v52 = vor.u32 %v16538_v55, %v13281_v19  ;;  %v16582_v19 = vld [vmem:[#allocation3 + $0x58c] sm:$0xf0]  ;;  %v13482_v55 = vor.u32 %v16587_v21, %v13481_v31 }
 0x3f0   : > { %4814 = vmatmul.bf16.vlgmr.msra.gmra.mxu0 %v4587_v12  ;;  %4827 = vmatmul.bf16.vlgmr.msrb.gmra.mxu1 %v4587_v12  ;;  %v13286_v12 = vor.u32 %v16536_v56, %v13283_v3  ;;  %v13459_v56 = vld [vmem:[#allocation3 + $0x590] sm:$0xf0]  ;;  %v13465_v3 = vld [vmem:[#allocation3 + $0x588] sm:$0xf]  ;;  %v13403_v31 = vld [vmem:[#allocation3 + $0x518] sm:$0xf0] }
 0x3f2   : > { %5031 = vmatpush.bf16.msra.mxu2 %v13362_v36  ;;  %5044 = vmatpush.bf16.msra.mxu3 %v13366_v23  ;;  %v16534_v36 = vld [vmem:[#allocation3 + $0x40c] sm:$0xf0]  ;;  %v16532_v23 = vld [vmem:[#allocation3 + $0x404] sm:$0xf] }
 0x3f3   : > { %5057 = vmatpush.bf16.msrb.mxu0 %v13370_v24  ;;  %5070 = vmatpush.bf16.msra.mxu1 %v13374_v10  ;;  %v13294_v24 = vor.u32 %v16537_v45, %v13291_v2  ;;  %v13273_v10 = vld [vmem:[#allocation3 + $0x408] sm:$0xf]  ;;  %v13266_v62 = vor.u32 %v16534_v36, %v13265_v58  ;;  %v13270_v63 = vor.u32 %v16532_v23, %v13267_v26  ;;  %v13467_v45 = vld [vmem:[#allocation3 + $0x598] sm:$0xf0]  ;;  %v16576_v26 = vld [vmem:[#allocation3 + $0x564] sm:$0xf] }
 0x3f4   : > { %v13274_v9 = vor.u32 %v16535_v61, %v13273_v10  ;;  %v13466_v36 = vor.u32 %v16583_v57, %v13465_v3  ;;  %v13470_v23 = vor.u32 %v16581_v59, %v13467_v45  ;;  %v16579_v10 = vld [vmem:[#allocation3 + $0x574] sm:$0xf0]  ;;  %v16577_v61 = vld [vmem:[#allocation3 + $0x56c] sm:$0xf] }
 0x3f6   : > { %5032 = vmatpush.bf16.msra.mxu2 %v13346_v37  ;;  %5045 = vmatpush.bf16.msra.mxu3 %v13350_v48  ;;  %v13507_v37 = vld [vmem:[#allocation3 + $0x5f0] sm:$0xf0]  ;;  %v13513_v48 = vld [vmem:[#allocation3 + $0x5e8] sm:$0xf] }
 0x3f7   : > { %5058 = vmatpush.bf16.msrb.mxu0 %v13354_v39  ;;  %5071 = vmatpush.bf16.msra.mxu1 %v13358_v20  ;;  %v16595_v39 = vld [vmem:[#allocation3 + $0x5f4] sm:$0xf0]  ;;  %v16593_v20 = vld [vmem:[#allocation3 + $0x5ec] sm:$0xf]  ;;  %v13510_v35 = vor.u32 %v16592_v33, %v13507_v37  ;;  %v16574_v33 = vld [vmem:[#allocation3 + $0x54c] sm:$0xf0] }
 0x3f8   : > { %v13514_v7 = vor.u32 %v16595_v39, %v13513_v48  ;;  %v13518_v8 = vor.u32 %v16593_v20, %v13515_v16  ;;  %v13454_v48 = vor.u32 %v16577_v61, %v13451_v4  ;;  %v13433_v39 = vld [vmem:[#allocation3 + $0x548] sm:$0xf]  ;;  %v16575_v20 = vld [vmem:[#allocation3 + $0x554] sm:$0xf0]  ;;  %v16573_v16 = vld [vmem:[#allocation3 + $0x54c] sm:$0xf] }
 0x3fa   : > { %5033 = vmatpush.bf16.msra.mxu2 %v13330_v29  ;;  %5046 = vmatpush.bf16.msra.mxu3 %v13334_v11  ;;  %v13489_v29 = vld [vmem:[#allocation3 + $0x5c0] sm:$0xf]  ;;  %v16590_v11 = vld [vmem:[#allocation3 + $0x5cc] sm:$0xf0] }
 0x3fb   : > { %5059 = vmatpush.bf16.msrb.mxu0 %v13338_v50  ;;  %5072 = vmatpush.bf16.msra.mxu1 %v13342_v53  ;;  %v16588_v50 = vld [vmem:[#allocation3 + $0x5c4] sm:$0xf]  ;;  %v13491_v53 = vld [vmem:[#allocation3 + $0x5d0] sm:$0xf0]  ;;  %v13490_v15 = vor.u32 %v16590_v11, %v13489_v29  ;;  %v13434_v29 = vor.u32 %v16575_v20, %v13433_v39 }
 0x3fe   : > { %5034 = vmatpush.bf16.msra.mxu2 %v13314_v17  ;;  %5047 = vmatpush.bf16.msra.mxu3 %v13318_v60  ;;  %v13494_v17 = vor.u32 %v16588_v50, %v13491_v53  ;;  %v13473_v60 = vld [vmem:[#allocation3 + $0x5a0] sm:$0xf]  ;;  %v13417_v50 = vld [vmem:[#allocation3 + $0x528] sm:$0xf]  ;;  %v16571_v53 = vld [vmem:[#allocation3 + $0x534] sm:$0xf0] }
 0x3ff   : > { %5060 = vmatpush.bf16.msrb.mxu0 %v13322_v5  ;;  %5073 = vmatpush.bf16.msra.mxu1 %v13326_v6  ;;  %v13502_v5 = vor.u32 %v16589_v13, %v13499_v41  ;;  %v16584_v6 = vld [vmem:[#allocation3 + $0x5a4] sm:$0xf]  ;;  %v13474_v51 = vor.u32 %v16586_v27, %v13473_v60  ;;  %v13422_v60 = vor.u32 %v16569_v30, %v13419_v14  ;;  %v16602_v14 = vld [vmem:[#allocation6 + $0x30] sm:$0xff] }
 0x400   : > { %v16564_v27 = vld [vmem:[#allocation3 + $0x504] sm:$0xf] }
 0x402   : > { %5035 = vmatpush.bf16.msra.mxu2 %v13298_v54  ;;  %5048 = vmatpush.bf16.msra.mxu3 %v13302_v18  ;;  %v13478_v54 = vor.u32 %v16584_v6, %v13475_v28  ;;  %v13457_v18 = vld [vmem:[#allocation3 + $0x580] sm:$0xf]  ;;  %v16567_v6 = vld [vmem:[#allocation3 + $0x514] sm:$0xf0]  ;;  %v16565_v28 = vld [vmem:[#allocation3 + $0x50c] sm:$0xf] }
 0x403   : > { %5061 = vmatpush.bf16.msrb.mxu0 %v13306_v32  ;;  %5074 = vmatpush.bf16.msra.mxu1 %v13310_v49  ;;  %v13486_v32 = vor.u32 %v16585_v44, %v13483_v47  ;;  %v16580_v49 = vld [vmem:[#allocation3 + $0x584] sm:$0xf]  ;;  %v13458_v2 = vor.u32 %v16582_v19, %v13457_v18 }
 0x404   : > { %v13462_v58 = vor.u32 %v16580_v49, %v13459_v56 }
 0x406   : > { %5036 = vmatpush.bf16.msra.mxu2 %v13282_v52  ;;  %5049 = vmatpush.bf16.msra.mxu3 %v13286_v12  ;;  %v13441_v52 = vld [vmem:[#allocation3 + $0x560] sm:$0xf]  ;;  %v16578_v12 = vld [vmem:[#allocation3 + $0x56c] sm:$0xf0] }
 0x407   : > { %5062 = vmatpush.bf16.msrb.mxu0 %v13290_v1  ;;  %5075 = vmatpush.bf16.msra.mxu1 %v13294_v24  ;;  %v13443_v1 = vld [vmem:[#allocation3 + $0x570] sm:$0xf0]  ;;  %v13449_v24 = vld [vmem:[#allocation3 + $0x568] sm:$0xf]  ;;  %v13442_v38 = vor.u32 %v16578_v12, %v13441_v52 }
 0x408   : > { %v13446_v34 = vor.u32 %v16576_v26, %v13443_v1  ;;  %v13450_v37 = vor.u32 %v16579_v10, %v13449_v24 }
 0x40a   : > { %5037 = vmatpush.bf16.msra.mxu2 %v13266_v62  ;;  %5050 = vmatpush.bf16.msra.mxu3 %v13270_v63  ;;  %v16572_v62 = vld [vmem:[#allocation3 + $0x544] sm:$0xf]  ;;  %v13427_v63 = vld [vmem:[#allocation3 + $0x550] sm:$0xf0] }
 0x40b   : > { %5063 = vmatpush.bf16.msrb.mxu0 %v13274_v9  ;;  %5076 = vmatpush.bf16.msra.mxu1 %v13278_v25  ;;  %v13435_v9 = vld [vmem:[#allocation3 + $0x558] sm:$0xf0]  ;;  %v13426_v25 = vor.u32 %v16574_v33, %v13425_v46  ;;  %v13430_v43 = vor.u32 %v16572_v62, %v13427_v63 }
 0x40c   : > { %v13438_v11 = vor.u32 %v16573_v16, %v13435_v9 }
 0x40d   : > { %5038 = vmatmul.bf16.vlgmr.msra.gmra.mxu2 %v4837_v22  ;;  %5051 = vmatmul.bf16.vlgmr.msra.gmra.mxu3 %v4837_v22 }
 0x40e   : > { %5280 = vmatpush.bf16.msrb.mxu2 %v13506_v0  ;;  %5293 = vmatpush.bf16.msrb.mxu3 %v13510_v35  ;;  %v13409_v0 = vld [vmem:[#allocation3 + $0x520] sm:$0xf]  ;;  %v16570_v35 = vld [vmem:[#allocation3 + $0x52c] sm:$0xf0] }
 0x40f   : > { %5306 = vmatpush.bf16.msra.mxu0 %v13514_v7  ;;  %5319 = vmatpush.bf16.msrb.mxu1 %v13518_v8  ;;  %v16568_v7 = vld [vmem:[#allocation3 + $0x524] sm:$0xf]  ;;  %v13411_v8 = vld [vmem:[#allocation3 + $0x530] sm:$0xf0]  ;;  %v13410_v13 = vor.u32 %v16570_v35, %v13409_v0 }
 0x410   : > { %5064 = vmatmul.bf16.vlgmr.msrb.gmra.mxu0 %v4837_v22  ;;  %5077 = vmatmul.bf16.vlgmr.msra.gmra.mxu1 %v4837_v22  ;;  %v13414_v41 = vor.u32 %v16568_v7, %v13411_v8  ;;  %v13393_v22 = vld [vmem:[#allocation3 + $0x500] sm:$0xf]  ;;  %v16611_v7 = vld [vmem:[#allocation6 + $0x78] sm:$0xff] }
 0x411   : > { %v16619_v8 = vld [vmem:[#allocation6 + $0xb8] sm:$0xff] }
 0x412   : > { %5281 = vmatpush.bf16.msrb.mxu2 %v13490_v15  ;;  %5294 = vmatpush.bf16.msrb.mxu3 %v13494_v17  ;;  %v16566_v15 = vld [vmem:[#allocation3 + $0x50c] sm:$0xf0]  ;;  %v13418_v17 = vor.u32 %v16571_v53, %v13417_v50  ;;  %v16627_v50 = vld [vmem:[#allocation6 + $0xf8] sm:$0xff] }
 0x413   : > { %5307 = vmatpush.bf16.msra.mxu0 %v13498_v40  ;;  %5320 = vmatpush.bf16.msrb.mxu1 %v13502_v5  ;;  %v13395_v40 = vld [vmem:[#allocation3 + $0x510] sm:$0xf0]  ;;  %v13401_v5 = vld [vmem:[#allocation3 + $0x508] sm:$0xf]  ;;  %v13394_v21 = vor.u32 %v16566_v15, %v13393_v22  ;;  %v16600_v15 = vld [vmem:[#allocation6 + $0x20] sm:$0xff] }
 0x414   : > { %v13398_v44 = vor.u32 %v16564_v27, %v13395_v40  ;;  %v13402_v47 = vor.u32 %v16567_v6, %v13401_v5  ;;  %v16601_v22 = vld [vmem:[#allocation6 + $0x28] sm:$0xff]  ;;  %v16599_v6 = vld [vmem:[#allocation6 + $0x18] sm:$0xff] }
 0x415   : > { %v16617_v27 = vld [vmem:[#allocation6 + $0xa8] sm:$0xff] }
 0x416   : > { %5282 = vmatpush.bf16.msrb.mxu2 %v13474_v51  ;;  %5295 = vmatpush.bf16.msrb.mxu3 %v13478_v54  ;;  %v13406_v51 = vor.u32 %v16565_v28, %v13403_v31  ;;  %v5086_v54 = vld [vmem:[#allocation2 + $0x5] ss:$2 sm:$0xf]  ;;  %v16625_v28 = vld [vmem:[#allocation6 + $0xe8] sm:$0xff]  ;;  %v16608_v31 = vld [vmem:[#allocation6 + $0x60] sm:$0xff] }
 0x417   : > { %5308 = vmatpush.bf16.msra.mxu0 %v13482_v55  ;;  %5321 = vmatpush.bf16.msrb.mxu1 %v13486_v32  ;;  %v5087_v18 = vpack.c.bf16 %v5086_v54, %v5086_v54 }
 0x41a   : > { %5283 = vmatpush.bf16.msrb.mxu2 %v13458_v2  ;;  %5296 = vmatpush.bf16.msrb.mxu3 %v13462_v58 }
 0x41b   : > { %5309 = vmatpush.bf16.msra.mxu0 %v13466_v36  ;;  %5322 = vmatpush.bf16.msrb.mxu1 %v13470_v23 }
 0x41e   : > { %5284 = vmatpush.bf16.msrb.mxu2 %v13442_v38  ;;  %5297 = vmatpush.bf16.msrb.mxu3 %v13446_v34 }
 0x41f   : > { %5310 = vmatpush.bf16.msra.mxu0 %v13450_v37  ;;  %5323 = vmatpush.bf16.msrb.mxu1 %v13454_v48 }
 0x422   : > { %5285 = vmatpush.bf16.msrb.mxu2 %v13426_v25  ;;  %5298 = vmatpush.bf16.msrb.mxu3 %v13430_v43 }
 0x423   : > { %5311 = vmatpush.bf16.msra.mxu0 %v13434_v29  ;;  %5324 = vmatpush.bf16.msrb.mxu1 %v13438_v11  ;;  %v16603_v11 = vld [vmem:[#allocation6 + $0x38] sm:$0xff] }
 0x426   : > { %5286 = vmatpush.bf16.msrb.mxu2 %v13410_v13  ;;  %5299 = vmatpush.bf16.msrb.mxu3 %v13414_v41  ;;  %v16610_v13 = vld [vmem:[#allocation6 + $0x70] sm:$0xff] }
 0x427   : > { %5312 = vmatpush.bf16.msra.mxu0 %v13418_v17  ;;  %5325 = vmatpush.bf16.msrb.mxu1 %v13422_v60  ;;  %v16618_v41 = vld [vmem:[#allocation6 + $0xb0] sm:$0xff]  ;;  %v16609_v60 = vld [vmem:[#allocation6 + $0x68] sm:$0xff] }
 0x428   : > { %v16626_v17 = vld [vmem:[#allocation6 + $0xf0] sm:$0xff] }
 0x42a   : > { %5287 = vmatpush.bf16.msrb.mxu2 %v13394_v21  ;;  %5300 = vmatpush.bf16.msrb.mxu3 %v13398_v44  ;;  %v4107_v19 = vpop.f32.mrf.mxu0  ;;  %v4120_v55 = vpop.f32.mrf.mxu1  ;;  %v16616_v21 = vld [vmem:[#allocation6 + $0xa0] sm:$0xff]  ;;  %v16598_v44 = vld [vmem:[#allocation6 + $0x10] sm:$0xff] }
 0x42b   : > { %5313 = vmatpush.bf16.msra.mxu0 %v13402_v47  ;;  %5326 = vmatpush.bf16.msrb.mxu1 %v13406_v51  ;;  %v16624_v47 = vld [vmem:[#allocation6 + $0xe0] sm:$0xff] }
 0x42d   : > { %5288 = vmatmul.bf16.vlgmr.msrb.gmra.mxu2 %v5087_v18  ;;  %5301 = vmatmul.bf16.vlgmr.msrb.gmra.mxu3 %v5087_v18 }
 0x42e   : > { %5314 = vmatmul.bf16.vlgmr.msra.gmra.mxu0 %v5087_v18  ;;  %5327 = vmatmul.bf16.vlgmr.msrb.gmra.mxu1 %v5087_v18  ;;  %v16607_v18 = vld [vmem:[#allocation6 + $0x58] sm:$0xff] }
 0x42f   : > { %v4081_v32 = vpop.f32.mrf.mxu2  ;;  %v4094_v49 = vpop.f32.mrf.mxu3  ;;  %5494 = vmatpush.bf16.msra.mxu3 %v16603_v11  ;;  %5433 = vmatpush.bf16.msra.mxu2 %v16611_v7 }
 0x430   : > { %5573 = vmatpush.bf16.msrb.mxu0 %v16619_v8  ;;  %5653 = vmatpush.bf16.msra.mxu1 %v16627_v50 }
 0x432   : > { %v4109_v56 = vpop.f32.mrf.mxu0  ;;  %v4122_v3 = vpop.f32.mrf.mxu1 }
 0x433   : > { %5495 = vmatpush.bf16.msra.mxu3 %v16602_v14  ;;  %5434 = vmatpush.bf16.msra.mxu2 %v16610_v13  ;;  %v16623_v56 = vld [vmem:[#allocation6 + $0xd8] sm:$0xff]  ;;  %v16606_v3 = vld [vmem:[#allocation6 + $0x50] sm:$0xff] }
 0x434   : > { %5574 = vmatpush.bf16.msrb.mxu0 %v16618_v41  ;;  %5654 = vmatpush.bf16.msra.mxu1 %v16626_v17  ;;  %v16644_v41 = vld [vmem:[%s19790_s1 + $0x44] sm:$0xf] }
 0x437   : > { %v4083_v57 = vpop.f32.mrf.mxu2  ;;  %v4096_v59 = vpop.f32.mrf.mxu3  ;;  %5496 = vmatpush.bf16.msra.mxu3 %v16601_v22  ;;  %5435 = vmatpush.bf16.msra.mxu2 %v16609_v60  ;;  %v13695_v22 = vld [vmem:[%s19790_s1 + $0x50] sm:$0xf0] }
 0x438   : > { %5575 = vmatpush.bf16.msrb.mxu0 %v16617_v27  ;;  %5655 = vmatpush.bf16.msra.mxu1 %v16625_v28  ;;  %v16614_v57 = vld [vmem:[#allocation6 + $0x90] sm:$0xff]  ;;  %v16596_v59 = vld [vmem:[#allocation6] sm:$0xff]  ;;  %v13698_v60 = vor.u32 %v16644_v41, %v13695_v22 }
 0x43a   : > { %v4319_v45 = vpop.f32.mrf.mxu0  ;;  %v4332_v2 = vpop.f32.mrf.mxu1 }
 0x43b   : > { %v4320_v58 = vadd.f32 %v4319_v45, %v4107_v19  ;;  %v4333_v52 = vadd.f32 %v4332_v2, %v4120_v55  ;;  %5497 = vmatpush.bf16.msra.mxu3 %v16600_v15  ;;  %5436 = vmatpush.bf16.msra.mxu2 %v16608_v31  ;;  %v16615_v19 = vld [vmem:[#allocation6 + $0x98] sm:$0xff]  ;;  %v16622_v45 = vld [vmem:[#allocation6 + $0xd0] sm:$0xff] }
 0x43c   : > { %5576 = vmatpush.bf16.msrb.mxu0 %v16616_v21  ;;  %5656 = vmatpush.bf16.msra.mxu1 %v16624_v47  ;;  %v13701_v15 = vld [vmem:[%s19790_s1 + $0x48] sm:$0xf]  ;;  %v17263_v31 = vld [vmem:[%s19793_s4] ss:$0 sm:$0xff] }
 0x43f   : > { %v4293_v12 = vpop.f32.mrf.mxu2  ;;  %v4306_v36 = vpop.f32.mrf.mxu3  ;;  %5498 = vmatpush.bf16.msra.mxu3 %v16599_v6  ;;  %5437 = vmatpush.bf16.msra.mxu2 %v16607_v18 }
 0x440   : > { %v4294_v23 = vadd.f32 %v4293_v12, %v4081_v32  ;;  %v4307_v26 = vadd.f32 %v4306_v36, %v4094_v49  ;;  %5577 = vmatpush.bf16.msrb.mxu0 %v16615_v19  ;;  %v16597_v49 = vld [vmem:[#allocation6 + $0x8] sm:$0xff]  ;;  %5657 = vmatpush.bf16.msra.mxu1 %v16623_v56  ;;  %v13745_v56 = vld [vmem:[%s19790_s1 + $0x20] sm:$0xf] }
 0x441   : > { %v16613_v12 = vld [vmem:[#allocation6 + $0x88] sm:$0xff] }
 0x442   : > { %v4321_v1 = vpop.f32.mrf.mxu0  ;;  %v4334_v24 = vpop.f32.mrf.mxu1  ;;  %v16621_v36 = vld [vmem:[#allocation6 + $0xc8] sm:$0xff] }
 0x443   : > { %5499 = vmatpush.bf16.msra.mxu3 %v16598_v44  ;;  %5438 = vmatpush.bf16.msra.mxu2 %v16606_v3  ;;  %v16620_v1 = vld [vmem:[#allocation6 + $0xc0] sm:$0xff]  ;;  %v13709_v24 = vld [vmem:[%s19790_s1 + $0x60] sm:$0xf] }
 0x444   : > { %5578 = vmatpush.bf16.msrb.mxu0 %v16614_v57  ;;  %5658 = vmatpush.bf16.msra.mxu1 %v16622_v45  ;;  %v16642_v3 = vld [vmem:[%s19790_s1 + $0x2c] sm:$0x30]  ;;  %v16645_v45 = vld [vmem:[%s19790_s1 + $0x4c] sm:$0xf] }
 0x447   : > { %v4295_v10 = vpop.f32.mrf.mxu2  ;;  %v4308_v61 = vpop.f32.mrf.mxu3  ;;  %5500 = vmatpush.bf16.msra.mxu3 %v16597_v49 }
 0x448   : > { %5579 = vmatpush.bf16.msrb.mxu0 %v16613_v12  ;;  %5659 = vmatpush.bf16.msra.mxu1 %v16621_v36  ;;  %v16650_v10 = vld [vmem:[%s19790_s1 + $0x6c] sm:$0x30]  ;;  %v13693_v61 = vld [vmem:[%s19790_s1 + $0x40] sm:$0xf]  ;;  %v13747_v12 = vld [vmem:[%s19790_s1 + $0x30] sm:$0x30] }
 0x44b   : > { %5501 = vmatpush.bf16.msra.mxu3 %v16596_v59 }
 0x44c   : > { %5660 = vmatpush.bf16.msra.mxu1 %v16620_v1 }
 0x44d   : > { %v4565_v4 = vpop.f32.mrf.mxu0  ;;  %v4578_v38 = vpop.f32.mrf.mxu1 }
 0x44e   : > { %v18594_v34 = vadd.f32 %v4565_v4, %v4320_v58  ;;  %v18596_v46 = vadd.f32 %v4578_v38, %v4333_v52  ;;  %v16605_v52 = vld [vmem:[#allocation6 + $0x48] sm:$0xff]  ;;  %v13710_v4 = vor.u32 %v16650_v10, %v13709_v24  ;;  %v16646_v38 = vld [vmem:[%s19790_s1 + $0x4c] sm:$0xf0] }
 0x44f   : > { %5439 = vmatpush.bf16.msra.mxu2 %v16605_v52  ;;  %v13694_v7 = vor.u32 %v16646_v38, %v13693_v61  ;;  %v16640_v52 = vld [vmem:[%s19790_s1 + $0x24] sm:$0xf]  ;;  %v16638_v38 = vld [vmem:[%s19790_s1 + $0xc] sm:$0xf0] }
 0x450   : > { %v4539_v33 = vpop.f32.mrf.mxu2  ;;  %v4552_v37 = vpop.f32.mrf.mxu3  ;;  %v13750_v1 = vor.u32 %v16640_v52, %v13747_v12  ;;  %v16665_v12 = vld [vmem:[%s19790_s1 + $0xec] sm:$0xf] }
 0x451   : > { %v18598_v48 = vadd.f32 %v4539_v33, %v4294_v23  ;;  %v18600_v62 = vadd.f32 %v4552_v37, %v4307_v26  ;;  %v16604_v23 = vld [vmem:[#allocation6 + $0x40] sm:$0xff]  ;;  %v16648_v33 = vld [vmem:[%s19790_s1 + $0x64] sm:$0xf] }
 0x452   : > { %v16612_v26 = vld [vmem:[#allocation6 + $0x80] sm:$0xff] }
 0x453   : > { %5440 = vmatpush.bf16.msra.mxu2 %v16604_v23  ;;  %5580 = vmatpush.bf16.msrb.mxu0 %v16612_v26  ;;  %v13711_v37 = vld [vmem:[%s19790_s1 + $0x70] sm:$0x30] }
 0x455   : > { %v4567_v63 = vpop.f32.mrf.mxu0  ;;  %v4580_v39 = vpop.f32.mrf.mxu1 }
 0x456   : > { %v13714_v63 = vor.u32 %v16648_v33, %v13711_v37  ;;  %v13717_v39 = vld [vmem:[%s19790_s1 + $0x68] sm:$0xf]  ;;  %v5937_v37 = vsel %vm437_vm0, %v13750_v1, 0  ;;  %v13764_v1 = vld [vmem:[%s17587_s25 + $0x52] ss:$2 sm:$0xf] }
 0x458   : > { %v4541_v20 = vpop.f32.mrf.mxu2  ;;  %v4554_v16 = vpop.f32.mrf.mxu3  ;;  %v5830_v8 = vsel %vm437_vm0, %v13714_v63, 0  ;;  %v16636_v63 = vld [vmem:[%s19790_s1 + $0x4] sm:$0xf] }
 0x459   : > { %v16651_v20 = vld [vmem:[%s19790_s1 + $0x74] sm:$0x30]  ;;  %5858 = vmatpush.bf16.msra.mxu0 %v5830_v8 }
 0x45a   : > { %v13718_v11 = vor.u32 %v16651_v20, %v13717_v39  ;;  %v13731_v39 = vld [vmem:[%s19790_s1 + $0x10] sm:$0xf0] }
 0x45d   : > { %5859 = vmatpush.bf16.msra.mxu0 %v13698_v60  ;;  %v16654_v60 = vld [vmem:[%s19790_s1 + $0x8c] sm:$0xf0] }
 0x46d   : > { %v18602_v9 = vpop.f32.mrf.mxu0  ;;  %v18604_v25 = vpop.f32.mrf.mxu1 }
 0x46e   : > { %v4834_v16 = vadd.f32 %v18602_v9, %v18594_v34 }
 0x470   : > { %v18606_v43 = vpop.f32.mrf.mxu2  ;;  %v18608_v0 = vpop.f32.mrf.mxu3 }
 0x475   : > { %v4817_v35 = vpop.f32.mrf.mxu0  ;;  %v4830_v29 = vpop.f32.mrf.mxu1 }
 0x476   : > { %v4835_v35 = vadd.f32 %v18604_v25, %v18596_v46  ;;  %v5827_v29 = vsel %vm437_vm0, %v13710_v4, 0  ;;  %v4832_v46 = vadd.f32 %v18606_v43, %v18598_v48  ;;  %v4833_v25 = vadd.f32 %v18608_v0, %v18600_v62  ;;  %v16647_v48 = vld [vmem:[%s19790_s1 + $0x54] sm:$0xf0]  ;;  %v13729_v4 = vld [vmem:[%s19790_s1] sm:$0xf] }
 0x477   : > { %5844 = vmatpush.bf16.msrb.mxu3 %v5827_v29  ;;  %v13702_v0 = vor.u32 %v16647_v48, %v13701_v15  ;;  %v13730_v20 = vor.u32 %v16638_v38, %v13729_v4  ;;  %v13681_v29 = vld [vmem:[%s17587_s25 + $0x41] ss:$2 sm:$0xff]  ;;  %v13831_v38 = vld [vmem:[%s19790_s1 + $0xd8] sm:$0xf0] }
 0x478   : > { %v4791_v53 = vpop.f32.mrf.mxu2  ;;  %v4804_v30 = vpop.f32.mrf.mxu3  ;;  %v16661_v4 = vld [vmem:[%s19790_s1 + $0xcc] sm:$0xf] }
 0x479   : > { %v5833_v30 = vsel %vm437_vm0, %v13718_v11, 0  ;;  %v13682_v11 = vld [vmem:[%s17587_s25 + $0x51] ss:$2 sm:$0xf] }
 0x47a   : > { %5872 = vmatpush.bf16.msrb.mxu1 %v5833_v30  ;;  %v16658_v30 = vld [vmem:[%s19790_s1 + $0xac] sm:$0x30] }
 0x47b   : > { %5845 = vmatpush.bf16.msrb.mxu3 %v13694_v7  ;;  %v13734_v7 = vor.u32 %v16636_v63, %v13731_v39  ;;  %v13885_v63 = vld [vmem:[%s19790_s1 + $0x130] sm:$0x30] }
 0x47e   : > { %5873 = vmatpush.bf16.msrb.mxu1 %v13702_v0 }
 0x48d   : > { %v18610_v40 = vpop.f32.mrf.mxu0  ;;  %v18612_v5 = vpop.f32.mrf.mxu1 }
 0x48e   : > { %v5084_v50 = vadd.f32 %v18610_v40, %v4834_v16  ;;  %v5085_v53 = vadd.f32 %v18612_v5, %v4835_v35  ;;  %v16641_v16 = vld [vmem:[%s19790_s1 + $0x2c] sm:$0xf]  ;;  %v13755_v35 = vld [vmem:[%s19790_s1 + $0x38] sm:$0x30] }
 0x48f   : > { %v13758_v8 = vor.u32 %v16641_v16, %v13755_v35  ;;  %v13834_v16 = vor.u32 %v16661_v4, %v13831_v38  ;;  %v13753_v4 = vld [vmem:[%s19790_s1 + $0x28] sm:$0xf]  ;;  %v16643_v38 = vld [vmem:[%s19790_s1 + $0x34] sm:$0x30] }
 0x490   : > { %v18614_v51 = vpop.f32.mrf.mxu2  ;;  %v18616_v54 = vpop.f32.mrf.mxu3 }
 0x491   : > { %v5082_v62 = vadd.f32 %v18614_v51, %v4832_v46  ;;  %v5083_v43 = vadd.f32 %v18616_v54, %v4833_v25  ;;  %v16649_v51 = vld [vmem:[%s19790_s1 + $0x6c] sm:$0xf]  ;;  %v13719_v54 = vld [vmem:[%s19790_s1 + $0x78] sm:$0x30]  ;;  %v13793_v46 = vld [vmem:[%s19790_s1 + $0xb0] sm:$0x30] }
 0x492   : > { %v13722_v19 = vor.u32 %v16649_v51, %v13719_v54  ;;  %v13785_v51 = vld [vmem:[%s19790_s1 + $0x98] sm:$0xf0]  ;;  %v13679_v54 = vld [vmem:[%s17587_s25 + $0x40] ss:$2 sm:$0xff] }
 0x494   : > { %v5836_v59 = vsel %vm437_vm0, %v13722_v19, 0  ;;  %v13839_v19 = vld [vmem:[%s19790_s1 + $0xf0] sm:$0x30] }
 0x495   : > { %v5067_v55 = vpop.f32.mrf.mxu0  ;;  %v5080_v32 = vpop.f32.mrf.mxu1 }
 0x498   : > { %v5041_v2 = vpop.f32.mrf.mxu2  ;;  %v5054_v58 = vpop.f32.mrf.mxu3 }
 0x499   : > { %v13703_v2 = vld [vmem:[%s19790_s1 + $0x58] sm:$0xf0]  ;;  %v13746_v58 = vor.u32 %v16642_v3, %v13745_v56 }
 0x49a   : > { %v13706_v23 = vor.u32 %v16645_v45, %v13703_v2  ;;  %v16660_v2 = vld [vmem:[%s19790_s1 + $0xc4] sm:$0xf] }
 0x49b   : > { %v5934_v24 = vsel %vm437_vm0, %v13746_v58, 0  ;;  %v13823_v58 = vld [vmem:[%s19790_s1 + $0xd0] sm:$0xf0] }
 0x4ab   : > { %v5315_v14 = vpop.f32.mrf.mxu0  ;;  %v5328_v13 = vpop.f32.mrf.mxu1 }
 0x4ac   : > { %v5334_v34 = vadd.f32 %v5315_v14, %v5084_v50  ;;  %v5335_v9 = vadd.f32 %v5328_v13, %v5085_v53  ;;  %v5778_v50 = vpack.c.bf16 %v13682_v11, %v13681_v29  ;;  %v13791_v53 = vld [vmem:[%s19790_s1 + $0xa0] sm:$0xf]  ;;  %v5943_v14 = vsel %vm437_vm0, %v13758_v8, 0  ;;  %v16637_v13 = vld [vmem:[%s19790_s1 + $0xc] sm:$0xf]  ;;  %v16634_v11 = vld [vmem:[%s19796_s7 + $0x30] sm:$0xff] }
 0x4ad   : > { %v13792_v25 = vor.u32 %v16658_v30, %v13791_v53  ;;  %v13867_v8 = vld [vmem:[%s19790_s1 + $0x100] sm:$0xf]  ;;  %v16668_v30 = vld [vmem:[%s19790_s1 + $0x104] sm:$0xf] }
 0x4ae   : > { %v5337_v17 = vmax.f32 %v5334_v34, %v5335_v9  ;;  %v13739_v34 = vld [vmem:[%s19790_s1 + $0x18] sm:$0xf0]  ;;  %v16656_v9 = vld [vmem:[%s19790_s1 + $0xa4] sm:$0xf] }
 0x4af   : > { %v13742_v41 = vor.u32 %v16637_v13, %v13739_v34  ;;  %v13796_v22 = vor.u32 %v16656_v9, %v13793_v46  ;;  %v6054_v15 = vsel %vm437_vm0, %v13792_v25, 0  ;;  %v16633_v34 = vld [vmem:[%s19796_s7 + $0x28] sm:$0xff]  ;;  %v13893_v46 = vld [vmem:[%s19790_s1 + $0x138] sm:$0x30] }
 0x4b0   : > { %v5289_v27 = vpop.f32.mrf.mxu2  ;;  %v5302_v40 = vpop.f32.mrf.mxu3  ;;  %v16673_v9 = vld [vmem:[%s19790_s1 + $0x12c] sm:$0xf] }
 0x4b1   : > { %v5332_v5 = vadd.f32 %v5289_v27, %v5082_v62  ;;  %v5333_v6 = vadd.f32 %v5302_v40, %v5083_v43  ;;  %v6057_v48 = vsel %vm437_vm0, %v13796_v22, 0  ;;  %v16652_v62 = vld [vmem:[%s19790_s1 + $0x84] sm:$0xf]  ;;  %v13777_v43 = vld [vmem:[%s19790_s1 + $0x90] sm:$0xf0] }
 0x4b2   : > { %v16657_v27 = vld [vmem:[%s19790_s1 + $0xac] sm:$0xf]  ;;  %v13801_v40 = vld [vmem:[%s19790_s1 + $0xb8] sm:$0x30] }
 0x4b3   : > { %v5336_v28 = vmax.f32 %v5332_v5, %v5333_v6  ;;  %v5317_v21 = vpop.f32.mrf.mxu0  ;;  %v5330_v44 = vpop.f32.mrf.mxu1  ;;  %v13780_v5 = vor.u32 %v16652_v62, %v13777_v43  ;;  %v13804_v6 = vor.u32 %v16657_v27, %v13801_v40  ;;  %v13856_v62 = vld [vmem:[%s17587_s25 + $0x54] ss:$2 sm:$0xf]  ;;  %v13877_v27 = vld [vmem:[%s19790_s1 + $0x118] sm:$0xf0]  ;;  %v16632_v40 = vld [vmem:[%s19796_s7 + $0x20] sm:$0xff] }
 0x4b4   : > { %v16666_v21 = vld [vmem:[%s19790_s1 + $0xec] sm:$0x30] }
 0x4b5   : > { %v5338_v47 = vmax.f32 %v5336_v28, %v5337_v17  ;;  %v13775_v17 = vld [vmem:[%s19790_s1 + $0x80] sm:$0xf]  ;;  %v13680_v28 = vld [vmem:[%s17587_s25 + $0x50] ss:$2 sm:$0xf]  ;;  %v6063_v44 = vsel %vm437_vm0, %v13804_v6, 0 }
 0x4b6   : > { %v13776_v0 = vor.u32 %v16654_v60, %v13775_v17  ;;  %v13810_v17 = vld [vmem:[%s17587_s25 + $0x53] ss:$2 sm:$0xf]  ;;  %v13929_v6 = vld [vmem:[%s19790_s1 + $0x160] sm:$0xf] }
 0x4b7   : > { %v5343_v18 = vadd.f32 %v17263_v31, %v5338_v47  ;;  %v13837_v31 = vld [vmem:[%s19790_s1 + $0xe0] sm:$0xf]  ;;  %v16653_v47 = vld [vmem:[%s19790_s1 + $0x8c] sm:$0xf] }
 0x4b8   : > { %v5291_v55 = vpop.f32.mrf.mxu2  ;;  %v5304_v32 = vpop.f32.mrf.mxu3 }
 0x4b9   : > { %v5344_v49 = vmax.f32 %v5343_v18, 0.0  ;;  %v16664_v18 = vld [vmem:[%s19790_s1 + $0xe4] sm:$0xf]  ;;  %v13838_v55 = vor.u32 %v16666_v21, %v13837_v31  ;;  %v13788_v32 = vor.u32 %v16653_v47, %v13785_v51  ;;  %v16631_v51 = vld [vmem:[%s19796_s7 + $0x18] sm:$0xff] }
 0x4ba   : > { %v13842_v56 = vor.u32 %v16664_v18, %v13839_v19  ;;  %v16680_v21 = vld [vmem:[%s19790_s1 + $0x164] sm:$0xf]  ;;  %v13913_v19 = vld [vmem:[%s19790_s1 + $0x140] sm:$0xf] }
 0x4bb   : > { %v5345_v57 = vpack.c.bf16 %v5344_v49, %v5344_v49  ;;  %v18783_v49 = vpack.c.bf16 %v13680_v28, %v13679_v54  ;;  %v6182_v3 = vsel %vm437_vm0, %v13838_v55, 0  ;;  %v16682_v28 = vld [vmem:[%s19790_s1 + $0x16c] sm:$0x30] }
 0x4bc   : > { %v6185_v45 = vsel %vm437_vm0, %v13842_v56, 0  ;;  %v13930_v31 = vor.u32 %v16682_v28, %v13929_v6  ;;  %v16678_v55 = vld [vmem:[%s19790_s1 + $0x14c] sm:$0xf0]  ;;  %v13845_v6 = vld [vmem:[%s19790_s1 + $0xe8] sm:$0xf] }
 0x4bd   : > { %v5379_v36 = vunpack.c.l.b16 %v5345_v57  ;;  %5502 = vmatmul.bf16.vlgmr.msra.gmra.mxu3 %v5345_v57  ;;  %v13821_v57 = vld [vmem:[%s19790_s1 + $0xc0] sm:$0xf]  ;;  %v13914_v56 = vor.u32 %v16678_v55, %v13913_v19  ;;  %v16667_v28 = vld [vmem:[%s19790_s1 + $0xf4] sm:$0x30] }
 0x4be   : > { %5886 = vmatpush.bf16.msra.mxu3 %v5836_v59  ;;  %v16662_v59 = vld [vmem:[%s19790_s1 + $0xcc] sm:$0xf0]  ;;  %v6438_v54 = vsel %vm437_vm0, %v13930_v31, 0 }
 0x4bf   : > { %v5380_v26 = vpack.c.b16 %v5379_v36, %v5379_v36  ;;  %v13822_v52 = vor.u32 %v16662_v59, %v13821_v57  ;;  %v13847_v36 = vld [vmem:[%s19790_s1 + $0xf8] sm:$0x30]  ;;  %v16630_v59 = vld [vmem:[%s19796_s7 + $0x10] sm:$0xff] }
 0x4c1   : > { %v5382_v10 = vshrl.u32 %v5380_v26, 16  ;;  %v5523_v61 = vrot.slane %v5380_v26, 1  ;;  %v13850_v26 = vor.u32 %v16665_v12, %v13847_v36  ;;  %v13939_v12 = vld [vmem:[%s19790_s1 + $0x178] sm:$0x30] }
 0x4c2   : > { %5887 = vmatpush.bf16.msra.mxu3 %v13706_v23  ;;  %v13826_v23 = vor.u32 %v16660_v2, %v13823_v58  ;;  %v13902_v2 = vld [vmem:[%s17587_s25 + $0x55] ss:$2 sm:$0xf] }
 0x4c3   : > { %5441 = vmatmul.bf16.vlgmr.msra.gmra.mxu2 %v5382_v10  ;;  %5581 = vmatmul.bf16.vlgmr.msrb.gmra.mxu0 %v5523_v61  ;;  %v5603_v33 = vrot.slane %v5382_v10, 1  ;;  %v16674_v10 = vld [vmem:[%s19790_s1 + $0x12c] sm:$0x30]  ;;  %v6191_v61 = vsel %vm437_vm0, %v13850_v26, 0 }
 0x4c4   : > { %5951 = vmatpush.bf16.msrb.mxu0 %v5934_v24  ;;  %v13883_v24 = vld [vmem:[%s19790_s1 + $0x120] sm:$0xf] }
 0x4c5   : > { %5661 = vmatmul.bf16.vlgmr.msra.gmra.mxu1 %v5603_v33  ;;  %v13763_v33 = vld [vmem:[%s17587_s25 + $0x42] ss:$2 sm:$0xff]  ;;  %v13884_v39 = vor.u32 %v16674_v10, %v13883_v24  ;;  %v13923_v24 = vld [vmem:[%s19790_s1 + $0x158] sm:$0xf0] }
 0x4c6   : > { %5965 = vmatpush.bf16.msra.mxu1 %v5937_v37  ;;  %v16672_v37 = vld [vmem:[%s19790_s1 + $0x124] sm:$0xf]  ;;  %v18835_v35 = vpack.c.bf16 %v13764_v1, %v13763_v33  ;;  %v16677_v1 = vld [vmem:[%s19790_s1 + $0x14c] sm:$0xf]  ;;  %v13754_v33 = vor.u32 %v16643_v38, %v13753_v4  ;;  %v16679_v4 = vld [vmem:[%s19790_s1 + $0x154] sm:$0xf0] }
 0x4c7   : > { %v13888_v29 = vor.u32 %v16672_v37, %v13885_v63  ;;  %v16628_v10 = vld [vmem:[%s19796_s7] sm:$0xff]  ;;  %v13737_v37 = vld [vmem:[%s19790_s1 + $0x8] sm:$0xf]  ;;  %v16639_v63 = vld [vmem:[%s19790_s1 + $0x14] sm:$0xf0] }
 0x4c8   : > { %5952 = vmatpush.bf16.msrb.mxu0 %v13730_v20  ;;  %v16635_v20 = vld [vmem:[%s19796_s7 + $0x38] sm:$0xff] }
 0x4c9   : > { %5736 = vmatpush.bf16.msrb.mxu2 %v16635_v20  ;;  %v6313_v53 = vsel %vm437_vm0, %v13888_v29, 0  ;;  %v13738_v20 = vor.u32 %v16639_v63, %v13737_v37 }
 0x4ca   : > { %5966 = vmatpush.bf16.msra.mxu1 %v13734_v7  ;;  %v6310_v7 = vsel %vm437_vm0, %v13884_v39, 0  ;;  %v5940_v39 = vsel %vm437_vm0, %v13754_v33, 0 }
 0x4cd   : > { %13723 = vmatmul.msk.bf16.vlgmr.msrb.gmra.mxu3 %vm433_vm1, %v5778_v50  ;;  %5737 = vmatpush.bf16.msrb.mxu2 %v16634_v11 }
 0x4ce   : > { %5993 = vmatpush.bf16.msrb.mxu3 %v5943_v14  ;;  %v13869_v14 = vld [vmem:[%s19790_s1 + $0x110] sm:$0xf0] }
 0x4cf   : > { %v13872_v25 = vor.u32 %v16668_v30, %v13869_v14  ;;  %v5667_v14 = vld [vmem:[%s19795_s6] sm:$0x1] }
 0x4d1   : > { %5738 = vmatpush.bf16.msrb.mxu2 %v16633_v34  ;;  %v13799_v34 = vld [vmem:[%s19790_s1 + $0xa8] sm:$0xf] }
 0x4d2   : > { %5994 = vmatpush.bf16.msrb.mxu3 %v13742_v41  ;;  %v13896_v41 = vor.u32 %v16673_v9, %v13893_v46  ;;  %v16659_v9 = vld [vmem:[%s19790_s1 + $0xb4] sm:$0x30] }
 0x4d3   : > { %13724 = vmatmul.msk.bf16.vlgmr.msra.gmra.mxu0 %vm433_vm1, %v5778_v50 }
 0x4d4   : > { %6071 = vmatpush.bf16.msra.mxu0 %v6054_v15  ;;  %v6319_v22 = vsel %vm437_vm0, %v13896_v41, 0  ;;  %v13809_v15 = vld [vmem:[%s17587_s25 + $0x43] ss:$2 sm:$0xff]  ;;  %v13800_v41 = vor.u32 %v16659_v9, %v13799_v34 }
 0x4d5   : > { %13725 = vmatmul.msk.bf16.vlgmr.msrb.gmra.mxu1 %vm433_vm1, %v5778_v50  ;;  %v18872_v60 = vpack.c.bf16 %v13810_v17, %v13809_v15  ;;  %5739 = vmatpush.bf16.msrb.mxu2 %v16632_v40 }
 0x4d6   : > { %6085 = vmatpush.bf16.msrb.mxu1 %v6057_v48  ;;  %v13855_v48 = vld [vmem:[%s17587_s25 + $0x44] ss:$2 sm:$0xff] }
 0x4d7   : > { %v18882_v43 = vpack.c.bf16 %v13856_v62, %v13855_v48  ;;  %v6060_v48 = vsel %vm437_vm0, %v13800_v41, 0  ;;  %v13783_v62 = vld [vmem:[%s19790_s1 + $0x88] sm:$0xf] }
 0x4d8   : > { %6072 = vmatpush.bf16.msra.mxu0 %v13776_v0  ;;  %v16669_v0 = vld [vmem:[%s19790_s1 + $0x10c] sm:$0xf] }
 0x4d9   : > { %5740 = vmatpush.bf16.msrb.mxu2 %v16631_v51  ;;  %v13829_v51 = vld [vmem:[%s19790_s1 + $0xc8] sm:$0xf] }
 0x4da   : > { %6086 = vmatpush.bf16.msrb.mxu1 %v13780_v5  ;;  %v13880_v5 = vor.u32 %v16669_v0, %v13877_v27  ;;  %v16655_v0 = vld [vmem:[%s19790_s1 + $0x94] sm:$0xf0] }
 0x4db   : > { %v13784_v40 = vor.u32 %v16655_v0, %v13783_v62 }
 0x4dd   : > { %13726 = vmatmul.msk.bf16.vlgmr.msra.gmra.mxu3 %vm433_vm1, %v5778_v50  ;;  %v16670_v50 = vld [vmem:[%s19790_s1 + $0x10c] sm:$0xf0]  ;;  %5741 = vmatpush.bf16.msrb.mxu2 %v16630_v59 }
 0x4de   : > { %6113 = vmatpush.bf16.msra.mxu3 %v6063_v44  ;;  %v13868_v13 = vor.u32 %v16670_v50, %v13867_v8  ;;  %v13931_v44 = vld [vmem:[%s19790_s1 + $0x170] sm:$0x30] }
 0x4df   : > { %v13934_v47 = vor.u32 %v16680_v21, %v13931_v44  ;;  %v13846_v44 = vor.u32 %v16667_v28, %v13845_v6  ;;  %v14061_v28 = vld [vmem:[#allocation3 + $0x1e0] sm:$0xf] }
 0x4e1   : > { %v6441_v18 = vsel %vm437_vm0, %v13934_v47, 0  ;;  %v6188_v47 = vsel %vm437_vm0, %v13846_v44, 0  ;;  %v16746_v44 = vld [vmem:[#allocation3 + $0x1ec] sm:$0xf0] }
 0x4e2   : > { %6114 = vmatpush.bf16.msra.mxu3 %v13788_v32  ;;  %v16676_v32 = vld [vmem:[%s19790_s1 + $0x144] sm:$0xf] }
 0x4e3   : > { %13759 = vmatmul.msk.bf16.vlgmr.msrb.gmra.mxu0 %vm433_vm1, %v18783_v49 }
 0x4e4   : > { %6199 = vmatpush.bf16.msrb.mxu0 %v6182_v3  ;;  %v13915_v3 = vld [vmem:[%s19790_s1 + $0x150] sm:$0xf0] }
 0x4e5   : > { %13760 = vmatmul.msk.bf16.vlgmr.msra.gmra.mxu1 %vm433_vm1, %v18783_v49  ;;  %v13918_v57 = vor.u32 %v16676_v32, %v13915_v3  ;;  %v13891_v32 = vld [vmem:[%s19790_s1 + $0x128] sm:$0xf] }
 0x4e6   : > { %6213 = vmatpush.bf16.msra.mxu1 %v6185_v45  ;;  %v13901_v45 = vld [vmem:[%s17587_s25 + $0x45] ss:$2 sm:$0xff] }
 0x4e7   : > { %v18933_v58 = vpack.c.bf16 %v13902_v2, %v13901_v45  ;;  %v13875_v45 = vld [vmem:[%s19790_s1 + $0x108] sm:$0xf]  ;;  %v16671_v2 = vld [vmem:[%s19790_s1 + $0x114] sm:$0xf0] }
 0x4e8   : > { %6200 = vmatpush.bf16.msrb.mxu0 %v13822_v52  ;;  %v16681_v52 = vld [vmem:[%s19790_s1 + $0x16c] sm:$0xf] }
 0x4e9   : > { %v13942_v36 = vor.u32 %v16681_v52, %v13939_v12  ;;  %v13876_v12 = vor.u32 %v16671_v2, %v13875_v45  ;;  %v16742_v2 = vld [vmem:[#allocation3 + $0x1cc] sm:$0xf0] }
 0x4ea   : > { %6214 = vmatpush.bf16.msra.mxu1 %v13826_v23  ;;  %v16629_v23 = vld [vmem:[%s19796_s7 + $0x8] sm:$0xff] }
 0x4eb   : > { %v6447_v26 = vsel %vm437_vm0, %v13942_v36, 0  ;;  %5742 = vmatpush.bf16.msrb.mxu2 %v16629_v23  ;;  %v13937_v23 = vld [vmem:[%s19790_s1 + $0x168] sm:$0xf] }
 0x4ed   : > { %13762 = vmatmul.msk.bf16.vlgmr.msrb.gmra.mxu3 %vm433_vm1, %v18783_v49 }
 0x4ee   : > { %6241 = vmatpush.bf16.msrb.mxu3 %v6191_v61  ;;  %v13926_v61 = vor.u32 %v16677_v1, %v13923_v24 }
 0x4ef   : > { %5743 = vmatpush.bf16.msrb.mxu2 %v16628_v10 }
 0x4f2   : > { %6242 = vmatpush.bf16.msrb.mxu3 %v13834_v16 }
 0x4f3   : > { %13805 = vmatmul.msk.bf16.vlgmr.msra.gmra.mxu0 %vm433_vm1, %v18835_v35  ;;  %5979 = vmatpush.bf16.msra.mxu2 %v5940_v39 }
 0x4f4   : > { %6327 = vmatpush.bf16.msra.mxu0 %v6310_v7 }
 0x4f5   : > { %13806 = vmatmul.msk.bf16.vlgmr.msrb.gmra.mxu1 %vm433_vm1, %v18835_v35 }
 0x4f6   : > { %6341 = vmatpush.bf16.msrb.mxu1 %v6313_v53 }
 0x4f7   : > { %5980 = vmatpush.bf16.msra.mxu2 %v13738_v20 }
 0x4f8   : > { %6328 = vmatpush.bf16.msra.mxu0 %v13868_v13 }
 0x4fa   : > { %6342 = vmatpush.bf16.msrb.mxu1 %v13872_v25 }
 0x4fd   : > { %13808 = vmatmul.msk.bf16.vlgmr.msra.gmra.mxu3 %vm433_vm1, %v18835_v35 }
 0x4fe   : > { %6369 = vmatpush.bf16.msra.mxu3 %v6319_v22 }
 0x502   : > { %6370 = vmatpush.bf16.msra.mxu3 %v13880_v5 }
 0x503   : > { %13851 = vmatmul.msk.bf16.vlgmr.msrb.gmra.mxu0 %vm433_vm1, %v18872_v60 }
 0x504   : > { %6455 = vmatpush.bf16.msrb.mxu0 %v6438_v54  ;;  %v16663_v54 = vld [vmem:[%s19790_s1 + $0xd4] sm:$0xf0] }
 0x505   : > { %13852 = vmatmul.msk.bf16.vlgmr.msra.gmra.mxu1 %vm433_vm1, %v18872_v60  ;;  %v13830_v19 = vor.u32 %v16663_v54, %v13829_v51  ;;  %v14062_v51 = vor.u32 %v16746_v44, %v14061_v28  ;;  %v14063_v54 = vld [vmem:[#allocation3 + $0x1f0] sm:$0xf0]  ;;  %v14021_v44 = vld [vmem:[#allocation3 + $0x188] sm:$0xf] }
 0x506   : > { %6469 = vmatpush.bf16.msra.mxu1 %v6441_v18 }
 0x508   : > { %6456 = vmatpush.bf16.msrb.mxu0 %v13914_v56  ;;  %v16675_v56 = vld [vmem:[%s19790_s1 + $0x134] sm:$0x30] }
 0x509   : > { %v13892_v59 = vor.u32 %v16675_v56, %v13891_v32  ;;  %v16745_v56 = vld [vmem:[#allocation3 + $0x1ec] sm:$0xf] }
 0x50a   : > { %6470 = vmatpush.bf16.msra.mxu1 %v13918_v57 }
 0x50d   : > { %13854 = vmatmul.msk.bf16.vlgmr.msrb.gmra.mxu3 %vm433_vm1, %v18872_v60 }
 0x50e   : > { %6497 = vmatpush.bf16.msrb.mxu3 %v6447_v26  ;;  %v16683_v26 = vld [vmem:[%s19790_s1 + $0x174] sm:$0x30] }
 0x50f   : > { %v13938_v10 = vor.u32 %v16683_v26, %v13937_v23  ;;  %v14053_v26 = vld [vmem:[#allocation3 + $0x1c8] sm:$0xf] }
 0x512   : > { %6498 = vmatpush.bf16.msrb.mxu3 %v13926_v61  ;;  %v13921_v61 = vld [vmem:[%s19790_s1 + $0x148] sm:$0xf] }
 0x513   : > { %13897 = vmatmul.msk.bf16.vlgmr.msra.gmra.mxu0 %vm433_vm1, %v18882_v43  ;;  %v13922_v33 = vor.u32 %v16679_v4, %v13921_v61  ;;  %v14055_v4 = vld [vmem:[#allocation3 + $0x1d8] sm:$0xf0] }
 0x514   : > { %6757 = vmatpush.bf16.msra.mxu0 %v14062_v51  ;;  %v16733_v51 = vld [vmem:[#allocation3 + $0x18c] sm:$0xf] }
 0x515   : > { %13898 = vmatmul.msk.bf16.vlgmr.msrb.gmra.mxu1 %vm433_vm1, %v18882_v43 }
 0x51d   : > { %13900 = vmatmul.msk.bf16.vlgmr.msra.gmra.mxu3 %vm433_vm1, %v18882_v43 }
 0x523   : > { %13943 = vmatmul.msk.bf16.vlgmr.msrb.gmra.mxu0 %vm433_vm1, %v18933_v58 }
 0x525   : > { %13944 = vmatmul.msk.bf16.vlgmr.msra.gmra.mxu1 %vm433_vm1, %v18933_v58 }
 0x52d   : > { %13946 = vmatmul.msk.bf16.vlgmr.msrb.gmra.mxu3 %vm433_vm1, %v18933_v58 }
 0x540   : > { %v5503_v16 = vpop.f32.mrf.mxu3  ;;  %v5582_v29 = vpop.f32.mrf.mxu0 }
 0x542   : > { %v5662_v11 = vpop.f32.mrf.mxu1 }
 0x546   : > { %v5442_v7 = vpop.f32.mrf.mxu2 }
 0x547   : > { %v5504_v8 = vadd.f32 %v5503_v16, %v5442_v7 }
 0x548   : > { %v5505_v50 = vpop.f32.mrf.mxu3  ;;  %v5584_v53 = vpop.f32.mrf.mxu0 }
 0x549   : > { %v5586_v30 = vadd.f32 %v5582_v29, %v5504_v8 }
 0x54a   : > { %v5664_v13 = vpop.f32.mrf.mxu1 }
 0x54b   : > { %v5666_v46 = vadd.f32 %v5662_v11, %v5586_v30 }
 0x54d   : > { %v5668_v25 = vadd.f32 %v5667_v14, %v5666_v46 }
 0x54e   : > { %v5444_v22 = vpop.f32.mrf.mxu2 }
 0x54f   : > { %v5669_v15 = vmax.f32 %v5668_v25, 0.0 }
 0x550   : > { %v5861_v27 = vpop.f32.mrf.mxu0  ;;  %v5847_v29 = vpop.f32.mrf.mxu3 }
 0x551   : > { %v5670_v17 = vpack.c.bf16 %v5669_v15, %v5669_v15 }
 0x552   : > { %v18989_v5 = vpop.f32.mrf.mxu1 }
 0x553   : > { %5744 = vmatmul.bf16.vlgmr.msrb.gmra.mxu2 %v5670_v17 }
 0x554   : > { %6099 = vmatpush.bf16.msrb.mxu2 %v6060_v48 }
 0x558   : > { %6100 = vmatpush.bf16.msrb.mxu2 %v13784_v40  ;;  %v18997_v31 = vpop.f32.mrf.mxu0  ;;  %v19066_v22 = vpop.f32.mrf.mxu3 }
 0x55a   : > { %v18999_v21 = vpop.f32.mrf.mxu1 }
 0x560   : > { %v5954_v18 = vpop.f32.mrf.mxu0  ;;  %v19068_v15 = vpop.f32.mrf.mxu3 }
 0x561   : > { %v5955_v11 = vadd.f32 %v5954_v18, %v5847_v29  ;;  %v14069_v18 = vld [vmem:[#allocation3 + $0x1e8] sm:$0xf]  ;;  %v16736_v29 = vld [vmem:[#allocation3 + $0x1a4] sm:$0xf] }
 0x562   : > { %v5968_v55 = vpop.f32.mrf.mxu1 }
 0x563   : > { %13761 = vmatmul.msk.bf16.vlgmr.msra.gmra.mxu2 %vm433_vm1, %v18783_v49  ;;  %v6316_v49 = vsel %vm437_vm0, %v13892_v59, 0  ;;  %v5969_v7 = vadd.f32 %v5968_v55, %v5861_v27  ;;  %v14071_v59 = vld [vmem:[#allocation3 + $0x1f8] sm:$0xf0] }
 0x564   : > { %6227 = vmatpush.bf16.msra.mxu2 %v6188_v47  ;;  %v16744_v47 = vld [vmem:[#allocation3 + $0x1e4] sm:$0xf]  ;;  %v14074_v45 = vor.u32 %v16745_v56, %v14071_v59  ;;  %v16730_v56 = vld [vmem:[#allocation3 + $0x16c] sm:$0xf0] }
 0x565   : > { %v14066_v55 = vor.u32 %v16744_v47, %v14063_v54  ;;  %v16735_v47 = vld [vmem:[#allocation3 + $0x194] sm:$0xf0]  ;;  %v16728_v59 = vld [vmem:[#allocation3 + $0x164] sm:$0xf] }
 0x566   : > { %6796 = vmatpush.bf16.msra.mxu3 %v14074_v45  ;;  %v14022_v54 = vor.u32 %v16735_v47, %v14021_v44  ;;  %v16721_v47 = vld [vmem:[#allocation3 + $0x12c] sm:$0xf] }
 0x567   : > { %6770 = vmatpush.bf16.msrb.mxu1 %v14066_v55 }
 0x568   : > { %6228 = vmatpush.bf16.msra.mxu2 %v13830_v19  ;;  %v19016_v3 = vpop.f32.mrf.mxu0  ;;  %v19070_v17 = vpop.f32.mrf.mxu3  ;;  %v16747_v19 = vld [vmem:[#allocation3 + $0x1f4] sm:$0xf0] }
 0x569   : > { %v14070_v32 = vor.u32 %v16747_v19, %v14069_v18  ;;  %v14023_v18 = vld [vmem:[#allocation3 + $0x198] sm:$0xf0] }
 0x56a   : > { %v19018_v57 = vpop.f32.mrf.mxu1  ;;  %v14026_v19 = vor.u32 %v16733_v51, %v14023_v18  ;;  %v13975_v51 = vld [vmem:[#allocation3 + $0x138] sm:$0xf0] }
 0x570   : > { %v6074_v52 = vpop.f32.mrf.mxu0  ;;  %v19072_v48 = vpop.f32.mrf.mxu3 }
 0x571   : > { %v6121_v8 = vadd.f32 %v6074_v52, %v5955_v11  ;;  %v16740_v52 = vld [vmem:[#allocation3 + $0x1c4] sm:$0xf] }
 0x572   : > { %v6088_v36 = vpop.f32.mrf.mxu1 }
 0x573   : > { %13807 = vmatmul.msk.bf16.vlgmr.msrb.gmra.mxu2 %vm433_vm1, %v18835_v35  ;;  %v6444_v35 = vsel %vm437_vm0, %v13938_v10, 0  ;;  %v6122_v50 = vadd.f32 %v6088_v36, %v5969_v7  ;;  %v16743_v10 = vld [vmem:[#allocation3 + $0x1d4] sm:$0xf0]  ;;  %v14031_v7 = vld [vmem:[#allocation3 + $0x1b0] sm:$0xf0] }
 0x574   : > { %6355 = vmatpush.bf16.msrb.mxu2 %v6316_v49  ;;  %v14045_v49 = vld [vmem:[#allocation3 + $0x1c0] sm:$0xf]  ;;  %v14054_v61 = vor.u32 %v16743_v10, %v14053_v26  ;;  %v16729_v26 = vld [vmem:[#allocation3 + $0x16c] sm:$0xf]  ;;  %v14007_v10 = vld [vmem:[#allocation3 + $0x178] sm:$0xf0] }
 0x575   : > { %v14046_v36 = vor.u32 %v16742_v2, %v14045_v49  ;;  %v13999_v2 = vld [vmem:[#allocation3 + $0x170] sm:$0xf0] }
 0x577   : > { %6758 = vmatpush.bf16.msra.mxu0 %v14046_v36  ;;  %v14002_v36 = vor.u32 %v16728_v59, %v13999_v2  ;;  %v13951_v59 = vld [vmem:[#allocation3 + $0x110] sm:$0xf0] }
 0x578   : > { %6356 = vmatpush.bf16.msrb.mxu2 %v13876_v12  ;;  %v19035_v1 = vpop.f32.mrf.mxu0  ;;  %v19081_v40 = vpop.f32.mrf.mxu3  ;;  %v14047_v12 = vld [vmem:[#allocation3 + $0x1d0] sm:$0xf0] }
 0x579   : > { %v14050_v23 = vor.u32 %v16740_v52, %v14047_v12  ;;  %v14005_v52 = vld [vmem:[#allocation3 + $0x168] sm:$0xf]  ;;  %v16731_v12 = vld [vmem:[#allocation3 + $0x174] sm:$0xf0] }
 0x57a   : > { %v19037_v24 = vpop.f32.mrf.mxu1 }
 0x57b   : > { %6771 = vmatpush.bf16.msrb.mxu1 %v14050_v23  ;;  %v14006_v23 = vor.u32 %v16731_v12, %v14005_v52  ;;  %v13957_v52 = vld [vmem:[#allocation3 + $0x108] sm:$0xf]  ;;  %v16719_v12 = vld [vmem:[#allocation3 + $0x114] sm:$0xf0] }
 0x580   : > { %v6202_v38 = vpop.f32.mrf.mxu0 }
 0x581   : > { %v6249_v30 = vadd.f32 %v6202_v38, %v6121_v8  ;;  %v14037_v8 = vld [vmem:[#allocation3 + $0x1a8] sm:$0xf] }
 0x582   : > { %v6216_v37 = vpop.f32.mrf.mxu1 }
 0x583   : > { %13853 = vmatmul.msk.bf16.vlgmr.msra.gmra.mxu2 %vm433_vm1, %v18872_v60  ;;  %v6250_v14 = vadd.f32 %v6216_v37, %v6122_v50  ;;  %v16739_v50 = vld [vmem:[#allocation3 + $0x1b4] sm:$0xf0] }
 0x584   : > { %6483 = vmatpush.bf16.msra.mxu2 %v6444_v35  ;;  %v16741_v35 = vld [vmem:[#allocation3 + $0x1cc] sm:$0xf] }
 0x585   : > { %v14058_v38 = vor.u32 %v16741_v35, %v14055_v4  ;;  %v13981_v35 = vld [vmem:[#allocation3 + $0x140] sm:$0xf]  ;;  %v16726_v4 = vld [vmem:[#allocation3 + $0x14c] sm:$0xf0] }
 0x587   : > { %6797 = vmatpush.bf16.msra.mxu3 %v14058_v38  ;;  %v16724_v38 = vld [vmem:[#allocation3 + $0x144] sm:$0xf] }
 0x588   : > { %6484 = vmatpush.bf16.msra.mxu2 %v13922_v33  ;;  %v19048_v63 = vpop.f32.mrf.mxu0  ;;  %v19083_v33 = vpop.f32.mrf.mxu3 }
 0x58a   : > { %v19050_v39 = vpop.f32.mrf.mxu1 }
 0x590   : > { %v6330_v20 = vpop.f32.mrf.mxu0  ;;  %v19089_v49 = vpop.f32.mrf.mxu3 }
 0x591   : > { %v6377_v13 = vadd.f32 %v6330_v20, %v6249_v30  ;;  %v14029_v20 = vld [vmem:[#allocation3 + $0x1a0] sm:$0xf]  ;;  %v14034_v30 = vor.u32 %v16736_v29, %v14031_v7  ;;  %v16727_v7 = vld [vmem:[#allocation3 + $0x154] sm:$0xf0] }
 0x592   : > { %v6344_v16 = vpop.f32.mrf.mxu1 }
 0x593   : > { %13899 = vmatmul.msk.bf16.vlgmr.msrb.gmra.mxu2 %vm433_vm1, %v18882_v43  ;;  %v6378_v34 = vadd.f32 %v6344_v16, %v6250_v14  ;;  %v16738_v16 = vld [vmem:[#allocation3 + $0x1ac] sm:$0xf0]  ;;  %v14038_v14 = vor.u32 %v16739_v50, %v14037_v8  ;;  %6772 = vmatpush.bf16.msrb.mxu1 %v14034_v30  ;;  %v16725_v8 = vld [vmem:[#allocation3 + $0x14c] sm:$0xf]  ;;  %v13991_v30 = vld [vmem:[#allocation3 + $0x158] sm:$0xf0] }
 0x594   : > { %6783 = vmatpush.bf16.msrb.mxu2 %v14070_v32  ;;  %v14030_v11 = vor.u32 %v16738_v16, %v14029_v20  ;;  %v13997_v32 = vld [vmem:[#allocation3 + $0x160] sm:$0xf]  ;;  %v13983_v20 = vld [vmem:[#allocation3 + $0x150] sm:$0xf0]  ;;  %v13982_v16 = vor.u32 %v16726_v4, %v13981_v35  ;;  %v16712_v4 = vld [vmem:[#allocation3 + $0xe4] sm:$0xf] }
 0x595   : > { %v13998_v45 = vor.u32 %v16730_v56, %v13997_v32  ;;  %v13986_v29 = vor.u32 %v16724_v38, %v13983_v20  ;;  %v16718_v32 = vld [vmem:[#allocation3 + $0x10c] sm:$0xf0]  ;;  %v16716_v56 = vld [vmem:[#allocation3 + $0x104] sm:$0xf]  ;;  %v14189_v35 = vld [vmem:[#allocation3 + $0xe0] sm:$0xf] }
 0x596   : > { %6759 = vmatpush.bf16.msra.mxu0 %v14030_v11  ;;  %v13989_v11 = vld [vmem:[#allocation3 + $0x148] sm:$0xf]  ;;  %v13954_v2 = vor.u32 %v16716_v56, %v13951_v59  ;;  %v16706_v56 = vld [vmem:[#allocation3 + $0xac] sm:$0xf0]  ;;  %v16704_v59 = vld [vmem:[#allocation3 + $0xa4] sm:$0xf] }
 0x597   : > { %v13990_v50 = vor.u32 %v16727_v7, %v13989_v11  ;;  %v16715_v11 = vld [vmem:[#allocation3 + $0xf4] sm:$0xf0] }
 0x598   : > { %v19054_v60 = vpop.f32.mrf.mxu0  ;;  %6784 = vmatpush.bf16.msrb.mxu2 %v14054_v61  ;;  %v14010_v61 = vor.u32 %v16729_v26, %v14007_v10  ;;  %v19093_v18 = vpop.f32.mrf.mxu3  ;;  %v13959_v26 = vld [vmem:[#allocation3 + $0x118] sm:$0xf0] }
 0x59a   : > { %v19056_v53 = vpop.f32.mrf.mxu1 }
 0x59c   : > { %6785 = vmatpush.bf16.msrb.mxu2 %v14038_v14  ;;  %v13994_v14 = vor.u32 %v16725_v8, %v13991_v30  ;;  %v14199_v30 = vld [vmem:[#allocation3 + $0xf8] sm:$0xf0] }
 0x5a0   : > { %v6458_v9 = vpop.f32.mrf.mxu0  ;;  %6786 = vmatpush.bf16.msrb.mxu2 %v14022_v54  ;;  %v13949_v54 = vld [vmem:[#allocation3 + $0x100] sm:$0xf] }
 0x5a1   : > { %v19060_v43 = vadd.f32 %v6458_v9, %v6377_v13  ;;  %v16737_v13 = vld [vmem:[#allocation3 + $0x1ac] sm:$0xf]  ;;  %v14013_v9 = vld [vmem:[#allocation3 + $0x180] sm:$0xf] }
 0x5a2   : > { %v6472_v46 = vpop.f32.mrf.mxu1 }
 0x5a3   : > { %13945 = vmatmul.msk.bf16.vlgmr.msra.gmra.mxu2 %vm433_vm1, %v18933_v58  ;;  %v19062_v25 = vadd.f32 %v6472_v46, %v6378_v34  ;;  %v5687_v58 = vld [vmem:[%s19797_s8] sm:$0x1]  ;;  %v14039_v34 = vld [vmem:[#allocation3 + $0x1b8] sm:$0xf0] }
 0x5a4   : > { %v14042_v46 = vor.u32 %v16737_v13, %v14039_v34  ;;  %6787 = vmatpush.bf16.msrb.mxu2 %v14006_v23  ;;  %v13965_v34 = vld [vmem:[#allocation3 + $0x120] sm:$0xf]  ;;  %v13958_v23 = vor.u32 %v16719_v12, %v13957_v52  ;;  %v14159_v52 = vld [vmem:[#allocation3 + $0xb0] sm:$0xf0]  ;;  %v14165_v12 = vld [vmem:[#allocation3 + $0xa8] sm:$0xf] }
 0x5a5   : > { %v6513_v41 = vmax.f32 %v19060_v43, %v19062_v25  ;;  %v14325_v43 = vld [vmem:[#allocation3 + $0x2e8] sm:$0xf]  ;;  %v16779_v25 = vld [vmem:[#allocation3 + $0x2f4] sm:$0xf0] }
 0x5a6   : > { %6798 = vmatpush.bf16.msra.mxu3 %v14042_v46  ;;  %v16720_v46 = vld [vmem:[#allocation3 + $0x124] sm:$0xf] }
 0x5a8   : > { %6788 = vmatpush.bf16.msrb.mxu2 %v13990_v50  ;;  %v16713_v50 = vld [vmem:[#allocation3 + $0xec] sm:$0xf] }
 0x5aa   : > { %6799 = vmatpush.bf16.msra.mxu3 %v14026_v19  ;;  %v13978_v19 = vor.u32 %v16721_v47, %v13975_v51  ;;  %v14183_v51 = vld [vmem:[#allocation3 + $0xd8] sm:$0xf0] }
 0x5ae   : > { %6800 = vmatpush.bf16.msra.mxu3 %v14010_v61  ;;  %v16714_v61 = vld [vmem:[#allocation3 + $0xec] sm:$0xf0] }
 0x5af   : > { %v14190_v20 = vor.u32 %v16714_v61, %v14189_v35  ;;  %v14167_v35 = vld [vmem:[#allocation3 + $0xb8] sm:$0xf0] }
 0x5b2   : > { %6801 = vmatpush.bf16.msra.mxu3 %v13994_v14  ;;  %v14173_v14 = vld [vmem:[#allocation3 + $0xc0] sm:$0xf] }
 0x5b6   : > { %6802 = vmatpush.bf16.msra.mxu3 %v13978_v19  ;;  %v19097_v19 = vpop.f32.mrf.mxu3 }
 0x5d6   : > { %v5745_v62 = vpop.f32.mrf.mxu2 }
 0x5d7   : > { %v19077_v0 = vadd.f32 %v5745_v62, %v5687_v58  ;;  %v16734_v58 = vld [vmem:[#allocation3 + $0x18c] sm:$0xf0]  ;;  %v16732_v62 = vld [vmem:[#allocation3 + $0x184] sm:$0xf] }
 0x5d9   : > { %v5749_v27 = vsel %vm3063_vm2, %v19077_v0, -inf }
 0x5da   : > { %5750 = vmax.xlane.f32.xlu0 %v5749_v27  ;;  %v14015_v27 = vld [vmem:[#allocation3 + $0x190] sm:$0xf0] }
 0x5db   : > { %v14018_v28 = vor.u32 %v16732_v62, %v14015_v27  ;;  %v13967_v62 = vld [vmem:[#allocation3 + $0x130] sm:$0xf0]  ;;  %v13973_v27 = vld [vmem:[#allocation3 + $0x128] sm:$0xf] }
 0x5dd   : > { %6773 = vmatpush.bf16.msrb.mxu1 %v14018_v28  ;;  %v13970_v28 = vor.u32 %v16720_v46, %v13967_v62  ;;  %v16708_v46 = vld [vmem:[#allocation3 + $0xc4] sm:$0xf] }
 0x5de   : > { %v5747_v6 = vpop.f32.mrf.mxu2 }
 0x5df   : > { %v14014_v6 = vor.u32 %v16734_v58, %v14013_v9  ;;  %v16722_v9 = vld [vmem:[#allocation3 + $0x12c] sm:$0xf0] }
 0x5e0   : > { %v13966_v58 = vor.u32 %v16722_v9, %v13965_v34  ;;  %v14202_v34 = vor.u32 %v16713_v50, %v14199_v30  ;;  %v16710_v9 = vld [vmem:[#allocation3 + $0xcc] sm:$0xf0] }
 0x5e1   : > { %6760 = vmatpush.bf16.msra.mxu0 %v14014_v6  ;;  %6774 = vmatpush.bf16.msrb.mxu1 %v14002_v36  ;;  %v16723_v6 = vld [vmem:[#allocation3 + $0x134] sm:$0xf0]  ;;  %v16717_v36 = vld [vmem:[#allocation3 + $0x10c] sm:$0xf]  ;;  %v14174_v62 = vor.u32 %v16710_v9, %v14173_v14 }
 0x5e2   : > { %v13974_v44 = vor.u32 %v16723_v6, %v13973_v27  ;;  %v13962_v10 = vor.u32 %v16717_v36, %v13959_v26  ;;  %v14181_v6 = vld [vmem:[#allocation3 + $0xc8] sm:$0xf]  ;;  %v16707_v36 = vld [vmem:[#allocation3 + $0xb4] sm:$0xf0]  ;;  %v16701_v14 = vld [vmem:[#allocation3 + $0x8c] sm:$0xf] }
 0x5e3   : > { %v14166_v26 = vor.u32 %v16707_v36, %v14165_v12  ;;  %v16694_v12 = vld [vmem:[#allocation3 + $0x4c] sm:$0xf0]  ;;  %v16692_v36 = vld [vmem:[#allocation3 + $0x44] sm:$0xf] }
 0x5e4   : > { %6789 = vmatpush.bf16.msrb.mxu2 %v13974_v44  ;;  %6803 = vmatpush.bf16.msra.mxu3 %v13962_v10  ;;  %v16709_v44 = vld [vmem:[#allocation3 + $0xcc] sm:$0xf] }
 0x5e5   : > { %6761 = vmatpush.bf16.msra.mxu0 %v13998_v45  ;;  %6775 = vmatpush.bf16.msrb.mxu1 %v13986_v29  ;;  %v13950_v45 = vor.u32 %v16718_v32, %v13949_v54  ;;  %v14197_v29 = vld [vmem:[#allocation3 + $0xe8] sm:$0xf]  ;;  %v14186_v54 = vor.u32 %v16709_v44, %v14183_v51  ;;  %v14157_v32 = vld [vmem:[#allocation3 + $0xa0] sm:$0xf]  ;;  %v16705_v10 = vld [vmem:[#allocation3 + $0xac] sm:$0xf] }
 0x5e6   : > { %v19085_v37 = vpop.f32.mrf.mxu2  ;;  %v14198_v8 = vor.u32 %v16715_v11, %v14197_v29  ;;  %v14170_v61 = vor.u32 %v16705_v10, %v14167_v35  ;;  %v14143_v11 = vld [vmem:[#allocation3 + $0x90] sm:$0xf0]  ;;  %v16699_v51 = vld [vmem:[#allocation3 + $0x74] sm:$0xf0]  ;;  %v14117_v10 = vld [vmem:[#allocation3 + $0x48] sm:$0xf] }
 0x5e7   : > { %v14127_v44 = vld [vmem:[#allocation3 + $0x70] sm:$0xf0]  ;;  %v16695_v35 = vld [vmem:[#allocation3 + $0x54] sm:$0xf0] }
 0x5e8   : > { %6790 = vmatpush.bf16.msrb.mxu2 %v13958_v23  ;;  %7008 = vmatpush.bf16.msrb.mxu3 %v14202_v34  ;;  %v14162_v23 = vor.u32 %v16704_v59, %v14159_v52  ;;  %v14151_v34 = vld [vmem:[#allocation3 + $0x98] sm:$0xf0]  ;;  %v14109_v52 = vld [vmem:[#allocation3 + $0x40] sm:$0xf] }
 0x5e9   : > { %6762 = vmatpush.bf16.msra.mxu0 %v13982_v16  ;;  %6776 = vmatpush.bf16.msrb.mxu1 %v13970_v28  ;;  %v14191_v16 = vld [vmem:[#allocation3 + $0xf0] sm:$0xf0]  ;;  %v16711_v28 = vld [vmem:[#allocation3 + $0xd4] sm:$0xf0]  ;;  %v14154_v9 = vor.u32 %v16701_v14, %v14151_v34  ;;  %v14135_v59 = vld [vmem:[#allocation3 + $0x78] sm:$0xf0] }
 0x5ea   : > { %v14194_v7 = vor.u32 %v16712_v4, %v14191_v16  ;;  %v14182_v47 = vor.u32 %v16711_v28, %v14181_v6  ;;  %v14141_v4 = vld [vmem:[#allocation3 + $0x80] sm:$0xf]  ;;  %v16700_v16 = vld [vmem:[#allocation3 + $0x84] sm:$0xf]  ;;  %v14095_v14 = vld [vmem:[#allocation3 + $0x30] sm:$0xf0] }
 0x5eb   : > { %v14146_v50 = vor.u32 %v16700_v16, %v14143_v11  ;;  %v14119_v16 = vld [vmem:[#allocation3 + $0x58] sm:$0xf0]  ;;  %v14093_v11 = vld [vmem:[#allocation3 + $0x20] sm:$0xf]  ;;  %v14101_v34 = vld [vmem:[#allocation3 + $0x28] sm:$0xf] }
 0x5ec   : > { %6995 = vmatpush.bf16.msra.mxu2 %v14198_v8  ;;  %7009 = vmatpush.bf16.msrb.mxu3 %v14186_v54  ;;  %v16703_v8 = vld [vmem:[#allocation3 + $0x94] sm:$0xf0] }
 0x5ed   : > { %6763 = vmatpush.bf16.msra.mxu0 %v13966_v58  ;;  %6777 = vmatpush.bf16.msrb.mxu1 %v13954_v2  ;;  %v14175_v58 = vld [vmem:[#allocation3 + $0xd0] sm:$0xf0]  ;;  %v14158_v2 = vor.u32 %v16706_v56, %v14157_v32  ;;  %v16697_v56 = vld [vmem:[#allocation3 + $0x6c] sm:$0xf] }
 0x5ee   : > { %v19087_v55 = vpop.f32.mrf.mxu2  ;;  %v14178_v27 = vor.u32 %v16708_v46, %v14175_v58  ;;  %v14125_v46 = vld [vmem:[#allocation3 + $0x60] sm:$0xf]  ;;  %v16698_v58 = vld [vmem:[#allocation3 + $0x6c] sm:$0xf0] }
 0x5ef   : > { %v14126_v28 = vor.u32 %v16698_v58, %v14125_v46  ;;  %v5997_v46 = vadd.f32 %v19072_v48, %v19068_v15 }
 0x5f0   : > { %6996 = vmatpush.bf16.msra.mxu2 %v14182_v47  ;;  %7010 = vmatpush.bf16.msrb.mxu3 %v14170_v61  ;;  %v14133_v47 = vld [vmem:[#allocation3 + $0x68] sm:$0xf] }
 0x5f1   : > { %6764 = vmatpush.bf16.msra.mxu0 %v13950_v45  ;;  %6982 = vmatpush.bf16.msra.mxu1 %v14194_v7  ;;  %v14149_v7 = vld [vmem:[#allocation3 + $0x88] sm:$0xf]  ;;  %v14134_v32 = vor.u32 %v16699_v51, %v14133_v47 }
 0x5f2   : > { %v14150_v30 = vor.u32 %v16703_v8, %v14149_v7  ;;  %v16690_v7 = vld [vmem:[#allocation3 + $0x2c] sm:$0xf0]  ;;  %v16688_v8 = vld [vmem:[#allocation3 + $0x24] sm:$0xf] }
 0x5f3   : > { %v14098_v58 = vor.u32 %v16688_v8, %v14095_v14 }
 0x5f4   : > { %6997 = vmatpush.bf16.msra.mxu2 %v14166_v26  ;;  %7011 = vmatpush.bf16.msrb.mxu3 %v14154_v9  ;;  %v14111_v26 = vld [vmem:[#allocation3 + $0x50] sm:$0xf0]  ;;  %v16691_v9 = vld [vmem:[#allocation3 + $0x34] sm:$0xf0] }
 0x5f5   : > { %6969 = vmatpush.bf16.msrb.mxu0 %v14190_v20  ;;  %6983 = vmatpush.bf16.msra.mxu1 %v14178_v27  ;;  %v16702_v20 = vld [vmem:[#allocation3 + $0x8c] sm:$0xf0]  ;;  %v19101_v27 = vpop.f32.mrf.mxu3  ;;  %v14114_v61 = vor.u32 %v16692_v36, %v14111_v26  ;;  %v6124_v36 = vadd.f32 %v19083_v33, %v5997_v46  ;;  %v14087_v26 = vld [vmem:[#allocation3 + $0x18] sm:$0xf0] }
 0x5f6   : > { %v19091_v13 = vpop.f32.mrf.mxu2  ;;  %v14142_v29 = vor.u32 %v16702_v20, %v14141_v4  ;;  %v14118_v4 = vor.u32 %v16695_v35, %v14117_v10  ;;  %v16693_v20 = vld [vmem:[#allocation3 + $0x4c] sm:$0xf]  ;;  %v5957_v35 = vadd.f32 %v19016_v3, %v19066_v22 }
 0x5f7   : > { %v6252_v33 = vadd.f32 %v19093_v18, %v6124_v36 }
 0x5f8   : > { %6998 = vmatpush.bf16.msra.mxu2 %v14150_v30  ;;  %v14094_v30 = vor.u32 %v16690_v7, %v14093_v11 }
 0x5f9   : > { %6970 = vmatpush.bf16.msrb.mxu0 %v14174_v62  ;;  %6984 = vmatpush.bf16.msra.mxu1 %v14162_v23  ;;  %v16696_v62 = vld [vmem:[#allocation3 + $0x64] sm:$0xf]  ;;  %v14110_v23 = vor.u32 %v16694_v12, %v14109_v52  ;;  %v14085_v52 = vld [vmem:[#allocation3 + $0x8] sm:$0xf]  ;;  %v16687_v12 = vld [vmem:[#allocation3 + $0x14] sm:$0xf0] }
 0x5fa   : > { %v14130_v54 = vor.u32 %v16696_v62, %v14127_v44  ;;  %v14102_v62 = vor.u32 %v16691_v9, %v14101_v34  ;;  %v14103_v44 = vld [vmem:[#allocation3 + $0x38] sm:$0xf0]  ;;  %v14086_v48 = vor.u32 %v16687_v12, %v14085_v52 }
 0x5fc   : > { %6999 = vmatpush.bf16.msra.mxu2 %v14134_v32  ;;  %v16686_v32 = vld [vmem:[#allocation3 + $0xc] sm:$0xf0] }
 0x5fd   : > { %6971 = vmatpush.bf16.msrb.mxu0 %v14158_v2  ;;  %6985 = vmatpush.bf16.msra.mxu1 %v14146_v50  ;;  %v14138_v2 = vor.u32 %v16697_v56, %v14135_v59  ;;  %v6374_v47 = vpop.f32.mrf.mxu3  ;;  %v16684_v56 = vld [vmem:[#allocation3 + $0x4] sm:$0xf] }
 0x5fe   : > { %v19095_v38 = vpop.f32.mrf.mxu2 }
 0x5ff   : > { %7012 = vmatpush.bf16.msrb.mxu3 %v14138_v2  ;;  %v14079_v2 = vld [vmem:[#allocation3 + $0x10] sm:$0xf0] }
 0x600   : > { %7000 = vmatpush.bf16.msra.mxu2 %v14118_v4  ;;  %v14082_v15 = vor.u32 %v16684_v56, %v14079_v2  ;;  %v16777_v56 = vld [vmem:[#allocation3 + $0x2ec] sm:$0xf] }
 0x601   : > { %6972 = vmatpush.bf16.msrb.mxu0 %v14142_v29  ;;  %6986 = vmatpush.bf16.msra.mxu1 %v14130_v54  ;;  %v14122_v29 = vor.u32 %v16693_v20, %v14119_v16  ;;  %v14077_v54 = vld [vmem:[#allocation3] sm:$0xf]  ;;  %v5999_v20 = vadd.f32 %v19081_v40, %v19070_v17  ;;  %v5983_v16 = vadd.f32 %v19085_v37, %v18989_v5 }
 0x602   : > { %v14078_v59 = vor.u32 %v16686_v32, %v14077_v54  ;;  %v16776_v54 = vld [vmem:[#allocation3 + $0x2e4] sm:$0xf]  ;;  %v14319_v32 = vld [vmem:[#allocation3 + $0x2f0] sm:$0xf0] }
 0x603   : > { %7013 = vmatpush.bf16.msrb.mxu3 %v14122_v29  ;;  %v6125_v29 = vadd.f32 %v19035_v1, %v5957_v35  ;;  %v6123_v3 = vadd.f32 %v19091_v13, %v5983_v16  ;;  %v14322_v36 = vor.u32 %v16776_v54, %v14319_v32  ;;  %v14303_v35 = vld [vmem:[#allocation3 + $0x2d0] sm:$0xf0]  ;;  %v16758_v54 = vld [vmem:[#allocation3 + $0x24c] sm:$0xf0] }
 0x604   : > { %7001 = vmatpush.bf16.msra.mxu2 %v14102_v62 }
 0x605   : > { %6973 = vmatpush.bf16.msrb.mxu0 %v14126_v28  ;;  %6987 = vmatpush.bf16.msra.mxu1 %v14114_v61  ;;  %v16689_v28 = vld [vmem:[#allocation3 + $0x2c] sm:$0xf]  ;;  %v5971_v61 = vadd.f32 %v19018_v57, %v18997_v31  ;;  %v6500_v22 = vpop.f32.mrf.mxu3  ;;  %v6128_v31 = vadd.f32 %v19089_v49, %v5999_v20  ;;  %v6380_v57 = vadd.f32 %v19101_v27, %v6252_v33  ;;  %v14311_v33 = vld [vmem:[#allocation3 + $0x2d8] sm:$0xf0] }
 0x606   : > { %v19099_v45 = vpop.f32.mrf.mxu2  ;;  %v14106_v51 = vor.u32 %v16689_v28, %v14103_v44  ;;  %v6253_v17 = vadd.f32 %v19048_v63, %v6125_v29  ;;  %v17264_v63 = vld [vmem:[%s19791_s2] ss:$0 sm:$0xff]  ;;  %v16773_v20 = vld [vmem:[#allocation3 + $0x2cc] sm:$0xf] }
 0x607   : > { %v6126_v11 = vadd.f32 %v19037_v24, %v5971_v61  ;;  %v6251_v7 = vadd.f32 %v19099_v45, %v6123_v3  ;;  %v6256_v5 = vadd.f32 %v19097_v19, %v6128_v31  ;;  %v6508_v1 = vadd.f32 %v6500_v22, %v6380_v57  ;;  %v14309_v61 = vld [vmem:[#allocation3 + $0x2c8] sm:$0xf]  ;;  %v16770_v3 = vld [vmem:[#allocation3 + $0x2ac] sm:$0xf0]  ;;  %v16768_v57 = vld [vmem:[#allocation3 + $0x2a4] sm:$0xf] }
 0x608   : > { %7014 = vmatpush.bf16.msrb.mxu3 %v14106_v51  ;;  %7002 = vmatpush.bf16.msra.mxu2 %v14086_v48  ;;  %v5985_v24 = vadd.f32 %v19087_v55, %v18999_v21  ;;  %v6381_v13 = vadd.f32 %v19054_v60, %v6253_v17  ;;  %v14317_v51 = vld [vmem:[#allocation3 + $0x2e0] sm:$0xf]  ;;  %v16774_v48 = vld [vmem:[#allocation3 + $0x2cc] sm:$0xf0]  ;;  %v14314_v31 = vor.u32 %v16773_v20, %v14311_v33  ;;  %v14293_v17 = vld [vmem:[#allocation3 + $0x2a8] sm:$0xf] }
 0x609   : > { %6974 = vmatpush.bf16.msrb.mxu0 %v14110_v23  ;;  %6988 = vmatpush.bf16.msra.mxu1 %v14098_v58  ;;  %v16685_v23 = vld [vmem:[#allocation3 + $0xc] sm:$0xf]  ;;  %v6254_v40 = vadd.f32 %v19050_v39, %v6126_v11  ;;  %v6460_v39 = vpop.f32.mrf.mxu0  ;;  %v14285_v11 = vld [vmem:[#allocation3 + $0x2a0] sm:$0xf]  ;;  %v14229_v20 = vld [vmem:[#allocation3 + $0x228] sm:$0xf] }
 0x60a   : > { %v14090_v10 = vor.u32 %v16685_v23, %v14087_v26  ;;  %v6127_v27 = vadd.f32 %v19095_v38, %v5985_v24  ;;  %v6509_v60 = vadd.f32 %v6460_v39, %v6381_v13  ;;  %v14326_v23 = vor.u32 %v16779_v25, %v14325_v43  ;;  %v14269_v24 = vld [vmem:[#allocation3 + $0x280] sm:$0xf]  ;;  %v16767_v39 = vld [vmem:[#allocation3 + $0x294] sm:$0xf0]  ;;  %v16756_v25 = vld [vmem:[#allocation3 + $0x244] sm:$0xf] }
 0x60b   : > { %v6382_v49 = vadd.f32 %v19056_v53, %v6254_v40  ;;  %v16771_v40 = vld [vmem:[#allocation3 + $0x2b4] sm:$0xf0] }
 0x60c   : > { %7015 = vmatpush.bf16.msrb.mxu3 %v14090_v10  ;;  %v16772_v10 = vld [vmem:[#allocation3 + $0x2c4] sm:$0xf]  ;;  %v14294_v13 = vor.u32 %v16771_v40, %v14293_v17  ;;  %v16755_v33 = vld [vmem:[#allocation3 + $0x234] sm:$0xf0]  ;;  %v14207_v17 = vld [vmem:[#allocation3 + $0x210] sm:$0xf0] }
 0x60d   : > { %6975 = vmatpush.bf16.msrb.mxu0 %v14094_v30  ;;  %6989 = vmatpush.bf16.msra.mxu1 %v14082_v15  ;;  %v6384_v30 = vadd.f32 %v6374_v47, %v6256_v5  ;;  %v6502_v55 = vpop.f32.mrf.mxu3  ;;  %v14301_v15 = vld [vmem:[#allocation3 + $0x2c0] sm:$0xf]  ;;  %v14306_v29 = vor.u32 %v16772_v10, %v14303_v35  ;;  %v14286_v5 = vor.u32 %v16770_v3, %v14285_v11 }
 0x60e   : > { %v19103_v6 = vpop.f32.mrf.mxu2  ;;  %v14302_v16 = vor.u32 %v16774_v48, %v14301_v15  ;;  %v14221_v48 = vld [vmem:[#allocation3 + $0x220] sm:$0xf] }
 0x60f   : > { %v6255_v19 = vadd.f32 %v19103_v6, %v6127_v27  ;;  %v6512_v9 = vadd.f32 %v6502_v55, %v6384_v30  ;;  %v16778_v6 = vld [vmem:[#allocation3 + $0x2ec] sm:$0xf0]  ;;  %v16764_v27 = vld [vmem:[#allocation3 + $0x284] sm:$0xf]  ;;  %v14279_v30 = vld [vmem:[#allocation3 + $0x298] sm:$0xf0] }
 0x610   : > { %v14318_v12 = vor.u32 %v16778_v6, %v14317_v51  ;;  %v14237_v6 = vld [vmem:[#allocation3 + $0x240] sm:$0xf] }
 0x611   : > { %6976 = vmatpush.bf16.msrb.mxu0 %v14078_v59  ;;  %v14327_v59 = vld [vmem:[#allocation3 + $0x2f8] sm:$0xf0]  ;;  %v14205_v3 = vld [vmem:[#allocation3 + $0x200] sm:$0xf] }
 0x612   : > { %v14330_v26 = vor.u32 %v16777_v56, %v14327_v59  ;;  %v14245_v56 = vld [vmem:[#allocation3 + $0x248] sm:$0xf]  ;;  %v16759_v59 = vld [vmem:[#allocation3 + $0x254] sm:$0xf0] }
 0x613   : > { %v14246_v10 = vor.u32 %v16759_v59, %v14245_v56  ;;  %v16802_v56 = vld [vmem:[#allocation3 + $0x3ac] sm:$0xf0]  ;;  %v16800_v59 = vld [vmem:[#allocation3 + $0x3a4] sm:$0xf] }
 0x616   : > { %v6358_v50 = vpop.f32.mrf.mxu2 }
 0x617   : > { %v6379_v18 = vadd.f32 %v6358_v50, %v6251_v7  ;;  %v6474_v50 = vpop.f32.mrf.mxu1  ;;  %v14287_v7 = vld [vmem:[#allocation3 + $0x2b0] sm:$0xf0] }
 0x618   : > { %v6510_v14 = vadd.f32 %v6474_v50, %v6382_v49  ;;  %v16765_v50 = vld [vmem:[#allocation3 + $0x28c] sm:$0xf] }
 0x61a   : > { %v6514_v62 = vmax.f32 %v6509_v60, %v6510_v14  ;;  %v16762_v60 = vld [vmem:[#allocation3 + $0x26c] sm:$0xf0]  ;;  %v16760_v14 = vld [vmem:[#allocation3 + $0x264] sm:$0xf] }
 0x61e   : > { %v6360_v4 = vpop.f32.mrf.mxu2 }
 0x61f   : > { %v6383_v53 = vadd.f32 %v6360_v4, %v6255_v19  ;;  %v16775_v4 = vld [vmem:[#allocation3 + $0x2d4] sm:$0xf0]  ;;  %v14253_v19 = vld [vmem:[#allocation3 + $0x260] sm:$0xf] }
 0x620   : > { %v14310_v22 = vor.u32 %v16775_v4, %v14309_v61  ;;  %v16752_v61 = vld [vmem:[#allocation3 + $0x224] sm:$0xf]  ;;  %v14223_v4 = vld [vmem:[#allocation3 + $0x230] sm:$0xf0] }
 0x626   : > { %v6486_v8 = vpop.f32.mrf.mxu2 }
 0x627   : > { %v6507_v37 = vadd.f32 %v6486_v8, %v6379_v18  ;;  %v16769_v18 = vld [vmem:[#allocation3 + $0x2ac] sm:$0xf]  ;;  %v14295_v8 = vld [vmem:[#allocation3 + $0x2b8] sm:$0xf0] }
 0x628   : > { %v14298_v49 = vor.u32 %v16769_v18, %v14295_v8  ;;  %v14213_v18 = vld [vmem:[#allocation3 + $0x208] sm:$0xf]  ;;  %v16751_v8 = vld [vmem:[#allocation3 + $0x214] sm:$0xf0] }
 0x629   : > { %v6515_v45 = vmax.f32 %v6507_v37, %v6508_v1  ;;  %v14290_v1 = vor.u32 %v16768_v57, %v14287_v7  ;;  %v16766_v37 = vld [vmem:[#allocation3 + $0x28c] sm:$0xf0]  ;;  %v16748_v7 = vld [vmem:[#allocation3 + $0x204] sm:$0xf] }
 0x62a   : > { %v16750_v57 = vld [vmem:[#allocation3 + $0x20c] sm:$0xf0] }
 0x62b   : > { %v6517_v21 = vmax.f32 %v6513_v41, %v6515_v45  ;;  %v14271_v45 = vld [vmem:[#allocation3 + $0x290] sm:$0xf0] }
 0x62c   : > { %v14274_v55 = vor.u32 %v16764_v27, %v14271_v45  ;;  %v14453_v27 = vld [vmem:[#allocation3 + $0x3e8] sm:$0xf]  ;;  %v14206_v45 = vor.u32 %v16750_v57, %v14205_v3  ;;  %v16797_v3 = vld [vmem:[#allocation3 + $0x38c] sm:$0xf] }
 0x62d   : > { %v6523_v34 = vadd.f32 %v17264_v63, %v6517_v21  ;;  %v14270_v21 = vor.u32 %v16766_v37, %v14269_v24  ;;  %v14445_v24 = vld [vmem:[#allocation3 + $0x3e0] sm:$0xf]  ;;  %v16810_v37 = vld [vmem:[#allocation3 + $0x3ec] sm:$0xf0] }
 0x62e   : > { %v6488_v38 = vpop.f32.mrf.mxu2 }
 0x62f   : > { %v6525_v46 = vmax.f32 %v6523_v34, 0.0  ;;  %v6511_v58 = vadd.f32 %v6488_v38, %v6383_v53  ;;  %v14255_v53 = vld [vmem:[#allocation3 + $0x270] sm:$0xf0]  ;;  %v14282_v38 = vor.u32 %v16765_v50, %v14279_v30  ;;  %v16809_v50 = vld [vmem:[#allocation3 + $0x3ec] sm:$0xf] }
 0x630   : > { %v14258_v51 = vor.u32 %v16760_v14, %v14255_v53  ;;  %v14455_v30 = vld [vmem:[#allocation3 + $0x3f8] sm:$0xf0]  ;;  %v14429_v14 = vld [vmem:[#allocation3 + $0x3c0] sm:$0xf]  ;;  %v16806_v53 = vld [vmem:[#allocation3 + $0x3cc] sm:$0xf0] }
 0x631   : > { %6527 = vst [vmem:[#allocation2] sm:$0xff] %v6525_v46  ;;  %v6516_v28 = vmax.f32 %v6511_v58, %v6512_v9  ;;  %v14261_v46 = vld [vmem:[#allocation3 + $0x268] sm:$0xf]  ;;  %v16763_v58 = vld [vmem:[#allocation3 + $0x274] sm:$0xf0] }
 0x632   : > { %v14262_v32 = vor.u32 %v16763_v58, %v14261_v46  ;;  %v16804_v58 = vld [vmem:[#allocation3 + $0x3c4] sm:$0xf] }
 0x633   : > { %v6518_v44 = vmax.f32 %v6514_v62, %v6516_v28  ;;  %v16761_v62 = vld [vmem:[#allocation3 + $0x26c] sm:$0xf]  ;;  %v14263_v28 = vld [vmem:[#allocation3 + $0x278] sm:$0xf0] }
 0x634   : > { %v14266_v43 = vor.u32 %v16761_v62, %v14263_v28  ;;  %v14431_v62 = vld [vmem:[#allocation3 + $0x3d0] sm:$0xf0]  ;;  %v14437_v28 = vld [vmem:[#allocation3 + $0x3c8] sm:$0xf] }
 0x635   : > { %v6524_v47 = vadd.f32 %v17264_v63, %v6518_v44  ;;  %v14277_v63 = vld [vmem:[#allocation3 + $0x288] sm:$0xf] }
 0x636   : > { %v14278_v34 = vor.u32 %v16767_v39, %v14277_v63  ;;  %v14210_v63 = vor.u32 %v16748_v7, %v14207_v17  ;;  %v16811_v39 = vld [vmem:[#allocation3 + $0x3f4] sm:$0xf0]  ;;  %v14381_v17 = vld [vmem:[#allocation3 + $0x360] sm:$0xf] }
 0x637   : > { %v6526_v41 = vmax.f32 %v6524_v47, 0.0  ;;  %v14254_v47 = vor.u32 %v16762_v60, %v14253_v19  ;;  %v14214_v19 = vor.u32 %v16751_v8, %v14213_v18  ;;  %v14383_v8 = vld [vmem:[#allocation3 + $0x370] sm:$0xf0] }
 0x638   : > { %v6563_v2 = vld [vmem:[#allocation2 + $0x1] ss:$2 sm:$0xf]  ;;  %v6529_v9 = vld [vmem:[#allocation2] ss:$2 sm:$0xf] }
 0x639   : > { %6528 = vst [vmem:[#allocation2 + $0x8] sm:$0xf] %v6526_v41  ;;  %v6564_v52 = vpack.c.bf16 %v6563_v2, %v6563_v2  ;;  %v6530_v44 = vpack.c.bf16 %v6529_v9, %v6529_v9  ;;  %v14239_v41 = vld [vmem:[#allocation3 + $0x250] sm:$0xf0]  ;;  %v16757_v2 = vld [vmem:[#allocation3 + $0x24c] sm:$0xf]  ;;  %v14458_v9 = vor.u32 %v16809_v50, %v14455_v30 }
 0x63a   : > { %v14242_v15 = vor.u32 %v16756_v25, %v14239_v41  ;;  %v14413_v41 = vld [vmem:[#allocation3 + $0x3a0] sm:$0xf]  ;;  %v14367_v30 = vld [vmem:[#allocation3 + $0x350] sm:$0xf0] }
 0x63b   : > { %6765 = vmatmul.bf16.vlgmr.msra.gmra.mxu0 %v6564_v52  ;;  %6778 = vmatmul.bf16.vlgmr.msrb.gmra.mxu1 %v6564_v52 }
 0x63c   : > { %6791 = vmatmul.bf16.vlgmr.msrb.gmra.mxu2 %v6564_v52  ;;  %6804 = vmatmul.bf16.vlgmr.msra.gmra.mxu3 %v6564_v52  ;;  %v14247_v52 = vld [vmem:[#allocation3 + $0x258] sm:$0xf0] }
 0x63d   : > { %7215 = vmatpush.bf16.msra.mxu0 %v14318_v12  ;;  %7228 = vmatpush.bf16.msrb.mxu1 %v14322_v36  ;;  %v14238_v36 = vor.u32 %v16758_v54, %v14237_v6  ;;  %v14250_v35 = vor.u32 %v16757_v2, %v14247_v52  ;;  %v14439_v6 = vld [vmem:[#allocation3 + $0x3d8] sm:$0xf0]  ;;  %v14415_v52 = vld [vmem:[#allocation3 + $0x3b0] sm:$0xf0] }
 0x63e   : > { %7241 = vmatpush.bf16.msrb.mxu2 %v14326_v23  ;;  %7254 = vmatpush.bf16.msra.mxu3 %v14330_v26  ;;  %v16754_v23 = vld [vmem:[#allocation3 + $0x22c] sm:$0xf0] }
 0x640   : > { %v7021_v46 = vld [vmem:[#allocation2 + $0x2] ss:$2 sm:$0xf] }
 0x641   : > { %7216 = vmatpush.bf16.msra.mxu0 %v14302_v16  ;;  %7229 = vmatpush.bf16.msrb.mxu1 %v14306_v29  ;;  %v16753_v16 = vld [vmem:[#allocation3 + $0x22c] sm:$0xf]  ;;  %v14231_v29 = vld [vmem:[#allocation3 + $0x238] sm:$0xf0]  ;;  %v7022_v54 = vpack.c.bf16 %v7021_v46, %v7021_v46  ;;  %v16784_v46 = vld [vmem:[#allocation3 + $0x324] sm:$0xf] }
 0x642   : > { %7242 = vmatpush.bf16.msrb.mxu2 %v14310_v22  ;;  %7255 = vmatpush.bf16.msra.mxu3 %v14314_v31  ;;  %v14222_v22 = vor.u32 %v16754_v23, %v14221_v48  ;;  %v14226_v31 = vor.u32 %v16752_v61, %v14223_v4  ;;  %v14234_v40 = vor.u32 %v16753_v16, %v14231_v29  ;;  %v14423_v48 = vld [vmem:[#allocation3 + $0x3b8] sm:$0xf0]  ;;  %v14397_v61 = vld [vmem:[#allocation3 + $0x380] sm:$0xf]  ;;  %v16798_v4 = vld [vmem:[#allocation3 + $0x38c] sm:$0xf0] }
 0x643   : > { %v14414_v23 = vor.u32 %v16802_v56, %v14413_v41  ;;  %v14399_v16 = vld [vmem:[#allocation3 + $0x390] sm:$0xf0]  ;;  %v14405_v29 = vld [vmem:[#allocation3 + $0x388] sm:$0xf]  ;;  %v16780_v41 = vld [vmem:[#allocation3 + $0x304] sm:$0xf] }
 0x644   : > { %v14335_v56 = vld [vmem:[#allocation3 + $0x310] sm:$0xf0] }
 0x645   : > { %7217 = vmatpush.bf16.msra.mxu0 %v14286_v5  ;;  %7230 = vmatpush.bf16.msrb.mxu1 %v14290_v1  ;;  %v16749_v5 = vld [vmem:[#allocation3 + $0x20c] sm:$0xf]  ;;  %v14215_v1 = vld [vmem:[#allocation3 + $0x218] sm:$0xf0] }
 0x646   : > { %7243 = vmatpush.bf16.msrb.mxu2 %v14294_v13  ;;  %7256 = vmatpush.bf16.msra.mxu3 %v14298_v49  ;;  %v16808_v13 = vld [vmem:[#allocation3 + $0x3e4] sm:$0xf]  ;;  %v14447_v49 = vld [vmem:[#allocation3 + $0x3f0] sm:$0xf0] }
 0x647   : > { %v14450_v60 = vor.u32 %v16808_v13, %v14447_v49 }
 0x649   : > { %7218 = vmatpush.bf16.msra.mxu0 %v14270_v21  ;;  %7231 = vmatpush.bf16.msrb.mxu1 %v14274_v55  ;;  %v14218_v21 = vor.u32 %v16749_v5, %v14215_v1  ;;  %v14446_v55 = vor.u32 %v16810_v37, %v14445_v24  ;;  %v14389_v5 = vld [vmem:[#allocation3 + $0x368] sm:$0xf]  ;;  %v16795_v1 = vld [vmem:[#allocation3 + $0x374] sm:$0xf0]  ;;  %v16793_v24 = vld [vmem:[#allocation3 + $0x36c] sm:$0xf] }
 0x64a   : > { %7244 = vmatpush.bf16.msrb.mxu2 %v14278_v34  ;;  %7257 = vmatpush.bf16.msra.mxu3 %v14282_v38  ;;  %v14454_v38 = vor.u32 %v16811_v39, %v14453_v27  ;;  %v14391_v37 = vld [vmem:[#allocation3 + $0x378] sm:$0xf0]  ;;  %v14390_v27 = vor.u32 %v16795_v1, %v14389_v5  ;;  %v16788_v39 = vld [vmem:[#allocation3 + $0x344] sm:$0xf]  ;;  %v16839_v5 = vld [vmem:[#allocation3 + $0x4d4] sm:$0xf0] }
 0x64b   : > { %6977 = vmatmul.bf16.vlgmr.msrb.gmra.mxu0 %v6530_v44  ;;  %6990 = vmatmul.bf16.vlgmr.msra.gmra.mxu1 %v6530_v44  ;;  %v14394_v50 = vor.u32 %v16793_v24, %v14391_v37  ;;  %v16837_v1 = vld [vmem:[#allocation3 + $0x4cc] sm:$0xf]  ;;  %v14567_v24 = vld [vmem:[#allocation3 + $0x4d8] sm:$0xf0] }
 0x64c   : > { %7003 = vmatmul.bf16.vlgmr.msra.gmra.mxu2 %v6530_v44  ;;  %7016 = vmatmul.bf16.vlgmr.msrb.gmra.mxu3 %v6530_v44  ;;  %v16807_v44 = vld [vmem:[#allocation3 + $0x3d4] sm:$0xf0] }
 0x64d   : > { %7219 = vmatpush.bf16.msra.mxu0 %v14254_v47  ;;  %7232 = vmatpush.bf16.msrb.mxu1 %v14258_v51  ;;  %v5751_v12 = vpop.xlane.xlu0 %5750  ;;  %v16805_v51 = vld [vmem:[#allocation3 + $0x3cc] sm:$0xf]  ;;  %v14438_v25 = vor.u32 %v16807_v44, %v14437_v28  ;;  %v14357_v28 = vld [vmem:[#allocation3 + $0x328] sm:$0xf]  ;;  %v16787_v44 = vld [vmem:[#allocation3 + $0x334] sm:$0xf0] }
 0x64e   : > { %7245 = vmatpush.bf16.msrb.mxu2 %v14262_v32  ;;  %7258 = vmatpush.bf16.msra.mxu3 %v14266_v43  ;;  %v19139_v26 = vsub.f32 %v19077_v0, %v5751_v12  ;;  %v14230_v0 = vor.u32 %v16755_v33, %v14229_v20  ;;  %v14430_v32 = vor.u32 %v16806_v53, %v14429_v14  ;;  %v14421_v12 = vld [vmem:[#allocation3 + $0x3a8] sm:$0xf]  ;;  %v16796_v20 = vld [vmem:[#allocation3 + $0x384] sm:$0xf] }
 0x64f   : > { %v14434_v43 = vor.u32 %v16804_v58, %v14431_v62  ;;  %v14442_v2 = vor.u32 %v16805_v51, %v14439_v6  ;;  %v14402_v57 = vor.u32 %v16796_v20, %v14399_v16  ;;  %v14370_v53 = vor.u32 %v16788_v39, %v14367_v30  ;;  %v14351_v62 = vld [vmem:[#allocation3 + $0x330] sm:$0xf0]  ;;  %v14359_v51 = vld [vmem:[#allocation3 + $0x338] sm:$0xf0]  ;;  %v16841_v16 = vld [vmem:[#allocation3 + $0x4ec] sm:$0xf] }
 0x650   : > { %v5753_v11 = vmul.f32 1.442695, %v19139_v26  ;;  %v14338_v20 = vor.u32 %v16780_v41, %v14335_v56  ;;  %v16832_v39 = vld [vmem:[#allocation3 + $0x4a4] sm:$0xf]  ;;  %v14543_v30 = vld [vmem:[#allocation3 + $0x4b0] sm:$0xf0] }
 0x651   : > { %7220 = vmatpush.bf16.msra.mxu0 %v14238_v36  ;;  %7233 = vmatpush.bf16.msrb.mxu1 %v14242_v15  ;;  %v16803_v36 = vld [vmem:[#allocation3 + $0x3b4] sm:$0xf0]  ;;  %v16801_v15 = vld [vmem:[#allocation3 + $0x3ac] sm:$0xf]  ;;  %v16824_v41 = vld [vmem:[#allocation3 + $0x464] sm:$0xf] }
 0x652   : > { %17268 = vpow2.f32 %v5753_v11  ;;  %7246 = vmatpush.bf16.msrb.mxu2 %v14246_v10  ;;  %7259 = vmatpush.bf16.msra.mxu3 %v14250_v35  ;;  %v14418_v10 = vor.u32 %v16800_v59, %v14415_v52  ;;  %v14422_v35 = vor.u32 %v16803_v36, %v14421_v12  ;;  %v14426_v33 = vor.u32 %v16801_v15, %v14423_v48  ;;  %v16799_v11 = vld [vmem:[#allocation3 + $0x394] sm:$0xf0]  ;;  %v14341_v59 = vld [vmem:[#allocation3 + $0x308] sm:$0xf]  ;;  %v16781_v12 = vld [vmem:[#allocation3 + $0x30c] sm:$0xf] }
 0x653   : > { %v14406_v7 = vor.u32 %v16799_v11, %v14405_v29  ;;  %v16783_v52 = vld [vmem:[#allocation3 + $0x314] sm:$0xf0]  ;;  %v14343_v36 = vld [vmem:[#allocation3 + $0x318] sm:$0xf0]  ;;  %v14573_v15 = vld [vmem:[#allocation3 + $0x4e0] sm:$0xf] }
 0x654   : > { %v16842_v48 = vld [vmem:[#allocation3 + $0x4ec] sm:$0xf0]  ;;  %v14583_v29 = vld [vmem:[#allocation3 + $0x4f8] sm:$0xf0]  ;;  %v14346_v11 = vor.u32 %v16781_v12, %v14343_v36  ;;  %v16825_v12 = vld [vmem:[#allocation3 + $0x46c] sm:$0xf] }
 0x655   : > { %7221 = vmatpush.bf16.msra.mxu0 %v14222_v22  ;;  %7234 = vmatpush.bf16.msrb.mxu1 %v14226_v31  ;;  %v14407_v22 = vld [vmem:[#allocation3 + $0x398] sm:$0xf0]  ;;  %v14398_v31 = vor.u32 %v16798_v4, %v14397_v61  ;;  %v14581_v61 = vld [vmem:[#allocation3 + $0x4e8] sm:$0xf]  ;;  %v16843_v4 = vld [vmem:[#allocation3 + $0x4f4] sm:$0xf0] }
 0x656   : > { %7247 = vmatpush.bf16.msrb.mxu2 %v14230_v0  ;;  %7260 = vmatpush.bf16.msra.mxu3 %v14234_v40  ;;  %v16794_v0 = vld [vmem:[#allocation3 + $0x36c] sm:$0xf0]  ;;  %v16792_v40 = vld [vmem:[#allocation3 + $0x364] sm:$0xf]  ;;  %v14410_v18 = vor.u32 %v16797_v3, %v14407_v22  ;;  %v14574_v3 = vor.u32 %v16842_v48, %v14573_v15  ;;  %v14519_v36 = vld [vmem:[#allocation3 + $0x478] sm:$0xf0] }
 0x657   : > { %v14382_v13 = vor.u32 %v16794_v0, %v14381_v17  ;;  %v14386_v49 = vor.u32 %v16792_v40, %v14383_v8  ;;  %v7271_v22 = vld [vmem:[#allocation2 + $0x3] ss:$2 sm:$0xf]  ;;  %v16836_v0 = vld [vmem:[#allocation3 + $0x4c4] sm:$0xf]  ;;  %v14586_v40 = vor.u32 %v16841_v16, %v14583_v29 }
 0x658   : > { %v17269_v34 = vpop.eup %17268  ;;  %v16838_v17 = vld [vmem:[#allocation3 + $0x4cc] sm:$0xf0]  ;;  %v14565_v8 = vld [vmem:[#allocation3 + $0x4c8] sm:$0xf]  ;;  %v7272_v37 = vpack.c.bf16 %v7271_v22, %v7271_v22  ;;  %v16823_v16 = vld [vmem:[#allocation3 + $0x454] sm:$0xf0] }
 0x659   : > { %7222 = vmatpush.bf16.msra.mxu0 %v14206_v45  ;;  %7235 = vmatpush.bf16.msrb.mxu1 %v14210_v63  ;;  %v5755_v47 = vsel %vm3063_vm2, %v17269_v34, 0.0  ;;  %v14365_v45 = vld [vmem:[#allocation3 + $0x340] sm:$0xf]  ;;  %v16790_v63 = vld [vmem:[#allocation3 + $0x34c] sm:$0xf0] }
 0x65a   : > { %7248 = vmatpush.bf16.msrb.mxu2 %v14214_v19  ;;  %7261 = vmatpush.bf16.msra.mxu3 %v14218_v21  ;;  %v14373_v19 = vld [vmem:[#allocation3 + $0x348] sm:$0xf]  ;;  %v16791_v21 = vld [vmem:[#allocation3 + $0x354] sm:$0xf0]  ;;  %v14366_v14 = vor.u32 %v16790_v63, %v14365_v45  ;;  %v14541_v45 = vld [vmem:[#allocation3 + $0x4a0] sm:$0xf] }
 0x65b   : > { %5756 = vadd.xlane.f32.xlu2 %v5755_v47  ;;  %v14374_v34 = vor.u32 %v16791_v21, %v14373_v19  ;;  %v16785_v47 = vld [vmem:[#allocation3 + $0x32c] sm:$0xf]  ;;  %v16834_v63 = vld [vmem:[#allocation3 + $0x4ac] sm:$0xf0]  ;;  %v14549_v19 = vld [vmem:[#allocation3 + $0x4a8] sm:$0xf] }
 0x65c   : > { %7223 = vmatmul.bf16.vlgmr.msra.gmra.mxu0 %v7022_v54  ;;  %7236 = vmatmul.bf16.vlgmr.msrb.gmra.mxu1 %v7022_v54  ;;  %v16835_v21 = vld [vmem:[#allocation3 + $0x4b4] sm:$0xf0]  ;;  %v16821_v29 = vld [vmem:[#allocation3 + $0x44c] sm:$0xf] }
 0x65d   : > { %7465 = vmatpush.bf16.msrb.mxu0 %v14446_v55  ;;  %7478 = vmatpush.bf16.msra.mxu1 %v14450_v60  ;;  %v16789_v55 = vld [vmem:[#allocation3 + $0x34c] sm:$0xf]  ;;  %v14375_v60 = vld [vmem:[#allocation3 + $0x358] sm:$0xf0] }
 0x65e   : > { %7491 = vmatpush.bf16.msra.mxu2 %v14454_v38  ;;  %7504 = vmatpush.bf16.msrb.mxu3 %v14458_v9  ;;  %v14349_v38 = vld [vmem:[#allocation3 + $0x320] sm:$0xf]  ;;  %v16786_v9 = vld [vmem:[#allocation3 + $0x32c] sm:$0xf0]  ;;  %v14378_v58 = vor.u32 %v16789_v55, %v14375_v60  ;;  %v16833_v55 = vld [vmem:[#allocation3 + $0x4ac] sm:$0xf] }
 0x65f   : > { %7249 = vmatmul.bf16.vlgmr.msrb.gmra.mxu2 %v7022_v54  ;;  %7262 = vmatmul.bf16.vlgmr.msra.gmra.mxu3 %v7022_v54  ;;  %v14350_v6 = vor.u32 %v16786_v9, %v14349_v38  ;;  %v14333_v54 = vld [vmem:[#allocation3 + $0x300] sm:$0xf]  ;;  %v14551_v60 = vld [vmem:[#allocation3 + $0x4b8] sm:$0xf0]  ;;  %v16830_v9 = vld [vmem:[#allocation3 + $0x48c] sm:$0xf0] }
 0x660   : > { %v14525_v38 = vld [vmem:[#allocation3 + $0x480] sm:$0xf] }
 0x661   : > { %7466 = vmatpush.bf16.msrb.mxu0 %v14430_v32  ;;  %7479 = vmatpush.bf16.msra.mxu1 %v14434_v43  ;;  %v16782_v32 = vld [vmem:[#allocation3 + $0x30c] sm:$0xf0]  ;;  %v14354_v43 = vor.u32 %v16784_v46, %v14351_v62  ;;  %v16828_v46 = vld [vmem:[#allocation3 + $0x484] sm:$0xf]  ;;  %v14527_v62 = vld [vmem:[#allocation3 + $0x490] sm:$0xf0] }
 0x662   : > { %7492 = vmatpush.bf16.msra.mxu2 %v14438_v25  ;;  %7505 = vmatpush.bf16.msrb.mxu3 %v14442_v2  ;;  %v14358_v25 = vor.u32 %v16787_v44, %v14357_v28  ;;  %v14362_v2 = vor.u32 %v16785_v47, %v14359_v51  ;;  %v14533_v28 = vld [vmem:[#allocation3 + $0x488] sm:$0xf]  ;;  %v16831_v44 = vld [vmem:[#allocation3 + $0x494] sm:$0xf0]  ;;  %v16829_v47 = vld [vmem:[#allocation3 + $0x48c] sm:$0xf] }
 0x663   : > { %v14535_v51 = vld [vmem:[#allocation3 + $0x498] sm:$0xf0] }
 0x664   : > { %v14538_v56 = vor.u32 %v16829_v47, %v14535_v51  ;;  %v7521_v51 = vld [vmem:[#allocation2 + $0x4] ss:$2 sm:$0xf] }
 0x665   : > { %7467 = vmatpush.bf16.msrb.mxu0 %v14414_v23  ;;  %7480 = vmatpush.bf16.msra.mxu1 %v14418_v10  ;;  %v16840_v23 = vld [vmem:[#allocation3 + $0x4e4] sm:$0xf]  ;;  %v14334_v10 = vor.u32 %v16782_v32, %v14333_v54  ;;  %v14530_v54 = vor.u32 %v16828_v46, %v14527_v62  ;;  %v14534_v32 = vor.u32 %v16831_v44, %v14533_v28  ;;  %v16873_v62 = vld [vmem:[#allocation3 + $0x5ec] sm:$0xf]  ;;  %v14711_v28 = vld [vmem:[#allocation3 + $0x5f8] sm:$0xf0] }
 0x666   : > { %7493 = vmatpush.bf16.msra.mxu2 %v14422_v35  ;;  %7506 = vmatpush.bf16.msrb.mxu3 %v14426_v33  ;;  %v14575_v35 = vld [vmem:[#allocation3 + $0x4f0] sm:$0xf0]  ;;  %v14342_v33 = vor.u32 %v16783_v52, %v14341_v59  ;;  %v16827_v52 = vld [vmem:[#allocation3 + $0x474] sm:$0xf0] }
 0x667   : > { %v14511_v59 = vld [vmem:[#allocation3 + $0x470] sm:$0xf0] }
 0x668   : > { %v14514_v48 = vor.u32 %v16824_v41, %v14511_v59  ;;  %v14714_v41 = vor.u32 %v16873_v62, %v14711_v28  ;;  %v14693_v59 = vld [vmem:[#allocation3 + $0x5c8] sm:$0xf]  ;;  %v16855_v62 = vld [vmem:[#allocation3 + $0x554] sm:$0xf0]  ;;  %v16853_v28 = vld [vmem:[#allocation3 + $0x54c] sm:$0xf] }
 0x669   : > { %7468 = vmatpush.bf16.msrb.mxu0 %v14398_v31  ;;  %7481 = vmatpush.bf16.msra.mxu1 %v14402_v57  ;;  %v14578_v31 = vor.u32 %v16840_v23, %v14575_v35  ;;  %v14582_v57 = vor.u32 %v16843_v4, %v14581_v61  ;;  %v16822_v35 = vld [vmem:[#allocation3 + $0x44c] sm:$0xf0]  ;;  %v16820_v61 = vld [vmem:[#allocation3 + $0x444] sm:$0xf]  ;;  %v14522_v4 = vor.u32 %v16825_v12, %v14519_v36  ;;  %v14695_v12 = vld [vmem:[#allocation3 + $0x5d8] sm:$0xf0] }
 0x66a   : > { %7494 = vmatpush.bf16.msra.mxu2 %v14406_v7  ;;  %7507 = vmatpush.bf16.msrb.mxu3 %v14410_v18  ;;  %v14557_v7 = vld [vmem:[#allocation3 + $0x4c0] sm:$0xf]  ;;  %v14559_v18 = vld [vmem:[#allocation3 + $0x4d0] sm:$0xf0]  ;;  %v7522_v36 = vpack.c.bf16 %v7521_v51, %v7521_v51 }
 0x66d   : > { %7469 = vmatpush.bf16.msrb.mxu0 %v14382_v13  ;;  %7482 = vmatpush.bf16.msra.mxu1 %v14386_v49  ;;  %v14558_v13 = vor.u32 %v16838_v17, %v14557_v7  ;;  %v14562_v49 = vor.u32 %v16836_v0, %v14559_v18  ;;  %v16818_v7 = vld [vmem:[#allocation3 + $0x42c] sm:$0xf0]  ;;  %v16816_v17 = vld [vmem:[#allocation3 + $0x424] sm:$0xf]  ;;  %v14485_v18 = vld [vmem:[#allocation3 + $0x428] sm:$0xf] }
 0x66e   : > { %7495 = vmatpush.bf16.msra.mxu2 %v14390_v27  ;;  %7508 = vmatpush.bf16.msrb.mxu3 %v14394_v50  ;;  %v14566_v27 = vor.u32 %v16839_v5, %v14565_v8  ;;  %v14570_v50 = vor.u32 %v16837_v1, %v14567_v24  ;;  %v16819_v8 = vld [vmem:[#allocation3 + $0x434] sm:$0xf0]  ;;  %v16817_v5 = vld [vmem:[#allocation3 + $0x42c] sm:$0xf]  ;;  %v14487_v1 = vld [vmem:[#allocation3 + $0x438] sm:$0xf0] }
 0x671   : > { %7470 = vmatpush.bf16.msrb.mxu0 %v14366_v14  ;;  %7483 = vmatpush.bf16.msra.mxu1 %v14370_v53  ;;  %v14542_v14 = vor.u32 %v16834_v63, %v14541_v45  ;;  %v14546_v53 = vor.u32 %v16832_v39, %v14543_v30  ;;  %v16812_v45 = vld [vmem:[#allocation3 + $0x404] sm:$0xf]  ;;  %v14463_v63 = vld [vmem:[#allocation3 + $0x410] sm:$0xf0]  ;;  %v14469_v39 = vld [vmem:[#allocation3 + $0x408] sm:$0xf] }
 0x672   : > { %7496 = vmatpush.bf16.msra.mxu2 %v14374_v34  ;;  %7509 = vmatpush.bf16.msrb.mxu3 %v14378_v58  ;;  %v14550_v34 = vor.u32 %v16835_v21, %v14549_v19  ;;  %v14554_v58 = vor.u32 %v16833_v55, %v14551_v60  ;;  %v16815_v30 = vld [vmem:[#allocation3 + $0x414] sm:$0xf0]  ;;  %v16813_v19 = vld [vmem:[#allocation3 + $0x40c] sm:$0xf]  ;;  %v14471_v21 = vld [vmem:[#allocation3 + $0x418] sm:$0xf0]  ;;  %v14466_v46 = vor.u32 %v16812_v45, %v14463_v63 }
 0x673   : > { %v14701_v55 = vld [vmem:[#allocation3 + $0x5e0] sm:$0xf]  ;;  %v16874_v60 = vld [vmem:[#allocation3 + $0x5ec] sm:$0xf0]  ;;  %v14474_v44 = vor.u32 %v16813_v19, %v14471_v21  ;;  %v16856_v45 = vld [vmem:[#allocation3 + $0x564] sm:$0xf] }
 0x674   : > { %v14702_v47 = vor.u32 %v16874_v60, %v14701_v55  ;;  %v16857_v19 = vld [vmem:[#allocation3 + $0x56c] sm:$0xf]  ;;  %v14647_v21 = vld [vmem:[#allocation3 + $0x578] sm:$0xf0] }
 0x675   : > { %7471 = vmatpush.bf16.msrb.mxu0 %v14350_v6  ;;  %7484 = vmatpush.bf16.msra.mxu1 %v14354_v43  ;;  %v14526_v6 = vor.u32 %v16830_v9, %v14525_v38  ;;  %v14509_v43 = vld [vmem:[#allocation3 + $0x460] sm:$0xf]  ;;  %v14709_v38 = vld [vmem:[#allocation3 + $0x5e8] sm:$0xf]  ;;  %v16875_v9 = vld [vmem:[#allocation3 + $0x5f4] sm:$0xf0] }
 0x676   : > { %7497 = vmatpush.bf16.msra.mxu2 %v14358_v25  ;;  %7510 = vmatpush.bf16.msrb.mxu3 %v14362_v2  ;;  %v16826_v25 = vld [vmem:[#allocation3 + $0x46c] sm:$0xf0]  ;;  %v14517_v2 = vld [vmem:[#allocation3 + $0x468] sm:$0xf] }
 0x677   : > { %v14510_v15 = vor.u32 %v16826_v25, %v14509_v43  ;;  %v14518_v23 = vor.u32 %v16827_v52, %v14517_v2  ;;  %v16870_v43 = vld [vmem:[#allocation3 + $0x5cc] sm:$0xf0]  ;;  %v16868_v25 = vld [vmem:[#allocation3 + $0x5c4] sm:$0xf]  ;;  %v16871_v2 = vld [vmem:[#allocation3 + $0x5d4] sm:$0xf0] }
 0x678   : > { %v16869_v52 = vld [vmem:[#allocation3 + $0x5cc] sm:$0xf] }
 0x679   : > { %7472 = vmatpush.bf16.msrb.mxu0 %v14334_v10  ;;  %7485 = vmatpush.bf16.msra.mxu1 %v14338_v20  ;;  %v14493_v10 = vld [vmem:[#allocation3 + $0x440] sm:$0xf]  ;;  %v14495_v20 = vld [vmem:[#allocation3 + $0x450] sm:$0xf0] }
 0x67a   : > { %7498 = vmatpush.bf16.msra.mxu2 %v14342_v33  ;;  %7511 = vmatpush.bf16.msrb.mxu3 %v14346_v11  ;;  %v14501_v33 = vld [vmem:[#allocation3 + $0x448] sm:$0xf]  ;;  %v14503_v11 = vld [vmem:[#allocation3 + $0x458] sm:$0xf0]  ;;  %v14498_v22 = vor.u32 %v16820_v61, %v14495_v20  ;;  %v16864_v61 = vld [vmem:[#allocation3 + $0x5a4] sm:$0xf] }
 0x67b   : > { %v14506_v0 = vor.u32 %v16821_v29, %v14503_v11  ;;  %v14671_v20 = vld [vmem:[#allocation3 + $0x5b0] sm:$0xf0]  ;;  %v16865_v29 = vld [vmem:[#allocation3 + $0x5ac] sm:$0xf]  ;;  %v14679_v11 = vld [vmem:[#allocation3 + $0x5b8] sm:$0xf0] }
 0x67c   : > { %7473 = vmatmul.bf16.vlgmr.msrb.gmra.mxu0 %v7272_v37  ;;  %7486 = vmatmul.bf16.vlgmr.msra.gmra.mxu1 %v7272_v37 }
 0x67d   : > { %7715 = vmatpush.bf16.msra.mxu0 %v14574_v3  ;;  %7728 = vmatpush.bf16.msrb.mxu1 %v14578_v31  ;;  %v14494_v3 = vor.u32 %v16822_v35, %v14493_v10  ;;  %v14502_v31 = vor.u32 %v16823_v16, %v14501_v33  ;;  %v14669_v10 = vld [vmem:[#allocation3 + $0x5a0] sm:$0xf]  ;;  %v16866_v35 = vld [vmem:[#allocation3 + $0x5ac] sm:$0xf0]  ;;  %v14677_v33 = vld [vmem:[#allocation3 + $0x5a8] sm:$0xf] }
 0x67e   : > { %7741 = vmatpush.bf16.msrb.mxu2 %v14582_v57  ;;  %7754 = vmatpush.bf16.msra.mxu3 %v14586_v40  ;;  %v14477_v57 = vld [vmem:[#allocation3 + $0x420] sm:$0xf]  ;;  %v14479_v40 = vld [vmem:[#allocation3 + $0x430] sm:$0xf0]  ;;  %v16867_v16 = vld [vmem:[#allocation3 + $0x5b4] sm:$0xf0] }
 0x67f   : > { %7499 = vmatmul.bf16.vlgmr.msra.gmra.mxu2 %v7272_v37  ;;  %7512 = vmatmul.bf16.vlgmr.msrb.gmra.mxu3 %v7272_v37  ;;  %v14478_v24 = vor.u32 %v16818_v7, %v14477_v57  ;;  %v14461_v37 = vld [vmem:[#allocation3 + $0x400] sm:$0xf]  ;;  %v16862_v7 = vld [vmem:[#allocation3 + $0x58c] sm:$0xf0] }
 0x680   : > { %v14653_v57 = vld [vmem:[#allocation3 + $0x580] sm:$0xf] }
 0x681   : > { %7716 = vmatpush.bf16.msra.mxu0 %v14558_v13  ;;  %7729 = vmatpush.bf16.msrb.mxu1 %v14562_v49  ;;  %v16814_v13 = vld [vmem:[#allocation3 + $0x40c] sm:$0xf0]  ;;  %v14482_v49 = vor.u32 %v16816_v17, %v14479_v40  ;;  %v16860_v17 = vld [vmem:[#allocation3 + $0x584] sm:$0xf]  ;;  %v14655_v40 = vld [vmem:[#allocation3 + $0x590] sm:$0xf0] }
 0x682   : > { %7742 = vmatpush.bf16.msrb.mxu2 %v14566_v27  ;;  %7755 = vmatpush.bf16.msra.mxu3 %v14570_v50  ;;  %v14486_v27 = vor.u32 %v16819_v8, %v14485_v18  ;;  %v14490_v50 = vor.u32 %v16817_v5, %v14487_v1  ;;  %v14661_v18 = vld [vmem:[#allocation3 + $0x588] sm:$0xf]  ;;  %v16863_v8 = vld [vmem:[#allocation3 + $0x594] sm:$0xf0]  ;;  %v16861_v5 = vld [vmem:[#allocation3 + $0x58c] sm:$0xf] }
 0x683   : > { %v14663_v1 = vld [vmem:[#allocation3 + $0x598] sm:$0xf0] }
 0x684   : > { %v14666_v63 = vor.u32 %v16861_v5, %v14663_v1 }
 0x685   : > { %7717 = vmatpush.bf16.msra.mxu0 %v14542_v14  ;;  %7730 = vmatpush.bf16.msrb.mxu1 %v14546_v53  ;;  %v16872_v14 = vld [vmem:[#allocation3 + $0x5e4] sm:$0xf]  ;;  %v14462_v53 = vor.u32 %v16814_v13, %v14461_v37  ;;  %v14658_v37 = vor.u32 %v16860_v17, %v14655_v40  ;;  %v14662_v13 = vor.u32 %v16863_v8, %v14661_v18 }
 0x686   : > { %7743 = vmatpush.bf16.msrb.mxu2 %v14550_v34  ;;  %7756 = vmatpush.bf16.msra.mxu3 %v14554_v58  ;;  %v14703_v34 = vld [vmem:[#allocation3 + $0x5f0] sm:$0xf0]  ;;  %v14470_v58 = vor.u32 %v16815_v30, %v14469_v39  ;;  %v16859_v30 = vld [vmem:[#allocation3 + $0x574] sm:$0xf0] }
 0x687   : > { %v14639_v39 = vld [vmem:[#allocation3 + $0x570] sm:$0xf0] }
 0x688   : > { %v14642_v60 = vor.u32 %v16856_v45, %v14639_v39 }
 0x689   : > { %7718 = vmatpush.bf16.msra.mxu0 %v14526_v6  ;;  %7731 = vmatpush.bf16.msrb.mxu1 %v14530_v54  ;;  %v14706_v6 = vor.u32 %v16872_v14, %v14703_v34  ;;  %v14710_v54 = vor.u32 %v16875_v9, %v14709_v38  ;;  %v16854_v34 = vld [vmem:[#allocation3 + $0x54c] sm:$0xf0]  ;;  %v16852_v38 = vld [vmem:[#allocation3 + $0x544] sm:$0xf]  ;;  %v14650_v9 = vor.u32 %v16857_v19, %v14647_v21 }
 0x68a   : > { %7744 = vmatpush.bf16.msrb.mxu2 %v14534_v32  ;;  %7757 = vmatpush.bf16.msra.mxu3 %v14538_v56  ;;  %v14685_v32 = vld [vmem:[#allocation3 + $0x5c0] sm:$0xf]  ;;  %v14687_v56 = vld [vmem:[#allocation3 + $0x5d0] sm:$0xf0] }
 0x68d   : > { %7719 = vmatpush.bf16.msra.mxu0 %v14510_v15  ;;  %7732 = vmatpush.bf16.msrb.mxu1 %v14514_v48  ;;  %v14686_v15 = vor.u32 %v16870_v43, %v14685_v32  ;;  %v14690_v48 = vor.u32 %v16868_v25, %v14687_v56  ;;  %v16850_v32 = vld [vmem:[#allocation3 + $0x52c] sm:$0xf0]  ;;  %v16848_v43 = vld [vmem:[#allocation3 + $0x524] sm:$0xf]  ;;  %v14613_v56 = vld [vmem:[#allocation3 + $0x528] sm:$0xf] }
 0x68e   : > { %7745 = vmatpush.bf16.msrb.mxu2 %v14518_v23  ;;  %7758 = vmatpush.bf16.msra.mxu3 %v14522_v4  ;;  %v14694_v23 = vor.u32 %v16871_v2, %v14693_v59  ;;  %v14698_v4 = vor.u32 %v16869_v52, %v14695_v12  ;;  %v16851_v59 = vld [vmem:[#allocation3 + $0x534] sm:$0xf0]  ;;  %v16849_v2 = vld [vmem:[#allocation3 + $0x52c] sm:$0xf]  ;;  %v14615_v52 = vld [vmem:[#allocation3 + $0x538] sm:$0xf0] }
 0x691   : > { %7720 = vmatpush.bf16.msra.mxu0 %v14494_v3  ;;  %7733 = vmatpush.bf16.msrb.mxu1 %v14498_v22  ;;  %v14670_v3 = vor.u32 %v16866_v35, %v14669_v10  ;;  %v14674_v22 = vor.u32 %v16864_v61, %v14671_v20  ;;  %v16844_v10 = vld [vmem:[#allocation3 + $0x504] sm:$0xf]  ;;  %v14618_v35 = vor.u32 %v16849_v2, %v14615_v52  ;;  %v14591_v61 = vld [vmem:[#allocation3 + $0x510] sm:$0xf0]  ;;  %v16847_v20 = vld [vmem:[#allocation3 + $0x514] sm:$0xf0] }
 0x692   : > { %7746 = vmatpush.bf16.msrb.mxu2 %v14502_v31  ;;  %7759 = vmatpush.bf16.msra.mxu3 %v14506_v0  ;;  %v14678_v31 = vor.u32 %v16867_v16, %v14677_v33  ;;  %v14682_v0 = vor.u32 %v16865_v29, %v14679_v11  ;;  %v16845_v33 = vld [vmem:[#allocation3 + $0x50c] sm:$0xf]  ;;  %v14599_v16 = vld [vmem:[#allocation3 + $0x518] sm:$0xf0]  ;;  %v14594_v11 = vor.u32 %v16844_v10, %v14591_v61  ;;  %v16906_v10 = vld [vmem:[#allocation6 + $0xf0] sm:$0xff] }
 0x693   : > { %v16907_v2 = vld [vmem:[#allocation6 + $0xf8] sm:$0xff]  ;;  %v16897_v61 = vld [vmem:[#allocation6 + $0xa8] sm:$0xff] }
 0x695   : > { %7721 = vmatpush.bf16.msra.mxu0 %v14478_v24  ;;  %7734 = vmatpush.bf16.msrb.mxu1 %v14482_v49  ;;  %v14654_v24 = vor.u32 %v16862_v7, %v14653_v57  ;;  %v14637_v49 = vld [vmem:[#allocation3 + $0x560] sm:$0xf] }
 0x696   : > { %7747 = vmatpush.bf16.msrb.mxu2 %v14486_v27  ;;  %7760 = vmatpush.bf16.msra.mxu3 %v14490_v50  ;;  %v16858_v27 = vld [vmem:[#allocation3 + $0x56c] sm:$0xf0]  ;;  %v14645_v50 = vld [vmem:[#allocation3 + $0x568] sm:$0xf] }
 0x697   : > { %v14638_v55 = vor.u32 %v16858_v27, %v14637_v49  ;;  %v14646_v14 = vor.u32 %v16859_v30, %v14645_v50 }
 0x699   : > { %7722 = vmatpush.bf16.msra.mxu0 %v14462_v53  ;;  %7735 = vmatpush.bf16.msrb.mxu1 %v14466_v46  ;;  %v14621_v53 = vld [vmem:[#allocation3 + $0x540] sm:$0xf]  ;;  %v14623_v46 = vld [vmem:[#allocation3 + $0x550] sm:$0xf0] }
 0x69a   : > { %7748 = vmatpush.bf16.msrb.mxu2 %v14470_v58  ;;  %7761 = vmatpush.bf16.msra.mxu3 %v14474_v44  ;;  %v14629_v58 = vld [vmem:[#allocation3 + $0x548] sm:$0xf]  ;;  %v14631_v44 = vld [vmem:[#allocation3 + $0x558] sm:$0xf0]  ;;  %v14626_v51 = vor.u32 %v16852_v38, %v14623_v46 }
 0x69b   : > { %v14634_v25 = vor.u32 %v16853_v28, %v14631_v44 }
 0x69c   : > { %7723 = vmatmul.bf16.vlgmr.msra.gmra.mxu0 %v7522_v36  ;;  %7736 = vmatmul.bf16.vlgmr.msrb.gmra.mxu1 %v7522_v36 }
 0x69d   : > { %7965 = vmatpush.bf16.msrb.mxu0 %v14702_v47  ;;  %7978 = vmatpush.bf16.msra.mxu1 %v14706_v6  ;;  %v14622_v47 = vor.u32 %v16854_v34, %v14621_v53  ;;  %v14630_v6 = vor.u32 %v16855_v62, %v14629_v58 }
 0x69e   : > { %7991 = vmatpush.bf16.msra.mxu2 %v14710_v54  ;;  %8004 = vmatpush.bf16.msrb.mxu3 %v14714_v41  ;;  %v14605_v54 = vld [vmem:[#allocation3 + $0x520] sm:$0xf]  ;;  %v14607_v41 = vld [vmem:[#allocation3 + $0x530] sm:$0xf0] }
 0x69f   : > { %7749 = vmatmul.bf16.vlgmr.msrb.gmra.mxu2 %v7522_v36  ;;  %7762 = vmatmul.bf16.vlgmr.msra.gmra.mxu3 %v7522_v36  ;;  %v14606_v12 = vor.u32 %v16850_v32, %v14605_v54  ;;  %v14610_v36 = vor.u32 %v16848_v43, %v14607_v41  ;;  %v16891_v41 = vld [vmem:[#allocation6 + $0x78] sm:$0xff] }
 0x6a1   : > { %7966 = vmatpush.bf16.msrb.mxu0 %v14686_v15  ;;  %7979 = vmatpush.bf16.msra.mxu1 %v14690_v48  ;;  %v14614_v15 = vor.u32 %v16851_v59, %v14613_v56  ;;  %v14589_v48 = vld [vmem:[#allocation3 + $0x500] sm:$0xf]  ;;  %v16899_v59 = vld [vmem:[#allocation6 + $0xb8] sm:$0xff] }
 0x6a2   : > { %7992 = vmatpush.bf16.msra.mxu2 %v14694_v23  ;;  %8005 = vmatpush.bf16.msrb.mxu3 %v14698_v4  ;;  %v16846_v23 = vld [vmem:[#allocation3 + $0x50c] sm:$0xf0]  ;;  %v14597_v4 = vld [vmem:[#allocation3 + $0x508] sm:$0xf] }
 0x6a3   : > { %v14590_v29 = vor.u32 %v16846_v23, %v14589_v48  ;;  %v16881_v48 = vld [vmem:[#allocation6 + $0x28] sm:$0xff]  ;;  %v16880_v23 = vld [vmem:[#allocation6 + $0x20] sm:$0xff] }
 0x6a5   : > { %7967 = vmatpush.bf16.msrb.mxu0 %v14670_v3  ;;  %7980 = vmatpush.bf16.msra.mxu1 %v14674_v22  ;;  %v14598_v3 = vor.u32 %v16847_v20, %v14597_v4  ;;  %v14602_v22 = vor.u32 %v16845_v33, %v14599_v16  ;;  %v16879_v33 = vld [vmem:[#allocation6 + $0x18] sm:$0xff]  ;;  %v16905_v16 = vld [vmem:[#allocation6 + $0xe8] sm:$0xff] }
 0x6a6   : > { %7993 = vmatpush.bf16.msra.mxu2 %v14678_v31  ;;  %8006 = vmatpush.bf16.msrb.mxu3 %v14682_v0  ;;  %v7771_v31 = vld [vmem:[#allocation2 + $0x5] ss:$2 sm:$0xf] }
 0x6a7   : > { %v7772_v57 = vpack.c.bf16 %v7771_v31, %v7771_v31 }
 0x6a9   : > { %7968 = vmatpush.bf16.msrb.mxu0 %v14654_v24  ;;  %7981 = vmatpush.bf16.msra.mxu1 %v14658_v37 }
 0x6aa   : > { %7994 = vmatpush.bf16.msra.mxu2 %v14662_v13  ;;  %8007 = vmatpush.bf16.msrb.mxu3 %v14666_v63 }
 0x6ad   : > { %7969 = vmatpush.bf16.msrb.mxu0 %v14638_v55  ;;  %7982 = vmatpush.bf16.msra.mxu1 %v14642_v60 }
 0x6ae   : > { %7995 = vmatpush.bf16.msra.mxu2 %v14646_v14  ;;  %8008 = vmatpush.bf16.msrb.mxu3 %v14650_v9 }
 0x6b1   : > { %7970 = vmatpush.bf16.msrb.mxu0 %v14622_v47  ;;  %7983 = vmatpush.bf16.msra.mxu1 %v14626_v51 }
 0x6b2   : > { %7996 = vmatpush.bf16.msra.mxu2 %v14630_v6  ;;  %8009 = vmatpush.bf16.msrb.mxu3 %v14634_v25  ;;  %v16883_v25 = vld [vmem:[#allocation6 + $0x38] sm:$0xff] }
 0x6b5   : > { %7971 = vmatpush.bf16.msrb.mxu0 %v14606_v12  ;;  %7984 = vmatpush.bf16.msra.mxu1 %v14610_v36  ;;  %v16882_v12 = vld [vmem:[#allocation6 + $0x30] sm:$0xff] }
 0x6b6   : > { %7997 = vmatpush.bf16.msra.mxu2 %v14614_v15  ;;  %8010 = vmatpush.bf16.msrb.mxu3 %v14618_v35  ;;  %v16890_v36 = vld [vmem:[#allocation6 + $0x70] sm:$0xff]  ;;  %v16889_v35 = vld [vmem:[#allocation6 + $0x68] sm:$0xff] }
 0x6b7   : > { %v16898_v15 = vld [vmem:[#allocation6 + $0xb0] sm:$0xff] }
 0x6b8   : > { %v6766_v7 = vpop.f32.mrf.mxu0  ;;  %v6779_v17 = vpop.f32.mrf.mxu1 }
 0x6b9   : > { %7972 = vmatpush.bf16.msrb.mxu0 %v14590_v29  ;;  %7985 = vmatpush.bf16.msra.mxu1 %v14594_v11  ;;  %v16888_v29 = vld [vmem:[#allocation6 + $0x60] sm:$0xff] }
 0x6ba   : > { %7998 = vmatpush.bf16.msra.mxu2 %v14598_v3  ;;  %8011 = vmatpush.bf16.msrb.mxu3 %v14602_v22  ;;  %v16896_v11 = vld [vmem:[#allocation6 + $0xa0] sm:$0xff]  ;;  %v16878_v3 = vld [vmem:[#allocation6 + $0x10] sm:$0xff] }
 0x6bb   : > { %v16904_v22 = vld [vmem:[#allocation6 + $0xe0] sm:$0xff] }
 0x6bc   : > { %7973 = vmatmul.bf16.vlgmr.msrb.gmra.mxu0 %v7772_v57  ;;  %7986 = vmatmul.bf16.vlgmr.msra.gmra.mxu1 %v7772_v57 }
 0x6bd   : > { %7999 = vmatmul.bf16.vlgmr.msra.gmra.mxu2 %v7772_v57  ;;  %8012 = vmatmul.bf16.vlgmr.msrb.gmra.mxu3 %v7772_v57  ;;  %v16887_v57 = vld [vmem:[#allocation6 + $0x58] sm:$0xff] }
 0x6be   : > { %8179 = vmatpush.bf16.msrb.mxu1 %v16883_v25  ;;  %8118 = vmatpush.bf16.msra.mxu0 %v16891_v41  ;;  %v16930_v41 = vld [vmem:[%s19790_s1 + $0x6c] sm:$0x30] }
 0x6bf   : > { %v6792_v0 = vpop.f32.mrf.mxu2  ;;  %v6805_v40 = vpop.f32.mrf.mxu3  ;;  %8258 = vmatpush.bf16.msrb.mxu2 %v16899_v59  ;;  %8338 = vmatpush.bf16.msra.mxu3 %v16907_v2 }
 0x6c0   : > { %v6768_v18 = vpop.f32.mrf.mxu0  ;;  %v6781_v8 = vpop.f32.mrf.mxu1 }
 0x6c1   : > { %v16877_v18 = vld [vmem:[#allocation6 + $0x8] sm:$0xff]  ;;  %v16903_v8 = vld [vmem:[#allocation6 + $0xd8] sm:$0xff] }
 0x6c2   : > { %8180 = vmatpush.bf16.msrb.mxu1 %v16882_v12  ;;  %8119 = vmatpush.bf16.msra.mxu0 %v16890_v36 }
 0x6c3   : > { %8259 = vmatpush.bf16.msrb.mxu2 %v16898_v15  ;;  %8339 = vmatpush.bf16.msra.mxu3 %v16906_v10 }
 0x6c6   : > { %8181 = vmatpush.bf16.msrb.mxu1 %v16881_v48  ;;  %8120 = vmatpush.bf16.msra.mxu0 %v16889_v35 }
 0x6c7   : > { %v6794_v5 = vpop.f32.mrf.mxu2  ;;  %v6807_v1 = vpop.f32.mrf.mxu3  ;;  %8260 = vmatpush.bf16.msrb.mxu2 %v16897_v61  ;;  %8340 = vmatpush.bf16.msra.mxu3 %v16905_v16 }
 0x6c8   : > { %v6978_v24 = vpop.f32.mrf.mxu0  ;;  %v6991_v37 = vpop.f32.mrf.mxu1  ;;  %v16886_v5 = vld [vmem:[#allocation6 + $0x50] sm:$0xff] }
 0x6c9   : > { %v6979_v13 = vadd.f32 %v6978_v24, %v6766_v7  ;;  %v6992_v49 = vadd.f32 %v6991_v37, %v6779_v17  ;;  %v16895_v7 = vld [vmem:[#allocation6 + $0x98] sm:$0xff]  ;;  %v16894_v1 = vld [vmem:[#allocation6 + $0x90] sm:$0xff]  ;;  %v16876_v24 = vld [vmem:[#allocation6] sm:$0xff] }
 0x6ca   : > { %8182 = vmatpush.bf16.msrb.mxu1 %v16880_v23  ;;  %8121 = vmatpush.bf16.msra.mxu0 %v16888_v29  ;;  %v16902_v37 = vld [vmem:[#allocation6 + $0xd0] sm:$0xff] }
 0x6cb   : > { %8261 = vmatpush.bf16.msrb.mxu2 %v16896_v11  ;;  %8341 = vmatpush.bf16.msra.mxu3 %v16904_v22 }
 0x6ce   : > { %8183 = vmatpush.bf16.msrb.mxu1 %v16879_v33  ;;  %8122 = vmatpush.bf16.msra.mxu0 %v16887_v57 }
 0x6cf   : > { %v7004_v27 = vpop.f32.mrf.mxu2  ;;  %v7017_v45 = vpop.f32.mrf.mxu3  ;;  %8262 = vmatpush.bf16.msrb.mxu2 %v16895_v7  ;;  %8342 = vmatpush.bf16.msra.mxu3 %v16903_v8  ;;  %v14941_v8 = vld [vmem:[%s19790_s1 + $0x20] sm:$0xf] }
 0x6d0   : > { %v7005_v63 = vadd.f32 %v7004_v27, %v6792_v0  ;;  %v7018_v39 = vadd.f32 %v7017_v45, %v6805_v40  ;;  %v6980_v50 = vpop.f32.mrf.mxu0  ;;  %v6993_v30 = vpop.f32.mrf.mxu1  ;;  %v16893_v27 = vld [vmem:[#allocation6 + $0x88] sm:$0xff] }
 0x6d1   : > { %v16892_v50 = vld [vmem:[#allocation6 + $0x80] sm:$0xff] }
 0x6d2   : > { %8184 = vmatpush.bf16.msrb.mxu1 %v16878_v3  ;;  %8123 = vmatpush.bf16.msra.mxu0 %v16886_v5  ;;  %v16900_v30 = vld [vmem:[#allocation6 + $0xc0] sm:$0xff] }
 0x6d3   : > { %8263 = vmatpush.bf16.msrb.mxu2 %v16894_v1  ;;  %8343 = vmatpush.bf16.msra.mxu3 %v16902_v37  ;;  %v16922_v5 = vld [vmem:[%s19790_s1 + $0x2c] sm:$0x30]  ;;  %v16920_v37 = vld [vmem:[%s19790_s1 + $0x24] sm:$0xf] }
 0x6d6   : > { %8185 = vmatpush.bf16.msrb.mxu1 %v16877_v18 }
 0x6d7   : > { %v7006_v19 = vpop.f32.mrf.mxu2  ;;  %v7019_v21 = vpop.f32.mrf.mxu3  ;;  %8264 = vmatpush.bf16.msrb.mxu2 %v16893_v27 }
 0x6d8   : > { %v16928_v21 = vld [vmem:[%s19790_s1 + $0x64] sm:$0xf] }
 0x6d9   : > { %v7224_v55 = vpop.f32.mrf.mxu0  ;;  %v7237_v14 = vpop.f32.mrf.mxu1 }
 0x6da   : > { %v19143_v60 = vadd.f32 %v7224_v55, %v6979_v13  ;;  %v19145_v53 = vadd.f32 %v7237_v14, %v6992_v49  ;;  %8186 = vmatpush.bf16.msrb.mxu1 %v16876_v24  ;;  %v16885_v49 = vld [vmem:[#allocation6 + $0x48] sm:$0xff]  ;;  %v14907_v55 = vld [vmem:[%s19790_s1 + $0x70] sm:$0x30]  ;;  %v14913_v14 = vld [vmem:[%s19790_s1 + $0x68] sm:$0xf] }
 0x6db   : > { %8124 = vmatpush.bf16.msra.mxu0 %v16885_v49  ;;  %8265 = vmatpush.bf16.msrb.mxu2 %v16892_v50  ;;  %v14925_v50 = vld [vmem:[%s19790_s1] sm:$0xf] }
 0x6e1   : > { %v7226_v46 = vpop.f32.mrf.mxu0  ;;  %v7239_v62 = vpop.f32.mrf.mxu1 }
 0x6e2   : > { %v7250_v34 = vpop.f32.mrf.mxu2  ;;  %v7263_v9 = vpop.f32.mrf.mxu3  ;;  %v16924_v46 = vld [vmem:[%s19790_s1 + $0x44] sm:$0xf]  ;;  %v14891_v62 = vld [vmem:[%s19790_s1 + $0x50] sm:$0xf0] }
 0x6e3   : > { %v19147_v38 = vadd.f32 %v7250_v34, %v7005_v63  ;;  %v19149_v58 = vadd.f32 %v7263_v9, %v7018_v39  ;;  %v16901_v63 = vld [vmem:[#allocation6 + $0xc8] sm:$0xff]  ;;  %v16884_v39 = vld [vmem:[#allocation6 + $0x40] sm:$0xff]  ;;  %v14910_v9 = vor.u32 %v16928_v21, %v14907_v55 }
 0x6e4   : > { %8344 = vmatpush.bf16.msra.mxu3 %v16901_v63  ;;  %8125 = vmatpush.bf16.msra.mxu0 %v16884_v39  ;;  %v16918_v55 = vld [vmem:[%s19790_s1 + $0xc] sm:$0xf0] }
 0x6e5   : > { %v8515_v25 = vsel %vm437_vm0, %v14910_v9, 0  ;;  %v16916_v9 = vld [vmem:[%s19790_s1 + $0x4] sm:$0xf] }
 0x6e6   : > { %8543 = vmatpush.bf16.msra.mxu2 %v8515_v25 }
 0x6e8   : > { %8345 = vmatpush.bf16.msra.mxu3 %v16900_v30 }
 0x6ea   : > { %v7252_v28 = vpop.f32.mrf.mxu2  ;;  %v7265_v44 = vpop.f32.mrf.mxu3 }
 0x6f9   : > { %v19151_v47 = vpop.f32.mrf.mxu0  ;;  %v19153_v51 = vpop.f32.mrf.mxu1 }
 0x6fa   : > { %v7517_v19 = vadd.f32 %v19151_v47, %v19143_v60  ;;  %v7518_v34 = vadd.f32 %v19153_v51, %v19145_v53  ;;  %v16931_v60 = vld [vmem:[%s19790_s1 + $0x74] sm:$0x30]  ;;  %v14897_v47 = vld [vmem:[%s19790_s1 + $0x48] sm:$0xf]  ;;  %v14905_v51 = vld [vmem:[%s19790_s1 + $0x60] sm:$0xf] }
 0x6fb   : > { %v14914_v44 = vor.u32 %v16931_v60, %v14913_v14  ;;  %v16927_v53 = vld [vmem:[%s19790_s1 + $0x54] sm:$0xf0]  ;;  %v14906_v12 = vor.u32 %v16930_v41, %v14905_v51  ;;  %v14927_v60 = vld [vmem:[%s19790_s1 + $0x10] sm:$0xf0]  ;;  %v14877_v51 = vld [vmem:[%s17587_s25 + $0x61] ss:$2 sm:$0xff] }
 0x6fc   : > { %v14898_v15 = vor.u32 %v16927_v53, %v14897_v47  ;;  %v14878_v53 = vld [vmem:[%s17587_s25 + $0x71] ss:$2 sm:$0xf]  ;;  %v14987_v41 = vld [vmem:[%s19790_s1 + $0xa0] sm:$0xf] }
 0x6fd   : > { %v8518_v2 = vsel %vm437_vm0, %v14914_v44, 0  ;;  %v8512_v48 = vsel %vm437_vm0, %v14906_v12, 0  ;;  %v14930_v44 = vor.u32 %v16916_v9, %v14927_v60  ;;  %v14989_v12 = vld [vmem:[%s19790_s1 + $0xb0] sm:$0x30]  ;;  %v14959_v9 = vld [vmem:[%s17587_s25 + $0x62] ss:$2 sm:$0xff] }
 0x6fe   : > { %8557 = vmatpush.bf16.msrb.mxu3 %v8518_v2  ;;  %8529 = vmatpush.bf16.msra.mxu1 %v8512_v48  ;;  %v16952_v60 = vld [vmem:[%s19790_s1 + $0x124] sm:$0xf] }
 0x701   : > { %v7476_v32 = vpop.f32.mrf.mxu0  ;;  %v7489_v43 = vpop.f32.mrf.mxu1 }
 0x702   : > { %v19155_v6 = vpop.f32.mrf.mxu2  ;;  %v19157_v54 = vpop.f32.mrf.mxu3  ;;  %8558 = vmatpush.bf16.msrb.mxu3 %v14898_v15 }
 0x703   : > { %v7519_v23 = vadd.f32 %v19155_v6, %v19147_v38  ;;  %v7520_v35 = vadd.f32 %v19157_v54, %v19149_v58  ;;  %v17265_v38 = vld [vmem:[%s19793_s4] ss:$0 sm:$0xff]  ;;  %v16926_v54 = vld [vmem:[%s19790_s1 + $0x4c] sm:$0xf0] }
 0x704   : > { %v14889_v58 = vld [vmem:[%s19790_s1 + $0x40] sm:$0xf] }
 0x70a   : > { %v7502_v56 = vpop.f32.mrf.mxu2  ;;  %v7515_v52 = vpop.f32.mrf.mxu3 }
 0x70b   : > { %v14894_v52 = vor.u32 %v16924_v46, %v14891_v62  ;;  %v14926_v46 = vor.u32 %v16918_v55, %v14925_v50  ;;  %v16925_v62 = vld [vmem:[%s19790_s1 + $0x4c] sm:$0xf]  ;;  %v16954_v55 = vld [vmem:[%s19790_s1 + $0x12c] sm:$0x30] }
 0x70c   : > { %v16945_v50 = vld [vmem:[%s19790_s1 + $0xec] sm:$0xf] }
 0x70d   : > { %8544 = vmatpush.bf16.msra.mxu2 %v14894_v52  ;;  %v16936_v52 = vld [vmem:[%s19790_s1 + $0xa4] sm:$0xf] }
 0x70e   : > { %v14992_v15 = vor.u32 %v16936_v52, %v14989_v12 }
 0x719   : > { %v7724_v4 = vpop.f32.mrf.mxu0  ;;  %v19159_v20 = vpop.f32.mrf.mxu1 }
 0x71a   : > { %v7767_v28 = vadd.f32 %v7724_v4, %v7517_v19  ;;  %v7768_v32 = vadd.f32 %v19159_v20, %v7518_v34 }
 0x721   : > { %v7726_v0 = vpop.f32.mrf.mxu0  ;;  %v7739_v40 = vpop.f32.mrf.mxu1 }
 0x722   : > { %v19161_v31 = vpop.f32.mrf.mxu2  ;;  %v19163_v17 = vpop.f32.mrf.mxu3  ;;  %v16929_v0 = vld [vmem:[%s19790_s1 + $0x6c] sm:$0xf]  ;;  %v14915_v40 = vld [vmem:[%s19790_s1 + $0x78] sm:$0x30] }
 0x723   : > { %v7769_v61 = vadd.f32 %v19161_v31, %v7519_v23  ;;  %v7770_v4 = vadd.f32 %v19163_v17, %v7520_v35  ;;  %v14890_v31 = vor.u32 %v16926_v54, %v14889_v58  ;;  %v14918_v1 = vor.u32 %v16929_v0, %v14915_v40  ;;  %v14971_v23 = vld [vmem:[%s19790_s1 + $0x80] sm:$0xf]  ;;  %v16946_v58 = vld [vmem:[%s19790_s1 + $0xec] sm:$0x30] }
 0x724   : > { %v8742_v35 = vsel %vm437_vm0, %v14992_v15, 0  ;;  %v14876_v54 = vld [vmem:[%s17587_s25 + $0x70] ss:$2 sm:$0xf]  ;;  %v15125_v15 = vld [vmem:[%s19790_s1 + $0x160] sm:$0xf] }
 0x725   : > { %8530 = vmatpush.bf16.msra.mxu1 %v14890_v31  ;;  %v8521_v49 = vsel %vm437_vm0, %v14918_v1, 0  ;;  %v16942_v1 = vld [vmem:[%s19790_s1 + $0xcc] sm:$0xf0] }
 0x72a   : > { %v7752_v13 = vpop.f32.mrf.mxu2  ;;  %v7765_v45 = vpop.f32.mrf.mxu3 }
 0x72b   : > { %v14943_v13 = vld [vmem:[%s19790_s1 + $0x30] sm:$0x30]  ;;  %v14942_v45 = vor.u32 %v16922_v5, %v14941_v8  ;;  %v15017_v5 = vld [vmem:[%s19790_s1 + $0xc0] sm:$0xf] }
 0x72c   : > { %v14946_v39 = vor.u32 %v16920_v37, %v14943_v13  ;;  %v16940_v37 = vld [vmem:[%s19790_s1 + $0xc4] sm:$0xf]  ;;  %v15019_v13 = vld [vmem:[%s19790_s1 + $0xd0] sm:$0xf0] }
 0x72d   : > { %v8619_v21 = vsel %vm437_vm0, %v14942_v45, 0  ;;  %v14981_v45 = vld [vmem:[%s19790_s1 + $0x98] sm:$0xf0] }
 0x72e   : > { %v8622_v34 = vsel %vm437_vm0, %v14946_v39, 0 }
 0x739   : > { %v7974_v43 = vpop.f32.mrf.mxu0  ;;  %v7987_v59 = vpop.f32.mrf.mxu1 }
 0x73a   : > { %v8017_v56 = vadd.f32 %v7974_v43, %v7767_v28  ;;  %v8018_v36 = vadd.f32 %v7987_v59, %v7768_v32  ;;  %v14899_v28 = vld [vmem:[%s19790_s1 + $0x58] sm:$0xf0]  ;;  %v16921_v32 = vld [vmem:[%s19790_s1 + $0x2c] sm:$0xf]  ;;  %v8463_v59 = vpack.c.bf16 %v14878_v53, %v14877_v51  ;;  %v15063_v53 = vld [vmem:[%s19790_s1 + $0x100] sm:$0xf] }
 0x73b   : > { %v14902_v47 = vor.u32 %v16925_v62, %v14899_v28  ;;  %v14951_v43 = vld [vmem:[%s19790_s1 + $0x38] sm:$0x30]  ;;  %v16950_v51 = vld [vmem:[%s19790_s1 + $0x10c] sm:$0xf0] }
 0x73c   : > { %v8021_v10 = vmax.f32 %v8017_v56, %v8018_v36  ;;  %v14954_v25 = vor.u32 %v16921_v32, %v14951_v43  ;;  %v16938_v56 = vld [vmem:[%s19790_s1 + $0xac] sm:$0x30]  ;;  %v16948_v43 = vld [vmem:[%s19790_s1 + $0x104] sm:$0xf] }
 0x73d   : > { %v14988_v36 = vor.u32 %v16938_v56, %v14987_v41  ;;  %v15064_v41 = vor.u32 %v16950_v51, %v15063_v53  ;;  %v16941_v56 = vld [vmem:[%s19790_s1 + $0xcc] sm:$0xf] }
 0x73e   : > { %v8628_v2 = vsel %vm437_vm0, %v14954_v25, 0  ;;  %v15065_v25 = vld [vmem:[%s19790_s1 + $0x110] sm:$0xf0] }
 0x73f   : > { %v8739_v48 = vsel %vm437_vm0, %v14988_v36, 0  ;;  %v15068_v52 = vor.u32 %v16948_v43, %v15065_v25  ;;  %v16914_v36 = vld [vmem:[%s19796_s7 + $0x30] sm:$0xff] }
 0x740   : > { %v8000_v20 = vpop.f32.mrf.mxu2  ;;  %v8013_v16 = vpop.f32.mrf.mxu3 }
 0x741   : > { %v8019_v33 = vadd.f32 %v8000_v20, %v7769_v61  ;;  %v7976_v29 = vpop.f32.mrf.mxu0  ;;  %v8020_v11 = vadd.f32 %v8013_v16, %v7770_v4  ;;  %v7989_v3 = vpop.f32.mrf.mxu1  ;;  %v16932_v61 = vld [vmem:[%s19790_s1 + $0x84] sm:$0xf]  ;;  %v14973_v4 = vld [vmem:[%s19790_s1 + $0x90] sm:$0xf0]  ;;  %v14935_v16 = vld [vmem:[%s19790_s1 + $0x18] sm:$0xf0] }
 0x742   : > { %v14976_v29 = vor.u32 %v16932_v61, %v14973_v4  ;;  %v16937_v3 = vld [vmem:[%s19790_s1 + $0xac] sm:$0xf]  ;;  %v15127_v61 = vld [vmem:[%s19790_s1 + $0x170] sm:$0x30] }
 0x743   : > { %v8022_v22 = vmax.f32 %v8019_v33, %v8020_v11  ;;  %v16917_v33 = vld [vmem:[%s19790_s1 + $0xc] sm:$0xf] }
 0x744   : > { %v14938_v11 = vor.u32 %v16917_v33, %v14935_v16 }
 0x745   : > { %v8023_v6 = vmax.f32 %v8021_v10, %v8022_v22  ;;  %v16934_v10 = vld [vmem:[%s19790_s1 + $0x8c] sm:$0xf0]  ;;  %v14997_v22 = vld [vmem:[%s19790_s1 + $0xb8] sm:$0x30] }
 0x746   : > { %v14972_v20 = vor.u32 %v16934_v10, %v14971_v23  ;;  %v15006_v23 = vld [vmem:[%s17587_s25 + $0x73] ss:$2 sm:$0xf]  ;;  %v15005_v10 = vld [vmem:[%s17587_s25 + $0x63] ss:$2 sm:$0xff] }
 0x747   : > { %v8028_v57 = vadd.f32 %v17265_v38, %v8023_v6  ;;  %v15000_v38 = vor.u32 %v16937_v3, %v14997_v22  ;;  %v15033_v6 = vld [vmem:[%s19790_s1 + $0xe0] sm:$0xf]  ;;  %v16956_v22 = vld [vmem:[%s19790_s1 + $0x144] sm:$0xf] }
 0x748   : > { %v8002_v7 = vpop.f32.mrf.mxu2  ;;  %v8015_v17 = vpop.f32.mrf.mxu3  ;;  %v15034_v0 = vor.u32 %v16946_v58, %v15033_v6 }
 0x749   : > { %v8029_v18 = vmax.f32 %v8028_v57, 0.0  ;;  %v8748_v31 = vsel %vm437_vm0, %v15000_v38, 0  ;;  %v14875_v57 = vld [vmem:[%s17587_s25 + $0x60] ss:$2 sm:$0xff]  ;;  %v15035_v17 = vld [vmem:[%s19790_s1 + $0xf0] sm:$0x30] }
 0x74a   : > { %v16944_v7 = vld [vmem:[%s19790_s1 + $0xe4] sm:$0xf]  ;;  %v19323_v40 = vpack.c.bf16 %v14876_v54, %v14875_v57  ;;  %v8867_v8 = vsel %vm437_vm0, %v15034_v0, 0  ;;  %v15111_v38 = vld [vmem:[%s19790_s1 + $0x150] sm:$0xf0] }
 0x74b   : > { %v8030_v24 = vpack.c.bf16 %v8029_v18, %v8029_v18  ;;  %v15038_v18 = vor.u32 %v16944_v7, %v15035_v17  ;;  %v15114_v58 = vor.u32 %v16956_v22, %v15111_v38  ;;  %v15051_v54 = vld [vmem:[%s17587_s25 + $0x64] ss:$2 sm:$0xff]  ;;  %v15089_v17 = vld [vmem:[%s19790_s1 + $0x138] sm:$0x30] }
 0x74c   : > { %v16953_v7 = vld [vmem:[%s19790_s1 + $0x12c] sm:$0xf] }
 0x74d   : > { %v8064_v27 = vunpack.c.l.b16 %v8030_v24  ;;  %8187 = vmatmul.bf16.vlgmr.msrb.gmra.mxu1 %v8030_v24  ;;  %v8870_v24 = vsel %vm437_vm0, %v15038_v18, 0  ;;  %v15092_v0 = vor.u32 %v16953_v7, %v15089_v17  ;;  %v16913_v18 = vld [vmem:[%s19796_s7 + $0x28] sm:$0xff] }
 0x74e   : > { %8571 = vmatpush.bf16.msrb.mxu1 %v8521_v49  ;;  %v15018_v49 = vor.u32 %v16942_v1, %v15017_v5  ;;  %v16912_v5 = vld [vmem:[%s19796_s7 + $0x20] sm:$0xff]  ;;  %v16949_v1 = vld [vmem:[%s19790_s1 + $0x10c] sm:$0xf]  ;;  %v15025_v17 = vld [vmem:[%s19790_s1 + $0xc8] sm:$0xf] }
 0x74f   : > { %v8065_v63 = vpack.c.b16 %v8064_v27, %v8064_v27  ;;  %v16933_v27 = vld [vmem:[%s19790_s1 + $0x8c] sm:$0xf] }
 0x750   : > { %v14984_v39 = vor.u32 %v16933_v27, %v14981_v45  ;;  %v16911_v45 = vld [vmem:[%s19796_s7 + $0x18] sm:$0xff] }
 0x751   : > { %v8067_v30 = vshrl.u32 %v8065_v63, 16  ;;  %v8208_v19 = vrot.slane %v8065_v63, 1  ;;  %v15022_v63 = vor.u32 %v16940_v37, %v15019_v13  ;;  %v15097_v13 = vld [vmem:[%s17587_s25 + $0x65] ss:$2 sm:$0xff] }
 0x752   : > { %8572 = vmatpush.bf16.msrb.mxu1 %v14902_v47 }
 0x753   : > { %8126 = vmatmul.bf16.vlgmr.msra.gmra.mxu0 %v8067_v30  ;;  %8266 = vmatmul.bf16.vlgmr.msrb.gmra.mxu2 %v8208_v19  ;;  %v8288_v14 = vrot.slane %v8067_v30, 1  ;;  %v15043_v30 = vld [vmem:[%s19790_s1 + $0xf8] sm:$0x30] }
 0x754   : > { %8636 = vmatpush.bf16.msrb.mxu2 %v8619_v21  ;;  %v15046_v19 = vor.u32 %v16945_v50, %v15043_v30  ;;  %v15079_v21 = vld [vmem:[%s19790_s1 + $0x120] sm:$0xf]  ;;  %v15135_v50 = vld [vmem:[%s19790_s1 + $0x178] sm:$0x30] }
 0x755   : > { %8346 = vmatmul.bf16.vlgmr.msra.gmra.mxu3 %v8288_v14  ;;  %v14960_v14 = vld [vmem:[%s17587_s25 + $0x72] ss:$2 sm:$0xf]  ;;  %v15080_v62 = vor.u32 %v16954_v55, %v15079_v21  ;;  %v16957_v55 = vld [vmem:[%s19790_s1 + $0x14c] sm:$0xf] }
 0x756   : > { %8650 = vmatpush.bf16.msra.mxu3 %v8622_v34  ;;  %v8876_v34 = vsel %vm437_vm0, %v15046_v19, 0  ;;  %v19372_v28 = vpack.c.bf16 %v14960_v14, %v14959_v9  ;;  %v16909_v19 = vld [vmem:[%s19796_s7 + $0x8] sm:$0xff]  ;;  %v15119_v14 = vld [vmem:[%s19790_s1 + $0x158] sm:$0xf0] }
 0x757   : > { %v8995_v47 = vsel %vm437_vm0, %v15080_v62, 0  ;;  %v15122_v9 = vor.u32 %v16957_v55, %v15119_v14  ;;  %v16963_v55 = vld [vmem:[%s19790_s1 + $0x174] sm:$0x30] }
 0x758   : > { %8637 = vmatpush.bf16.msrb.mxu2 %v14926_v46  ;;  %v15081_v46 = vld [vmem:[%s19790_s1 + $0x130] sm:$0x30] }
 0x75a   : > { %8651 = vmatpush.bf16.msra.mxu3 %v14930_v44  ;;  %v15084_v44 = vor.u32 %v16952_v60, %v15081_v46  ;;  %v14949_v60 = vld [vmem:[%s19790_s1 + $0x28] sm:$0xf]  ;;  %v16923_v46 = vld [vmem:[%s19790_s1 + $0x34] sm:$0x30] }
 0x75b   : > { %v14950_v62 = vor.u32 %v16923_v46, %v14949_v60  ;;  %v16959_v60 = vld [vmem:[%s19790_s1 + $0x154] sm:$0xf0] }
 0x75c   : > { %v8998_v32 = vsel %vm437_vm0, %v15084_v44, 0  ;;  %v14933_v44 = vld [vmem:[%s19790_s1 + $0x8] sm:$0xf] }
 0x75d   : > { %14919 = vmatmul.msk.bf16.vlgmr.msra.gmra.mxu1 %vm433_vm1, %v8463_v59  ;;  %v8625_v53 = vsel %vm437_vm0, %v14950_v62, 0 }
 0x75e   : > { %8678 = vmatpush.bf16.msra.mxu1 %v8628_v2  ;;  %v16915_v2 = vld [vmem:[%s19796_s7 + $0x38] sm:$0xff] }
 0x75f   : > { %8421 = vmatpush.bf16.msrb.mxu0 %v16915_v2 }
 0x762   : > { %8679 = vmatpush.bf16.msra.mxu1 %v14938_v11  ;;  %v16958_v11 = vld [vmem:[%s19790_s1 + $0x14c] sm:$0xf0] }
 0x763   : > { %14920 = vmatmul.msk.bf16.vlgmr.msra.gmra.mxu2 %vm433_vm1, %v8463_v59  ;;  %8422 = vmatpush.bf16.msrb.mxu0 %v16914_v36  ;;  %v14995_v36 = vld [vmem:[%s19790_s1 + $0xa8] sm:$0xf] }
 0x764   : > { %8756 = vmatpush.bf16.msra.mxu2 %v8739_v48  ;;  %v16962_v48 = vld [vmem:[%s19790_s1 + $0x16c] sm:$0x30] }
 0x765   : > { %14921 = vmatmul.msk.bf16.vlgmr.msrb.gmra.mxu3 %vm433_vm1, %v8463_v59  ;;  %v15126_v4 = vor.u32 %v16962_v48, %v15125_v15  ;;  %v16939_v15 = vld [vmem:[%s19790_s1 + $0xb4] sm:$0x30] }
 0x766   : > { %8770 = vmatpush.bf16.msrb.mxu3 %v8742_v35  ;;  %v16960_v35 = vld [vmem:[%s19790_s1 + $0x164] sm:$0xf] }
 0x767   : > { %v15130_v33 = vor.u32 %v16960_v35, %v15127_v61  ;;  %v9123_v16 = vsel %vm437_vm0, %v15126_v4, 0  ;;  %8423 = vmatpush.bf16.msrb.mxu0 %v16913_v18 }
 0x768   : > { %8757 = vmatpush.bf16.msra.mxu2 %v14972_v20  ;;  %v19420_v20 = vpack.c.bf16 %v15006_v23, %v15005_v10  ;;  %v14996_v10 = vor.u32 %v16939_v15, %v14995_v36 }
 0x769   : > { %v9126_v3 = vsel %vm437_vm0, %v15130_v33, 0 }
 0x76a   : > { %8771 = vmatpush.bf16.msrb.mxu3 %v14976_v29  ;;  %v15109_v29 = vld [vmem:[%s19790_s1 + $0x140] sm:$0xf]  ;;  %v8745_v33 = vsel %vm437_vm0, %v14996_v10, 0 }
 0x76b   : > { %v15110_v6 = vor.u32 %v16958_v11, %v15109_v29  ;;  %8424 = vmatpush.bf16.msrb.mxu0 %v16912_v5  ;;  %v16935_v29 = vld [vmem:[%s19790_s1 + $0x94] sm:$0xf0] }
 0x76d   : > { %14922 = vmatmul.msk.bf16.vlgmr.msrb.gmra.mxu1 %vm433_vm1, %v8463_v59  ;;  %v15027_v59 = vld [vmem:[%s19790_s1 + $0xd8] sm:$0xf0] }
 0x76e   : > { %8798 = vmatpush.bf16.msrb.mxu1 %v8748_v31  ;;  %v15030_v12 = vor.u32 %v16941_v56, %v15027_v59  ;;  %v15052_v31 = vld [vmem:[%s17587_s25 + $0x74] ss:$2 sm:$0xf] }
 0x76f   : > { %v19444_v57 = vpack.c.bf16 %v15052_v31, %v15051_v54  ;;  %8425 = vmatpush.bf16.msrb.mxu0 %v16911_v45 }
 0x772   : > { %8799 = vmatpush.bf16.msrb.mxu1 %v14984_v39  ;;  %v16961_v39 = vld [vmem:[%s19790_s1 + $0x16c] sm:$0xf] }
 0x773   : > { %14955 = vmatmul.msk.bf16.vlgmr.msrb.gmra.mxu2 %vm433_vm1, %v19323_v40  ;;  %v15138_v30 = vor.u32 %v16961_v39, %v15135_v50 }
 0x774   : > { %8884 = vmatpush.bf16.msrb.mxu2 %v8867_v8  ;;  %v9004_v8 = vsel %vm437_vm0, %v15092_v0, 0  ;;  %v16943_v0 = vld [vmem:[%s19790_s1 + $0xd4] sm:$0xf0] }
 0x775   : > { %14956 = vmatmul.msk.bf16.vlgmr.msra.gmra.mxu3 %vm433_vm1, %v19323_v40  ;;  %v9132_v21 = vsel %vm437_vm0, %v15138_v30, 0 }
 0x776   : > { %8898 = vmatpush.bf16.msra.mxu3 %v8870_v24  ;;  %v15073_v24 = vld [vmem:[%s19790_s1 + $0x118] sm:$0xf0] }
 0x777   : > { %v15076_v37 = vor.u32 %v16949_v1, %v15073_v24  ;;  %v15087_v24 = vld [vmem:[%s19790_s1 + $0x128] sm:$0xf] }
 0x778   : > { %8885 = vmatpush.bf16.msrb.mxu2 %v15018_v49  ;;  %v15098_v49 = vld [vmem:[%s17587_s25 + $0x75] ss:$2 sm:$0xf] }
 0x779   : > { %v19471_v27 = vpack.c.bf16 %v15098_v49, %v15097_v13 }
 0x77a   : > { %8899 = vmatpush.bf16.msra.mxu3 %v15022_v63  ;;  %v16910_v63 = vld [vmem:[%s19796_s7 + $0x10] sm:$0xff] }
 0x77b   : > { %8426 = vmatpush.bf16.msrb.mxu0 %v16910_v63  ;;  %v16951_v63 = vld [vmem:[%s19790_s1 + $0x114] sm:$0xf0] }
 0x77d   : > { %14958 = vmatmul.msk.bf16.vlgmr.msra.gmra.mxu1 %vm433_vm1, %v19323_v40 }
 0x77e   : > { %8926 = vmatpush.bf16.msra.mxu1 %v8876_v34  ;;  %v16908_v34 = vld [vmem:[%s19796_s7] sm:$0xff] }
 0x77f   : > { %8427 = vmatpush.bf16.msrb.mxu0 %v16909_v19 }
 0x782   : > { %8927 = vmatpush.bf16.msra.mxu1 %v15030_v12  ;;  %v8352_v12 = vld [vmem:[%s19795_s6] sm:$0x1] }
 0x783   : > { %15001 = vmatmul.msk.bf16.vlgmr.msra.gmra.mxu2 %vm433_vm1, %v19372_v28  ;;  %8428 = vmatpush.bf16.msrb.mxu0 %v16908_v34 }
 0x784   : > { %9012 = vmatpush.bf16.msra.mxu2 %v8995_v47  ;;  %v16919_v47 = vld [vmem:[%s19790_s1 + $0x14] sm:$0xf0] }
 0x785   : > { %15002 = vmatmul.msk.bf16.vlgmr.msrb.gmra.mxu3 %vm433_vm1, %v19372_v28  ;;  %v14934_v51 = vor.u32 %v16919_v47, %v14933_v44 }
 0x786   : > { %9026 = vmatpush.bf16.msrb.mxu3 %v8998_v32 }
 0x787   : > { %8664 = vmatpush.bf16.msra.mxu0 %v8625_v53 }
 0x788   : > { %9013 = vmatpush.bf16.msra.mxu2 %v15064_v41 }
 0x78a   : > { %9027 = vmatpush.bf16.msrb.mxu3 %v15068_v52 }
 0x78b   : > { %8665 = vmatpush.bf16.msra.mxu0 %v14934_v51 }
 0x78d   : > { %15004 = vmatmul.msk.bf16.vlgmr.msrb.gmra.mxu1 %vm433_vm1, %v19372_v28 }
 0x78e   : > { %9054 = vmatpush.bf16.msrb.mxu1 %v9004_v8  ;;  %v15026_v8 = vor.u32 %v16943_v0, %v15025_v17 }
 0x792   : > { %9055 = vmatpush.bf16.msrb.mxu1 %v15076_v37  ;;  %v16955_v37 = vld [vmem:[%s19790_s1 + $0x134] sm:$0x30] }
 0x793   : > { %15047 = vmatmul.msk.bf16.vlgmr.msrb.gmra.mxu2 %vm433_vm1, %v19420_v20  ;;  %v15088_v13 = vor.u32 %v16955_v37, %v15087_v24  ;;  %v15259_v37 = vld [vmem:[#allocation3 + $0x1f0] sm:$0xf0] }
 0x794   : > { %9140 = vmatpush.bf16.msrb.mxu2 %v9123_v16  ;;  %v14979_v16 = vld [vmem:[%s19790_s1 + $0x88] sm:$0xf] }
 0x795   : > { %15048 = vmatmul.msk.bf16.vlgmr.msra.gmra.mxu3 %vm433_vm1, %v19420_v20  ;;  %v9001_v45 = vsel %vm437_vm0, %v15088_v13, 0  ;;  %v15265_v13 = vld [vmem:[#allocation3 + $0x1e8] sm:$0xf] }
 0x796   : > { %9154 = vmatpush.bf16.msra.mxu3 %v9126_v3  ;;  %v14980_v3 = vor.u32 %v16935_v29, %v14979_v16  ;;  %v3066_v29 = vpop.xlane.xlu1 %3065 }
 0x798   : > { %9141 = vmatpush.bf16.msrb.mxu2 %v15110_v6  ;;  %v15041_v6 = vld [vmem:[%s19790_s1 + $0xe8] sm:$0xf] }
 0x79a   : > { %9155 = vmatpush.bf16.msra.mxu3 %v15114_v58  ;;  %v16947_v58 = vld [vmem:[%s19790_s1 + $0xf4] sm:$0x30] }
 0x79b   : > { %v15042_v54 = vor.u32 %v16947_v58, %v15041_v6 }
 0x79d   : > { %15050 = vmatmul.msk.bf16.vlgmr.msra.gmra.mxu1 %vm433_vm1, %v19420_v20  ;;  %v8873_v7 = vsel %vm437_vm0, %v15042_v54, 0 }
 0x79e   : > { %9182 = vmatpush.bf16.msra.mxu1 %v9132_v21  ;;  %v15133_v21 = vld [vmem:[%s19790_s1 + $0x168] sm:$0xf] }
 0x79f   : > { %v15134_v14 = vor.u32 %v16963_v55, %v15133_v21  ;;  %v17022_v55 = vld [vmem:[#allocation3 + $0x1cc] sm:$0xf0] }
 0x7a2   : > { %9183 = vmatpush.bf16.msra.mxu1 %v15122_v9  ;;  %v9129_v9 = vsel %vm437_vm0, %v15134_v14, 0  ;;  %v17020_v14 = vld [vmem:[#allocation3 + $0x1c4] sm:$0xf] }
 0x7a3   : > { %15093 = vmatmul.msk.bf16.vlgmr.msra.gmra.mxu2 %vm433_vm1, %v19444_v57 }
 0x7a5   : > { %15094 = vmatmul.msk.bf16.vlgmr.msrb.gmra.mxu3 %vm433_vm1, %v19444_v57 }
 0x7ad   : > { %15096 = vmatmul.msk.bf16.vlgmr.msrb.gmra.mxu1 %vm433_vm1, %v19444_v57 }
 0x7b3   : > { %15139 = vmatmul.msk.bf16.vlgmr.msrb.gmra.mxu2 %vm433_vm1, %v19471_v27 }
 0x7b5   : > { %15140 = vmatmul.msk.bf16.vlgmr.msra.gmra.mxu3 %vm433_vm1, %v19471_v27 }
 0x7bd   : > { %15142 = vmatmul.msk.bf16.vlgmr.msra.gmra.mxu1 %vm433_vm1, %v19471_v27 }
 0x7ca   : > { %v8188_v32 = vpop.f32.mrf.mxu1 }
 0x7d0   : > { %v8127_v43 = vpop.f32.mrf.mxu0 }
 0x7d1   : > { %v8189_v41 = vadd.f32 %v8188_v32, %v8127_v43 }
 0x7d2   : > { %v8190_v25 = vpop.f32.mrf.mxu1 }
 0x7d6   : > { %v8267_v56 = vpop.f32.mrf.mxu2 }
 0x7d7   : > { %v8271_v59 = vadd.f32 %v8267_v56, %v8189_v41 }
 0x7d8   : > { %v8129_v2 = vpop.f32.mrf.mxu0  ;;  %v8347_v52 = vpop.f32.mrf.mxu3 }
 0x7d9   : > { %v8351_v48 = vadd.f32 %v8347_v52, %v8271_v59 }
 0x7da   : > { %v8532_v32 = vpop.f32.mrf.mxu1 }
 0x7db   : > { %v8353_v23 = vadd.f32 %v8352_v12, %v8351_v48 }
 0x7dd   : > { %v8354_v35 = vmax.f32 %v8353_v23, 0.0 }
 0x7de   : > { %v8269_v61 = vpop.f32.mrf.mxu2 }
 0x7df   : > { %v8355_v4 = vpack.c.bf16 %v8354_v35, %v8354_v35 }
 0x7e0   : > { %v8349_v11 = vpop.f32.mrf.mxu3 }
 0x7e1   : > { %8429 = vmatmul.bf16.vlgmr.msrb.gmra.mxu0 %v8355_v4 }
 0x7e2   : > { %8784 = vmatpush.bf16.msrb.mxu0 %v8745_v33  ;;  %v19612_v4 = vpop.f32.mrf.mxu1 }
 0x7e6   : > { %v8546_v22 = vpop.f32.mrf.mxu2  ;;  %8785 = vmatpush.bf16.msrb.mxu0 %v14980_v3 }
 0x7e8   : > { %v19535_v38 = vpop.f32.mrf.mxu3 }
 0x7ea   : > { %v19614_v33 = vpop.f32.mrf.mxu1 }
 0x7ee   : > { %v19543_v31 = vpop.f32.mrf.mxu2 }
 0x7f0   : > { %v19552_v18 = vpop.f32.mrf.mxu3 }
 0x7f1   : > { %14957 = vmatmul.msk.bf16.vlgmr.msra.gmra.mxu0 %vm433_vm1, %v19323_v40  ;;  %v15071_v40 = vld [vmem:[%s19790_s1 + $0x108] sm:$0xf] }
 0x7f2   : > { %8912 = vmatpush.bf16.msra.mxu0 %v8873_v7  ;;  %v15072_v50 = vor.u32 %v16951_v63, %v15071_v40  ;;  %v19616_v16 = vpop.f32.mrf.mxu1 }
 0x7f6   : > { %v8639_v5 = vpop.f32.mrf.mxu2  ;;  %8913 = vmatpush.bf16.msra.mxu0 %v15026_v8  ;;  %v15257_v8 = vld [vmem:[#allocation3 + $0x1e0] sm:$0xf] }
 0x7f7   : > { %v8640_v25 = vadd.f32 %v8639_v5, %v8532_v32  ;;  %v17026_v5 = vld [vmem:[#allocation3 + $0x1ec] sm:$0xf0] }
 0x7f8   : > { %v8653_v1 = vpop.f32.mrf.mxu3  ;;  %v15258_v24 = vor.u32 %v17026_v5, %v15257_v8 }
 0x7f9   : > { %v8654_v56 = vadd.f32 %v8653_v1, %v8546_v22  ;;  %v8372_v22 = vld [vmem:[%s19797_s8] sm:$0x1]  ;;  %v17024_v1 = vld [vmem:[#allocation3 + $0x1e4] sm:$0xf] }
 0x7fa   : > { %v19622_v3 = vpop.f32.mrf.mxu1  ;;  %v15262_v40 = vor.u32 %v17024_v1, %v15259_v37  ;;  %9442 = vmatpush.bf16.msra.mxu2 %v15258_v24  ;;  %v15217_v1 = vld [vmem:[#allocation3 + $0x188] sm:$0xf]  ;;  %v17015_v24 = vld [vmem:[#allocation3 + $0x194] sm:$0xf0]  ;;  %v17013_v37 = vld [vmem:[#allocation3 + $0x18c] sm:$0xf] }
 0x7fc   : > { %9455 = vmatpush.bf16.msrb.mxu3 %v15262_v40 }
 0x7fe   : > { %v19562_v49 = vpop.f32.mrf.mxu2 }
 0x800   : > { %v19571_v39 = vpop.f32.mrf.mxu3 }
 0x801   : > { %15003 = vmatmul.msk.bf16.vlgmr.msrb.gmra.mxu0 %vm433_vm1, %v19372_v28  ;;  %v15117_v28 = vld [vmem:[%s19790_s1 + $0x148] sm:$0xf] }
 0x802   : > { %9040 = vmatpush.bf16.msrb.mxu0 %v9001_v45  ;;  %v15118_v62 = vor.u32 %v16959_v60, %v15117_v28  ;;  %v19631_v17 = vpop.f32.mrf.mxu1  ;;  %v17027_v45 = vld [vmem:[#allocation3 + $0x1f4] sm:$0xf0] }
 0x803   : > { %v15266_v63 = vor.u32 %v17027_v45, %v15265_v13  ;;  %v15218_v13 = vor.u32 %v17015_v24, %v15217_v1  ;;  %v15219_v45 = vld [vmem:[#allocation3 + $0x198] sm:$0xf0] }
 0x804   : > { %v15222_v40 = vor.u32 %v17013_v37, %v15219_v45  ;;  %v17001_v37 = vld [vmem:[#allocation3 + $0x12c] sm:$0xf]  ;;  %v15145_v45 = vld [vmem:[#allocation3 + $0x100] sm:$0xf] }
 0x806   : > { %v8759_v30 = vpop.f32.mrf.mxu2  ;;  %9041 = vmatpush.bf16.msrb.mxu0 %v15072_v50  ;;  %v17025_v50 = vld [vmem:[#allocation3 + $0x1ec] sm:$0xf] }
 0x807   : > { %v8806_v59 = vadd.f32 %v8759_v30, %v8640_v25  ;;  %v15267_v30 = vld [vmem:[#allocation3 + $0x1f8] sm:$0xf0] }
 0x808   : > { %v8773_v19 = vpop.f32.mrf.mxu3  ;;  %v15270_v21 = vor.u32 %v17025_v50, %v15267_v30  ;;  %v15193_v50 = vld [vmem:[#allocation3 + $0x160] sm:$0xf]  ;;  %v17010_v30 = vld [vmem:[#allocation3 + $0x16c] sm:$0xf0] }
 0x809   : > { %v8807_v2 = vadd.f32 %v8773_v19, %v8654_v56  ;;  %v15241_v19 = vld [vmem:[#allocation3 + $0x1c0] sm:$0xf] }
 0x80a   : > { %v15242_v28 = vor.u32 %v17022_v55, %v15241_v19  ;;  %9481 = vmatpush.bf16.msrb.mxu1 %v15270_v21  ;;  %v17008_v19 = vld [vmem:[#allocation3 + $0x164] sm:$0xf]  ;;  %v15194_v21 = vor.u32 %v17010_v30, %v15193_v50  ;;  %v15195_v55 = vld [vmem:[#allocation3 + $0x170] sm:$0xf0]  ;;  %v16998_v50 = vld [vmem:[#allocation3 + $0x10c] sm:$0xf0] }
 0x80b   : > { %v16996_v30 = vld [vmem:[#allocation3 + $0x104] sm:$0xf] }
 0x80c   : > { %9443 = vmatpush.bf16.msra.mxu2 %v15242_v28 }
 0x80e   : > { %v19581_v34 = vpop.f32.mrf.mxu2 }
 0x810   : > { %v19590_v46 = vpop.f32.mrf.mxu3 }
 0x811   : > { %15049 = vmatmul.msk.bf16.vlgmr.msra.gmra.mxu0 %vm433_vm1, %v19420_v20 }
 0x812   : > { %9168 = vmatpush.bf16.msra.mxu0 %v9129_v9  ;;  %v15243_v9 = vld [vmem:[#allocation3 + $0x1d0] sm:$0xf0] }
 0x813   : > { %v15246_v60 = vor.u32 %v17020_v14, %v15243_v9  ;;  %v15201_v14 = vld [vmem:[#allocation3 + $0x168] sm:$0xf]  ;;  %v17011_v9 = vld [vmem:[#allocation3 + $0x174] sm:$0xf0] }
 0x815   : > { %9456 = vmatpush.bf16.msrb.mxu3 %v15246_v60  ;;  %v15198_v60 = vor.u32 %v17008_v19, %v15195_v55  ;;  %v15147_v19 = vld [vmem:[#allocation3 + $0x110] sm:$0xf0]  ;;  %v15146_v55 = vor.u32 %v16998_v50, %v15145_v45  ;;  %v15379_v45 = vld [vmem:[#allocation3 + $0xd8] sm:$0xf0]  ;;  %v15353_v50 = vld [vmem:[#allocation3 + $0xa0] sm:$0xf] }
 0x816   : > { %v8887_v44 = vpop.f32.mrf.mxu2  ;;  %9169 = vmatpush.bf16.msra.mxu0 %v15118_v62  ;;  %v15249_v62 = vld [vmem:[#allocation3 + $0x1c8] sm:$0xf] }
 0x817   : > { %v8934_v52 = vadd.f32 %v8887_v44, %v8806_v59  ;;  %v17023_v44 = vld [vmem:[#allocation3 + $0x1d4] sm:$0xf0]  ;;  %v15225_v59 = vld [vmem:[#allocation3 + $0x1a0] sm:$0xf] }
 0x818   : > { %v8901_v47 = vpop.f32.mrf.mxu3  ;;  %v15250_v32 = vor.u32 %v17023_v44, %v15249_v62  ;;  %v15202_v62 = vor.u32 %v17011_v9, %v15201_v14  ;;  %v17009_v44 = vld [vmem:[#allocation3 + $0x16c] sm:$0xf]  ;;  %v15150_v14 = vor.u32 %v16996_v30, %v15147_v19  ;;  %v15153_v9 = vld [vmem:[#allocation3 + $0x108] sm:$0xf]  ;;  %v16986_v30 = vld [vmem:[#allocation3 + $0xac] sm:$0xf0] }
 0x819   : > { %v8935_v36 = vadd.f32 %v8901_v47, %v8807_v2  ;;  %v17021_v47 = vld [vmem:[#allocation3 + $0x1cc] sm:$0xf]  ;;  %v17018_v2 = vld [vmem:[#allocation3 + $0x1ac] sm:$0xf0]  ;;  %v16984_v19 = vld [vmem:[#allocation3 + $0xa4] sm:$0xf] }
 0x81e   : > { %v19594_v53 = vpop.f32.mrf.mxu2 }
 0x820   : > { %v19596_v51 = vpop.f32.mrf.mxu3 }
 0x821   : > { %15095 = vmatmul.msk.bf16.vlgmr.msrb.gmra.mxu0 %vm433_vm1, %v19444_v57 }
 0x822   : > { %9468 = vmatpush.bf16.msrb.mxu0 %v15266_v63 }
 0x826   : > { %v9015_v43 = vpop.f32.mrf.mxu2  ;;  %9469 = vmatpush.bf16.msrb.mxu0 %v15250_v32  ;;  %v15177_v32 = vld [vmem:[#allocation3 + $0x140] sm:$0xf] }
 0x827   : > { %v9062_v15 = vadd.f32 %v9015_v43, %v8934_v52  ;;  %v15251_v43 = vld [vmem:[#allocation3 + $0x1d8] sm:$0xf0]  ;;  %v17016_v52 = vld [vmem:[#allocation3 + $0x1a4] sm:$0xf] }
 0x828   : > { %v9029_v41 = vpop.f32.mrf.mxu3  ;;  %v15254_v25 = vor.u32 %v17021_v47, %v15251_v43  ;;  %v15203_v47 = vld [vmem:[#allocation3 + $0x178] sm:$0xf0] }
 0x829   : > { %v9063_v48 = vadd.f32 %v9029_v41, %v8935_v36  ;;  %v19634_v41 = vpop.f32.mrf.mxu1  ;;  %v15226_v36 = vor.u32 %v17018_v2, %v15225_v59  ;;  %v15206_v43 = vor.u32 %v17009_v44, %v15203_v47  ;;  %v17004_v59 = vld [vmem:[#allocation3 + $0x144] sm:$0xf]  ;;  %v15179_v2 = vld [vmem:[#allocation3 + $0x150] sm:$0xf0]  ;;  %v15155_v47 = vld [vmem:[#allocation3 + $0x118] sm:$0xf0] }
 0x82a   : > { %9482 = vmatpush.bf16.msrb.mxu1 %v15254_v25  ;;  %v17006_v25 = vld [vmem:[#allocation3 + $0x14c] sm:$0xf0] }
 0x82b   : > { %9444 = vmatpush.bf16.msra.mxu2 %v15226_v36  ;;  %v15182_v36 = vor.u32 %v17004_v59, %v15179_v2  ;;  %v16992_v2 = vld [vmem:[#allocation3 + $0xe4] sm:$0xf] }
 0x82e   : > { %v19600_v20 = vpop.f32.mrf.mxu2 }
 0x830   : > { %v19602_v12 = vpop.f32.mrf.mxu3 }
 0x831   : > { %15141 = vmatmul.msk.bf16.vlgmr.msra.gmra.mxu0 %vm433_vm1, %v19471_v27  ;;  %v19619_v27 = vsub.f32 %v18533_v42, %v3066_v29  ;;  %v19640_v28 = vpop.f32.mrf.mxu1 }
 0x833   : > { %v3068_v11 = vmul.f32 1.442695, %v19619_v27 }
 0x835   : > { %17270 = vpow2.f32 %v3068_v11  ;;  %v17017_v11 = vld [vmem:[#allocation3 + $0x1ac] sm:$0xf] }
 0x836   : > { %v9143_v23 = vpop.f32.mrf.mxu2 }
 0x837   : > { %v19606_v57 = vadd.f32 %v9143_v23, %v9062_v15  ;;  %v15227_v15 = vld [vmem:[#allocation3 + $0x1b0] sm:$0xf0]  ;;  %v17019_v23 = vld [vmem:[#allocation3 + $0x1b4] sm:$0xf0] }
 0x838   : > { %v9157_v10 = vpop.f32.mrf.mxu3 }
 0x839   : > { %v19608_v35 = vadd.f32 %v9157_v10, %v9063_v48  ;;  %v15233_v48 = vld [vmem:[#allocation3 + $0x1a8] sm:$0xf]  ;;  %v15230_v10 = vor.u32 %v17016_v52, %v15227_v15  ;;  %v15178_v52 = vor.u32 %v17006_v25, %v15177_v32  ;;  %v15385_v32 = vld [vmem:[#allocation3 + $0xe0] sm:$0xf] }
 0x83a   : > { %v15234_v29 = vor.u32 %v17019_v23, %v15233_v48  ;;  %v15185_v15 = vld [vmem:[#allocation3 + $0x148] sm:$0xf]  ;;  %v17007_v48 = vld [vmem:[#allocation3 + $0x154] sm:$0xf0]  ;;  %v17005_v23 = vld [vmem:[#allocation3 + $0x14c] sm:$0xf] }
 0x83b   : > { %v9198_v61 = vmax.f32 %v19606_v57, %v19608_v35  ;;  %v17271_v7 = vpop.eup %17270  ;;  %9457 = vmatpush.bf16.msrb.mxu3 %v15230_v10  ;;  %v15186_v10 = vor.u32 %v17007_v48, %v15185_v15  ;;  %v16995_v48 = vld [vmem:[#allocation3 + $0xf4] sm:$0xf0]  ;;  %v15521_v57 = vld [vmem:[#allocation3 + $0x2e8] sm:$0xf] }
 0x83c   : > { %v3070_v42 = vsel %vm3063_vm2, %v17271_v7, 0.0  ;;  %v17014_v7 = vld [vmem:[#allocation3 + $0x18c] sm:$0xf0]  ;;  %9470 = vmatpush.bf16.msrb.mxu0 %v15234_v29  ;;  %v15187_v29 = vld [vmem:[#allocation3 + $0x158] sm:$0xf0] }
 0x83d   : > { %v17059_v35 = vld [vmem:[#allocation3 + $0x2f4] sm:$0xf0] }
 0x840   : > { %9471 = vmatpush.bf16.msrb.mxu0 %v15218_v13  ;;  %v15171_v13 = vld [vmem:[#allocation3 + $0x138] sm:$0xf0] }
 0x844   : > { %9472 = vmatpush.bf16.msrb.mxu0 %v15202_v62  ;;  %v16997_v62 = vld [vmem:[#allocation3 + $0x10c] sm:$0xf] }
 0x845   : > { %v15158_v25 = vor.u32 %v16997_v62, %v15155_v47  ;;  %v16987_v62 = vld [vmem:[#allocation3 + $0xb4] sm:$0xf0] }
 0x848   : > { %9473 = vmatpush.bf16.msrb.mxu0 %v15186_v10  ;;  %v15395_v10 = vld [vmem:[#allocation3 + $0xf8] sm:$0xf0] }
 0x85e   : > { %v8430_v6 = vpop.f32.mrf.mxu0 }
 0x85f   : > { %v19627_v58 = vadd.f32 %v8430_v6, %v8372_v22  ;;  %v15235_v22 = vld [vmem:[#allocation3 + $0x1b8] sm:$0xf0]  ;;  %v15209_v6 = vld [vmem:[#allocation3 + $0x180] sm:$0xf] }
 0x860   : > { %v15210_v8 = vor.u32 %v17014_v7, %v15209_v6  ;;  %v15161_v6 = vld [vmem:[#allocation3 + $0x120] sm:$0xf]  ;;  %v17000_v7 = vld [vmem:[#allocation3 + $0x124] sm:$0xf] }
 0x861   : > { %v8434_v54 = vsel %vm3063_vm2, %v19627_v58, -inf }
 0x862   : > { %8435 = vmax.xlane.f32.xlu0 %v8434_v54  ;;  %v15238_v54 = vor.u32 %v17017_v11, %v15235_v22  ;;  %9445 = vmatpush.bf16.msra.mxu2 %v15210_v8  ;;  %v15190_v11 = vor.u32 %v17005_v23, %v15187_v29  ;;  %v15169_v8 = vld [vmem:[#allocation3 + $0x128] sm:$0xf]  ;;  %v16993_v23 = vld [vmem:[#allocation3 + $0xec] sm:$0xf] }
 0x864   : > { %9483 = vmatpush.bf16.msrb.mxu1 %v15238_v54  ;;  %v17002_v54 = vld [vmem:[#allocation3 + $0x12c] sm:$0xf0] }
 0x866   : > { %v8432_v0 = vpop.f32.mrf.mxu0  ;;  %9446 = vmatpush.bf16.msra.mxu2 %v15194_v21  ;;  %v19644_v21 = vpop.f32.mrf.mxu1 }
 0x867   : > { %v15211_v0 = vld [vmem:[#allocation3 + $0x190] sm:$0xf0] }
 0x868   : > { %9484 = vmatpush.bf16.msrb.mxu1 %v15222_v40  ;;  %v15174_v40 = vor.u32 %v17001_v37, %v15171_v13  ;;  %v16989_v13 = vld [vmem:[#allocation3 + $0xcc] sm:$0xf] }
 0x86a   : > { %3071 = vadd.xlane.f32.xlu0 %v3070_v42  ;;  %v17012_v42 = vld [vmem:[#allocation3 + $0x184] sm:$0xf]  ;;  %9447 = vmatpush.bf16.msra.mxu2 %v15178_v52  ;;  %v15387_v52 = vld [vmem:[#allocation3 + $0xf0] sm:$0xf0] }
 0x86b   : > { %v15214_v5 = vor.u32 %v17012_v42, %v15211_v0  ;;  %v15162_v42 = vor.u32 %v17002_v54, %v15161_v6  ;;  %v15163_v0 = vld [vmem:[#allocation3 + $0x130] sm:$0xf0]  ;;  %v15390_v15 = vor.u32 %v16992_v2, %v15387_v52  ;;  %v15398_v6 = vor.u32 %v16993_v23, %v15395_v10  ;;  %v15369_v54 = vld [vmem:[#allocation3 + $0xc0] sm:$0xf]  ;;  %v16982_v52 = vld [vmem:[#allocation3 + $0x8c] sm:$0xf0] }
 0x86c   : > { %9485 = vmatpush.bf16.msrb.mxu1 %v15206_v43  ;;  %v15166_v1 = vor.u32 %v17000_v7, %v15163_v0  ;;  %v16994_v43 = vld [vmem:[#allocation3 + $0xec] sm:$0xf0]  ;;  %v15337_v2 = vld [vmem:[#allocation3 + $0x80] sm:$0xf]  ;;  %v15345_v23 = vld [vmem:[#allocation3 + $0x88] sm:$0xf] }
 0x86d   : > { %9458 = vmatpush.bf16.msrb.mxu3 %v15214_v5  ;;  %v17003_v5 = vld [vmem:[#allocation3 + $0x134] sm:$0xf0]  ;;  %v15386_v59 = vor.u32 %v16994_v43, %v15385_v32  ;;  %v16990_v7 = vld [vmem:[#allocation3 + $0xcc] sm:$0xf0]  ;;  %v16985_v32 = vld [vmem:[#allocation3 + $0xac] sm:$0xf] }
 0x86e   : > { %v19636_v56 = vpop.f32.mrf.mxu0  ;;  %v15170_v24 = vor.u32 %v17003_v5, %v15169_v8  ;;  %9448 = vmatpush.bf16.msra.mxu2 %v15162_v42  ;;  %v16988_v42 = vld [vmem:[#allocation3 + $0xc4] sm:$0xf]  ;;  %v15370_v0 = vor.u32 %v16990_v7, %v15369_v54  ;;  %v15371_v8 = vld [vmem:[#allocation3 + $0xd0] sm:$0xf0]  ;;  %v15377_v5 = vld [vmem:[#allocation3 + $0xc8] sm:$0xf] }
 0x86f   : > { %v15363_v43 = vld [vmem:[#allocation3 + $0xb8] sm:$0xf0]  ;;  %v16983_v10 = vld [vmem:[#allocation3 + $0x94] sm:$0xf0]  ;;  %v16981_v54 = vld [vmem:[#allocation3 + $0x8c] sm:$0xf] }
 0x870   : > { %9486 = vmatpush.bf16.msrb.mxu1 %v15190_v11  ;;  %9474 = vmatpush.bf16.msrb.mxu0 %v15170_v24  ;;  %v15374_v24 = vor.u32 %v16988_v42, %v15371_v8  ;;  %v15347_v7 = vld [vmem:[#allocation3 + $0x98] sm:$0xf0]  ;;  %v16978_v8 = vld [vmem:[#allocation3 + $0x6c] sm:$0xf0] }
 0x871   : > { %9459 = vmatpush.bf16.msrb.mxu3 %v15198_v60  ;;  %v16999_v60 = vld [vmem:[#allocation3 + $0x114] sm:$0xf0]  ;;  %v15350_v42 = vor.u32 %v16981_v54, %v15347_v7  ;;  %v15291_v54 = vld [vmem:[#allocation3 + $0x30] sm:$0xf0]  ;;  %v15297_v7 = vld [vmem:[#allocation3 + $0x28] sm:$0xf] }
 0x872   : > { %v15154_v44 = vor.u32 %v16999_v60, %v15153_v9  ;;  %9449 = vmatpush.bf16.msra.mxu2 %v15146_v55  ;;  %v19648_v55 = vpop.f32.mrf.mxu1  ;;  %v15355_v9 = vld [vmem:[#allocation3 + $0xb0] sm:$0xf0]  ;;  %v15361_v60 = vld [vmem:[#allocation3 + $0xa8] sm:$0xf] }
 0x873   : > { %v15362_v47 = vor.u32 %v16987_v62, %v15361_v60  ;;  %v15305_v60 = vld [vmem:[#allocation3 + $0x40] sm:$0xf]  ;;  %v16974_v62 = vld [vmem:[#allocation3 + $0x4c] sm:$0xf0] }
 0x874   : > { %9487 = vmatpush.bf16.msrb.mxu1 %v15174_v40  ;;  %9475 = vmatpush.bf16.msrb.mxu0 %v15154_v44  ;;  %v15382_v40 = vor.u32 %v16989_v13, %v15379_v45  ;;  %v15358_v44 = vor.u32 %v16984_v19, %v15355_v9  ;;  %v16979_v45 = vld [vmem:[#allocation3 + $0x74] sm:$0xf0] }
 0x875   : > { %9460 = vmatpush.bf16.msrb.mxu3 %v15182_v36  ;;  %v15393_v36 = vld [vmem:[#allocation3 + $0xe8] sm:$0xf] }
 0x876   : > { %v19638_v63 = vpop.f32.mrf.mxu0  ;;  %9654 = vmatpush.bf16.msrb.mxu2 %v15386_v59  ;;  %v15394_v11 = vor.u32 %v16995_v48, %v15393_v36  ;;  %v15366_v59 = vor.u32 %v16985_v32, %v15363_v43  ;;  %v16980_v36 = vld [vmem:[#allocation3 + $0x84] sm:$0xf]  ;;  %v15339_v48 = vld [vmem:[#allocation3 + $0x90] sm:$0xf0]  ;;  %v15313_v43 = vld [vmem:[#allocation3 + $0x48] sm:$0xf] }
 0x877   : > { %v15307_v32 = vld [vmem:[#allocation3 + $0x50] sm:$0xf0] }
 0x878   : > { %9488 = vmatpush.bf16.msrb.mxu1 %v15158_v25  ;;  %9680 = vmatpush.bf16.msra.mxu0 %v15394_v11  ;;  %v15342_v11 = vor.u32 %v16980_v36, %v15339_v48  ;;  %v16973_v36 = vld [vmem:[#allocation3 + $0x4c] sm:$0xf] }
 0x879   : > { %9461 = vmatpush.bf16.msrb.mxu3 %v15166_v1  ;;  %v16991_v1 = vld [vmem:[#allocation3 + $0xd4] sm:$0xf0] }
 0x87a   : > { %v15378_v37 = vor.u32 %v16991_v1, %v15377_v5  ;;  %9655 = vmatpush.bf16.msrb.mxu2 %v15370_v0  ;;  %v15321_v0 = vld [vmem:[#allocation3 + $0x60] sm:$0xf]  ;;  %v16976_v1 = vld [vmem:[#allocation3 + $0x64] sm:$0xf] }
 0x87b   : > { %v15322_v5 = vor.u32 %v16978_v8, %v15321_v0 }
 0x87c   : > { %9693 = vmatpush.bf16.msra.mxu1 %v15398_v6  ;;  %9681 = vmatpush.bf16.msra.mxu0 %v15378_v37  ;;  %v15346_v6 = vor.u32 %v16983_v10, %v15345_v23  ;;  %v15329_v37 = vld [vmem:[#allocation3 + $0x68] sm:$0xf]  ;;  %v15289_v23 = vld [vmem:[#allocation3 + $0x20] sm:$0xf]  ;;  %v16970_v10 = vld [vmem:[#allocation3 + $0x2c] sm:$0xf0] }
 0x87d   : > { %9462 = vmatpush.bf16.msrb.mxu3 %v15150_v14  ;;  %v15354_v14 = vor.u32 %v16986_v30, %v15353_v50  ;;  %v15331_v50 = vld [vmem:[#allocation3 + $0x78] sm:$0xf0]  ;;  %v19652_v30 = vpop.f32.mrf.mxu1 }
 0x87e   : > { %v19642_v22 = vpop.f32.mrf.mxu0 }
 0x87f   : > { %9656 = vmatpush.bf16.msrb.mxu2 %v15354_v14  ;;  %v15330_v14 = vor.u32 %v16979_v45, %v15329_v37  ;;  %v15273_v45 = vld [vmem:[#allocation3] sm:$0xf] }
 0x880   : > { %9694 = vmatpush.bf16.msra.mxu1 %v15382_v40  ;;  %9682 = vmatpush.bf16.msra.mxu0 %v15362_v47  ;;  %v16977_v40 = vld [vmem:[#allocation3 + $0x6c] sm:$0xf]  ;;  %v15306_v47 = vor.u32 %v16974_v62, %v15305_v60  ;;  %v15275_v60 = vld [vmem:[#allocation3 + $0x10] sm:$0xf0]  ;;  %v15281_v62 = vld [vmem:[#allocation3 + $0x8] sm:$0xf] }
 0x881   : > { %9667 = vmatpush.bf16.msra.mxu3 %v15390_v15  ;;  %v15338_v15 = vor.u32 %v16982_v52, %v15337_v2  ;;  %v15334_v9 = vor.u32 %v16977_v40, %v15331_v50  ;;  %v16966_v40 = vld [vmem:[#allocation3 + $0xc] sm:$0xf0]  ;;  %v16964_v50 = vld [vmem:[#allocation3 + $0x4] sm:$0xf] }
 0x883   : > { %9657 = vmatpush.bf16.msrb.mxu2 %v15338_v15  ;;  %v15315_v15 = vld [vmem:[#allocation3 + $0x58] sm:$0xf0] }
 0x884   : > { %9695 = vmatpush.bf16.msra.mxu1 %v15366_v59  ;;  %9683 = vmatpush.bf16.msra.mxu0 %v15346_v6  ;;  %v16975_v59 = vld [vmem:[#allocation3 + $0x54] sm:$0xf0]  ;;  %v15318_v48 = vor.u32 %v16973_v36, %v15315_v15  ;;  %v15290_v6 = vor.u32 %v16970_v10, %v15289_v23  ;;  %v8684_v15 = vadd.f32 %v19631_v17, %v19616_v16 }
 0x885   : > { %9668 = vmatpush.bf16.msra.mxu3 %v15374_v24  ;;  %v15323_v24 = vld [vmem:[#allocation3 + $0x70] sm:$0xf0]  ;;  %v15314_v52 = vor.u32 %v16975_v59, %v15313_v43  ;;  %v16965_v43 = vld [vmem:[#allocation3 + $0xc] sm:$0xf]  ;;  %v15283_v59 = vld [vmem:[#allocation3 + $0x18] sm:$0xf0]  ;;  %v8668_v23 = vadd.f32 %v19636_v56, %v19535_v38 }
 0x886   : > { %v19646_v29 = vpop.f32.mrf.mxu0  ;;  %v15326_v13 = vor.u32 %v16976_v1, %v15323_v24  ;;  %v15299_v1 = vld [vmem:[#allocation3 + $0x38] sm:$0xf0] }
 0x887   : > { %9658 = vmatpush.bf16.msrb.mxu2 %v15322_v5  ;;  %v16969_v5 = vld [vmem:[#allocation3 + $0x2c] sm:$0xf] }
 0x888   : > { %9696 = vmatpush.bf16.msra.mxu1 %v15350_v42  ;;  %9684 = vmatpush.bf16.msra.mxu0 %v15330_v14  ;;  %v16971_v42 = vld [vmem:[#allocation3 + $0x34] sm:$0xf0]  ;;  %v15302_v37 = vor.u32 %v16969_v5, %v15299_v1  ;;  %v9059_v14 = vpop.f32.mrf.mxu1 }
 0x889   : > { %9669 = vmatpush.bf16.msra.mxu3 %v15358_v44  ;;  %v16972_v44 = vld [vmem:[#allocation3 + $0x44] sm:$0xf]  ;;  %v15298_v8 = vor.u32 %v16971_v42, %v15297_v7 }
 0x88a   : > { %v15310_v2 = vor.u32 %v16972_v44, %v15307_v32  ;;  %v16967_v44 = vld [vmem:[#allocation3 + $0x14] sm:$0xf0] }
 0x88b   : > { %9659 = vmatpush.bf16.msrb.mxu2 %v15306_v47  ;;  %v15278_v47 = vor.u32 %v16964_v50, %v15275_v60  ;;  %v15282_v32 = vor.u32 %v16967_v44, %v15281_v62  ;;  %v17056_v50 = vld [vmem:[#allocation3 + $0x2e4] sm:$0xf]  ;;  %v15523_v60 = vld [vmem:[#allocation3 + $0x2f8] sm:$0xf0] }
 0x88c   : > { %9697 = vmatpush.bf16.msra.mxu1 %v15334_v9  ;;  %9685 = vmatpush.bf16.msra.mxu0 %v15314_v52  ;;  %v15274_v9 = vor.u32 %v16966_v40, %v15273_v45  ;;  %v15513_v40 = vld [vmem:[#allocation3 + $0x2e0] sm:$0xf] }
 0x88d   : > { %9670 = vmatpush.bf16.msra.mxu3 %v15342_v11  ;;  %v16968_v11 = vld [vmem:[#allocation3 + $0x24] sm:$0xf] }
 0x88e   : > { %v19650_v25 = vpop.f32.mrf.mxu0  ;;  %v15294_v0 = vor.u32 %v16968_v11, %v15291_v54  ;;  %v8808_v11 = vadd.f32 %v19642_v22, %v8668_v23  ;;  %v9159_v54 = vpop.f32.mrf.mxu3  ;;  %v15507_v23 = vld [vmem:[#allocation3 + $0x2d8] sm:$0xf0] }
 0x88f   : > { %9660 = vmatpush.bf16.msrb.mxu2 %v15290_v6 }
 0x890   : > { %9698 = vmatpush.bf16.msra.mxu1 %v15318_v48  ;;  %9686 = vmatpush.bf16.msra.mxu0 %v15298_v8 }
 0x891   : > { %9671 = vmatpush.bf16.msra.mxu3 %v15326_v13  ;;  %v8682_v13 = vadd.f32 %v19622_v3, %v19614_v33  ;;  %v8642_v33 = vadd.f32 %v19562_v49, %v19612_v4  ;;  %v8656_v3 = vadd.f32 %v19571_v39, %v19543_v31  ;;  %v9185_v49 = vpop.f32.mrf.mxu1  ;;  %v8813_v4 = vadd.f32 %v19640_v28, %v8684_v15  ;;  %v17055_v15 = vld [vmem:[#allocation3 + $0x2d4] sm:$0xf0] }
 0x892   : > { %v8936_v39 = vadd.f32 %v19650_v25, %v8808_v11  ;;  %v15481_v11 = vld [vmem:[#allocation3 + $0x2a0] sm:$0xf] }
 0x893   : > { %9661 = vmatpush.bf16.msrb.mxu2 %v15274_v9  ;;  %v8809_v52 = vadd.f32 %v19634_v41, %v8682_v13  ;;  %v8810_v41 = vadd.f32 %v19581_v34, %v8642_v33  ;;  %v8811_v10 = vadd.f32 %v19590_v46, %v8656_v3  ;;  %v8941_v38 = vadd.f32 %v19648_v55, %v8813_v4  ;;  %v17057_v9 = vld [vmem:[#allocation3 + $0x2ec] sm:$0xf]  ;;  %v17052_v33 = vld [vmem:[#allocation3 + $0x2c4] sm:$0xf]  ;;  %v15499_v3 = vld [vmem:[#allocation3 + $0x2d0] sm:$0xf0] }
 0x894   : > { %9699 = vmatpush.bf16.msra.mxu1 %v15302_v37  ;;  %9687 = vmatpush.bf16.msra.mxu0 %v15282_v32  ;;  %v8670_v46 = vadd.f32 %v19638_v63, %v19552_v18 }
 0x895   : > { %9672 = vmatpush.bf16.msra.mxu3 %v15310_v2  ;;  %v15286_v2 = vor.u32 %v16965_v43, %v15283_v59  ;;  %v8937_v48 = vadd.f32 %v19644_v21, %v8809_v52  ;;  %v8938_v16 = vadd.f32 %v19594_v53, %v8810_v41  ;;  %v8939_v17 = vadd.f32 %v19596_v51, %v8811_v10  ;;  %v17266_v53 = vld [vmem:[%s19791_s2] ss:$0 sm:$0xff]  ;;  %v9145_v51 = vpop.f32.mrf.mxu2  ;;  %v15497_v43 = vld [vmem:[#allocation3 + $0x2c0] sm:$0xf] }
 0x896   : > { %v19654_v19 = vpop.f32.mrf.mxu0  ;;  %v9069_v7 = vadd.f32 %v9059_v14, %v8941_v38  ;;  %v15515_v14 = vld [vmem:[#allocation3 + $0x2f0] sm:$0xf0]  ;;  %v17054_v59 = vld [vmem:[#allocation3 + $0x2cc] sm:$0xf0]  ;;  %v15526_v52 = vor.u32 %v17057_v9, %v15523_v60  ;;  %v15502_v10 = vor.u32 %v17052_v33, %v15499_v3  ;;  %v15491_v38 = vld [vmem:[#allocation3 + $0x2b8] sm:$0xf0] }
 0x897   : > { %v9065_v31 = vadd.f32 %v19652_v30, %v8937_v48  ;;  %v9066_v22 = vadd.f32 %v19600_v20, %v8938_v16  ;;  %v9067_v28 = vadd.f32 %v19602_v12, %v8939_v17  ;;  %v8812_v30 = vadd.f32 %v19646_v29, %v8670_v46  ;;  %v17053_v48 = vld [vmem:[#allocation3 + $0x2cc] sm:$0xf]  ;;  %v15483_v16 = vld [vmem:[#allocation3 + $0x2b0] sm:$0xf0]  ;;  %v15489_v17 = vld [vmem:[#allocation3 + $0x2a8] sm:$0xf] }
 0x898   : > { %9700 = vmatpush.bf16.msra.mxu1 %v15286_v2  ;;  %v15518_v32 = vor.u32 %v17056_v50, %v15515_v14  ;;  %v15522_v2 = vor.u32 %v17059_v35, %v15521_v57  ;;  %v15498_v41 = vor.u32 %v17054_v59, %v15497_v43  ;;  %v15433_v50 = vld [vmem:[#allocation3 + $0x240] sm:$0xf]  ;;  %v17038_v14 = vld [vmem:[#allocation3 + $0x24c] sm:$0xf0]  ;;  %v15435_v9 = vld [vmem:[#allocation3 + $0x250] sm:$0xf0] }
 0x899   : > { %9673 = vmatpush.bf16.msra.mxu3 %v15294_v0  ;;  %v9193_v34 = vadd.f32 %v9185_v49, %v9065_v31  ;;  %v8940_v55 = vadd.f32 %v19654_v19, %v8812_v30  ;;  %v9187_v63 = vpop.f32.mrf.mxu1  ;;  %v9194_v20 = vadd.f32 %v9145_v51, %v9066_v22  ;;  %v9195_v42 = vadd.f32 %v9159_v54, %v9067_v28  ;;  %v17058_v19 = vld [vmem:[#allocation3 + $0x2ec] sm:$0xf0]  ;;  %v15473_v51 = vld [vmem:[#allocation3 + $0x288] sm:$0xf]  ;;  %v17047_v54 = vld [vmem:[#allocation3 + $0x294] sm:$0xf0] }
 0x89a   : > { %v9197_v8 = vadd.f32 %v9187_v63, %v9069_v7  ;;  %v17050_v49 = vld [vmem:[#allocation3 + $0x2ac] sm:$0xf0]  ;;  %v15510_v31 = vor.u32 %v17053_v48, %v15507_v23  ;;  %v17045_v7 = vld [vmem:[#allocation3 + $0x28c] sm:$0xf]  ;;  %v15441_v60 = vld [vmem:[#allocation3 + $0x248] sm:$0xf]  ;;  %v15434_v43 = vor.u32 %v17038_v14, %v15433_v50 }
 0x89b   : > { %v17046_v22 = vld [vmem:[#allocation3 + $0x28c] sm:$0xf0]  ;;  %v15419_v48 = vld [vmem:[#allocation3 + $0x230] sm:$0xf0]  ;;  %v15425_v23 = vld [vmem:[#allocation3 + $0x228] sm:$0xf] }
 0x89c   : > { %v17085_v50 = vld [vmem:[#allocation3 + $0x3cc] sm:$0xf]  ;;  %v15635_v14 = vld [vmem:[#allocation3 + $0x3d8] sm:$0xf0] }
 0x89d   : > { %9674 = vmatpush.bf16.msra.mxu3 %v15278_v47  ;;  %v15514_v47 = vor.u32 %v17058_v19, %v15513_v40 }
 0x89e   : > { %v9043_v24 = vpop.f32.mrf.mxu0 }
 0x89f   : > { %v9064_v21 = vadd.f32 %v9043_v24, %v8936_v39  ;;  %v9199_v24 = vmax.f32 %v9194_v20, %v9195_v42  ;;  %v17048_v39 = vld [vmem:[#allocation3 + $0x2a4] sm:$0xf]  ;;  %v17042_v42 = vld [vmem:[#allocation3 + $0x26c] sm:$0xf0] }
 0x8a0   : > { %v15486_v46 = vor.u32 %v17048_v39, %v15483_v16  ;;  %v17030_v16 = vld [vmem:[#allocation3 + $0x20c] sm:$0xf0] }
 0x8a6   : > { %v9045_v36 = vpop.f32.mrf.mxu0 }
 0x8a7   : > { %v9068_v12 = vadd.f32 %v9045_v36, %v8940_v55  ;;  %v15505_v36 = vld [vmem:[#allocation3 + $0x2c8] sm:$0xf]  ;;  %v15475_v55 = vld [vmem:[#allocation3 + $0x298] sm:$0xf0] }
 0x8a8   : > { %v15506_v4 = vor.u32 %v17055_v15, %v15505_v36  ;;  %v17032_v15 = vld [vmem:[#allocation3 + $0x224] sm:$0xf] }
 0x8a9   : > { %v15422_v39 = vor.u32 %v17032_v15, %v15419_v48  ;;  %v15593_v48 = vld [vmem:[#allocation3 + $0x380] sm:$0xf] }
 0x8ae   : > { %v9171_v6 = vpop.f32.mrf.mxu0 }
 0x8af   : > { %v9192_v56 = vadd.f32 %v9171_v6, %v9064_v21  ;;  %v17051_v21 = vld [vmem:[#allocation3 + $0x2b4] sm:$0xf0]  ;;  %v17049_v6 = vld [vmem:[#allocation3 + $0x2ac] sm:$0xf] }
 0x8b0   : > { %v15490_v28 = vor.u32 %v17051_v21, %v15489_v17  ;;  %v15494_v30 = vor.u32 %v17049_v6, %v15491_v38  ;;  %v17028_v17 = vld [vmem:[#allocation3 + $0x204] sm:$0xf]  ;;  %v15403_v21 = vld [vmem:[#allocation3 + $0x210] sm:$0xf0]  ;;  %v15409_v38 = vld [vmem:[#allocation3 + $0x208] sm:$0xf] }
 0x8b1   : > { %v9200_v25 = vmax.f32 %v9192_v56, %v9193_v34  ;;  %v15482_v34 = vor.u32 %v17050_v49, %v15481_v11  ;;  %v15465_v56 = vld [vmem:[#allocation3 + $0x280] sm:$0xf]  ;;  %v15427_v11 = vld [vmem:[#allocation3 + $0x238] sm:$0xf0] }
 0x8b2   : > { %v15466_v63 = vor.u32 %v17046_v22, %v15465_v56  ;;  %v15411_v56 = vld [vmem:[#allocation3 + $0x218] sm:$0xf0]  ;;  %v15641_v22 = vld [vmem:[#allocation3 + $0x3e0] sm:$0xf] }
 0x8b3   : > { %v9202_v18 = vmax.f32 %v9198_v61, %v9200_v25  ;;  %v17044_v25 = vld [vmem:[#allocation3 + $0x284] sm:$0xf] }
 0x8b5   : > { %v9208_v0 = vadd.f32 %v17266_v53, %v9202_v18  ;;  %v15449_v18 = vld [vmem:[#allocation3 + $0x260] sm:$0xf] }
 0x8b6   : > { %v9173_v29 = vpop.f32.mrf.mxu0  ;;  %v15450_v40 = vor.u32 %v17042_v42, %v15449_v18  ;;  %v15651_v18 = vld [vmem:[#allocation3 + $0x3f8] sm:$0xf0] }
 0x8b7   : > { %v9210_v5 = vmax.f32 %v9208_v0, 0.0  ;;  %v9196_v1 = vadd.f32 %v9173_v29, %v9068_v12  ;;  %v17040_v12 = vld [vmem:[#allocation3 + $0x264] sm:$0xf]  ;;  %v15451_v0 = vld [vmem:[#allocation3 + $0x270] sm:$0xf0]  ;;  %v15474_v29 = vor.u32 %v17047_v54, %v15473_v51  ;;  %v15406_v54 = vor.u32 %v17028_v17, %v15403_v21 }
 0x8b8   : > { %v15454_v19 = vor.u32 %v17040_v12, %v15451_v0  ;;  %v15625_v0 = vld [vmem:[#allocation3 + $0x3c0] sm:$0xf] }
 0x8b9   : > { %9212 = vst [vmem:[#allocation2] sm:$0xff] %v9210_v5  ;;  %v9201_v37 = vmax.f32 %v9196_v1, %v9197_v8  ;;  %v15478_v8 = vor.u32 %v17045_v7, %v15475_v55  ;;  %v15457_v1 = vld [vmem:[#allocation3 + $0x268] sm:$0xf]  ;;  %v17091_v7 = vld [vmem:[#allocation3 + $0x3f4] sm:$0xf0] }
 0x8ba   : > { %v17089_v55 = vld [vmem:[#allocation3 + $0x3ec] sm:$0xf] }
 0x8bb   : > { %v9203_v13 = vmax.f32 %v9199_v24, %v9201_v37  ;;  %v17043_v24 = vld [vmem:[#allocation3 + $0x274] sm:$0xf0]  ;;  %v17041_v37 = vld [vmem:[#allocation3 + $0x26c] sm:$0xf] }
 0x8bc   : > { %v15458_v57 = vor.u32 %v17043_v24, %v15457_v1  ;;  %v15654_v1 = vor.u32 %v17089_v55, %v15651_v18  ;;  %v17068_v55 = vld [vmem:[#allocation3 + $0x344] sm:$0xf] }
 0x8bd   : > { %v9209_v45 = vadd.f32 %v17266_v53, %v9203_v13  ;;  %v15467_v53 = vld [vmem:[#allocation3 + $0x290] sm:$0xf0]  ;;  %v15459_v13 = vld [vmem:[#allocation3 + $0x278] sm:$0xf0] }
 0x8be   : > { %v15470_v20 = vor.u32 %v17044_v25, %v15467_v53  ;;  %v15462_v35 = vor.u32 %v17041_v37, %v15459_v13  ;;  %v15643_v25 = vld [vmem:[#allocation3 + $0x3f0] sm:$0xf0]  ;;  %v15649_v53 = vld [vmem:[#allocation3 + $0x3e8] sm:$0xf]  ;;  %v17084_v37 = vld [vmem:[#allocation3 + $0x3c4] sm:$0xf] }
 0x8bf   : > { %v9211_v61 = vmax.f32 %v9209_v45, 0.0  ;;  %v15627_v13 = vld [vmem:[#allocation3 + $0x3d0] sm:$0xf0] }
 0x8c0   : > { %v9248_v62 = vld [vmem:[#allocation2 + $0x1] ss:$2 sm:$0xf]  ;;  %v9214_v5 = vld [vmem:[#allocation2] ss:$2 sm:$0xf] }
 0x8c1   : > { %9213 = vst [vmem:[#allocation2 + $0x8] sm:$0xf] %v9211_v61  ;;  %v9249_v44 = vpack.c.bf16 %v9248_v62, %v9248_v62  ;;  %v9215_v45 = vpack.c.bf16 %v9214_v5, %v9214_v5  ;;  %v17036_v61 = vld [vmem:[#allocation3 + $0x244] sm:$0xf]  ;;  %v17039_v62 = vld [vmem:[#allocation3 + $0x254] sm:$0xf0]  ;;  %v15650_v5 = vor.u32 %v17091_v7, %v15649_v53 }
 0x8c2   : > { %v15438_v59 = vor.u32 %v17036_v61, %v15435_v9  ;;  %v15442_v3 = vor.u32 %v17039_v62, %v15441_v60  ;;  %v15630_v61 = vor.u32 %v17084_v37, %v15627_v13  ;;  %v15609_v60 = vld [vmem:[#allocation3 + $0x3a0] sm:$0xf]  ;;  %v17082_v62 = vld [vmem:[#allocation3 + $0x3ac] sm:$0xf0]  ;;  %v17064_v37 = vld [vmem:[#allocation3 + $0x324] sm:$0xf] }
 0x8c3   : > { %9450 = vmatmul.bf16.vlgmr.msra.gmra.mxu2 %v9249_v44  ;;  %9463 = vmatmul.bf16.vlgmr.msrb.gmra.mxu3 %v9249_v44  ;;  %v17070_v7 = vld [vmem:[#allocation3 + $0x34c] sm:$0xf0] }
 0x8c4   : > { %9476 = vmatmul.bf16.vlgmr.msrb.gmra.mxu0 %v9249_v44  ;;  %9489 = vmatmul.bf16.vlgmr.msrb.gmra.mxu1 %v9249_v44  ;;  %v17037_v44 = vld [vmem:[#allocation3 + $0x24c] sm:$0xf] }
 0x8c5   : > { %9900 = vmatpush.bf16.msra.mxu2 %v15514_v47  ;;  %9913 = vmatpush.bf16.msrb.mxu3 %v15518_v32  ;;  %v15443_v47 = vld [vmem:[#allocation3 + $0x258] sm:$0xf0] }
 0x8c6   : > { %9926 = vmatpush.bf16.msrb.mxu0 %v15522_v2  ;;  %9939 = vmatpush.bf16.msrb.mxu1 %v15526_v52  ;;  %v15417_v2 = vld [vmem:[#allocation3 + $0x220] sm:$0xf]  ;;  %v17034_v52 = vld [vmem:[#allocation3 + $0x22c] sm:$0xf0]  ;;  %v15446_v36 = vor.u32 %v17037_v44, %v15443_v47  ;;  %v17080_v44 = vld [vmem:[#allocation3 + $0x3a4] sm:$0xf]  ;;  %v15638_v47 = vor.u32 %v17085_v50, %v15635_v14 }
 0x8c7   : > { %v17065_v50 = vld [vmem:[#allocation3 + $0x32c] sm:$0xf]  ;;  %v15555_v14 = vld [vmem:[#allocation3 + $0x338] sm:$0xf0] }
 0x8c8   : > { %v9706_v24 = vld [vmem:[#allocation2 + $0x2] ss:$2 sm:$0xf] }
 0x8c9   : > { %9901 = vmatpush.bf16.msra.mxu2 %v15498_v41  ;;  %9914 = vmatpush.bf16.msrb.mxu3 %v15502_v10  ;;  %v17035_v41 = vld [vmem:[#allocation3 + $0x234] sm:$0xf0]  ;;  %v17033_v10 = vld [vmem:[#allocation3 + $0x22c] sm:$0xf] }
 0x8ca   : > { %9927 = vmatpush.bf16.msrb.mxu0 %v15506_v4  ;;  %9940 = vmatpush.bf16.msrb.mxu1 %v15510_v31  ;;  %v15401_v4 = vld [vmem:[#allocation3 + $0x200] sm:$0xf]  ;;  %v15418_v31 = vor.u32 %v17034_v52, %v15417_v2  ;;  %v15430_v6 = vor.u32 %v17033_v10, %v15427_v11  ;;  %v17081_v2 = vld [vmem:[#allocation3 + $0x3ac] sm:$0xf]  ;;  %v15619_v52 = vld [vmem:[#allocation3 + $0x3b8] sm:$0xf0] }
 0x8cb   : > { %v15402_v51 = vor.u32 %v17030_v16, %v15401_v4  ;;  %v15622_v10 = vor.u32 %v17081_v2, %v15619_v52  ;;  %v15595_v11 = vld [vmem:[#allocation3 + $0x390] sm:$0xf0]  ;;  %v17079_v4 = vld [vmem:[#allocation3 + $0x394] sm:$0xf0]  ;;  %v15539_v2 = vld [vmem:[#allocation3 + $0x318] sm:$0xf0] }
 0x8cc   : > { %v15769_v52 = vld [vmem:[#allocation3 + $0x4e0] sm:$0xf] }
 0x8cd   : > { %9902 = vmatpush.bf16.msra.mxu2 %v15482_v34  ;;  %9915 = vmatpush.bf16.msrb.mxu3 %v15486_v46  ;;  %v17031_v34 = vld [vmem:[#allocation3 + $0x214] sm:$0xf0]  ;;  %v17029_v46 = vld [vmem:[#allocation3 + $0x20c] sm:$0xf] }
 0x8ce   : > { %9928 = vmatpush.bf16.msrb.mxu0 %v15490_v28  ;;  %9941 = vmatpush.bf16.msrb.mxu1 %v15494_v30  ;;  %v17090_v28 = vld [vmem:[#allocation3 + $0x3ec] sm:$0xf0]  ;;  %v17088_v30 = vld [vmem:[#allocation3 + $0x3e4] sm:$0xf] }
 0x8cf   : > { %v15642_v42 = vor.u32 %v17090_v28, %v15641_v22  ;;  %v15646_v12 = vor.u32 %v17088_v30, %v15643_v25  ;;  %v17075_v22 = vld [vmem:[#allocation3 + $0x374] sm:$0xf0]  ;;  %v17073_v28 = vld [vmem:[#allocation3 + $0x36c] sm:$0xf]  ;;  %v15587_v30 = vld [vmem:[#allocation3 + $0x378] sm:$0xf0] }
 0x8d0   : > { %v15590_v18 = vor.u32 %v17073_v28, %v15587_v30  ;;  %v17117_v28 = vld [vmem:[#allocation3 + $0x4cc] sm:$0xf]  ;;  %v15763_v30 = vld [vmem:[#allocation3 + $0x4d8] sm:$0xf0] }
 0x8d1   : > { %9903 = vmatpush.bf16.msra.mxu2 %v15466_v63  ;;  %9916 = vmatpush.bf16.msrb.mxu3 %v15470_v20  ;;  %v15410_v63 = vor.u32 %v17031_v34, %v15409_v38  ;;  %v15414_v20 = vor.u32 %v17029_v46, %v15411_v56  ;;  %v17072_v38 = vld [vmem:[#allocation3 + $0x364] sm:$0xf]  ;;  %v15579_v46 = vld [vmem:[#allocation3 + $0x370] sm:$0xf0]  ;;  %v15585_v56 = vld [vmem:[#allocation3 + $0x368] sm:$0xf] }
 0x8d2   : > { %9929 = vmatpush.bf16.msrb.mxu0 %v15474_v29  ;;  %9942 = vmatpush.bf16.msrb.mxu1 %v15478_v8  ;;  %v17086_v29 = vld [vmem:[#allocation3 + $0x3cc] sm:$0xf0]  ;;  %v15582_v53 = vor.u32 %v17072_v38, %v15579_v46  ;;  %v17116_v38 = vld [vmem:[#allocation3 + $0x4c4] sm:$0xf]  ;;  %v15755_v46 = vld [vmem:[#allocation3 + $0x4d0] sm:$0xf0] }
 0x8d3   : > { %9662 = vmatmul.bf16.vlgmr.msrb.gmra.mxu2 %v9215_v45  ;;  %9675 = vmatmul.bf16.vlgmr.msra.gmra.mxu3 %v9215_v45 }
 0x8d4   : > { %9688 = vmatmul.bf16.vlgmr.msra.gmra.mxu0 %v9215_v45  ;;  %9701 = vmatmul.bf16.vlgmr.msra.gmra.mxu1 %v9215_v45  ;;  %v15633_v45 = vld [vmem:[#allocation3 + $0x3c8] sm:$0xf] }
 0x8d5   : > { %9904 = vmatpush.bf16.msra.mxu2 %v15450_v40  ;;  %9917 = vmatpush.bf16.msrb.mxu3 %v15454_v19  ;;  %v8436_v32 = vpop.xlane.xlu0 %8435  ;;  %v17087_v40 = vld [vmem:[#allocation3 + $0x3d4] sm:$0xf0] }
 0x8d6   : > { %9930 = vmatpush.bf16.msrb.mxu0 %v15458_v57  ;;  %9943 = vmatpush.bf16.msrb.mxu1 %v15462_v35  ;;  %v19690_v33 = vsub.f32 %v19627_v58, %v8436_v32  ;;  %v15426_v58 = vor.u32 %v17035_v41, %v15425_v23  ;;  %v9707_v57 = vpack.c.bf16 %v9706_v24, %v9706_v24  ;;  %v15611_v32 = vld [vmem:[#allocation3 + $0x3b0] sm:$0xf0]  ;;  %v17078_v23 = vld [vmem:[#allocation3 + $0x38c] sm:$0xf0]  ;;  %v17076_v41 = vld [vmem:[#allocation3 + $0x384] sm:$0xf] }
 0x8d7   : > { %v15626_v35 = vor.u32 %v17086_v29, %v15625_v0  ;;  %v15634_v9 = vor.u32 %v17087_v40, %v15633_v45  ;;  %v15594_v16 = vor.u32 %v17078_v23, %v15593_v48  ;;  %v15598_v17 = vor.u32 %v17076_v41, %v15595_v11  ;;  %v15571_v0 = vld [vmem:[#allocation3 + $0x358] sm:$0xf0]  ;;  %v17066_v24 = vld [vmem:[#allocation3 + $0x32c] sm:$0xf0]  ;;  %v15547_v45 = vld [vmem:[#allocation3 + $0x330] sm:$0xf0] }
 0x8d8   : > { %v8438_v49 = vmul.f32 1.442695, %v19690_v33  ;;  %v15553_v40 = vld [vmem:[#allocation3 + $0x328] sm:$0xf]  ;;  %v15771_v48 = vld [vmem:[#allocation3 + $0x4f0] sm:$0xf0] }
 0x8d9   : > { %9905 = vmatpush.bf16.msra.mxu2 %v15434_v43  ;;  %9918 = vmatpush.bf16.msrb.mxu3 %v15438_v59  ;;  %v15617_v43 = vld [vmem:[#allocation3 + $0x3a8] sm:$0xf]  ;;  %v17083_v59 = vld [vmem:[#allocation3 + $0x3b4] sm:$0xf0] }
 0x8da   : > { %17272 = vpow2.f32 %v8438_v49  ;;  %9931 = vmatpush.bf16.msrb.mxu0 %v15442_v3  ;;  %9944 = vmatpush.bf16.msrb.mxu1 %v15446_v36  ;;  %v15610_v3 = vor.u32 %v17082_v62, %v15609_v60  ;;  %v15614_v36 = vor.u32 %v17080_v44, %v15611_v32  ;;  %v15618_v15 = vor.u32 %v17083_v59, %v15617_v43  ;;  %v15601_v49 = vld [vmem:[#allocation3 + $0x388] sm:$0xf]  ;;  %v17060_v62 = vld [vmem:[#allocation3 + $0x304] sm:$0xf]  ;;  %v15531_v44 = vld [vmem:[#allocation3 + $0x310] sm:$0xf0] }
 0x8db   : > { %v15602_v21 = vor.u32 %v17079_v4, %v15601_v49  ;;  %v15558_v32 = vor.u32 %v17065_v50, %v15555_v14  ;;  %v17063_v43 = vld [vmem:[#allocation3 + $0x314] sm:$0xf0]  ;;  %v17061_v59 = vld [vmem:[#allocation3 + $0x30c] sm:$0xf]  ;;  %v15777_v23 = vld [vmem:[#allocation3 + $0x4e8] sm:$0xf] }
 0x8dc   : > { %v17123_v41 = vld [vmem:[#allocation3 + $0x4f4] sm:$0xf0]  ;;  %v17121_v49 = vld [vmem:[#allocation3 + $0x4ec] sm:$0xf]  ;;  %v15779_v4 = vld [vmem:[#allocation3 + $0x4f8] sm:$0xf0] }
 0x8dd   : > { %9906 = vmatpush.bf16.msra.mxu2 %v15418_v31  ;;  %9919 = vmatpush.bf16.msrb.mxu3 %v15422_v39  ;;  %v17077_v31 = vld [vmem:[#allocation3 + $0x38c] sm:$0xf]  ;;  %v15603_v39 = vld [vmem:[#allocation3 + $0x398] sm:$0xf0]  ;;  %v17111_v50 = vld [vmem:[#allocation3 + $0x494] sm:$0xf0] }
 0x8de   : > { %9932 = vmatpush.bf16.msrb.mxu0 %v15426_v58  ;;  %9945 = vmatpush.bf16.msrb.mxu1 %v15430_v6  ;;  %v15577_v58 = vld [vmem:[#allocation3 + $0x360] sm:$0xf]  ;;  %v17074_v6 = vld [vmem:[#allocation3 + $0x36c] sm:$0xf0]  ;;  %v15606_v34 = vor.u32 %v17077_v31, %v15603_v39  ;;  %v15542_v31 = vor.u32 %v17061_v59, %v15539_v2  ;;  %v17109_v14 = vld [vmem:[#allocation3 + $0x48c] sm:$0xf] }
 0x8df   : > { %v15578_v25 = vor.u32 %v17074_v6, %v15577_v58  ;;  %v15753_v58 = vld [vmem:[#allocation3 + $0x4c0] sm:$0xf]  ;;  %v17118_v6 = vld [vmem:[#allocation3 + $0x4cc] sm:$0xf0]  ;;  %v17107_v59 = vld [vmem:[#allocation3 + $0x474] sm:$0xf0] }
 0x8e0   : > { %v17273_v8 = vpop.eup %17272  ;;  %v17105_v2 = vld [vmem:[#allocation3 + $0x46c] sm:$0xf] }
 0x8e1   : > { %9907 = vmatpush.bf16.msra.mxu2 %v15402_v51  ;;  %9920 = vmatpush.bf16.msrb.mxu3 %v15406_v54  ;;  %v8440_v19 = vsel %vm3063_vm2, %v17273_v8, 0.0  ;;  %v15586_v51 = vor.u32 %v17075_v22, %v15585_v56  ;;  %v15561_v54 = vld [vmem:[#allocation3 + $0x340] sm:$0xf]  ;;  %v15761_v56 = vld [vmem:[#allocation3 + $0x4c8] sm:$0xf] }
 0x8e2   : > { %9933 = vmatpush.bf16.msrb.mxu0 %v15410_v63  ;;  %9946 = vmatpush.bf16.msrb.mxu1 %v15414_v20  ;;  %v15563_v63 = vld [vmem:[#allocation3 + $0x350] sm:$0xf0]  ;;  %v15569_v20 = vld [vmem:[#allocation3 + $0x348] sm:$0xf]  ;;  %v15562_v29 = vor.u32 %v17070_v7, %v15561_v54  ;;  %v17119_v22 = vld [vmem:[#allocation3 + $0x4d4] sm:$0xf0] }
 0x8e3   : > { %8441 = vadd.xlane.f32.xlu2 %v8440_v19  ;;  %v15566_v8 = vor.u32 %v17068_v55, %v15563_v63  ;;  %v17067_v19 = vld [vmem:[#allocation3 + $0x334] sm:$0xf0]  ;;  %v15762_v54 = vor.u32 %v17119_v22, %v15761_v56  ;;  %v15737_v7 = vld [vmem:[#allocation3 + $0x4a0] sm:$0xf]  ;;  %v17114_v55 = vld [vmem:[#allocation3 + $0x4ac] sm:$0xf0]  ;;  %v15766_v63 = vor.u32 %v17117_v28, %v15763_v30 }
 0x8e4   : > { %9908 = vmatmul.bf16.vlgmr.msra.gmra.mxu2 %v9707_v57  ;;  %9921 = vmatmul.bf16.vlgmr.msrb.gmra.mxu3 %v9707_v57  ;;  %v15554_v60 = vor.u32 %v17067_v19, %v15553_v40  ;;  %v15723_v40 = vld [vmem:[#allocation3 + $0x490] sm:$0xf0]  ;;  %v15729_v19 = vld [vmem:[#allocation3 + $0x488] sm:$0xf]  ;;  %v17099_v22 = vld [vmem:[#allocation3 + $0x434] sm:$0xf0] }
 0x8e5   : > { %10150 = vmatpush.bf16.msrb.mxu2 %v15642_v42  ;;  %10163 = vmatpush.bf16.msra.mxu3 %v15646_v12  ;;  %v17071_v42 = vld [vmem:[#allocation3 + $0x354] sm:$0xf0]  ;;  %v17069_v12 = vld [vmem:[#allocation3 + $0x34c] sm:$0xf]  ;;  %v15681_v56 = vld [vmem:[#allocation3 + $0x428] sm:$0xf] }
 0x8e6   : > { %10176 = vmatpush.bf16.msra.mxu0 %v15650_v5  ;;  %10189 = vmatpush.bf16.msra.mxu1 %v15654_v1  ;;  %v15570_v5 = vor.u32 %v17071_v42, %v15569_v20  ;;  %v15545_v1 = vld [vmem:[#allocation3 + $0x320] sm:$0xf]  ;;  %v15574_v13 = vor.u32 %v17069_v12, %v15571_v0  ;;  %v15739_v20 = vld [vmem:[#allocation3 + $0x4b0] sm:$0xf0]  ;;  %v15745_v42 = vld [vmem:[#allocation3 + $0x4a8] sm:$0xf] }
 0x8e7   : > { %9934 = vmatmul.bf16.vlgmr.msrb.gmra.mxu0 %v9707_v57  ;;  %9947 = vmatmul.bf16.vlgmr.msrb.gmra.mxu1 %v9707_v57  ;;  %v15546_v57 = vor.u32 %v17066_v24, %v15545_v1  ;;  %v17115_v12 = vld [vmem:[#allocation3 + $0x4b4] sm:$0xf0]  ;;  %v17113_v0 = vld [vmem:[#allocation3 + $0x4ac] sm:$0xf]  ;;  %v15721_v24 = vld [vmem:[#allocation3 + $0x480] sm:$0xf] }
 0x8e8   : > { %v15746_v1 = vor.u32 %v17115_v12, %v15745_v42  ;;  %v17097_v28 = vld [vmem:[#allocation3 + $0x42c] sm:$0xf]  ;;  %v15683_v30 = vld [vmem:[#allocation3 + $0x438] sm:$0xf0]  ;;  %v17095_v42 = vld [vmem:[#allocation3 + $0x414] sm:$0xf0] }
 0x8e9   : > { %10151 = vmatpush.bf16.msrb.mxu2 %v15626_v35  ;;  %10164 = vmatpush.bf16.msra.mxu3 %v15630_v61  ;;  %v15529_v35 = vld [vmem:[#allocation3 + $0x300] sm:$0xf]  ;;  %v17062_v61 = vld [vmem:[#allocation3 + $0x30c] sm:$0xf0]  ;;  %v17093_v12 = vld [vmem:[#allocation3 + $0x40c] sm:$0xf] }
 0x8ea   : > { %10177 = vmatpush.bf16.msra.mxu0 %v15634_v9  ;;  %10190 = vmatpush.bf16.msra.mxu1 %v15638_v47  ;;  %v15550_v9 = vor.u32 %v17064_v37, %v15547_v45  ;;  %v15537_v47 = vld [vmem:[#allocation3 + $0x308] sm:$0xf]  ;;  %v17110_v37 = vld [vmem:[#allocation3 + $0x48c] sm:$0xf0] }
 0x8eb   : > { %v15538_v11 = vor.u32 %v17063_v43, %v15537_v47  ;;  %v15713_v43 = vld [vmem:[#allocation3 + $0x468] sm:$0xf] }
 0x8ed   : > { %10152 = vmatpush.bf16.msrb.mxu2 %v15610_v3  ;;  %10165 = vmatpush.bf16.msra.mxu3 %v15614_v36  ;;  %v17122_v3 = vld [vmem:[#allocation3 + $0x4ec] sm:$0xf0]  ;;  %v17120_v36 = vld [vmem:[#allocation3 + $0x4e4] sm:$0xf] }
 0x8ee   : > { %10178 = vmatpush.bf16.msra.mxu0 %v15618_v15  ;;  %10191 = vmatpush.bf16.msra.mxu1 %v15622_v10  ;;  %v15530_v15 = vor.u32 %v17062_v61, %v15529_v35  ;;  %v15534_v10 = vor.u32 %v17060_v62, %v15531_v44  ;;  %v15770_v39 = vor.u32 %v17122_v3, %v15769_v52  ;;  %v17106_v62 = vld [vmem:[#allocation3 + $0x46c] sm:$0xf0]  ;;  %v17104_v44 = vld [vmem:[#allocation3 + $0x464] sm:$0xf]  ;;  %v15715_v52 = vld [vmem:[#allocation3 + $0x478] sm:$0xf0] }
 0x8ef   : > { %v15722_v35 = vor.u32 %v17110_v37, %v15721_v24  ;;  %v15899_v24 = vld [vmem:[#allocation3 + $0x5f0] sm:$0xf0]  ;;  %v15905_v37 = vld [vmem:[#allocation3 + $0x5e8] sm:$0xf] }
 0x8f1   : > { %10153 = vmatpush.bf16.msrb.mxu2 %v15594_v16  ;;  %10166 = vmatpush.bf16.msra.mxu3 %v15598_v17  ;;  %v9956_v16 = vld [vmem:[#allocation2 + $0x3] ss:$2 sm:$0xf]  ;;  %v15774_v17 = vor.u32 %v17120_v36, %v15771_v48  ;;  %v15689_v48 = vld [vmem:[#allocation3 + $0x440] sm:$0xf] }
 0x8f2   : > { %10179 = vmatpush.bf16.msra.mxu0 %v15602_v21  ;;  %10192 = vmatpush.bf16.msra.mxu1 %v15606_v34  ;;  %v15778_v21 = vor.u32 %v17123_v41, %v15777_v23  ;;  %v15782_v34 = vor.u32 %v17121_v49, %v15779_v4  ;;  %v17102_v23 = vld [vmem:[#allocation3 + $0x44c] sm:$0xf0]  ;;  %v17100_v41 = vld [vmem:[#allocation3 + $0x444] sm:$0xf]  ;;  %v15697_v49 = vld [vmem:[#allocation3 + $0x448] sm:$0xf] }
 0x8f3   : > { %v17103_v4 = vld [vmem:[#allocation3 + $0x454] sm:$0xf0] }
 0x8f5   : > { %10154 = vmatpush.bf16.msrb.mxu2 %v15578_v25  ;;  %10167 = vmatpush.bf16.msra.mxu3 %v15582_v53  ;;  %v9957_v25 = vpack.c.bf16 %v9956_v16, %v9956_v16  ;;  %v15754_v53 = vor.u32 %v17118_v6, %v15753_v58  ;;  %v15690_v16 = vor.u32 %v17102_v23, %v15689_v48  ;;  %v15673_v58 = vld [vmem:[#allocation3 + $0x420] sm:$0xf]  ;;  %v17098_v6 = vld [vmem:[#allocation3 + $0x42c] sm:$0xf0] }
 0x8f6   : > { %10180 = vmatpush.bf16.msra.mxu0 %v15586_v51  ;;  %10193 = vmatpush.bf16.msra.mxu1 %v15590_v18  ;;  %v15758_v51 = vor.u32 %v17116_v38, %v15755_v46  ;;  %v17112_v18 = vld [vmem:[#allocation3 + $0x4a4] sm:$0xf]  ;;  %v15675_v46 = vld [vmem:[#allocation3 + $0x430] sm:$0xf0]  ;;  %v15865_v23 = vld [vmem:[#allocation3 + $0x5a0] sm:$0xf] }
 0x8f7   : > { %v17096_v38 = vld [vmem:[#allocation3 + $0x424] sm:$0xf] }
 0x8f9   : > { %10155 = vmatpush.bf16.msrb.mxu2 %v15562_v29  ;;  %10168 = vmatpush.bf16.msra.mxu3 %v15566_v8  ;;  %v15747_v29 = vld [vmem:[#allocation3 + $0x4b8] sm:$0xf0]  ;;  %v15738_v8 = vor.u32 %v17114_v55, %v15737_v7  ;;  %v15682_v7 = vor.u32 %v17099_v22, %v15681_v56  ;;  %v17092_v55 = vld [vmem:[#allocation3 + $0x404] sm:$0xf]  ;;  %v15851_v56 = vld [vmem:[#allocation3 + $0x590] sm:$0xf0] }
 0x8fa   : > { %10181 = vmatpush.bf16.msra.mxu0 %v15570_v5  ;;  %10194 = vmatpush.bf16.msra.mxu1 %v15574_v13  ;;  %v15742_v5 = vor.u32 %v17112_v18, %v15739_v20  ;;  %v17108_v13 = vld [vmem:[#allocation3 + $0x484] sm:$0xf]  ;;  %v15750_v45 = vor.u32 %v17113_v0, %v15747_v29  ;;  %v15659_v18 = vld [vmem:[#allocation3 + $0x410] sm:$0xf0]  ;;  %v15686_v20 = vor.u32 %v17097_v28, %v15683_v30  ;;  %v15667_v0 = vld [vmem:[#allocation3 + $0x418] sm:$0xf0] }
 0x8fb   : > { %v15726_v61 = vor.u32 %v17108_v13, %v15723_v40  ;;  %v15897_v29 = vld [vmem:[#allocation3 + $0x5e0] sm:$0xf]  ;;  %v17155_v13 = vld [vmem:[#allocation3 + $0x5f4] sm:$0xf0]  ;;  %v15857_v22 = vld [vmem:[#allocation3 + $0x588] sm:$0xf] }
 0x8fc   : > { %v17143_v28 = vld [vmem:[#allocation3 + $0x594] sm:$0xf0]  ;;  %v17141_v30 = vld [vmem:[#allocation3 + $0x58c] sm:$0xf] }
 0x8fd   : > { %10156 = vmatpush.bf16.msrb.mxu2 %v15546_v57  ;;  %10169 = vmatpush.bf16.msra.mxu3 %v15550_v9  ;;  %v15731_v57 = vld [vmem:[#allocation3 + $0x498] sm:$0xf0]  ;;  %v15730_v9 = vor.u32 %v17111_v50, %v15729_v19  ;;  %v17153_v19 = vld [vmem:[#allocation3 + $0x5ec] sm:$0xf] }
 0x8fe   : > { %10182 = vmatpush.bf16.msra.mxu0 %v15554_v60  ;;  %10195 = vmatpush.bf16.msra.mxu1 %v15558_v32  ;;  %v15705_v60 = vld [vmem:[#allocation3 + $0x460] sm:$0xf]  ;;  %v15734_v47 = vor.u32 %v17109_v14, %v15731_v57  ;;  %v15707_v32 = vld [vmem:[#allocation3 + $0x470] sm:$0xf0]  ;;  %v15907_v50 = vld [vmem:[#allocation3 + $0x5f8] sm:$0xf0]  ;;  %v15670_v14 = vor.u32 %v17093_v12, %v15667_v0 }
 0x8ff   : > { %v15706_v3 = vor.u32 %v17106_v62, %v15705_v60  ;;  %v15710_v36 = vor.u32 %v17104_v44, %v15707_v32  ;;  %v15881_v60 = vld [vmem:[#allocation3 + $0x5c0] sm:$0xf]  ;;  %v17150_v62 = vld [vmem:[#allocation3 + $0x5cc] sm:$0xf0]  ;;  %v17148_v44 = vld [vmem:[#allocation3 + $0x5c4] sm:$0xf] }
 0x900   : > { %v15883_v32 = vld [vmem:[#allocation3 + $0x5d0] sm:$0xf0]  ;;  %v17139_v12 = vld [vmem:[#allocation3 + $0x574] sm:$0xf0]  ;;  %v17137_v0 = vld [vmem:[#allocation3 + $0x56c] sm:$0xf] }
 0x901   : > { %10157 = vmatpush.bf16.msrb.mxu2 %v15530_v15  ;;  %10170 = vmatpush.bf16.msra.mxu3 %v15534_v10  ;;  %v15714_v15 = vor.u32 %v17107_v59, %v15713_v43  ;;  %v15718_v10 = vor.u32 %v17105_v2, %v15715_v52  ;;  %v15889_v43 = vld [vmem:[#allocation3 + $0x5c8] sm:$0xf]  ;;  %v17151_v59 = vld [vmem:[#allocation3 + $0x5d4] sm:$0xf0]  ;;  %v17149_v2 = vld [vmem:[#allocation3 + $0x5cc] sm:$0xf] }
 0x902   : > { %10183 = vmatpush.bf16.msra.mxu0 %v15538_v11  ;;  %10196 = vmatpush.bf16.msra.mxu1 %v15542_v31  ;;  %v15691_v11 = vld [vmem:[#allocation3 + $0x450] sm:$0xf0]  ;;  %v17101_v31 = vld [vmem:[#allocation3 + $0x44c] sm:$0xf]  ;;  %v15891_v52 = vld [vmem:[#allocation3 + $0x5d8] sm:$0xf0]  ;;  %v15890_v48 = vor.u32 %v17151_v59, %v15889_v43 }
 0x903   : > { %v15809_v43 = vld [vmem:[#allocation3 + $0x528] sm:$0xf]  ;;  %v17131_v59 = vld [vmem:[#allocation3 + $0x534] sm:$0xf0] }
 0x904   : > { %10158 = vmatmul.bf16.vlgmr.msrb.gmra.mxu2 %v9957_v25  ;;  %10171 = vmatmul.bf16.vlgmr.msra.gmra.mxu3 %v9957_v25 }
 0x905   : > { %10400 = vmatpush.bf16.msra.mxu2 %v15770_v39  ;;  %10413 = vmatpush.bf16.msrb.mxu3 %v15774_v17  ;;  %v15699_v39 = vld [vmem:[#allocation3 + $0x458] sm:$0xf0]  ;;  %v15694_v17 = vor.u32 %v17100_v41, %v15691_v11  ;;  %v17146_v41 = vld [vmem:[#allocation3 + $0x5ac] sm:$0xf0]  ;;  %v15894_v11 = vor.u32 %v17149_v2, %v15891_v52  ;;  %v17129_v2 = vld [vmem:[#allocation3 + $0x52c] sm:$0xf] }
 0x906   : > { %10426 = vmatpush.bf16.msrb.mxu0 %v15778_v21  ;;  %10439 = vmatpush.bf16.msrb.mxu1 %v15782_v34  ;;  %v15698_v21 = vor.u32 %v17103_v4, %v15697_v49  ;;  %v15702_v34 = vor.u32 %v17101_v31, %v15699_v39  ;;  %v15867_v49 = vld [vmem:[#allocation3 + $0x5b0] sm:$0xf0]  ;;  %v15873_v4 = vld [vmem:[#allocation3 + $0x5a8] sm:$0xf]  ;;  %v17147_v31 = vld [vmem:[#allocation3 + $0x5b4] sm:$0xf0] }
 0x907   : > { %10184 = vmatmul.bf16.vlgmr.msra.gmra.mxu0 %v9957_v25  ;;  %10197 = vmatmul.bf16.vlgmr.msra.gmra.mxu1 %v9957_v25  ;;  %v15674_v25 = vor.u32 %v17098_v6, %v15673_v58  ;;  %v17145_v39 = vld [vmem:[#allocation3 + $0x5ac] sm:$0xf]  ;;  %v15874_v58 = vor.u32 %v17147_v31, %v15873_v4  ;;  %v15849_v6 = vld [vmem:[#allocation3 + $0x580] sm:$0xf]  ;;  %v15811_v52 = vld [vmem:[#allocation3 + $0x538] sm:$0xf0] }
 0x908   : > { %v17127_v4 = vld [vmem:[#allocation3 + $0x514] sm:$0xf0]  ;;  %v17125_v31 = vld [vmem:[#allocation3 + $0x50c] sm:$0xf] }
 0x909   : > { %10401 = vmatpush.bf16.msra.mxu2 %v15754_v53  ;;  %10414 = vmatpush.bf16.msrb.mxu3 %v15758_v51  ;;  %v15657_v53 = vld [vmem:[#allocation3 + $0x400] sm:$0xf]  ;;  %v17094_v51 = vld [vmem:[#allocation3 + $0x40c] sm:$0xf0] }
 0x90a   : > { %10427 = vmatpush.bf16.msrb.mxu0 %v15762_v54  ;;  %10440 = vmatpush.bf16.msrb.mxu1 %v15766_v63  ;;  %v15678_v54 = vor.u32 %v17096_v38, %v15675_v46  ;;  %v15665_v63 = vld [vmem:[#allocation3 + $0x408] sm:$0xf]  ;;  %v17142_v38 = vld [vmem:[#allocation3 + $0x58c] sm:$0xf0] }
 0x90b   : > { %v15666_v40 = vor.u32 %v17095_v42, %v15665_v63  ;;  %v15841_v42 = vld [vmem:[#allocation3 + $0x568] sm:$0xf] }
 0x90d   : > { %10402 = vmatpush.bf16.msra.mxu2 %v15738_v8  ;;  %10415 = vmatpush.bf16.msrb.mxu3 %v15742_v5  ;;  %v17154_v8 = vld [vmem:[#allocation3 + $0x5ec] sm:$0xf0]  ;;  %v17152_v5 = vld [vmem:[#allocation3 + $0x5e4] sm:$0xf] }
 0x90e   : > { %10428 = vmatpush.bf16.msrb.mxu0 %v15746_v1  ;;  %10441 = vmatpush.bf16.msrb.mxu1 %v15750_v45  ;;  %v15658_v1 = vor.u32 %v17094_v51, %v15657_v53  ;;  %v15662_v45 = vor.u32 %v17092_v55, %v15659_v18  ;;  %v15898_v57 = vor.u32 %v17154_v8, %v15897_v29  ;;  %v17138_v55 = vld [vmem:[#allocation3 + $0x56c] sm:$0xf0]  ;;  %v17136_v18 = vld [vmem:[#allocation3 + $0x564] sm:$0xf]  ;;  %v15843_v29 = vld [vmem:[#allocation3 + $0x578] sm:$0xf0] }
 0x90f   : > { %v15850_v53 = vor.u32 %v17142_v38, %v15849_v6  ;;  %v10456_v6 = vld [vmem:[#allocation2 + $0x5] ss:$2 sm:$0xf] }
 0x910   : > { %v10457_v38 = vpack.c.bf16 %v10456_v6, %v10456_v6  ;;  %v17158_v6 = vld [vmem:[#allocation6 + $0x10] sm:$0xff] }
 0x911   : > { %10403 = vmatpush.bf16.msra.mxu2 %v15722_v35  ;;  %10416 = vmatpush.bf16.msrb.mxu3 %v15726_v61  ;;  %v10206_v35 = vld [vmem:[#allocation2 + $0x4] ss:$2 sm:$0xf]  ;;  %v15902_v61 = vor.u32 %v17152_v5, %v15899_v24  ;;  %v15817_v24 = vld [vmem:[#allocation3 + $0x540] sm:$0xf] }
 0x912   : > { %10429 = vmatpush.bf16.msrb.mxu0 %v15730_v9  ;;  %10442 = vmatpush.bf16.msrb.mxu1 %v15734_v47  ;;  %v15906_v9 = vor.u32 %v17155_v13, %v15905_v37  ;;  %v15910_v47 = vor.u32 %v17153_v19, %v15907_v50  ;;  %v17134_v37 = vld [vmem:[#allocation3 + $0x54c] sm:$0xf0]  ;;  %v17132_v13 = vld [vmem:[#allocation3 + $0x544] sm:$0xf]  ;;  %v15825_v19 = vld [vmem:[#allocation3 + $0x548] sm:$0xf] }
 0x913   : > { %v17135_v50 = vld [vmem:[#allocation3 + $0x554] sm:$0xf0] }
 0x915   : > { %10404 = vmatpush.bf16.msra.mxu2 %v15706_v3  ;;  %10417 = vmatpush.bf16.msrb.mxu3 %v15710_v36  ;;  %v10207_v3 = vpack.c.bf16 %v10206_v35, %v10206_v35  ;;  %v15882_v36 = vor.u32 %v17150_v62, %v15881_v60  ;;  %v15818_v35 = vor.u32 %v17134_v37, %v15817_v24  ;;  %v15801_v60 = vld [vmem:[#allocation3 + $0x520] sm:$0xf]  ;;  %v17130_v62 = vld [vmem:[#allocation3 + $0x52c] sm:$0xf0] }
 0x916   : > { %10430 = vmatpush.bf16.msrb.mxu0 %v15714_v15  ;;  %10443 = vmatpush.bf16.msrb.mxu1 %v15718_v10  ;;  %v15886_v15 = vor.u32 %v17148_v44, %v15883_v32  ;;  %v17144_v10 = vld [vmem:[#allocation3 + $0x5a4] sm:$0xf]  ;;  %v15803_v32 = vld [vmem:[#allocation3 + $0x530] sm:$0xf0] }
 0x917   : > { %v17128_v44 = vld [vmem:[#allocation3 + $0x524] sm:$0xf] }
 0x919   : > { %10405 = vmatpush.bf16.msra.mxu2 %v15690_v16  ;;  %10418 = vmatpush.bf16.msrb.mxu3 %v15694_v17  ;;  %v15875_v16 = vld [vmem:[#allocation3 + $0x5b8] sm:$0xf0]  ;;  %v15866_v17 = vor.u32 %v17146_v41, %v15865_v23  ;;  %v17126_v23 = vld [vmem:[#allocation3 + $0x50c] sm:$0xf0]  ;;  %v17124_v41 = vld [vmem:[#allocation3 + $0x504] sm:$0xf] }
 0x91a   : > { %10431 = vmatpush.bf16.msrb.mxu0 %v15698_v21  ;;  %10444 = vmatpush.bf16.msrb.mxu1 %v15702_v34  ;;  %v15870_v21 = vor.u32 %v17144_v10, %v15867_v49  ;;  %v17140_v34 = vld [vmem:[#allocation3 + $0x584] sm:$0xf]  ;;  %v15878_v46 = vor.u32 %v17145_v39, %v15875_v16  ;;  %v15814_v10 = vor.u32 %v17129_v2, %v15811_v52  ;;  %v15793_v49 = vld [vmem:[#allocation3 + $0x508] sm:$0xf]  ;;  %v15795_v39 = vld [vmem:[#allocation3 + $0x518] sm:$0xf0] }
 0x91b   : > { %v15854_v51 = vor.u32 %v17140_v34, %v15851_v56  ;;  %v17179_v2 = vld [vmem:[#allocation6 + $0xb8] sm:$0xff] }
 0x91c   : > { %v17187_v52 = vld [vmem:[#allocation6 + $0xf8] sm:$0xff] }
 0x91d   : > { %10406 = vmatpush.bf16.msra.mxu2 %v15674_v25  ;;  %10419 = vmatpush.bf16.msrb.mxu3 %v15678_v54  ;;  %v15859_v25 = vld [vmem:[#allocation3 + $0x598] sm:$0xf0]  ;;  %v15858_v54 = vor.u32 %v17143_v28, %v15857_v22 }
 0x91e   : > { %10432 = vmatpush.bf16.msrb.mxu0 %v15682_v7  ;;  %10445 = vmatpush.bf16.msrb.mxu1 %v15686_v20  ;;  %v15833_v7 = vld [vmem:[#allocation3 + $0x560] sm:$0xf]  ;;  %v15862_v63 = vor.u32 %v17141_v30, %v15859_v25  ;;  %v15835_v20 = vld [vmem:[#allocation3 + $0x570] sm:$0xf0] }
 0x91f   : > { %v15834_v8 = vor.u32 %v17138_v55, %v15833_v7  ;;  %v15838_v5 = vor.u32 %v17136_v18, %v15835_v20 }
 0x921   : > { %10407 = vmatpush.bf16.msra.mxu2 %v15658_v1  ;;  %10420 = vmatpush.bf16.msrb.mxu3 %v15662_v45  ;;  %v15842_v1 = vor.u32 %v17139_v12, %v15841_v42  ;;  %v15846_v45 = vor.u32 %v17137_v0, %v15843_v29 }
 0x922   : > { %10433 = vmatpush.bf16.msrb.mxu0 %v15666_v40  ;;  %10446 = vmatpush.bf16.msrb.mxu1 %v15670_v14  ;;  %v15819_v40 = vld [vmem:[#allocation3 + $0x550] sm:$0xf0]  ;;  %v17133_v14 = vld [vmem:[#allocation3 + $0x54c] sm:$0xf] }
 0x924   : > { %10408 = vmatmul.bf16.vlgmr.msra.gmra.mxu2 %v10207_v3  ;;  %10421 = vmatmul.bf16.vlgmr.msrb.gmra.mxu3 %v10207_v3 }
 0x925   : > { %10650 = vmatpush.bf16.msrb.mxu2 %v15898_v57  ;;  %10663 = vmatpush.bf16.msra.mxu3 %v15902_v61  ;;  %v15827_v57 = vld [vmem:[#allocation3 + $0x558] sm:$0xf0]  ;;  %v15822_v61 = vor.u32 %v17132_v13, %v15819_v40 }
 0x926   : > { %10676 = vmatpush.bf16.msra.mxu0 %v15906_v9  ;;  %10689 = vmatpush.bf16.msra.mxu1 %v15910_v47  ;;  %v15826_v9 = vor.u32 %v17135_v50, %v15825_v19  ;;  %v15830_v47 = vor.u32 %v17133_v14, %v15827_v57 }
 0x927   : > { %10434 = vmatmul.bf16.vlgmr.msrb.gmra.mxu0 %v10207_v3  ;;  %10447 = vmatmul.bf16.vlgmr.msrb.gmra.mxu1 %v10207_v3  ;;  %v15802_v3 = vor.u32 %v17130_v62, %v15801_v60 }
 0x929   : > { %10651 = vmatpush.bf16.msrb.mxu2 %v15882_v36  ;;  %10664 = vmatpush.bf16.msra.mxu3 %v15886_v15  ;;  %v15806_v36 = vor.u32 %v17128_v44, %v15803_v32  ;;  %v15810_v15 = vor.u32 %v17131_v59, %v15809_v43  ;;  %v17163_v32 = vld [vmem:[#allocation6 + $0x38] sm:$0xff] }
 0x92a   : > { %10677 = vmatpush.bf16.msra.mxu0 %v15890_v48  ;;  %10690 = vmatpush.bf16.msra.mxu1 %v15894_v11  ;;  %v15785_v48 = vld [vmem:[#allocation3 + $0x500] sm:$0xf]  ;;  %v15787_v11 = vld [vmem:[#allocation3 + $0x510] sm:$0xf0]  ;;  %v17171_v43 = vld [vmem:[#allocation6 + $0x78] sm:$0xff] }
 0x92b   : > { %v15786_v16 = vor.u32 %v17126_v23, %v15785_v48  ;;  %v17178_v48 = vld [vmem:[#allocation6 + $0xb0] sm:$0xff]  ;;  %v17161_v23 = vld [vmem:[#allocation6 + $0x28] sm:$0xff] }
 0x92d   : > { %10652 = vmatpush.bf16.msrb.mxu2 %v15866_v17  ;;  %10665 = vmatpush.bf16.msra.mxu3 %v15870_v21  ;;  %v15790_v17 = vor.u32 %v17124_v41, %v15787_v11  ;;  %v15794_v21 = vor.u32 %v17127_v4, %v15793_v49  ;;  %v17160_v41 = vld [vmem:[#allocation6 + $0x20] sm:$0xff]  ;;  %v17169_v11 = vld [vmem:[#allocation6 + $0x68] sm:$0xff] }
 0x92e   : > { %10678 = vmatpush.bf16.msra.mxu0 %v15874_v58  ;;  %10691 = vmatpush.bf16.msra.mxu1 %v15878_v46  ;;  %v15798_v58 = vor.u32 %v17125_v31, %v15795_v39  ;;  %v17177_v49 = vld [vmem:[#allocation6 + $0xa8] sm:$0xff]  ;;  %v17159_v39 = vld [vmem:[#allocation6 + $0x18] sm:$0xff] }
 0x931   : > { %10653 = vmatpush.bf16.msrb.mxu2 %v15850_v53  ;;  %10666 = vmatpush.bf16.msra.mxu3 %v15854_v51 }
 0x932   : > { %10679 = vmatpush.bf16.msra.mxu0 %v15858_v54  ;;  %10692 = vmatpush.bf16.msra.mxu1 %v15862_v63 }
 0x935   : > { %10654 = vmatpush.bf16.msrb.mxu2 %v15834_v8  ;;  %10667 = vmatpush.bf16.msra.mxu3 %v15838_v5 }
 0x936   : > { %10680 = vmatpush.bf16.msra.mxu0 %v15842_v1  ;;  %10693 = vmatpush.bf16.msra.mxu1 %v15846_v45 }
 0x939   : > { %10655 = vmatpush.bf16.msrb.mxu2 %v15818_v35  ;;  %10668 = vmatpush.bf16.msra.mxu3 %v15822_v61 }
 0x93a   : > { %10681 = vmatpush.bf16.msra.mxu0 %v15826_v9  ;;  %10694 = vmatpush.bf16.msra.mxu1 %v15830_v47 }
 0x93d   : > { %10656 = vmatpush.bf16.msrb.mxu2 %v15802_v3  ;;  %10669 = vmatpush.bf16.msra.mxu3 %v15806_v36  ;;  %v17162_v36 = vld [vmem:[#allocation6 + $0x30] sm:$0xff] }
 0x93e   : > { %10682 = vmatpush.bf16.msra.mxu0 %v15810_v15  ;;  %10695 = vmatpush.bf16.msra.mxu1 %v15814_v10  ;;  %v17170_v15 = vld [vmem:[#allocation6 + $0x70] sm:$0xff] }
 0x93f   : > { %v17186_v10 = vld [vmem:[#allocation6 + $0xf0] sm:$0xff] }
 0x941   : > { %10657 = vmatpush.bf16.msrb.mxu2 %v15786_v16  ;;  %10670 = vmatpush.bf16.msra.mxu3 %v15790_v17  ;;  %v9477_v34 = vpop.f32.mrf.mxu0  ;;  %v9490_v46 = vpop.f32.mrf.mxu1  ;;  %v17185_v16 = vld [vmem:[#allocation6 + $0xe8] sm:$0xff]  ;;  %v17168_v17 = vld [vmem:[#allocation6 + $0x60] sm:$0xff] }
 0x942   : > { %10683 = vmatpush.bf16.msra.mxu0 %v15794_v21  ;;  %10696 = vmatpush.bf16.msra.mxu1 %v15798_v58  ;;  %v17176_v21 = vld [vmem:[#allocation6 + $0xa0] sm:$0xff] }
 0x944   : > { %10658 = vmatmul.bf16.vlgmr.msrb.gmra.mxu2 %v10457_v38  ;;  %10671 = vmatmul.bf16.vlgmr.msra.gmra.mxu3 %v10457_v38 }
 0x945   : > { %10684 = vmatmul.bf16.vlgmr.msra.gmra.mxu0 %v10457_v38  ;;  %10697 = vmatmul.bf16.vlgmr.msra.gmra.mxu1 %v10457_v38  ;;  %v17184_v38 = vld [vmem:[#allocation6 + $0xe0] sm:$0xff] }
 0x946   : > { %v9451_v56 = vpop.f32.mrf.mxu2  ;;  %v9464_v22 = vpop.f32.mrf.mxu3  ;;  %10864 = vmatpush.bf16.msrb.mxu3 %v17163_v32  ;;  %10803 = vmatpush.bf16.msra.mxu2 %v17171_v43 }
 0x947   : > { %10943 = vmatpush.bf16.msrb.mxu0 %v17179_v2  ;;  %11023 = vmatpush.bf16.msrb.mxu1 %v17187_v52 }
 0x949   : > { %v9479_v28 = vpop.f32.mrf.mxu0  ;;  %v9492_v30 = vpop.f32.mrf.mxu1 }
 0x94a   : > { %10865 = vmatpush.bf16.msrb.mxu3 %v17162_v36  ;;  %10804 = vmatpush.bf16.msra.mxu2 %v17170_v15  ;;  %v17157_v30 = vld [vmem:[#allocation6 + $0x8] sm:$0xff]  ;;  %v17267_v15 = vld [vmem:[%s19793_s4] ss:$0 sm:$0xff] }
 0x94b   : > { %10944 = vmatpush.bf16.msrb.mxu0 %v17178_v48  ;;  %11024 = vmatpush.bf16.msrb.mxu1 %v17186_v10 }
 0x94e   : > { %v9453_v25 = vpop.f32.mrf.mxu2  ;;  %v9466_v53 = vpop.f32.mrf.mxu3  ;;  %10866 = vmatpush.bf16.msrb.mxu3 %v17161_v23  ;;  %10805 = vmatpush.bf16.msra.mxu2 %v17169_v11 }
 0x94f   : > { %10945 = vmatpush.bf16.msrb.mxu0 %v17177_v49  ;;  %11025 = vmatpush.bf16.msrb.mxu1 %v17185_v16  ;;  %v17183_v25 = vld [vmem:[#allocation6 + $0xd8] sm:$0xff]  ;;  %v17166_v53 = vld [vmem:[#allocation6 + $0x50] sm:$0xff]  ;;  %v17191_v16 = vld [vmem:[%s19796_s7 + $0x18] sm:$0xff] }
 0x951   : > { %v9689_v51 = vpop.f32.mrf.mxu0  ;;  %v9702_v54 = vpop.f32.mrf.mxu1 }
 0x952   : > { %v9690_v7 = vadd.f32 %v9689_v51, %v9477_v34  ;;  %v9703_v55 = vadd.f32 %v9702_v54, %v9490_v46  ;;  %10867 = vmatpush.bf16.msrb.mxu3 %v17160_v41  ;;  %10806 = vmatpush.bf16.msra.mxu2 %v17168_v17  ;;  %v17167_v46 = vld [vmem:[#allocation6 + $0x58] sm:$0xff]  ;;  %v17174_v51 = vld [vmem:[#allocation6 + $0x90] sm:$0xff]  ;;  %v17190_v17 = vld [vmem:[%s19796_s7 + $0x10] sm:$0xff] }
 0x953   : > { %10946 = vmatpush.bf16.msrb.mxu0 %v17176_v21  ;;  %11026 = vmatpush.bf16.msrb.mxu1 %v17184_v38  ;;  %v17189_v21 = vld [vmem:[%s19796_s7 + $0x8] sm:$0xff] }
 0x956   : > { %v9663_v18 = vpop.f32.mrf.mxu2  ;;  %v9676_v63 = vpop.f32.mrf.mxu3  ;;  %10868 = vmatpush.bf16.msrb.mxu3 %v17159_v39  ;;  %10807 = vmatpush.bf16.msra.mxu2 %v17167_v46  ;;  %v17192_v39 = vld [vmem:[%s19796_s7 + $0x20] sm:$0xff] }
 0x957   : > { %v9664_v20 = vadd.f32 %v9663_v18, %v9451_v56  ;;  %v9677_v42 = vadd.f32 %v9676_v63, %v9464_v22  ;;  %v17175_v56 = vld [vmem:[#allocation6 + $0x98] sm:$0xff]  ;;  %11027 = vmatpush.bf16.msrb.mxu1 %v17183_v25  ;;  %v17165_v63 = vld [vmem:[#allocation6 + $0x48] sm:$0xff]  ;;  %v11037_v25 = vld [vmem:[%s19795_s6] sm:$0x1] }
 0x958   : > { %10947 = vmatpush.bf16.msrb.mxu0 %v17175_v56 }
 0x959   : > { %v9691_v12 = vpop.f32.mrf.mxu0  ;;  %v9704_v0 = vpop.f32.mrf.mxu1 }
 0x95a   : > { %10869 = vmatpush.bf16.msrb.mxu3 %v17158_v6  ;;  %10808 = vmatpush.bf16.msra.mxu2 %v17166_v53  ;;  %v17164_v12 = vld [vmem:[#allocation6 + $0x40] sm:$0xff] }
 0x95b   : > { %v17172_v0 = vld [vmem:[#allocation6 + $0x80] sm:$0xff] }
 0x95c   : > { %10948 = vmatpush.bf16.msrb.mxu0 %v17174_v51 }
 0x95e   : > { %v9665_v29 = vpop.f32.mrf.mxu2  ;;  %v9678_v8 = vpop.f32.mrf.mxu3  ;;  %10870 = vmatpush.bf16.msrb.mxu3 %v17157_v30  ;;  %10809 = vmatpush.bf16.msra.mxu2 %v17165_v63  ;;  %v11057_v63 = vld [vmem:[%s19797_s8] sm:$0x1] }
 0x95f   : > { %v17180_v29 = vld [vmem:[#allocation6 + $0xc0] sm:$0xff]  ;;  %v17195_v8 = vld [vmem:[%s19796_s7 + $0x38] sm:$0xff] }
 0x962   : > { %10810 = vmatpush.bf16.msra.mxu2 %v17164_v12 }
 0x964   : > { %v9935_v5 = vpop.f32.mrf.mxu0  ;;  %v9948_v24 = vpop.f32.mrf.mxu1 }
 0x965   : > { %v19694_v1 = vadd.f32 %v9935_v5, %v9690_v7  ;;  %v19696_v37 = vadd.f32 %v9948_v24, %v9703_v55  ;;  %v17156_v7 = vld [vmem:[#allocation6] sm:$0xff]  ;;  %v17182_v55 = vld [vmem:[#allocation6 + $0xd0] sm:$0xff] }
 0x966   : > { %10871 = vmatpush.bf16.msrb.mxu3 %v17156_v7  ;;  %11028 = vmatpush.bf16.msrb.mxu1 %v17182_v55  ;;  %v17194_v24 = vld [vmem:[%s19796_s7 + $0x30] sm:$0xff] }
 0x967   : > { %v9909_v13 = vpop.f32.mrf.mxu2  ;;  %v9922_v40 = vpop.f32.mrf.mxu3  ;;  %11106 = vmatpush.bf16.msrb.mxu2 %v17195_v8 }
 0x968   : > { %v19698_v45 = vadd.f32 %v9909_v13, %v9664_v20  ;;  %v19700_v19 = vadd.f32 %v9922_v40, %v9677_v42  ;;  %v17173_v20 = vld [vmem:[#allocation6 + $0x88] sm:$0xff] }
 0x969   : > { %10949 = vmatpush.bf16.msrb.mxu0 %v17173_v20  ;;  %v17181_v42 = vld [vmem:[#allocation6 + $0xc8] sm:$0xff] }
 0x96a   : > { %11029 = vmatpush.bf16.msrb.mxu1 %v17181_v42 }
 0x96b   : > { %11107 = vmatpush.bf16.msrb.mxu2 %v17194_v24 }
 0x96c   : > { %v9937_v50 = vpop.f32.mrf.mxu0  ;;  %v9950_v14 = vpop.f32.mrf.mxu1 }
 0x96d   : > { %10950 = vmatpush.bf16.msrb.mxu0 %v17172_v0 }
 0x96e   : > { %11030 = vmatpush.bf16.msrb.mxu1 %v17180_v29 }
 0x96f   : > { %v9911_v57 = vpop.f32.mrf.mxu2  ;;  %v9924_v35 = vpop.f32.mrf.mxu3 }
 0x984   : > { %v19702_v61 = vpop.f32.mrf.mxu0  ;;  %v19704_v9 = vpop.f32.mrf.mxu1 }
 0x985   : > { %v10204_v5 = vadd.f32 %v19702_v61, %v19694_v1  ;;  %v10205_v13 = vadd.f32 %v19704_v9, %v19696_v37 }
 0x987   : > { %v19706_v60 = vpop.f32.mrf.mxu2  ;;  %v19708_v62 = vpop.f32.mrf.mxu3 }
 0x988   : > { %v10202_v1 = vadd.f32 %v19706_v60, %v19698_v45 }
 0x98c   : > { %v10187_v44 = vpop.f32.mrf.mxu0  ;;  %v10200_v47 = vpop.f32.mrf.mxu1 }
 0x98d   : > { %v17193_v44 = vld [vmem:[%s19796_s7 + $0x28] sm:$0xff]  ;;  %v10203_v47 = vadd.f32 %v19708_v62, %v19700_v19 }
 0x98e   : > { %11108 = vmatpush.bf16.msrb.mxu2 %v17193_v44 }
 0x98f   : > { %v10161_v59 = vpop.f32.mrf.mxu2  ;;  %v10174_v3 = vpop.f32.mrf.mxu3 }
 0x992   : > { %11109 = vmatpush.bf16.msrb.mxu2 %v17192_v39 }
 0x996   : > { %11110 = vmatpush.bf16.msrb.mxu2 %v17191_v16 }
 0x99a   : > { %11111 = vmatpush.bf16.msrb.mxu2 %v17190_v17 }
 0x99e   : > { %11112 = vmatpush.bf16.msrb.mxu2 %v17189_v21 }
 0x9a4   : > { %v10435_v4 = vpop.f32.mrf.mxu0  ;;  %v10448_v31 = vpop.f32.mrf.mxu1 }
 0x9a5   : > { %v10454_v40 = vadd.f32 %v10435_v4, %v10204_v5  ;;  %v10455_v50 = vadd.f32 %v10448_v31, %v10205_v13 }
 0x9a7   : > { %v10409_v58 = vpop.f32.mrf.mxu2  ;;  %v10422_v34 = vpop.f32.mrf.mxu3 }
 0x9a8   : > { %v10452_v32 = vadd.f32 %v10409_v58, %v10202_v1  ;;  %v10453_v37 = vadd.f32 %v10422_v34, %v10203_v47  ;;  %v17188_v58 = vld [vmem:[%s19796_s7] sm:$0xff] }
 0x9a9   : > { %11113 = vmatpush.bf16.msrb.mxu2 %v17188_v58 }
 0x9ac   : > { %v10437_v22 = vpop.f32.mrf.mxu0  ;;  %v10450_v28 = vpop.f32.mrf.mxu1 }
 0x9af   : > { %v10411_v54 = vpop.f32.mrf.mxu2  ;;  %v10424_v18 = vpop.f32.mrf.mxu3 }
 0x9c2   : > { %v10685_v14 = vpop.f32.mrf.mxu0  ;;  %v10698_v35 = vpop.f32.mrf.mxu1 }
 0x9c3   : > { %v10704_v57 = vadd.f32 %v10685_v14, %v10454_v40  ;;  %v10705_v61 = vadd.f32 %v10698_v35, %v10455_v50  ;;  %v5757_v40 = vpop.xlane.xlu2 %5756  ;;  %v3072_v14 = vpop.xlane.xlu0 %3071 }
 0x9c5   : > { %v10707_v43 = vmax.f32 %v10704_v57, %v10705_v61 }
 0x9c7   : > { %v10659_v9 = vpop.f32.mrf.mxu2  ;;  %v10672_v2 = vpop.f32.mrf.mxu3 }
 0x9c8   : > { %v10702_v59 = vadd.f32 %v10659_v9, %v10452_v32  ;;  %v10703_v52 = vadd.f32 %v10672_v2, %v10453_v37 }
 0x9ca   : > { %v10687_v3 = vpop.f32.mrf.mxu0  ;;  %v10706_v36 = vmax.f32 %v10702_v59, %v10703_v52  ;;  %v10700_v48 = vpop.f32.mrf.mxu1 }
 0x9cb   : > { %v8442_v50 = vpop.xlane.xlu2 %8441 }
 0x9cc   : > { %v10708_v45 = vmax.f32 %v10706_v36, %v10707_v43 }
 0x9ce   : > { %v10713_v60 = vadd.f32 %v17267_v15, %v10708_v45 }
 0x9cf   : > { %v10661_v23 = vpop.f32.mrf.mxu2  ;;  %v10674_v41 = vpop.f32.mrf.mxu3 }
 0x9d0   : > { %v10714_v19 = vmax.f32 %v10713_v60, 0.0 }
 0x9d2   : > { %v10715_v62 = vpack.c.bf16 %v10714_v19, %v10714_v19 }
 0x9d4   : > { %v10749_v10 = vunpack.c.l.b16 %v10715_v62  ;;  %10872 = vmatmul.bf16.vlgmr.msrb.gmra.mxu3 %v10715_v62 }
 0x9d6   : > { %v10750_v11 = vpack.c.b16 %v10749_v10, %v10749_v10 }
 0x9d8   : > { %v10752_v49 = vshrl.u32 %v10750_v11, 16  ;;  %v10893_v4 = vrot.slane %v10750_v11, 1 }
 0x9da   : > { %10811 = vmatmul.bf16.vlgmr.msra.gmra.mxu2 %v10752_v49  ;;  %10951 = vmatmul.bf16.vlgmr.msrb.gmra.mxu0 %v10893_v4  ;;  %v10973_v31 = vrot.slane %v10752_v49, 1 }
 0x9dc   : > { %11031 = vmatmul.bf16.vlgmr.msrb.gmra.mxu1 %v10973_v31 }
 0xa57   : > { %v10873_v6 = vpop.f32.mrf.mxu3  ;;  %v10952_v38 = vpop.f32.mrf.mxu0 }
 0xa59   : > { %v11032_v34 = vpop.f32.mrf.mxu1 }
 0xa5d   : > { %v10812_v46 = vpop.f32.mrf.mxu2 }
 0xa5e   : > { %v10874_v56 = vadd.f32 %v10873_v6, %v10812_v46 }
 0xa5f   : > { %v10875_v22 = vpop.f32.mrf.mxu3  ;;  %v10954_v28 = vpop.f32.mrf.mxu0 }
 0xa60   : > { %v10956_v30 = vadd.f32 %v10952_v38, %v10874_v56 }
 0xa61   : > { %v11034_v53 = vpop.f32.mrf.mxu1 }
 0xa62   : > { %v11036_v51 = vadd.f32 %v11032_v34, %v10956_v30 }
 0xa64   : > { %v11038_v54 = vadd.f32 %v11037_v25, %v11036_v51 }
 0xa65   : > { %v10814_v7 = vpop.f32.mrf.mxu2 }
 0xa66   : > { %v11039_v55 = vmax.f32 %v11038_v54, 0.0 }
 0xa68   : > { %v11040_v18 = vpack.c.bf16 %v11039_v55, %v11039_v55 }
 0xa6a   : > { %11114 = vmatmul.bf16.vlgmr.msrb.gmra.mxu2 %v11040_v18 }
 0xaed   : > { %v11115_v20 = vpop.f32.mrf.mxu2 }
 0xaee   : > { %v11116_v42 = vadd.f32 %v11115_v20, %v11057_v63 }
 0xaf0   : > { %v11119_v12 = vsel %vm3063_vm2, %v11116_v42, -inf }
 0xaf1   : > { %11120 = vmax.xlane.f32.xlu1 %v11119_v12 }
 0xaf5   : > { %v11117_v0 = vpop.f32.mrf.mxu2 }
 0xb64   : > { %v11121_v29 = vpop.xlane.xlu1 %11120 }
 0xb65   : > { %v11122_v8 = vsub.f32 %v11116_v42, %v11121_v29 }
 0xb67   : > { %v11123_v5 = vmul.f32 1.442695, %v11122_v8 }
 0xb69   : > { %17274 = vpow2.f32 %v11123_v5 }
 0xb6a   : > { %17276 = vlog2.f32 %v8442_v50 }
 0xb6b   : > { %17278 = vlog2.f32 %v5757_v40 }
 0xb6c   : > { %17280 = vlog2.f32 %v3072_v14 }
 0xb6f   : > { %v17275_v24 = vpop.eup %17274 }
 0xb70   : > { %v11125_v13 = vsel %vm3063_vm2, %v17275_v24, 0.0  ;;  %v17277_v57 = vpop.eup %17276 }
 0xb71   : > { %11126 = vadd.xlane.f32.xlu1 %v11125_v13  ;;  %v17279_v35 = vpop.eup %17278  ;;  %v8444_v61 = vmul.f32 0.6931472, %v17277_v57 }
 0xb72   : > { %v17281_v1 = vpop.eup %17280  ;;  %v5759_v47 = vmul.f32 0.6931472, %v17279_v35 }
 0xb73   : > { %v3074_v32 = vmul.f32 0.6931472, %v17281_v1  ;;  %v8445_v43 = vsub.f32 %v19690_v33, %v8444_v61 }
 0xb74   : > { %v5760_v37 = vsub.f32 %v19139_v26, %v5759_v47 }
 0xb75   : > { %v3075_v59 = vsub.f32 %v19619_v27, %v3074_v32  ;;  %v11135_v52 = vrot.slane %v8445_v43, 6 }
 0xb76   : > { %v11132_v3 = vrot.slane %v5760_v37, 7 }
 0xb78   : > { %v11140_v33 = vsel %vm3063_vm2, %v3075_v59, %v11132_v3 }
 0xb79   : > { %v11142_v15 = vsel %vm11141_vm3, %v11140_v33, %v11135_v52 }
 0xbe4   : > { %v11127_v44 = vpop.xlane.xlu1 %11126 }
 0xbe5   : > { %17282 = vlog2.f32 %v11127_v44 }
 0xbeb   : > { %v17283_v9 = vpop.eup %17282 }
 0xbec   : > { %v11129_v2 = vmul.f32 0.6931472, %v17283_v9 }
 0xbee   : > { %v11130_v36 = vsub.f32 %v11122_v8, %v11129_v2 }
 0xbf0   : > { %v11138_v26 = vrot.slane %v11130_v36, 5 }
 0xbf2   : > { %v11144_v48 = vsel %vm11143_vm4, %v11142_v15, %v11138_v26 }
 0xbf3   : > { %11145 = vst [vmem:[%s362_s26] sm:$0xf] %v11144_v48 }
 0xbf4   : > { %17371 = shalt.err (!%p17368_p8)
}
 0xbf5   : > { %17204 = dma.vmem_to_hbm [thread:$0]  (%p17510_p5), %s11160_s27, 64, %s11162_s28, %s11147_s24  }
 0xbf6 PF: > { %p17221_p9 = scmp.ge.s32.totalorder %s17414_s12, 2  ;;  %s11173_s16 = sand.u32 1, %s17402_s30  }
 0xbf7   : > { %s11174_s23 = scalar_lea.sflag [#allocation5], %s11173_s16 }
 0xbf8   : > { %p17214_p10 = pnand %p17221_p9, %p17514_p6 }
 0xbfa   : > { %p17215_p11 = pneg %p17214_p10 }
 0xbfc   : > { %17397 = dma.done.wait (%p17215_p11), %s11174_s23, 64  }
 0xbfd   : > { %17399 = vsyncadd (%p17215_p11), %s11174_s23, 4294967232  ;;  %p21_p12 = scmp.ge.s32.totalorder %s17497_s15, 4   ;;  %s19804_s30 = smov %s17406_s10 }
 0xbfe   : > { %s19805_s10 = smov %s17410_s11  ;;  %s19806_s11 = smov %s17508_s18 }
 0xbff   : > { %s19807_s12 = smov %s17497_s15  ;;  %23 = sbr.rel (!%p21_p12) target bundleno = 7 (0x7), region = 165 }
 0xc04   :  { %11180 = vsyncpa [#allocation4], 1 }
 0xc05   :  { %11182 = vsyncpa [#allocation4 + $0x1], 1 }
 0xc06   :  { %11183 = vsyncpa [#allocation7], 1 }
 0xc07   :  { %11184 = vsyncpa [#allocation5], 1 }
 0xc08   :  { %11186 = vsyncpa [#allocation5 + $0x1], 1 }

</bundles_post_ra>
